<compile_context>
chip_gen: v7x
topology: tpu7x:2x2x1
jax: 0.10.0
libtpu: 0.0.40
codegen_flags: <defaults>
</compile_context>

<pallas_src>
import functools

import jax
import jax.numpy as jnp
import numpy as np
from jax.experimental import pallas as pl
from jax.experimental.pallas import tpu as pltpu


# ---------------------------------------------------------------------------
# Pallas kernels
# ---------------------------------------------------------------------------
def _matmul_bias_kernel(a_ref, b_ref, bias_ref, o_ref, *, activation=None):
    acc = (
        jnp.dot(a_ref[...], b_ref[...], preferred_element_type=jnp.float32)
        + bias_ref[...]
    )
    if activation == "log_softmax":
        m = jnp.max(acc, axis=-1, keepdims=True)
        s = acc - m
        acc = s - jnp.log(jnp.sum(jnp.exp(s), axis=-1, keepdims=True))
    o_ref[...] = acc


def _window_reduce_kernel(x_ref, o_ref, *, op, scale, relu):
    x = x_ref[...]                      # (K, B, L) — K window taps, L lane-dense
    if op == "max":
        r = jnp.max(x, axis=0)
    else:  # mean
        r = jnp.sum(x, axis=0) * scale
    if relu:
        r = jnp.maximum(r, 0.0)
    o_ref[...] = r


# ---------------------------------------------------------------------------
# Pallas wrappers
# ---------------------------------------------------------------------------
def _pick_tm(M):
    """Row-tile so the grid has >=2 blocks when possible (keeps both v7x
    TensorCores busy) while the second-to-last block dim stays a multiple of 8.
    Falls back to a full-array block (always legal) for tiny/odd M."""
    if M >= 256 and M % 128 == 0:
        return 128
    half = M // 2
    if M >= 64 and M % 2 == 0 and half % 8 == 0:
        return half
    return M


def matmul_bias(a, b, bias, *, activation=None):
    """(M,K) @ (K,N) + bias(N,) in a single Pallas kernel.

    No activation/weight re-padding: full-extent K/N blocks are legal, and the
    weight matrices are already stored pre-transposed in bf16 by
    prepare_params().  Optional fused log_softmax epilogue for the FC layer.
    """
    M, K = a.shape
    _, N = b.shape
    a = a.astype(b.dtype)               # bf16 MXU operands, f32 accumulation
    bias2 = bias.reshape(1, N).astype(jnp.float32)

    TM = _pick_tm(M)
    kernel = functools.partial(_matmul_bias_kernel, activation=activation)
    return pl.pallas_call(
        kernel,
        out_shape=jax.ShapeDtypeStruct((M, N), jnp.float32),
        grid=(M // TM,),
        in_specs=[
            pl.BlockSpec((TM, K), lambda i: (i, 0)),
            pl.BlockSpec((K, N), lambda i: (0, 0)),
            pl.BlockSpec((1, N), lambda i: (0, 0)),
        ],
        out_specs=pl.BlockSpec((TM, N), lambda i: (i, 0)),
        compiler_params=pltpu.CompilerParams(dimension_semantics=("parallel",)),
    )(a, b, bias2)


def conv2d_nhwc(x, w_mat, b, kh, kw, pad):
    """PyTorch-style Conv2d (stride 1) on NHWC activations via im2col + Pallas
    matmul.  w_mat is pre-reshaped to (kh*kw*Cin, Cout) — K ordered (dy,dx,ci)
    to match the concat order below."""
    B, H, W, Cin = x.shape
    Ho = H + 2 * pad - kh + 1
    Wo = W + 2 * pad - kw + 1
    if kh == 1 and kw == 1 and pad == 0:
        a = x.reshape(B * H * W, Cin)
    else:
        xp = jnp.pad(x, ((0, 0), (pad, pad), (pad, pad), (0, 0)))
        a = jnp.concatenate(
            [xp[:, dy:dy + Ho, dx:dx + Wo, :] for dy in range(kh) for dx in range(kw)],
            axis=-1,
        ).reshape(B * Ho * Wo, kh * kw * Cin)
    y = matmul_bias(a, w_mat, b)
    return y.reshape(B, Ho, Wo, w_mat.shape[1])


def maxpool2_relu(x):
    """relu(max_pool2d(x, 2)) on NHWC input, lane-dense reduce layout."""
    B, H, W, C = x.shape
    Ho, Wo = H // 2, W // 2
    taps = (x.reshape(B, Ho, 2, Wo, 2, C)
              .transpose(2, 4, 0, 1, 3, 5)
              .reshape(4, B, Ho * Wo * C))        # last dim >= 128 → dense vst
    out = pl.pallas_call(
        functools.partial(_window_reduce_kernel, op="max", scale=1.0, relu=True),
        out_shape=jax.ShapeDtypeStruct((B, Ho * Wo * C), jnp.float32),
    )(taps)
    return out.reshape(B, Ho, Wo, C)


def avgpool3_s1_p1(x):
    """F.avg_pool2d(k=3, stride=1, padding=1), count_include_pad=True, NHWC."""
    B, H, W, C = x.shape
    xp = jnp.pad(x, ((0, 0), (1, 1), (1, 1), (0, 0)))
    taps = jnp.stack(
        [xp[:, dy:dy + H, dx:dx + W, :] for dy in range(3) for dx in range(3)],
        axis=0,
    ).reshape(9, B, H * W * C)                    # lane-dense last dim
    out = pl.pallas_call(
        functools.partial(_window_reduce_kernel, op="mean", scale=1.0 / 9.0, relu=False),
        out_shape=jax.ShapeDtypeStruct((B, H * W * C), jnp.float32),
    )(taps)
    return out.reshape(B, H, W, C)


# ---------------------------------------------------------------------------
# Model
# ---------------------------------------------------------------------------
def inception(x, pp, pre):
    """Inception block on NHWC input.  All four 1x1 convs are fused into one
    matmul (N = 16+16+16+24 = 72).  For branch 4, avg-pool and a bias-free 1x1
    conv commute, so we pool the conv output and add the bias afterwards —
    this matches conv1x1(avg_pool(x)) exactly."""
    B, H, W, Cin = x.shape
    y = matmul_bias(x.reshape(B * H * W, Cin),
                    pp[f"{pre}_1x1_w"], pp[f"{pre}_1x1_b"]).reshape(B, H, W, 72)
    b1 = y[..., 0:16]
    b2 = conv2d_nhwc(y[..., 16:32], pp[f"{pre}_b2_2_w"], pp[f"{pre}_b2_2_b"], 5, 5, 2)
    b3 = conv2d_nhwc(y[..., 32:48], pp[f"{pre}_b3_2_w"], pp[f"{pre}_b3_2_b"], 3, 3, 1)
    b3 = conv2d_nhwc(b3, pp[f"{pre}_b3_3_w"], pp[f"{pre}_b3_3_b"], 3, 3, 1)
    b4 = avgpool3_s1_p1(y[..., 48:72]) + pp[f"{pre}_b4_b"]
    return jnp.concatenate([b1, b2, b3, b4], axis=-1)       # 16+24+24+24 = 88 ch


def net_forward(x, pp):
    B = x.shape[0]
    x = jnp.transpose(x, (0, 2, 3, 1))                       # NCHW -> NHWC (C=1: free)
    x = conv2d_nhwc(x, pp["conv1_w"], pp["conv1_b"], 5, 5, 0)  # (B,24,24,10)
    x = maxpool2_relu(x)                                     # (B,12,12,10)
    x = inception(x, pp, "i1")                               # (B,12,12,88)
    x = conv2d_nhwc(x, pp["conv2_w"], pp["conv2_b"], 5, 5, 0)  # (B,8,8,20)
    x = maxpool2_relu(x)                                     # (B,4,4,20)
    x = inception(x, pp, "i2")                               # (B,4,4,88)
    # PyTorch flattens NCHW: transpose back before the FC to match fc_w layout.
    x = jnp.transpose(x, (0, 3, 1, 2)).reshape(B, -1)        # (B, 1408)
    return matmul_bias(x, pp["fc_w"], pp["fc_b"], activation="log_softmax")


# ---------------------------------------------------------------------------
# Parameters (PyTorch layout) + one-time matmul-ready preprocessing
# ---------------------------------------------------------------------------
def init_params(key):
    params = {}
    conv_specs = [
        ("conv1", 10, 1, 5),
        ("i1_b1", 16, 10, 1), ("i1_b2_1", 16, 10, 1), ("i1_b2_2", 24, 16, 5),
        ("i1_b3_1", 16, 10, 1), ("i1_b3_2", 24, 16, 3), ("i1_b3_3", 24, 24, 3),
        ("i1_b4", 24, 10, 1),
        ("conv2", 20, 88, 5),
        ("i2_b1", 16, 20, 1), ("i2_b2_1", 16, 20, 1), ("i2_b2_2", 24, 16, 5),
        ("i2_b3_1", 16, 20, 1), ("i2_b3_2", 24, 16, 3), ("i2_b3_3", 24, 24, 3),
        ("i2_b4", 24, 20, 1),
    ]
    for name, cout, cin, k in conv_specs:
        key, kw_, kb_ = jax.random.split(key, 3)
        bound = 1.0 / float(np.sqrt(cin * k * k))
        params[f"{name}_w"] = jax.random.uniform(
            kw_, (cout, cin, k, k), jnp.float32, -bound, bound)
        params[f"{name}_b"] = jax.random.uniform(
            kb_, (cout,), jnp.float32, -bound, bound)
    key, kw_, kb_ = jax.random.split(key, 3)
    bound = 1.0 / float(np.sqrt(1408))
    params["fc_w"] = jax.random.uniform(kw_, (10, 1408), jnp.float32, -bound, bound)
    params["fc_b"] = jax.random.uniform(kb_, (10,), jnp.float32, -bound, bound)
    return params


def prepare_params(p):
    """One-time conversion of PyTorch-layout params into matmul-ready form
    (transposed, bf16) so no weight reshaping happens per forward pass."""
    dt = jnp.bfloat16

    def conv_w(name):
        w = p[f"{name}_w"]                                   # (Cout,Cin,kh,kw)
        co, ci, kh, kw = w.shape
        # K ordered (dy, dx, ci) to match the NHWC im2col concat order.
        return w.transpose(2, 3, 1, 0).reshape(kh * kw * ci, co).astype(dt)

    pp = {}
    pp["conv1_w"], pp["conv1_b"] = conv_w("conv1"), p["conv1_b"]
    pp["conv2_w"], pp["conv2_b"] = conv_w("conv2"), p["conv2_b"]
    for pre in ("i1", "i2"):
        # Fused 1x1 convs: columns ordered [branch1 | branch2_1 | branch3_1 | branch4].
        w1 = jnp.concatenate(
            [p[f"{pre}_{n}_w"][:, :, 0, 0] for n in ("b1", "b2_1", "b3_1", "b4")],
            axis=0)                                          # (72, Cin)
        pp[f"{pre}_1x1_w"] = w1.T.astype(dt)                 # (Cin, 72)
        pp[f"{pre}_1x1_b"] = jnp.concatenate(
            [p[f"{pre}_b1_b"], p[f"{pre}_b2_1_b"], p[f"{pre}_b3_1_b"],
             jnp.zeros_like(p[f"{pre}_b4_b"])])              # b4 bias added post-pool
        pp[f"{pre}_b4_b"] = p[f"{pre}_b4_b"]
        for n in ("b2_2", "b3_2", "b3_3"):
            pp[f"{pre}_{n}_w"] = conv_w(f"{pre}_{n}")
            pp[f"{pre}_{n}_b"] = p[f"{pre}_{n}_b"]
    pp["fc_w"] = p["fc_w"].T.astype(dt)                      # (1408, 10)
    pp["fc_b"] = p["fc_b"]
    return pp


if __name__ == "__main__":
    key = jax.random.PRNGKey(0)
    kx, kp = jax.random.split(key)
    # MNIST-shaped input is required by fc(1408): B=2, 1 channel, 28x28.
    x = jax.random.normal(kx, (2, 1, 28, 28), jnp.float32)
    params = init_params(kp)
    prepped = jax.tree.map(jax.block_until_ready, prepare_params(params))

    fwd = jax.jit(net_forward)
    out = fwd(x, prepped)
    out = jax.block_until_ready(out)

    assert out.shape == (2, 10), out.shape
    assert bool(jnp.all(jnp.isfinite(out)))
    # log_softmax rows should exp-sum to ~1
    assert bool(jnp.allclose(jnp.sum(jnp.exp(out), axis=-1), 1.0, atol=1e-4))
    print("KERNEL_OK")
</pallas_src>

<mosaic_0001>
module attributes {stable_mosaic.version = 11 : i64} {
  func.func @_matmul_bias_kernel(%arg0: i32, %arg1: memref<128x25xbf16, #tpu.memory_space<vmem>>, %arg2: memref<25x10xbf16, #tpu.memory_space<vmem>>, %arg3: memref<1x10xf32, #tpu.memory_space<vmem>>, %arg4: memref<128x10xf32, #tpu.memory_space<vmem>>) attributes {dimension_semantics = [#tpu.dimension_semantics<parallel>], iteration_bounds = array<i64: 9>, scalar_prefetch = 0 : i64, scratch_operands = 0 : i64, tpu.core_type = #tpu.core_type<tc>, window_params = [{transform_indices = @transform_0, window_bounds = array<i64: 128, 25>}, {pipeline_mode = #tpu.pipeline_mode<synchronous>, transform_indices = @transform_1, window_bounds = array<i64: 25, 10>}, {pipeline_mode = #tpu.pipeline_mode<synchronous>, transform_indices = @transform_2, window_bounds = array<i64: 1, 10>}, {transform_indices = @transform_3, window_bounds = array<i64: 128, 10>}]} {
    %c0 = arith.constant 0 : index
    %c0_0 = arith.constant 0 : index
    %0 = vector.load %arg1[%c0, %c0_0] : memref<128x25xbf16, #tpu.memory_space<vmem>>, vector<128x25xbf16>
    %c0_1 = arith.constant 0 : index
    %c0_2 = arith.constant 0 : index
    %1 = vector.load %arg2[%c0_1, %c0_2] : memref<25x10xbf16, #tpu.memory_space<vmem>>, vector<25x10xbf16>
    %cst = arith.constant dense<0.000000e+00> : vector<128x10xf32>
    %2 = tpu.matmul %0, %1, %cst {dimension_numbers = #tpu.dot_dimension_numbers<[1], [0], [0], [1], [0, 0, 1, 1], [], []>} : vector<128x25xbf16>, vector<25x10xbf16>, vector<128x10xf32> -> vector<128x10xf32>
    %c0_3 = arith.constant 0 : index
    %c0_4 = arith.constant 0 : index
    %3 = vector.load %arg3[%c0_3, %c0_4] : memref<1x10xf32, #tpu.memory_space<vmem>>, vector<1x10xf32>
    %4 = vector.broadcast %3 : vector<1x10xf32> to vector<128x10xf32>
    %5 = arith.addf %2, %4 : vector<128x10xf32>
    %c0_5 = arith.constant 0 : index
    %c0_6 = arith.constant 0 : index
    %6 = vector.load %arg4[%c0_5, %c0_6] : memref<128x10xf32, #tpu.memory_space<vmem>>, vector<128x10xf32>
    tpu.vector_store %arg4[%c0_5, %c0_6], %5 {strides = array<i32>} : memref<128x10xf32, #tpu.memory_space<vmem>>, vector<128x10xf32>,
    return
  }
  func.func @transform_0(%arg0: i32) -> (i32, i32) {
    %c0_i32 = arith.constant 0 : i32
    %c0_i32_0 = arith.constant 0 : i32
    return %arg0, %c0_i32 : i32, i32
  }
  func.func @transform_1(%arg0: i32) -> (i32, i32) {
    %c0_i32 = arith.constant 0 : i32
    %c0_i32_0 = arith.constant 0 : i32
    %c0_i32_1 = arith.constant 0 : i32
    return %c0_i32, %c0_i32_0 : i32, i32
  }
  func.func @transform_2(%arg0: i32) -> (i32, i32) {
    %c0_i32 = arith.constant 0 : i32
    %c0_i32_0 = arith.constant 0 : i32
    %c0_i32_1 = arith.constant 0 : i32
    return %c0_i32, %c0_i32_0 : i32, i32
  }
  func.func @transform_3(%arg0: i32) -> (i32, i32) {
    %c0_i32 = arith.constant 0 : i32
    %c0_i32_0 = arith.constant 0 : i32
    return %arg0, %c0_i32 : i32, i32
  }
}

module attributes {stable_mosaic.version = 11 : i64} {
  func.func @_window_reduce_kernel(%arg0: memref<4x2x1440xf32, #tpu.memory_space<vmem>>, %arg1: memref<2x1440xf32, #tpu.memory_space<vmem>>) attributes {dimension_semantics = [], scalar_prefetch = 0 : i64, scratch_operands = 0 : i64, tpu.core_type = #tpu.core_type<tc>} {
    %c0 = arith.constant 0 : index
    %c0_0 = arith.constant 0 : index
    %c0_1 = arith.constant 0 : index
    %0 = vector.load %arg0[%c0, %c0_0, %c0_1] : memref<4x2x1440xf32, #tpu.memory_space<vmem>>, vector<4x2x1440xf32>
    %cst = arith.constant dense<0xFF800000> : vector<2x1440xf32>
    %1 = vector.multi_reduction <maximumf>, %0, %cst [0] : vector<4x2x1440xf32> to vector<2x1440xf32>
    %cst_2 = arith.constant 0.000000e+00 : f32
    %2 = vector.broadcast %cst_2 : f32 to vector<2x1440xf32>
    %3 = arith.maximumf %1, %2 : vector<2x1440xf32>
    %c0_3 = arith.constant 0 : index
    %c0_4 = arith.constant 0 : index
    %4 = vector.load %arg1[%c0_3, %c0_4] : memref<2x1440xf32, #tpu.memory_space<vmem>>, vector<2x1440xf32>
    tpu.vector_store %arg1[%c0_3, %c0_4], %3 {strides = array<i32>} : memref<2x1440xf32, #tpu.memory_space<vmem>>, vector<2x1440xf32>,
    return
  }
}

module attributes {stable_mosaic.version = 11 : i64} {
  func.func @_matmul_bias_kernel(%arg0: i32, %arg1: memref<144x10xbf16, #tpu.memory_space<vmem>>, %arg2: memref<10x72xbf16, #tpu.memory_space<vmem>>, %arg3: memref<1x72xf32, #tpu.memory_space<vmem>>, %arg4: memref<144x72xf32, #tpu.memory_space<vmem>>) attributes {dimension_semantics = [#tpu.dimension_semantics<parallel>], iteration_bounds = array<i64: 2>, scalar_prefetch = 0 : i64, scratch_operands = 0 : i64, tpu.core_type = #tpu.core_type<tc>, window_params = [{transform_indices = @transform_0, window_bounds = array<i64: 144, 10>}, {pipeline_mode = #tpu.pipeline_mode<synchronous>, transform_indices = @transform_1, window_bounds = array<i64: 10, 72>}, {pipeline_mode = #tpu.pipeline_mode<synchronous>, transform_indices = @transform_2, window_bounds = array<i64: 1, 72>}, {transform_indices = @transform_3, window_bounds = array<i64: 144, 72>}]} {
    %c0 = arith.constant 0 : index
    %c0_0 = arith.constant 0 : index
    %0 = vector.load %arg1[%c0, %c0_0] : memref<144x10xbf16, #tpu.memory_space<vmem>>, vector<144x10xbf16>
    %c0_1 = arith.constant 0 : index
    %c0_2 = arith.constant 0 : index
    %1 = vector.load %arg2[%c0_1, %c0_2] : memref<10x72xbf16, #tpu.memory_space<vmem>>, vector<10x72xbf16>
    %cst = arith.constant dense<0.000000e+00> : vector<144x72xf32>
    %2 = tpu.matmul %0, %1, %cst {dimension_numbers = #tpu.dot_dimension_numbers<[1], [0], [0], [1], [0, 0, 1, 1], [], []>} : vector<144x10xbf16>, vector<10x72xbf16>, vector<144x72xf32> -> vector<144x72xf32>
    %c0_3 = arith.constant 0 : index
    %c0_4 = arith.constant 0 : index
    %3 = vector.load %arg3[%c0_3, %c0_4] : memref<1x72xf32, #tpu.memory_space<vmem>>, vector<1x72xf32>
    %4 = vector.broadcast %3 : vector<1x72xf32> to vector<144x72xf32>
    %5 = arith.addf %2, %4 : vector<144x72xf32>
    %c0_5 = arith.constant 0 : index
    %c0_6 = arith.constant 0 : index
    %6 = vector.load %arg4[%c0_5, %c0_6] : memref<144x72xf32, #tpu.memory_space<vmem>>, vector<144x72xf32>
    tpu.vector_store %arg4[%c0_5, %c0_6], %5 {strides = array<i32>} : memref<144x72xf32, #tpu.memory_space<vmem>>, vector<144x72xf32>,
    return
  }
  func.func @transform_0(%arg0: i32) -> (i32, i32) {
    %c0_i32 = arith.constant 0 : i32
    %c0_i32_0 = arith.constant 0 : i32
    return %arg0, %c0_i32 : i32, i32
  }
  func.func @transform_1(%arg0: i32) -> (i32, i32) {
    %c0_i32 = arith.constant 0 : i32
    %c0_i32_0 = arith.constant 0 : i32
    %c0_i32_1 = arith.constant 0 : i32
    return %c0_i32, %c0_i32_0 : i32, i32
  }
  func.func @transform_2(%arg0: i32) -> (i32, i32) {
    %c0_i32 = arith.constant 0 : i32
    %c0_i32_0 = arith.constant 0 : i32
    %c0_i32_1 = arith.constant 0 : i32
    return %c0_i32, %c0_i32_0 : i32, i32
  }
  func.func @transform_3(%arg0: i32) -> (i32, i32) {
    %c0_i32 = arith.constant 0 : i32
    %c0_i32_0 = arith.constant 0 : i32
    return %arg0, %c0_i32 : i32, i32
  }
}

module attributes {stable_mosaic.version = 11 : i64} {
  func.func @_window_reduce_kernel(%arg0: memref<9x2x3456xf32, #tpu.memory_space<vmem>>, %arg1: memref<2x3456xf32, #tpu.memory_space<vmem>>) attributes {dimension_semantics = [], scalar_prefetch = 0 : i64, scratch_operands = 0 : i64, tpu.core_type = #tpu.core_type<tc>} {
    %c0 = arith.constant 0 : index
    %c0_0 = arith.constant 0 : index
    %c0_1 = arith.constant 0 : index
    %0 = vector.load %arg0[%c0, %c0_0, %c0_1] : memref<9x2x3456xf32, #tpu.memory_space<vmem>>, vector<9x2x3456xf32>
    %cst = arith.constant dense<0.000000e+00> : vector<2x3456xf32>
    %1 = vector.multi_reduction <add>, %0, %cst [0] : vector<9x2x3456xf32> to vector<2x3456xf32>
    %cst_2 = arith.constant 0.111111112 : f32
    %2 = vector.broadcast %cst_2 : f32 to vector<2x3456xf32>
    %3 = arith.mulf %1, %2 : vector<2x3456xf32>
    %c0_3 = arith.constant 0 : index
    %c0_4 = arith.constant 0 : index
    %4 = vector.load %arg1[%c0_3, %c0_4] : memref<2x3456xf32, #tpu.memory_space<vmem>>, vector<2x3456xf32>
    tpu.vector_store %arg1[%c0_3, %c0_4], %3 {strides = array<i32>} : memref<2x3456xf32, #tpu.memory_space<vmem>>, vector<2x3456xf32>,
    return
  }
}

module attributes {stable_mosaic.version = 11 : i64} {
  func.func @_matmul_bias_kernel(%arg0: i32, %arg1: memref<144x144xbf16, #tpu.memory_space<vmem>>, %arg2: memref<144x24xbf16, #tpu.memory_space<vmem>>, %arg3: memref<1x24xf32, #tpu.memory_space<vmem>>, %arg4: memref<144x24xf32, #tpu.memory_space<vmem>>) attributes {dimension_semantics = [#tpu.dimension_semantics<parallel>], iteration_bounds = array<i64: 2>, scalar_prefetch = 0 : i64, scratch_operands = 0 : i64, tpu.core_type = #tpu.core_type<tc>, window_params = [{transform_indices = @transform_0, window_bounds = array<i64: 144, 144>}, {pipeline_mode = #tpu.pipeline_mode<synchronous>, transform_indices = @transform_1, window_bounds = array<i64: 144, 24>}, {pipeline_mode = #tpu.pipeline_mode<synchronous>, transform_indices = @transform_2, window_bounds = array<i64: 1, 24>}, {transform_indices = @transform_3, window_bounds = array<i64: 144, 24>}]} {
    %c0 = arith.constant 0 : index
    %c0_0 = arith.constant 0 : index
    %0 = vector.load %arg1[%c0, %c0_0] : memref<144x144xbf16, #tpu.memory_space<vmem>>, vector<144x144xbf16>
    %c0_1 = arith.constant 0 : index
    %c0_2 = arith.constant 0 : index
    %1 = vector.load %arg2[%c0_1, %c0_2] : memref<144x24xbf16, #tpu.memory_space<vmem>>, vector<144x24xbf16>
    %cst = arith.constant dense<0.000000e+00> : vector<144x24xf32>
    %2 = tpu.matmul %0, %1, %cst {dimension_numbers = #tpu.dot_dimension_numbers<[1], [0], [0], [1], [0, 0, 1, 1], [], []>} : vector<144x144xbf16>, vector<144x24xbf16>, vector<144x24xf32> -> vector<144x24xf32>
    %c0_3 = arith.constant 0 : index
    %c0_4 = arith.constant 0 : index
    %3 = vector.load %arg3[%c0_3, %c0_4] : memref<1x24xf32, #tpu.memory_space<vmem>>, vector<1x24xf32>
    %4 = vector.broadcast %3 : vector<1x24xf32> to vector<144x24xf32>
    %5 = arith.addf %2, %4 : vector<144x24xf32>
    %c0_5 = arith.constant 0 : index
    %c0_6 = arith.constant 0 : index
    %6 = vector.load %arg4[%c0_5, %c0_6] : memref<144x24xf32, #tpu.memory_space<vmem>>, vector<144x24xf32>
    tpu.vector_store %arg4[%c0_5, %c0_6], %5 {strides = array<i32>} : memref<144x24xf32, #tpu.memory_space<vmem>>, vector<144x24xf32>,
    return
  }
  func.func @transform_0(%arg0: i32) -> (i32, i32) {
    %c0_i32 = arith.constant 0 : i32
    %c0_i32_0 = arith.constant 0 : i32
    return %arg0, %c0_i32 : i32, i32
  }
  func.func @transform_1(%arg0: i32) -> (i32, i32) {
    %c0_i32 = arith.constant 0 : i32
    %c0_i32_0 = arith.constant 0 : i32
    %c0_i32_1 = arith.constant 0 : i32
    return %c0_i32, %c0_i32_0 : i32, i32
  }
  func.func @transform_2(%arg0: i32) -> (i32, i32) {
    %c0_i32 = arith.constant 0 : i32
    %c0_i32_0 = arith.constant 0 : i32
    %c0_i32_1 = arith.constant 0 : i32
    return %c0_i32, %c0_i32_0 : i32, i32
  }
  func.func @transform_3(%arg0: i32) -> (i32, i32) {
    %c0_i32 = arith.constant 0 : i32
    %c0_i32_0 = arith.constant 0 : i32
    return %arg0, %c0_i32 : i32, i32
  }
}

module attributes {stable_mosaic.version = 11 : i64} {
  func.func @_matmul_bias_kernel(%arg0: i32, %arg1: memref<144x216xbf16, #tpu.memory_space<vmem>>, %arg2: memref<216x24xbf16, #tpu.memory_space<vmem>>, %arg3: memref<1x24xf32, #tpu.memory_space<vmem>>, %arg4: memref<144x24xf32, #tpu.memory_space<vmem>>) attributes {dimension_semantics = [#tpu.dimension_semantics<parallel>], iteration_bounds = array<i64: 2>, scalar_prefetch = 0 : i64, scratch_operands = 0 : i64, tpu.core_type = #tpu.core_type<tc>, window_params = [{transform_indices = @transform_0, window_bounds = array<i64: 144, 216>}, {pipeline_mode = #tpu.pipeline_mode<synchronous>, transform_indices = @transform_1, window_bounds = array<i64: 216, 24>}, {pipeline_mode = #tpu.pipeline_mode<synchronous>, transform_indices = @transform_2, window_bounds = array<i64: 1, 24>}, {transform_indices = @transform_3, window_bounds = array<i64: 144, 24>}]} {
    %c0 = arith.constant 0 : index
    %c0_0 = arith.constant 0 : index
    %0 = vector.load %arg1[%c0, %c0_0] : memref<144x216xbf16, #tpu.memory_space<vmem>>, vector<144x216xbf16>
    %c0_1 = arith.constant 0 : index
    %c0_2 = arith.constant 0 : index
    %1 = vector.load %arg2[%c0_1, %c0_2] : memref<216x24xbf16, #tpu.memory_space<vmem>>, vector<216x24xbf16>
    %cst = arith.constant dense<0.000000e+00> : vector<144x24xf32>
    %2 = tpu.matmul %0, %1, %cst {dimension_numbers = #tpu.dot_dimension_numbers<[1], [0], [0], [1], [0, 0, 1, 1], [], []>} : vector<144x216xbf16>, vector<216x24xbf16>, vector<144x24xf32> -> vector<144x24xf32>
    %c0_3 = arith.constant 0 : index
    %c0_4 = arith.constant 0 : index
    %3 = vector.load %arg3[%c0_3, %c0_4] : memref<1x24xf32, #tpu.memory_space<vmem>>, vector<1x24xf32>
    %4 = vector.broadcast %3 : vector<1x24xf32> to vector<144x24xf32>
    %5 = arith.addf %2, %4 : vector<144x24xf32>
    %c0_5 = arith.constant 0 : index
    %c0_6 = arith.constant 0 : index
    %6 = vector.load %arg4[%c0_5, %c0_6] : memref<144x24xf32, #tpu.memory_space<vmem>>, vector<144x24xf32>
    tpu.vector_store %arg4[%c0_5, %c0_6], %5 {strides = array<i32>} : memref<144x24xf32, #tpu.memory_space<vmem>>, vector<144x24xf32>,
    return
  }
  func.func @transform_0(%arg0: i32) -> (i32, i32) {
    %c0_i32 = arith.constant 0 : i32
    %c0_i32_0 = arith.constant 0 : i32
    return %arg0, %c0_i32 : i32, i32
  }
  func.func @transform_1(%arg0: i32) -> (i32, i32) {
    %c0_i32 = arith.constant 0 : i32
    %c0_i32_0 = arith.constant 0 : i32
    %c0_i32_1 = arith.constant 0 : i32
    return %c0_i32, %c0_i32_0 : i32, i32
  }
  func.func @transform_2(%arg0: i32) -> (i32, i32) {
    %c0_i32 = arith.constant 0 : i32
    %c0_i32_0 = arith.constant 0 : i32
    %c0_i32_1 = arith.constant 0 : i32
    return %c0_i32, %c0_i32_0 : i32, i32
  }
  func.func @transform_3(%arg0: i32) -> (i32, i32) {
    %c0_i32 = arith.constant 0 : i32
    %c0_i32_0 = arith.constant 0 : i32
    return %arg0, %c0_i32 : i32, i32
  }
}

module attributes {stable_mosaic.version = 11 : i64} {
  func.func @_matmul_bias_kernel(%arg0: i32, %arg1: memref<144x400xbf16, #tpu.memory_space<vmem>>, %arg2: memref<400x24xbf16, #tpu.memory_space<vmem>>, %arg3: memref<1x24xf32, #tpu.memory_space<vmem>>, %arg4: memref<144x24xf32, #tpu.memory_space<vmem>>) attributes {dimension_semantics = [#tpu.dimension_semantics<parallel>], iteration_bounds = array<i64: 2>, scalar_prefetch = 0 : i64, scratch_operands = 0 : i64, tpu.core_type = #tpu.core_type<tc>, window_params = [{transform_indices = @transform_0, window_bounds = array<i64: 144, 400>}, {pipeline_mode = #tpu.pipeline_mode<synchronous>, transform_indices = @transform_1, window_bounds = array<i64: 400, 24>}, {pipeline_mode = #tpu.pipeline_mode<synchronous>, transform_indices = @transform_2, window_bounds = array<i64: 1, 24>}, {transform_indices = @transform_3, window_bounds = array<i64: 144, 24>}]} {
    %c0 = arith.constant 0 : index
    %c0_0 = arith.constant 0 : index
    %0 = vector.load %arg1[%c0, %c0_0] : memref<144x400xbf16, #tpu.memory_space<vmem>>, vector<144x400xbf16>
    %c0_1 = arith.constant 0 : index
    %c0_2 = arith.constant 0 : index
    %1 = vector.load %arg2[%c0_1, %c0_2] : memref<400x24xbf16, #tpu.memory_space<vmem>>, vector<400x24xbf16>
    %cst = arith.constant dense<0.000000e+00> : vector<144x24xf32>
    %2 = tpu.matmul %0, %1, %cst {dimension_numbers = #tpu.dot_dimension_numbers<[1], [0], [0], [1], [0, 0, 1, 1], [], []>} : vector<144x400xbf16>, vector<400x24xbf16>, vector<144x24xf32> -> vector<144x24xf32>
    %c0_3 = arith.constant 0 : index
    %c0_4 = arith.constant 0 : index
    %3 = vector.load %arg3[%c0_3, %c0_4] : memref<1x24xf32, #tpu.memory_space<vmem>>, vector<1x24xf32>
    %4 = vector.broadcast %3 : vector<1x24xf32> to vector<144x24xf32>
    %5 = arith.addf %2, %4 : vector<144x24xf32>
    %c0_5 = arith.constant 0 : index
    %c0_6 = arith.constant 0 : index
    %6 = vector.load %arg4[%c0_5, %c0_6] : memref<144x24xf32, #tpu.memory_space<vmem>>, vector<144x24xf32>
    tpu.vector_store %arg4[%c0_5, %c0_6], %5 {strides = array<i32>} : memref<144x24xf32, #tpu.memory_space<vmem>>, vector<144x24xf32>,
    return
  }
  func.func @transform_0(%arg0: i32) -> (i32, i32) {
    %c0_i32 = arith.constant 0 : i32
    %c0_i32_0 = arith.constant 0 : i32
    return %arg0, %c0_i32 : i32, i32
  }
  func.func @transform_1(%arg0: i32) -> (i32, i32) {
    %c0_i32 = arith.constant 0 : i32
    %c0_i32_0 = arith.constant 0 : i32
    %c0_i32_1 = arith.constant 0 : i32
    return %c0_i32, %c0_i32_0 : i32, i32
  }
  func.func @transform_2(%arg0: i32) -> (i32, i32) {
    %c0_i32 = arith.constant 0 : i32
    %c0_i32_0 = arith.constant 0 : i32
    %c0_i32_1 = arith.constant 0 : i32
    return %c0_i32, %c0_i32_0 : i32, i32
  }
  func.func @transform_3(%arg0: i32) -> (i32, i32) {
    %c0_i32 = arith.constant 0 : i32
    %c0_i32_0 = arith.constant 0 : i32
    return %arg0, %c0_i32 : i32, i32
  }
}

module attributes {stable_mosaic.version = 11 : i64} {
  func.func @_matmul_bias_kernel(%arg0: i32, %arg1: memref<64x2200xbf16, #tpu.memory_space<vmem>>, %arg2: memref<2200x20xbf16, #tpu.memory_space<vmem>>, %arg3: memref<1x20xf32, #tpu.memory_space<vmem>>, %arg4: memref<64x20xf32, #tpu.memory_space<vmem>>) attributes {dimension_semantics = [#tpu.dimension_semantics<parallel>], iteration_bounds = array<i64: 2>, scalar_prefetch = 0 : i64, scratch_operands = 0 : i64, tpu.core_type = #tpu.core_type<tc>, window_params = [{transform_indices = @transform_0, window_bounds = array<i64: 64, 2200>}, {pipeline_mode = #tpu.pipeline_mode<synchronous>, transform_indices = @transform_1, window_bounds = array<i64: 2200, 20>}, {pipeline_mode = #tpu.pipeline_mode<synchronous>, transform_indices = @transform_2, window_bounds = array<i64: 1, 20>}, {transform_indices = @transform_3, window_bounds = array<i64: 64, 20>}]} {
    %c0 = arith.constant 0 : index
    %c0_0 = arith.constant 0 : index
    %0 = vector.load %arg1[%c0, %c0_0] : memref<64x2200xbf16, #tpu.memory_space<vmem>>, vector<64x2200xbf16>
    %c0_1 = arith.constant 0 : index
    %c0_2 = arith.constant 0 : index
    %1 = vector.load %arg2[%c0_1, %c0_2] : memref<2200x20xbf16, #tpu.memory_space<vmem>>, vector<2200x20xbf16>
    %cst = arith.constant dense<0.000000e+00> : vector<64x20xf32>
    %2 = tpu.matmul %0, %1, %cst {dimension_numbers = #tpu.dot_dimension_numbers<[1], [0], [0], [1], [0, 0, 1, 1], [], []>} : vector<64x2200xbf16>, vector<2200x20xbf16>, vector<64x20xf32> -> vector<64x20xf32>
    %c0_3 = arith.constant 0 : index
    %c0_4 = arith.constant 0 : index
    %3 = vector.load %arg3[%c0_3, %c0_4] : memref<1x20xf32, #tpu.memory_space<vmem>>, vector<1x20xf32>
    %4 = vector.broadcast %3 : vector<1x20xf32> to vector<64x20xf32>
    %5 = arith.addf %2, %4 : vector<64x20xf32>
    %c0_5 = arith.constant 0 : index
    %c0_6 = arith.constant 0 : index
    %6 = vector.load %arg4[%c0_5, %c0_6] : memref<64x20xf32, #tpu.memory_space<vmem>>, vector<64x20xf32>
    tpu.vector_store %arg4[%c0_5, %c0_6], %5 {strides = array<i32>} : memref<64x20xf32, #tpu.memory_space<vmem>>, vector<64x20xf32>,
    return
  }
  func.func @transform_0(%arg0: i32) -> (i32, i32) {
    %c0_i32 = arith.constant 0 : i32
    %c0_i32_0 = arith.constant 0 : i32
    return %arg0, %c0_i32 : i32, i32
  }
  func.func @transform_1(%arg0: i32) -> (i32, i32) {
    %c0_i32 = arith.constant 0 : i32
    %c0_i32_0 = arith.constant 0 : i32
    %c0_i32_1 = arith.constant 0 : i32
    return %c0_i32, %c0_i32_0 : i32, i32
  }
  func.func @transform_2(%arg0: i32) -> (i32, i32) {
    %c0_i32 = arith.constant 0 : i32
    %c0_i32_0 = arith.constant 0 : i32
    %c0_i32_1 = arith.constant 0 : i32
    return %c0_i32, %c0_i32_0 : i32, i32
  }
  func.func @transform_3(%arg0: i32) -> (i32, i32) {
    %c0_i32 = arith.constant 0 : i32
    %c0_i32_0 = arith.constant 0 : i32
    return %arg0, %c0_i32 : i32, i32
  }
}

module attributes {stable_mosaic.version = 11 : i64} {
  func.func @_window_reduce_kernel(%arg0: memref<4x2x320xf32, #tpu.memory_space<vmem>>, %arg1: memref<2x320xf32, #tpu.memory_space<vmem>>) attributes {dimension_semantics = [], scalar_prefetch = 0 : i64, scratch_operands = 0 : i64, tpu.core_type = #tpu.core_type<tc>} {
    %c0 = arith.constant 0 : index
    %c0_0 = arith.constant 0 : index
    %c0_1 = arith.constant 0 : index
    %0 = vector.load %arg0[%c0, %c0_0, %c0_1] : memref<4x2x320xf32, #tpu.memory_space<vmem>>, vector<4x2x320xf32>
    %cst = arith.constant dense<0xFF800000> : vector<2x320xf32>
    %1 = vector.multi_reduction <maximumf>, %0, %cst [0] : vector<4x2x320xf32> to vector<2x320xf32>
    %cst_2 = arith.constant 0.000000e+00 : f32
    %2 = vector.broadcast %cst_2 : f32 to vector<2x320xf32>
    %3 = arith.maximumf %1, %2 : vector<2x320xf32>
    %c0_3 = arith.constant 0 : index
    %c0_4 = arith.constant 0 : index
    %4 = vector.load %arg1[%c0_3, %c0_4] : memref<2x320xf32, #tpu.memory_space<vmem>>, vector<2x320xf32>
    tpu.vector_store %arg1[%c0_3, %c0_4], %3 {strides = array<i32>} : memref<2x320xf32, #tpu.memory_space<vmem>>, vector<2x320xf32>,
    return
  }
}

module attributes {stable_mosaic.version = 11 : i64} {
  func.func @_matmul_bias_kernel(%arg0: i32, %arg1: memref<32x20xbf16, #tpu.memory_space<vmem>>, %arg2: memref<20x72xbf16, #tpu.memory_space<vmem>>, %arg3: memref<1x72xf32, #tpu.memory_space<vmem>>, %arg4: memref<32x72xf32, #tpu.memory_space<vmem>>) attributes {dimension_semantics = [#tpu.dimension_semantics<parallel>], iteration_bounds = array<i64: 1>, scalar_prefetch = 0 : i64, scratch_operands = 0 : i64, tpu.core_type = #tpu.core_type<tc>, window_params = [{transform_indices = @transform_0, window_bounds = array<i64: 32, 20>}, {pipeline_mode = #tpu.pipeline_mode<synchronous>, transform_indices = @transform_1, window_bounds = array<i64: 20, 72>}, {pipeline_mode = #tpu.pipeline_mode<synchronous>, transform_indices = @transform_2, window_bounds = array<i64: 1, 72>}, {transform_indices = @transform_3, window_bounds = array<i64: 32, 72>}]} {
    %c0 = arith.constant 0 : index
    %c0_0 = arith.constant 0 : index
    %0 = vector.load %arg1[%c0, %c0_0] : memref<32x20xbf16, #tpu.memory_space<vmem>>, vector<32x20xbf16>
    %c0_1 = arith.constant 0 : index
    %c0_2 = arith.constant 0 : index
    %1 = vector.load %arg2[%c0_1, %c0_2] : memref<20x72xbf16, #tpu.memory_space<vmem>>, vector<20x72xbf16>
    %cst = arith.constant dense<0.000000e+00> : vector<32x72xf32>
    %2 = tpu.matmul %0, %1, %cst {dimension_numbers = #tpu.dot_dimension_numbers<[1], [0], [0], [1], [0, 0, 1, 1], [], []>} : vector<32x20xbf16>, vector<20x72xbf16>, vector<32x72xf32> -> vector<32x72xf32>
    %c0_3 = arith.constant 0 : index
    %c0_4 = arith.constant 0 : index
    %3 = vector.load %arg3[%c0_3, %c0_4] : memref<1x72xf32, #tpu.memory_space<vmem>>, vector<1x72xf32>
    %4 = vector.broadcast %3 : vector<1x72xf32> to vector<32x72xf32>
    %5 = arith.addf %2, %4 : vector<32x72xf32>
    %c0_5 = arith.constant 0 : index
    %c0_6 = arith.constant 0 : index
    %6 = vector.load %arg4[%c0_5, %c0_6] : memref<32x72xf32, #tpu.memory_space<vmem>>, vector<32x72xf32>
    tpu.vector_store %arg4[%c0_5, %c0_6], %5 {strides = array<i32>} : memref<32x72xf32, #tpu.memory_space<vmem>>, vector<32x72xf32>,
    return
  }
  func.func @transform_0(%arg0: i32) -> (i32, i32) {
    %c0_i32 = arith.constant 0 : i32
    %c0_i32_0 = arith.constant 0 : i32
    return %arg0, %c0_i32 : i32, i32
  }
  func.func @transform_1(%arg0: i32) -> (i32, i32) {
    %c0_i32 = arith.constant 0 : i32
    %c0_i32_0 = arith.constant 0 : i32
    %c0_i32_1 = arith.constant 0 : i32
    return %c0_i32, %c0_i32_0 : i32, i32
  }
  func.func @transform_2(%arg0: i32) -> (i32, i32) {
    %c0_i32 = arith.constant 0 : i32
    %c0_i32_0 = arith.constant 0 : i32
    %c0_i32_1 = arith.constant 0 : i32
    return %c0_i32, %c0_i32_0 : i32, i32
  }
  func.func @transform_3(%arg0: i32) -> (i32, i32) {
    %c0_i32 = arith.constant 0 : i32
    %c0_i32_0 = arith.constant 0 : i32
    return %arg0, %c0_i32 : i32, i32
  }
}

module attributes {stable_mosaic.version = 11 : i64} {
  func.func @_window_reduce_kernel(%arg0: memref<9x2x384xf32, #tpu.memory_space<vmem>>, %arg1: memref<2x384xf32, #tpu.memory_space<vmem>>) attributes {dimension_semantics = [], scalar_prefetch = 0 : i64, scratch_operands = 0 : i64, tpu.core_type = #tpu.core_type<tc>} {
    %c0 = arith.constant 0 : index
    %c0_0 = arith.constant 0 : index
    %c0_1 = arith.constant 0 : index
    %0 = vector.load %arg0[%c0, %c0_0, %c0_1] : memref<9x2x384xf32, #tpu.memory_space<vmem>>, vector<9x2x384xf32>
    %cst = arith.constant dense<0.000000e+00> : vector<2x384xf32>
    %1 = vector.multi_reduction <add>, %0, %cst [0] : vector<9x2x384xf32> to vector<2x384xf32>
    %cst_2 = arith.constant 0.111111112 : f32
    %2 = vector.broadcast %cst_2 : f32 to vector<2x384xf32>
    %3 = arith.mulf %1, %2 : vector<2x384xf32>
    %c0_3 = arith.constant 0 : index
    %c0_4 = arith.constant 0 : index
    %4 = vector.load %arg1[%c0_3, %c0_4] : memref<2x384xf32, #tpu.memory_space<vmem>>, vector<2x384xf32>
    tpu.vector_store %arg1[%c0_3, %c0_4], %3 {strides = array<i32>} : memref<2x384xf32, #tpu.memory_space<vmem>>, vector<2x384xf32>,
    return
  }
}

module attributes {stable_mosaic.version = 11 : i64} {
  func.func @_matmul_bias_kernel(%arg0: i32, %arg1: memref<32x144xbf16, #tpu.memory_space<vmem>>, %arg2: memref<144x24xbf16, #tpu.memory_space<vmem>>, %arg3: memref<1x24xf32, #tpu.memory_space<vmem>>, %arg4: memref<32x24xf32, #tpu.memory_space<vmem>>) attributes {dimension_semantics = [#tpu.dimension_semantics<parallel>], iteration_bounds = array<i64: 1>, scalar_prefetch = 0 : i64, scratch_operands = 0 : i64, tpu.core_type = #tpu.core_type<tc>, window_params = [{transform_indices = @transform_0, window_bounds = array<i64: 32, 144>}, {pipeline_mode = #tpu.pipeline_mode<synchronous>, transform_indices = @transform_1, window_bounds = array<i64: 144, 24>}, {pipeline_mode = #tpu.pipeline_mode<synchronous>, transform_indices = @transform_2, window_bounds = array<i64: 1, 24>}, {transform_indices = @transform_3, window_bounds = array<i64: 32, 24>}]} {
    %c0 = arith.constant 0 : index
    %c0_0 = arith.constant 0 : index
    %0 = vector.load %arg1[%c0, %c0_0] : memref<32x144xbf16, #tpu.memory_space<vmem>>, vector<32x144xbf16>
    %c0_1 = arith.constant 0 : index
    %c0_2 = arith.constant 0 : index
    %1 = vector.load %arg2[%c0_1, %c0_2] : memref<144x24xbf16, #tpu.memory_space<vmem>>, vector<144x24xbf16>
    %cst = arith.constant dense<0.000000e+00> : vector<32x24xf32>
    %2 = tpu.matmul %0, %1, %cst {dimension_numbers = #tpu.dot_dimension_numbers<[1], [0], [0], [1], [0, 0, 1, 1], [], []>} : vector<32x144xbf16>, vector<144x24xbf16>, vector<32x24xf32> -> vector<32x24xf32>
    %c0_3 = arith.constant 0 : index
    %c0_4 = arith.constant 0 : index
    %3 = vector.load %arg3[%c0_3, %c0_4] : memref<1x24xf32, #tpu.memory_space<vmem>>, vector<1x24xf32>
    %4 = vector.broadcast %3 : vector<1x24xf32> to vector<32x24xf32>
    %5 = arith.addf %2, %4 : vector<32x24xf32>
    %c0_5 = arith.constant 0 : index
    %c0_6 = arith.constant 0 : index
    %6 = vector.load %arg4[%c0_5, %c0_6] : memref<32x24xf32, #tpu.memory_space<vmem>>, vector<32x24xf32>
    tpu.vector_store %arg4[%c0_5, %c0_6], %5 {strides = array<i32>} : memref<32x24xf32, #tpu.memory_space<vmem>>, vector<32x24xf32>,
    return
  }
  func.func @transform_0(%arg0: i32) -> (i32, i32) {
    %c0_i32 = arith.constant 0 : i32
    %c0_i32_0 = arith.constant 0 : i32
    return %arg0, %c0_i32 : i32, i32
  }
  func.func @transform_1(%arg0: i32) -> (i32, i32) {
    %c0_i32 = arith.constant 0 : i32
    %c0_i32_0 = arith.constant 0 : i32
    %c0_i32_1 = arith.constant 0 : i32
    return %c0_i32, %c0_i32_0 : i32, i32
  }
  func.func @transform_2(%arg0: i32) -> (i32, i32) {
    %c0_i32 = arith.constant 0 : i32
    %c0_i32_0 = arith.constant 0 : i32
    %c0_i32_1 = arith.constant 0 : i32
    return %c0_i32, %c0_i32_0 : i32, i32
  }
  func.func @transform_3(%arg0: i32) -> (i32, i32) {
    %c0_i32 = arith.constant 0 : i32
    %c0_i32_0 = arith.constant 0 : i32
    return %arg0, %c0_i32 : i32, i32
  }
}

module attributes {stable_mosaic.version = 11 : i64} {
  func.func @_matmul_bias_kernel(%arg0: i32, %arg1: memref<32x216xbf16, #tpu.memory_space<vmem>>, %arg2: memref<216x24xbf16, #tpu.memory_space<vmem>>, %arg3: memref<1x24xf32, #tpu.memory_space<vmem>>, %arg4: memref<32x24xf32, #tpu.memory_space<vmem>>) attributes {dimension_semantics = [#tpu.dimension_semantics<parallel>], iteration_bounds = array<i64: 1>, scalar_prefetch = 0 : i64, scratch_operands = 0 : i64, tpu.core_type = #tpu.core_type<tc>, window_params = [{transform_indices = @transform_0, window_bounds = array<i64: 32, 216>}, {pipeline_mode = #tpu.pipeline_mode<synchronous>, transform_indices = @transform_1, window_bounds = array<i64: 216, 24>}, {pipeline_mode = #tpu.pipeline_mode<synchronous>, transform_indices = @transform_2, window_bounds = array<i64: 1, 24>}, {transform_indices = @transform_3, window_bounds = array<i64: 32, 24>}]} {
    %c0 = arith.constant 0 : index
    %c0_0 = arith.constant 0 : index
    %0 = vector.load %arg1[%c0, %c0_0] : memref<32x216xbf16, #tpu.memory_space<vmem>>, vector<32x216xbf16>
    %c0_1 = arith.constant 0 : index
    %c0_2 = arith.constant 0 : index
    %1 = vector.load %arg2[%c0_1, %c0_2] : memref<216x24xbf16, #tpu.memory_space<vmem>>, vector<216x24xbf16>
    %cst = arith.constant dense<0.000000e+00> : vector<32x24xf32>
    %2 = tpu.matmul %0, %1, %cst {dimension_numbers = #tpu.dot_dimension_numbers<[1], [0], [0], [1], [0, 0, 1, 1], [], []>} : vector<32x216xbf16>, vector<216x24xbf16>, vector<32x24xf32> -> vector<32x24xf32>
    %c0_3 = arith.constant 0 : index
    %c0_4 = arith.constant 0 : index
    %3 = vector.load %arg3[%c0_3, %c0_4] : memref<1x24xf32, #tpu.memory_space<vmem>>, vector<1x24xf32>
    %4 = vector.broadcast %3 : vector<1x24xf32> to vector<32x24xf32>
    %5 = arith.addf %2, %4 : vector<32x24xf32>
    %c0_5 = arith.constant 0 : index
    %c0_6 = arith.constant 0 : index
    %6 = vector.load %arg4[%c0_5, %c0_6] : memref<32x24xf32, #tpu.memory_space<vmem>>, vector<32x24xf32>
    tpu.vector_store %arg4[%c0_5, %c0_6], %5 {strides = array<i32>} : memref<32x24xf32, #tpu.memory_space<vmem>>, vector<32x24xf32>,
    return
  }
  func.func @transform_0(%arg0: i32) -> (i32, i32) {
    %c0_i32 = arith.constant 0 : i32
    %c0_i32_0 = arith.constant 0 : i32
    return %arg0, %c0_i32 : i32, i32
  }
  func.func @transform_1(%arg0: i32) -> (i32, i32) {
    %c0_i32 = arith.constant 0 : i32
    %c0_i32_0 = arith.constant 0 : i32
    %c0_i32_1 = arith.constant 0 : i32
    return %c0_i32, %c0_i32_0 : i32, i32
  }
  func.func @transform_2(%arg0: i32) -> (i32, i32) {
    %c0_i32 = arith.constant 0 : i32
    %c0_i32_0 = arith.constant 0 : i32
    %c0_i32_1 = arith.constant 0 : i32
    return %c0_i32, %c0_i32_0 : i32, i32
  }
  func.func @transform_3(%arg0: i32) -> (i32, i32) {
    %c0_i32 = arith.constant 0 : i32
    %c0_i32_0 = arith.constant 0 : i32
    return %arg0, %c0_i32 : i32, i32
  }
}

module attributes {stable_mosaic.version = 11 : i64} {
  func.func @_matmul_bias_kernel(%arg0: i32, %arg1: memref<32x400xbf16, #tpu.memory_space<vmem>>, %arg2: memref<400x24xbf16, #tpu.memory_space<vmem>>, %arg3: memref<1x24xf32, #tpu.memory_space<vmem>>, %arg4: memref<32x24xf32, #tpu.memory_space<vmem>>) attributes {dimension_semantics = [#tpu.dimension_semantics<parallel>], iteration_bounds = array<i64: 1>, scalar_prefetch = 0 : i64, scratch_operands = 0 : i64, tpu.core_type = #tpu.core_type<tc>, window_params = [{transform_indices = @transform_0, window_bounds = array<i64: 32, 400>}, {pipeline_mode = #tpu.pipeline_mode<synchronous>, transform_indices = @transform_1, window_bounds = array<i64: 400, 24>}, {pipeline_mode = #tpu.pipeline_mode<synchronous>, transform_indices = @transform_2, window_bounds = array<i64: 1, 24>}, {transform_indices = @transform_3, window_bounds = array<i64: 32, 24>}]} {
    %c0 = arith.constant 0 : index
    %c0_0 = arith.constant 0 : index
    %0 = vector.load %arg1[%c0, %c0_0] : memref<32x400xbf16, #tpu.memory_space<vmem>>, vector<32x400xbf16>
    %c0_1 = arith.constant 0 : index
    %c0_2 = arith.constant 0 : index
    %1 = vector.load %arg2[%c0_1, %c0_2] : memref<400x24xbf16, #tpu.memory_space<vmem>>, vector<400x24xbf16>
    %cst = arith.constant dense<0.000000e+00> : vector<32x24xf32>
    %2 = tpu.matmul %0, %1, %cst {dimension_numbers = #tpu.dot_dimension_numbers<[1], [0], [0], [1], [0, 0, 1, 1], [], []>} : vector<32x400xbf16>, vector<400x24xbf16>, vector<32x24xf32> -> vector<32x24xf32>
    %c0_3 = arith.constant 0 : index
    %c0_4 = arith.constant 0 : index
    %3 = vector.load %arg3[%c0_3, %c0_4] : memref<1x24xf32, #tpu.memory_space<vmem>>, vector<1x24xf32>
    %4 = vector.broadcast %3 : vector<1x24xf32> to vector<32x24xf32>
    %5 = arith.addf %2, %4 : vector<32x24xf32>
    %c0_5 = arith.constant 0 : index
    %c0_6 = arith.constant 0 : index
    %6 = vector.load %arg4[%c0_5, %c0_6] : memref<32x24xf32, #tpu.memory_space<vmem>>, vector<32x24xf32>
    tpu.vector_store %arg4[%c0_5, %c0_6], %5 {strides = array<i32>} : memref<32x24xf32, #tpu.memory_space<vmem>>, vector<32x24xf32>,
    return
  }
  func.func @transform_0(%arg0: i32) -> (i32, i32) {
    %c0_i32 = arith.constant 0 : i32
    %c0_i32_0 = arith.constant 0 : i32
    return %arg0, %c0_i32 : i32, i32
  }
  func.func @transform_1(%arg0: i32) -> (i32, i32) {
    %c0_i32 = arith.constant 0 : i32
    %c0_i32_0 = arith.constant 0 : i32
    %c0_i32_1 = arith.constant 0 : i32
    return %c0_i32, %c0_i32_0 : i32, i32
  }
  func.func @transform_2(%arg0: i32) -> (i32, i32) {
    %c0_i32 = arith.constant 0 : i32
    %c0_i32_0 = arith.constant 0 : i32
    %c0_i32_1 = arith.constant 0 : i32
    return %c0_i32, %c0_i32_0 : i32, i32
  }
  func.func @transform_3(%arg0: i32) -> (i32, i32) {
    %c0_i32 = arith.constant 0 : i32
    %c0_i32_0 = arith.constant 0 : i32
    return %arg0, %c0_i32 : i32, i32
  }
}

module attributes {stable_mosaic.version = 11 : i64} {
  func.func @_matmul_bias_kernel(%arg0: i32, %arg1: memref<2x1408xbf16, #tpu.memory_space<vmem>>, %arg2: memref<1408x10xbf16, #tpu.memory_space<vmem>>, %arg3: memref<1x10xf32, #tpu.memory_space<vmem>>, %arg4: memref<2x10xf32, #tpu.memory_space<vmem>>) attributes {dimension_semantics = [#tpu.dimension_semantics<parallel>], iteration_bounds = array<i64: 1>, scalar_prefetch = 0 : i64, scratch_operands = 0 : i64, tpu.core_type = #tpu.core_type<tc>, window_params = [{transform_indices = @transform_0, window_bounds = array<i64: 2, 1408>}, {pipeline_mode = #tpu.pipeline_mode<synchronous>, transform_indices = @transform_1, window_bounds = array<i64: 1408, 10>}, {pipeline_mode = #tpu.pipeline_mode<synchronous>, transform_indices = @transform_2, window_bounds = array<i64: 1, 10>}, {transform_indices = @transform_3, window_bounds = array<i64: 2, 10>}]} {
    %c0 = arith.constant 0 : index
    %c0_0 = arith.constant 0 : index
    %0 = vector.load %arg1[%c0, %c0_0] : memref<2x1408xbf16, #tpu.memory_space<vmem>>, vector<2x1408xbf16>
    %c0_1 = arith.constant 0 : index
    %c0_2 = arith.constant 0 : index
    %1 = vector.load %arg2[%c0_1, %c0_2] : memref<1408x10xbf16, #tpu.memory_space<vmem>>, vector<1408x10xbf16>
    %cst = arith.constant dense<0.000000e+00> : vector<2x10xf32>
    %2 = tpu.matmul %0, %1, %cst {dimension_numbers = #tpu.dot_dimension_numbers<[1], [0], [0], [1], [0, 0, 1, 1], [], []>} : vector<2x1408xbf16>, vector<1408x10xbf16>, vector<2x10xf32> -> vector<2x10xf32>
    %c0_3 = arith.constant 0 : index
    %c0_4 = arith.constant 0 : index
    %3 = vector.load %arg3[%c0_3, %c0_4] : memref<1x10xf32, #tpu.memory_space<vmem>>, vector<1x10xf32>
    %4 = vector.broadcast %3 : vector<1x10xf32> to vector<2x10xf32>
    %5 = arith.addf %2, %4 : vector<2x10xf32>
    %cst_5 = arith.constant dense<0xFF800000> : vector<2xf32>
    %6 = vector.multi_reduction <maximumf>, %5, %cst_5 [1] : vector<2x10xf32> to vector<2xf32>
    %7 = vector.shape_cast %6 : vector<2xf32> to vector<2x1xf32>
    %8 = vector.broadcast %7 : vector<2x1xf32> to vector<2x10xf32>
    %9 = arith.subf %5, %8 : vector<2x10xf32>
    %10 = math.exp %9 : vector<2x10xf32>
    %cst_6 = arith.constant dense<0.000000e+00> : vector<2xf32>
    %11 = vector.multi_reduction <add>, %10, %cst_6 [1] : vector<2x10xf32> to vector<2xf32>
    %12 = vector.shape_cast %11 : vector<2xf32> to vector<2x1xf32>
    %13 = math.log %12 : vector<2x1xf32>
    %14 = vector.broadcast %13 : vector<2x1xf32> to vector<2x10xf32>
    %15 = arith.subf %9, %14 : vector<2x10xf32>
    %c0_7 = arith.constant 0 : index
    %c0_8 = arith.constant 0 : index
    %16 = vector.load %arg4[%c0_7, %c0_8] : memref<2x10xf32, #tpu.memory_space<vmem>>, vector<2x10xf32>
    tpu.vector_store %arg4[%c0_7, %c0_8], %15 {strides = array<i32>} : memref<2x10xf32, #tpu.memory_space<vmem>>, vector<2x10xf32>,
    return
  }
  func.func @transform_0(%arg0: i32) -> (i32, i32) {
    %c0_i32 = arith.constant 0 : i32
    %c0_i32_0 = arith.constant 0 : i32
    return %arg0, %c0_i32 : i32, i32
  }
  func.func @transform_1(%arg0: i32) -> (i32, i32) {
    %c0_i32 = arith.constant 0 : i32
    %c0_i32_0 = arith.constant 0 : i32
    %c0_i32_1 = arith.constant 0 : i32
    return %c0_i32, %c0_i32_0 : i32, i32
  }
  func.func @transform_2(%arg0: i32) -> (i32, i32) {
    %c0_i32 = arith.constant 0 : i32
    %c0_i32_0 = arith.constant 0 : i32
    %c0_i32_1 = arith.constant 0 : i32
    return %c0_i32, %c0_i32_0 : i32, i32
  }
  func.func @transform_3(%arg0: i32) -> (i32, i32) {
    %c0_i32 = arith.constant 0 : i32
    %c0_i32_0 = arith.constant 0 : i32
    return %arg0, %c0_i32 : i32, i32
  }
}

</mosaic_0001>

<bundles_post_ra>
// kernel: net_forward.16
= control target key start
LH: loop header
LB: loop body
LE: loop exit
PB: predicated region body
PF: predicated region fallthrough
CT: control target
= control target key end

     0   :  { %vm26_vm0 = vcmask 1041408   ;;  %vm27_vm1 = vcmask 1043458   ;;  %vm29_vm2 = vcmask 1045508   ;;  %vm31_vm3 = vcmask 261126   ;;  %s105_s0 = inlined_call_operand.vmem [shape: f32[4,2,1440], index: 0, kind: input, shape index: {}]   ;;  %s106_s1 = inlined_call_operand.vmem [shape: f32[2,1440], index: 1, kind: output, shape index: {}]  }
   0x1   :  { %v8_v0 = vld [vmem:[%s105_s0] sm:$0xff]  ;;  %v11_v1 = vld [vmem:[%s105_s0 + $0x18] sm:$0xff]  ;;  %v14_v2 = vld [vmem:[%s105_s0 + $0x30] sm:$0xff] }
   0x2   :  { %v17_v3 = vld [vmem:[%s105_s0 + $0x48] sm:$0xff]  ;;  %v20_v4 = vmax.f32 %v8_v0, %v14_v2  ;;  %v12_v6 = vld [vmem:[%s105_s0 + $0x20] sm:$0xff]  ;;  %v15_v8 = vld [vmem:[%s105_s0 + $0x38] sm:$0xff] }
   0x3   :  { %v9_v5 = vld [vmem:[%s105_s0 + $0x8] sm:$0xff]  ;;  %v21_v7 = vmax.f32 %v11_v1, %v17_v3  ;;  %v18_v9 = vld [vmem:[%s105_s0 + $0x50] sm:$0xff]  ;;  %v16_v15 = vld [vmem:[%s105_s0 + $0x40] sm:$0xff] }
   0x4   :  { %v23_v10 = vmax.f32 %v9_v5, %v15_v8  ;;  %v24_v11 = vmax.f32 %v12_v6, %v18_v9  ;;  %v10_v12 = vld [vmem:[%s105_s0 + $0x10] sm:$0xff]  ;;  %v13_v14 = vld [vmem:[%s105_s0 + $0x28] sm:$0xff]  ;;  %vm28_vm4 = vmor %vm27_vm1, %vm26_vm0 }
   0x5   :  { %v22_v13 = vmax.f32 %v20_v4, %v21_v7  ;;  %v19_v17 = vld [vmem:[%s105_s0 + $0x58] sm:$0xff]  ;;  %vm30_vm5 = vmor %vm29_vm2, %vm28_vm4 }
   0x6   :  { %v25_v16 = vmax.f32 %v23_v10, %v24_v11  ;;  %vm32_vm6 = vmor %vm31_vm3, %vm30_vm5 }
   0x7   :  { %v40_v18 = vmax.f32 %v22_v13, 0.0  ;;  %v33_v20 = vsel %vm32_vm6, %v10_v12, -inf  ;;  %v34_v21 = vsel %vm32_vm6, %v13_v14, -inf  ;;  %v35_v22 = vsel %vm32_vm6, %v16_v15, -inf }
   0x8   :  { %v41_v19 = vmax.f32 %v25_v16, 0.0  ;;  %v36_v23 = vmax.f32 %v33_v20, %v35_v22  ;;  %v37_v24 = vsel %vm32_vm6, %v19_v17, -inf }
   0x9   :  { %43 = vst [vmem:[%s106_s1] sm:$0xff] %v40_v18  ;;  %v38_v25 = vmax.f32 %v34_v21, %v37_v24 }
   0xa   :  { %44 = vst [vmem:[%s106_s1 + $0x8] sm:$0xff] %v41_v19 }
   0xb   :  { %v39_v26 = vmax.f32 %v36_v23, %v38_v25 }
   0xd   :  { %v42_v27 = vmax.f32 %v39_v26, 0.0 }
   0xf   :  { %45 = vst.msk [vmem:[%s106_s1 + $0x10] sm:$0xff] %vm32_vm6, %v42_v27 }

// kernel: net_forward.15
= control target key start
LH: loop header
LB: loop body
LE: loop exit
PB: predicated region body
PF: predicated region fallthrough
CT: control target
= control target key end

     0   :  { %s567_s12 = smov 0   ;;  %s635_s0 = inlined_call_operand.vmem [shape: bf16[1152,25], index: 0, kind: input, shape index: {}]   ;;  %s636_s1 = inlined_call_operand.vmem [shape: bf16[25,10], index: 1, kind: input, shape index: {}]   ;;  %s637_s2 = inlined_call_operand.vmem [shape: f32[1,10], index: 2, kind: input, shape index: {}]   ;;  %s638_s3 = inlined_call_operand.vmem [shape: f32[1152,10], index: 3, kind: output, shape index: {}]  }
   0x1 LB: > { %s455_s13 = sadd.s32 4294967295, %s544_s12   ;;  %p459_p0 = scmp.ge.s32.totalorder %s544_s12, 1  ;;  %s544_s12 = sphi %s567_s12, %s13_s12  }
   0x2   : > { %p138_p1 = scmp.lt.s32.totalorder %s544_s12, 10 }
   0x4   : > { %p139_p2 = pnand %p459_p0, %p138_p1 }
   0x5   : > { %v528_v0 = vld [vmem:[%s636_s1] sm:$0xff] (!%p139_p2)   ;;  %vm278_vm0 = vcmask (!%p139_p2), 1043456   ;;  %v529_v1 = vld [vmem:[%s636_s1 + $0x8] sm:$0x1f] (!%p139_p2)   ;;  %vm279_vm1 = vcmask (!%p139_p2), 1044480   ;;  %s460_s18 = sshll.u32 (!%p139_p2), %s455_s13, 4 }
   0x6   : > { %142 = sbr.rel (%p139_p2) target bundleno = 245 (0xf5), region = 32  ;;  %495 = vmatprep.subr.bf16.mxu0 (!%p139_p2), %v528_v0  ;;  %515 = vmatprep.subr.bf16.mxu1 (!%p139_p2), %v528_v0  ;;  %v546_v2 = vmov (!%p139_p2), 65535   ;;  %p163_p3 = scmp.lt.s32.totalorder (!%p139_p2), %s460_s18, 143  ;;  %vm253_vm2 = vcmask (!%p139_p2), 203776   ;;  %v464_v14 = vld [vmem:[%s637_s2] ss:$0 sm:$0xff] (!%p139_p2) }
   0x7   : > { %496 = vmatpush3.bf16.msra.mxu0 (!%p139_p2), %v528_v0  ;;  %517 = vmatpush3.bf16.msra.mxu1 (!%p139_p2), %v528_v0  ;;  %v280_v3 = vsel (!%p139_p2), %vm278_vm0, 4294967295, %v546_v2  ;;  %vm382_vm3 = vcmask (!%p139_p2), 80896  }
   0x8   : > { %v281_v4 = vsel (!%p139_p2), %vm279_vm1, %v280_v3, 0 }
   0x9   : > { %v283_v5 = vand.u32 (!%p139_p2), %v529_v1, %v281_v4 }
   0xb   : > { %497 = vmatprep.subr.bf16.mxu0 (!%p139_p2), %v283_v5  ;;  %516 = vmatprep.subr.bf16.mxu1 (!%p139_p2), %v283_v5 }
   0xc   : > { %498 = vmatpush3.bf16.msra.mxu0 (!%p139_p2), %v283_v5  ;;  %518 = vmatpush3.bf16.msra.mxu1 (!%p139_p2), %v283_v5 }
   0xd   : > { %s640_s18 = smov (!%p163_p3, %s460_s18), 143 }
   0xe   : > { %s461_s19 = sshll.u32 %s640_s18, 2  ;;  %s463_s23 = sshll.u32 %s640_s18, 3 }
   0xf   : > { %s166_s22 = scalar_lea.vmem %s635_s0, %s461_s19  ;;  %s598_s28 = scalar_lea.vmem %s638_s3, %s463_s23 }
  0x10   : > { %v530_v6 = vld [vmem:[%s166_s22] sm:$0xff]   ;;  %v532_v8 = vld [vmem:[%s166_s22 + $0x8] sm:$0xff]   ;;  %v534_v10 = vld [vmem:[%s166_s22 + $0x10] sm:$0xff]  }
  0x11   : > { %v531_v7 = vld [vmem:[%s166_s22 + $0x20] sm:$0xff]   ;;  %499 = vmatprep.mubr.msk.bf16.mxu0 %vm253_vm2, %v530_v6  ;;  %v533_v9 = vld [vmem:[%s166_s22 + $0x28] sm:$0xff]   ;;  %v535_v11 = vld [vmem:[%s166_s22 + $0x30] sm:$0xff]  }
  0x12   : > { %507 = vmatprep.mubr.msk.bf16.mxu1 %vm253_vm2, %v531_v7  ;;  %500 = vmatmul.mubr.msk.bf16.vlgmr.msra.gmra.mrb[0].mxu0 %vm253_vm2, %v532_v8  ;;  %v536_v12 = vld [vmem:[%s166_s22 + $0x18] sm:$0xff]  }
  0x13   : > { %508 = vmatmul.mubr.msk.bf16.vlgmr.msra.gmra.mrb[0].mxu1 %vm253_vm2, %v533_v9  ;;  %503 = vmatprep.mubr.msk.bf16.mxu0 %vm253_vm2, %v534_v10  ;;  %v537_v13 = vld [vmem:[%s166_s22 + $0x38] sm:$0xff]  }
  0x14   : > { %511 = vmatprep.mubr.msk.bf16.mxu1 %vm253_vm2, %v535_v11 }
  0x1a   : > { %504 = vmatmul.mubr.msk.bf16.gmra.mrb[4].mxu0 %vm253_vm2, %v536_v12 }
  0x1b   : > { %512 = vmatmul.mubr.msk.bf16.gmra.mrb[4].mxu1 %vm253_vm2, %v537_v13 }
  0xe5   : > { %v501_v15 = vpop.f32.mrb[0].mxu0 }
  0xe6   : > { %v328_v16 = vadd.f32 %v501_v15, %v464_v14  ;;  %v509_v17 = vpop.f32.mrb[0].mxu1  ;;  %v319_v18 = vpop.f32.mrb[1].mxu0 }
  0xe7   : > { %v360_v19 = vadd.f32 %v509_v17, %v464_v14  ;;  %v320_v20 = vadd.f32 %v464_v14, %v319_v18  ;;  %v351_v21 = vpop.f32.mrb[1].mxu1  ;;  %v502_v22 = vpop.f32.mrb[2].mxu0 }
  0xe8   : > { %385 = vst.msk [vmem:[%s598_s28 + $0x10] sm:$0xff] %vm382_vm3, %v328_v16  ;;  %v352_v23 = vadd.f32 %v464_v14, %v351_v21  ;;  %v331_v24 = vadd.f32 %v502_v22, %v464_v14  ;;  %v510_v25 = vpop.f32.mrb[2].mxu1  ;;  %v322_v26 = vpop.f32.mrb[3].mxu0 }
  0xe9   : > { %393 = vst.msk [vmem:[%s598_s28 + $0x50] sm:$0xff] %vm382_vm3, %v360_v19  ;;  %383 = vst.msk [vmem:[%s598_s28] sm:$0xff] %vm382_vm3, %v320_v20  ;;  %v363_v27 = vadd.f32 %v510_v25, %v464_v14  ;;  %v323_v28 = vadd.f32 %v464_v14, %v322_v26  ;;  %v354_v29 = vpop.f32.mrb[3].mxu1 }
  0xea   : > { %391 = vst.msk [vmem:[%s598_s28 + $0x40] sm:$0xff] %vm382_vm3, %v352_v23  ;;  %386 = vst.msk [vmem:[%s598_s28 + $0x18] sm:$0xff] %vm382_vm3, %v331_v24  ;;  %v355_v30 = vadd.f32 %v464_v14, %v354_v29 }
  0xeb   : > { %394 = vst.msk [vmem:[%s598_s28 + $0x58] sm:$0xff] %vm382_vm3, %v363_v27  ;;  %384 = vst.msk [vmem:[%s598_s28 + $0x8] sm:$0xff] %vm382_vm3, %v323_v28 }
  0xec   : > { %392 = vst.msk [vmem:[%s598_s28 + $0x48] sm:$0xff] %vm382_vm3, %v355_v30 }
  0xed   : > { %v505_v31 = vpop.f32.mrb[4].mxu0 }
  0xee   : > { %v344_v32 = vadd.f32 %v505_v31, %v464_v14  ;;  %v513_v33 = vpop.f32.mrb[4].mxu1  ;;  %v335_v34 = vpop.f32.mrb[5].mxu0 }
  0xef   : > { %v376_v35 = vadd.f32 %v513_v33, %v464_v14  ;;  %v336_v36 = vadd.f32 %v464_v14, %v335_v34  ;;  %v367_v37 = vpop.f32.mrb[5].mxu1  ;;  %v506_v38 = vpop.f32.mrb[6].mxu0 }
  0xf0   : > { %389 = vst.msk [vmem:[%s598_s28 + $0x30] sm:$0xff] %vm382_vm3, %v344_v32  ;;  %v368_v39 = vadd.f32 %v464_v14, %v367_v37  ;;  %v347_v40 = vadd.f32 %v506_v38, %v464_v14  ;;  %v514_v41 = vpop.f32.mrb[6].mxu1  ;;  %v338_v42 = vpop.f32.mrb[7].mxu0 }
  0xf1   : > { %397 = vst.msk [vmem:[%s598_s28 + $0x70] sm:$0xff] %vm382_vm3, %v376_v35  ;;  %387 = vst.msk [vmem:[%s598_s28 + $0x20] sm:$0xff] %vm382_vm3, %v336_v36  ;;  %v379_v43 = vadd.f32 %v514_v41, %v464_v14  ;;  %v339_v44 = vadd.f32 %v464_v14, %v338_v42  ;;  %v370_v45 = vpop.f32.mrb[7].mxu1 }
  0xf2   : > { %395 = vst.msk [vmem:[%s598_s28 + $0x60] sm:$0xff] %vm382_vm3, %v368_v39  ;;  %390 = vst.msk [vmem:[%s598_s28 + $0x38] sm:$0xff] %vm382_vm3, %v347_v40  ;;  %v371_v46 = vadd.f32 %v464_v14, %v370_v45 }
  0xf3   : > { %398 = vst.msk [vmem:[%s598_s28 + $0x78] sm:$0xff] %vm382_vm3, %v379_v43  ;;  %388 = vst.msk [vmem:[%s598_s28 + $0x28] sm:$0xff] %vm382_vm3, %v339_v44 }
  0xf4   : > { %396 = vst.msk [vmem:[%s598_s28 + $0x68] sm:$0xff] %vm382_vm3, %v371_v46 }
  0xf5 PF: > { %s13_s12 = sadd.s32 1, %s544_s12  }
  0xf6   : > { %p10_p4 = scmp.ge.s32.totalorder %s13_s12, 11  }
  0xf8   :  { %12 = sbr.rel (!%p10_p4) target bundleno = 1 (0x1), region = 62 }

// kernel: net_forward.17
= control target key start
LH: loop header
LB: loop body
LE: loop exit
PB: predicated region body
PF: predicated region fallthrough
CT: control target
= control target key end

     0   :  { %s593_s12 = smov 0   ;;  %s696_s0 = inlined_call_operand.vmem [shape: bf16[288,10], index: 0, kind: input, shape index: {}]   ;;  %s697_s1 = inlined_call_operand.vmem [shape: bf16[10,72], index: 1, kind: input, shape index: {}]   ;;  %s698_s2 = inlined_call_operand.vmem [shape: f32[1,72], index: 2, kind: input, shape index: {}]   ;;  %s699_s3 = inlined_call_operand.vmem [shape: f32[288,72], index: 3, kind: output, shape index: {}]  }
   0x1 LB: > { %s464_s13 = sadd.s32 4294967295, %s569_s12   ;;  %p468_p0 = scmp.ge.s32.totalorder %s569_s12, 1  ;;  %s569_s12 = sphi %s593_s12, %s13_s12  }
   0x2   : > { %p138_p1 = scmp.lt.s32.totalorder %s569_s12, 3 }
   0x4   : > { %p139_p2 = pnand %p468_p0, %p138_p1 }
   0x5   : > { %vm280_vm0 = vcmask (!%p139_p2), 1044480   ;;  %v571_v0 = vmov (!%p139_p2), 0.0   ;;  %v553_v1 = vld [vmem:[%s697_s1] sm:$0x1f] (!%p139_p2)   ;;  %s162_s16 = smul.u32 (!%p139_p2), 18, %s464_s13  ;;  %vm572_vm1 = vmmov (!%p139_p2), 0  }
   0x6   : > { %142 = sbr.rel (%p139_p2) target bundleno = 266 (0x10a), region = 32  ;;  %503 = vmatprep.subr.bf16.mxu0 (!%p139_p2), %v571_v0  ;;  %541 = vmatprep.subr.bf16.mxu1 (!%p139_p2), %v571_v0  ;;  %v282_v2 = vsel (!%p139_p2), %vm280_vm0, %v553_v1, 0  ;;  %vm252_vm2 = vcmask (!%p139_p2), 80896   ;;  %v632_v12 = vld [vmem:[%s698_s2] ss:$0 sm:$0xff] (!%p139_p2)  ;;  %vm389_vm3 = vcmask (!%p139_p2), 588800  }
   0x7   : > { %505 = vmatprep.mubr.msk.bf16.mxu0 (!%p139_p2), %vm572_vm1, %v571_v0  ;;  %525 = vmatprep.mubr.msk.bf16.mxu1 (!%p139_p2), %vm572_vm1, %v571_v0  ;;  %p163_p3 = scmp.lt.s32.totalorder (!%p139_p2), %s162_s16, 35 }
   0x8   : > { %504 = vmatpush3.bf16.msra.mxu0 (!%p139_p2), %v282_v2  ;;  %542 = vmatpush3.bf16.msra.mxu1 (!%p139_p2), %v282_v2 }
   0xd   : > { %s701_s16 = smov (!%p163_p3, %s162_s16), 35 }
   0xe   : > { %s469_s17 = sshll.u32 %s701_s16, 2  ;;  %s470_s21 = sshll.u32 %s701_s16, 3 }
   0xf   : > { %s166_s20 = scalar_lea.vmem %s696_s0, %s469_s17  ;;  %s637_s26 = scalar_lea.vmem %s699_s3, %s470_s21 }
  0x10   : > { %v554_v3 = vld [vmem:[%s166_s20] sm:$0xff]   ;;  %v555_v4 = vld [vmem:[%s166_s20 + $0x28] sm:$0xff]   ;;  %v557_v6 = vld [vmem:[%s166_s20 + $0x30] sm:$0xff]  }
  0x11   : > { %506 = vmatmul.mubr.msk.bf16.vlgmr.msra.gmra.mrb[0].mxu0 %vm252_vm2, %v554_v3  ;;  %526 = vmatmul.mubr.msk.bf16.vlgmr.msra.gmra.mrb[0].mxu1 %vm252_vm2, %v555_v4  ;;  %v556_v5 = vld [vmem:[%s166_s20 + $0x8] sm:$0xff]   ;;  %v558_v7 = vld [vmem:[%s166_s20 + $0x10] sm:$0xff]   ;;  %v559_v8 = vld [vmem:[%s166_s20 + $0x38] sm:$0xff]  }
  0x12   : > { %509 = vmatprep.mubr.msk.bf16.mxu0 %vm572_vm1, %v571_v0  ;;  %529 = vmatprep.mubr.msk.bf16.mxu1 %vm572_vm1, %v571_v0  ;;  %v560_v9 = vld [vmem:[%s166_s20 + $0x18] sm:$0xff]   ;;  %v561_v10 = vld [vmem:[%s166_s20 + $0x40] sm:$0xff]  }
  0x13   : > { %v562_v11 = vld [vmem:[%s166_s20 + $0x20] sm:$0xff]  }
  0x19   : > { %510 = vmatmul.mubr.msk.bf16.gmra.mrb[4].mxu0 %vm252_vm2, %v556_v5  ;;  %530 = vmatmul.mubr.msk.bf16.gmra.mrb[4].mxu1 %vm252_vm2, %v557_v6 }
  0x1a   : > { %513 = vmatprep.mubr.msk.bf16.mxu0 %vm572_vm1, %v571_v0  ;;  %533 = vmatprep.mubr.msk.bf16.mxu1 %vm572_vm1, %v571_v0 }
  0x21   : > { %514 = vmatmul.mubr.msk.bf16.gmra.mrb[8].mxu0 %vm252_vm2, %v558_v7  ;;  %534 = vmatmul.mubr.msk.bf16.gmra.mrb[8].mxu1 %vm252_vm2, %v559_v8 }
  0x22   : > { %517 = vmatprep.mubr.msk.bf16.mxu0 %vm572_vm1, %v571_v0  ;;  %537 = vmatprep.mubr.msk.bf16.mxu1 %vm572_vm1, %v571_v0 }
  0x29   : > { %518 = vmatmul.mubr.msk.bf16.gmra.mrb[12].mxu0 %vm252_vm2, %v560_v9  ;;  %538 = vmatmul.mubr.msk.bf16.gmra.mrb[12].mxu1 %vm252_vm2, %v561_v10 }
  0x2a   : > { %521 = vmatprep.mubr.msk.bf16.mxu0 %vm572_vm1, %v571_v0 }
  0x31   : > { %522 = vmatmul.mubr.msk.bf16.gmra.mrb[16].mxu0 %vm252_vm2, %v562_v11 }
  0xe4   : > { %v318_v13 = vpop.f32.mrb[0].mxu0  ;;  %v358_v16 = vpop.f32.mrb[0].mxu1 }
  0xe5   : > { %v319_v14 = vadd.f32 %v632_v12, %v318_v13  ;;  %v507_v15 = vpop.f32.mrb[1].mxu0  ;;  %v359_v18 = vadd.f32 %v632_v12, %v358_v16  ;;  %v527_v19 = vpop.f32.mrb[1].mxu1 }
  0xe6   : > { %v321_v17 = vpop.f32.mrb[2].mxu0  ;;  %v361_v22 = vpop.f32.mrb[2].mxu1 }
  0xe7   : > { %390 = vst.msk [vmem:[%s637_s26] sm:$0xff] %vm389_vm3, %v319_v14  ;;  %v322_v20 = vadd.f32 %v632_v12, %v321_v17  ;;  %v508_v21 = vpop.f32.mrb[3].mxu0  ;;  %400 = vst.msk [vmem:[%s637_s26 + $0x50] sm:$0xff] %vm389_vm3, %v359_v18  ;;  %v362_v23 = vadd.f32 %v632_v12, %v361_v22  ;;  %v528_v24 = vpop.f32.mrb[3].mxu1 }
  0xe9   : > { %391 = vst.msk [vmem:[%s637_s26 + $0x8] sm:$0xff] %vm389_vm3, %v322_v20  ;;  %401 = vst.msk [vmem:[%s637_s26 + $0x58] sm:$0xff] %vm389_vm3, %v362_v23 }
  0xec   : > { %v326_v25 = vpop.f32.mrb[4].mxu0  ;;  %v366_v28 = vpop.f32.mrb[4].mxu1 }
  0xed   : > { %v327_v26 = vadd.f32 %v632_v12, %v326_v25  ;;  %v511_v27 = vpop.f32.mrb[5].mxu0  ;;  %v367_v30 = vadd.f32 %v632_v12, %v366_v28  ;;  %v531_v31 = vpop.f32.mrb[5].mxu1 }
  0xee   : > { %v329_v29 = vpop.f32.mrb[6].mxu0  ;;  %v369_v34 = vpop.f32.mrb[6].mxu1 }
  0xef   : > { %392 = vst.msk [vmem:[%s637_s26 + $0x10] sm:$0xff] %vm389_vm3, %v327_v26  ;;  %v330_v32 = vadd.f32 %v632_v12, %v329_v29  ;;  %v512_v33 = vpop.f32.mrb[7].mxu0  ;;  %402 = vst.msk [vmem:[%s637_s26 + $0x60] sm:$0xff] %vm389_vm3, %v367_v30  ;;  %v370_v35 = vadd.f32 %v632_v12, %v369_v34  ;;  %v532_v36 = vpop.f32.mrb[7].mxu1 }
  0xf1   : > { %393 = vst.msk [vmem:[%s637_s26 + $0x18] sm:$0xff] %vm389_vm3, %v330_v32  ;;  %403 = vst.msk [vmem:[%s637_s26 + $0x68] sm:$0xff] %vm389_vm3, %v370_v35 }
  0xf4   : > { %v334_v37 = vpop.f32.mrb[8].mxu0  ;;  %v374_v40 = vpop.f32.mrb[8].mxu1 }
  0xf5   : > { %v335_v38 = vadd.f32 %v632_v12, %v334_v37  ;;  %v515_v39 = vpop.f32.mrb[9].mxu0  ;;  %v375_v42 = vadd.f32 %v632_v12, %v374_v40  ;;  %v535_v43 = vpop.f32.mrb[9].mxu1 }
  0xf6   : > { %v337_v41 = vpop.f32.mrb[10].mxu0  ;;  %v377_v46 = vpop.f32.mrb[10].mxu1 }
  0xf7   : > { %394 = vst.msk [vmem:[%s637_s26 + $0x20] sm:$0xff] %vm389_vm3, %v335_v38  ;;  %v338_v44 = vadd.f32 %v632_v12, %v337_v41  ;;  %v516_v45 = vpop.f32.mrb[11].mxu0  ;;  %404 = vst.msk [vmem:[%s637_s26 + $0x70] sm:$0xff] %vm389_vm3, %v375_v42  ;;  %v378_v47 = vadd.f32 %v632_v12, %v377_v46  ;;  %v536_v48 = vpop.f32.mrb[11].mxu1 }
  0xf9   : > { %395 = vst.msk [vmem:[%s637_s26 + $0x28] sm:$0xff] %vm389_vm3, %v338_v44  ;;  %405 = vst.msk [vmem:[%s637_s26 + $0x78] sm:$0xff] %vm389_vm3, %v378_v47 }
  0xfc   : > { %v342_v49 = vpop.f32.mrb[12].mxu0  ;;  %v382_v52 = vpop.f32.mrb[12].mxu1 }
  0xfd   : > { %v343_v50 = vadd.f32 %v632_v12, %v342_v49  ;;  %v519_v51 = vpop.f32.mrb[13].mxu0  ;;  %v383_v54 = vadd.f32 %v632_v12, %v382_v52  ;;  %v539_v55 = vpop.f32.mrb[13].mxu1 }
  0xfe   : > { %v345_v53 = vpop.f32.mrb[14].mxu0  ;;  %v385_v58 = vpop.f32.mrb[14].mxu1 }
  0xff   : > { %396 = vst.msk [vmem:[%s637_s26 + $0x30] sm:$0xff] %vm389_vm3, %v343_v50  ;;  %v346_v56 = vadd.f32 %v632_v12, %v345_v53  ;;  %v520_v57 = vpop.f32.mrb[15].mxu0  ;;  %406 = vst.msk [vmem:[%s637_s26 + $0x80] sm:$0xff] %vm389_vm3, %v383_v54  ;;  %v386_v59 = vadd.f32 %v632_v12, %v385_v58  ;;  %v540_v60 = vpop.f32.mrb[15].mxu1 }
 0x101   : > { %397 = vst.msk [vmem:[%s637_s26 + $0x38] sm:$0xff] %vm389_vm3, %v346_v56  ;;  %407 = vst.msk [vmem:[%s637_s26 + $0x88] sm:$0xff] %vm389_vm3, %v386_v59 }
 0x104   : > { %v350_v61 = vpop.f32.mrb[16].mxu0 }
 0x105   : > { %v351_v62 = vadd.f32 %v632_v12, %v350_v61  ;;  %v523_v63 = vpop.f32.mrb[17].mxu0 }
 0x106   : > { %v353_v0 = vpop.f32.mrb[18].mxu0 }
 0x107   : > { %398 = vst.msk [vmem:[%s637_s26 + $0x40] sm:$0xff] %vm389_vm3, %v351_v62  ;;  %v354_v1 = vadd.f32 %v632_v12, %v353_v0  ;;  %v524_v2 = vpop.f32.mrb[19].mxu0 }
 0x109   : > { %399 = vst.msk [vmem:[%s637_s26 + $0x48] sm:$0xff] %vm389_vm3, %v354_v1 }
 0x10a PF: > { %s13_s12 = sadd.s32 1, %s569_s12  }
 0x10b   : > { %p10_p4 = scmp.ge.s32.totalorder %s13_s12, 4  }
 0x10d   :  { %12 = sbr.rel (!%p10_p4) target bundleno = 1 (0x1), region = 62 }

// kernel: net_forward.21
= control target key start
LH: loop header
LB: loop body
LE: loop exit
PB: predicated region body
PF: predicated region fallthrough
CT: control target
= control target key end

     0   :  { %v138_v0 = vlaneseq  ;;  %v2153_v4 = vmov 1983009808   ;;  %vm1439_vm0 = vcmask 1041408   ;;  %s3793_s0 = inlined_call_operand.vmem [shape: f32[9,2,3456], index: 0, kind: input, shape index: {}]   ;;  %s3794_s1 = inlined_call_operand.vmem [shape: f32[2,3456], index: 1, kind: output, shape index: {}]  }
   0x1   :  { %v8_v1 = vld [vmem:[%s3793_s0] sm:$0xff]  ;;  %v9_v2 = vld [vmem:[%s3793_s0 + $0x8] sm:$0xff]  ;;  %v10_v3 = vld [vmem:[%s3793_s0 + $0x10] sm:$0xff]  ;;  %v136_v5 = vunpack.c.l.s4 %v2153_v4 }
   0x2   :  { %v11_v6 = vld [vmem:[%s3793_s0 + $0x18] sm:$0xff]  ;;  %v12_v7 = vld [vmem:[%s3793_s0 + $0x20] sm:$0xff]  ;;  %v13_v8 = vld [vmem:[%s3793_s0 + $0x28] sm:$0xff]  ;;  %v134_v9 = vcombine.high %v8_v1, %v8_v1  ;;  %v139_v10 = vshrl.u32 %v138_v0, 7  ;;  %v151_v15 = vcombine.high %v9_v2, %v9_v2  ;;  %v168_v16 = vcombine.high %v10_v3, %v10_v3 }
   0x3   :  { %v14_v11 = vld [vmem:[%s3793_s0 + $0x30] sm:$0x3f]  ;;  %v15_v12 = vld [vmem:[%s3793_s0 + $0x36] sm:$0xff]  ;;  %v16_v13 = vld [vmem:[%s3793_s0 + $0x3e] sm:$0xff]  ;;  %v137_v14 = vunpack.c.0.s8 %v136_v5  ;;  %v185_v17 = vcombine.high %v11_v6, %v11_v6  ;;  %v202_v21 = vcombine.high %v12_v7, %v12_v7  ;;  %v219_v22 = vcombine.high %v13_v8, %v13_v8 }
   0x4   :  { %v17_v18 = vld [vmem:[%s3793_s0 + $0x46] sm:$0xff]  ;;  %v18_v19 = vld [vmem:[%s3793_s0 + $0x4e] sm:$0xff]  ;;  %v19_v20 = vld [vmem:[%s3793_s0 + $0x56] sm:$0xff]  ;;  %v236_v23 = vcombine.high %v14_v11, %v14_v11  ;;  %v252_v24 = vcombine.high %v15_v12, %v15_v12  ;;  %v269_v29 = vcombine.high %v16_v13, %v16_v13 }
   0x5   :  { %v20_v25 = vld [vmem:[%s3793_s0 + $0x5e] sm:$0xff]  ;;  %v2206_v26 = vld [vmem:[%s3793_s0 + $0x66] sm:$0x3f]  ;;  %v2211_v27 = vld [vmem:[%s3793_s0 + $0x6c] sm:$0xff]  ;;  %v2213_v28 = vsub.s32 %v137_v14, %v139_v10  ;;  %v286_v30 = vcombine.high %v17_v18, %v17_v18  ;;  %v303_v31 = vcombine.high %v18_v19, %v18_v19  ;;  %v320_v32 = vcombine.high %v19_v20, %v19_v20 }
   0x6   :  { %v337_v33 = vcombine.high %v20_v25, %v20_v25  ;;  %v354_v34 = vcombine.high %v2206_v26, %v2206_v26  ;;  %v370_v35 = vcombine.high %v2211_v27, %v2211_v27  ;;  %v28_v60 = vld [vmem:[%s3793_s0 + $0x9c] sm:$0x3f]  ;;  %v30_v49 = vld [vmem:[%s3793_s0 + $0xaa] sm:$0xff]  ;;  %v31_v50 = vld [vmem:[%s3793_s0 + $0xb2] sm:$0xff] }
   0x7   :  { %3939 = vst [vmem:[#allocation2_spill] sm:$0xff] %v2213_v28  ;;  %v2220_v36 = vrot.slane %v8_v1, %v2213_v28  ;;  %v2223_v37 = vrot.slane %v134_v9, %v2213_v28  ;;  %v2226_v38 = vrot.slane %v9_v2, %v2213_v28  ;;  %v2229_v39 = vrot.slane %v151_v15, %v2213_v28  ;;  %v35_v2 = vld [vmem:[%s3793_s0 + $0xd2] sm:$0x3f] }
   0x8   :  { %v2232_v40 = vrot.slane %v10_v3, %v2213_v28  ;;  %v2235_v41 = vrot.slane %v168_v16, %v2213_v28  ;;  %v2238_v42 = vrot.slane %v11_v6, %v2213_v28  ;;  %v2241_v43 = vrot.slane %v185_v17, %v2213_v28  ;;  %v24_v17 = vld [vmem:[%s3793_s0 + $0x7c] sm:$0xff] }
   0x9   :  { %v2260_v52 = vrot.slane %v12_v7, %v2213_v28  ;;  %v2263_v53 = vrot.slane %v202_v21, %v2213_v28  ;;  %v2266_v54 = vrot.slane %v13_v8, %v2213_v28  ;;  %v2269_v55 = vrot.slane %v219_v22, %v2213_v28 }
   0xa   :  { %3940 = vst [vmem:[#allocation3_spill] sm:$0xff] %v2238_v42  ;;  %3941 = vst [vmem:[#allocation4_spill] sm:$0xff] %v2241_v43  ;;  %v2272_v56 = vrot.slane %v14_v11, %v2213_v28  ;;  %v2275_v57 = vrot.slane %v236_v23, %v2213_v28  ;;  %v2278_v58 = vrot.slane %v15_v12, %v2213_v28  ;;  %v23_v12 = vld [vmem:[%s3793_s0 + $0x74] sm:$0xff] }
   0xb   :  { %3942 = vst [vmem:[#allocation5_spill] sm:$0xff] %v2260_v52  ;;  %3943 = vst [vmem:[#allocation6_spill] sm:$0xff] %v2263_v53  ;;  %v2281_v59 = vrot.slane %v252_v24, %v2213_v28  ;;  %v2298_v3 = vrot.slane %v16_v13, %v2213_v28  ;;  %v2301_v4 = vrot.slane %v269_v29, %v2213_v28 }
   0xc   :  { %3944 = vst [vmem:[#allocation7_spill] sm:$0xff] %v2266_v54  ;;  %3945 = vst [vmem:[#allocation8_spill] sm:$0xff] %v2269_v55  ;;  %v2304_v5 = vrot.slane %v17_v18, %v2213_v28  ;;  %v2307_v6 = vrot.slane %v286_v30, %v2213_v28  ;;  %v2310_v7 = vrot.slane %v18_v19, %v2213_v28  ;;  %v25_v30 = vld [vmem:[%s3793_s0 + $0x84] sm:$0xff] }
   0xd   :  { %3946 = vst [vmem:[#allocation9_spill] sm:$0xff] %v2272_v56  ;;  %3947 = vst [vmem:[#allocation10_spill] sm:$0xff] %v2275_v57  ;;  %v2315_v9 = vrot.slane %v303_v31, %v2213_v28  ;;  %v2318_v10 = vrot.slane %v19_v20, %v2213_v28  ;;  %v2321_v11 = vrot.slane %v320_v32, %v2213_v28 }
   0xe   :  { %3948 = vst [vmem:[#allocation11_spill] sm:$0xff] %v2307_v6  ;;  %3949 = vst [vmem:[#allocation12_spill] sm:$0xff] %v2310_v7  ;;  %v2344_v21 = vrot.slane %v20_v25, %v2213_v28  ;;  %v2347_v22 = vrot.slane %v337_v33, %v2213_v28  ;;  %v2351_v23 = vrot.slane %v2206_v26, %v2213_v28  ;;  %v26_v25 = vld [vmem:[%s3793_s0 + $0x8c] sm:$0xff] }
   0xf   :  { %3950 = vst [vmem:[#allocation13_spill] sm:$0xff] %v2315_v9  ;;  %3951 = vst [vmem:[#allocation14_spill] sm:$0xff] %v2318_v10  ;;  %v2354_v24 = vrot.slane %v354_v34, %v2213_v28  ;;  %v2358_v29 = vrot.slane %v2211_v27, %v2213_v28  ;;  %v2369_v26 = vrot.slane %v370_v35, %v2213_v28  ;;  %v27_v27 = vld [vmem:[%s3793_s0 + $0x94] sm:$0xff] }
  0x10   :  { %3952 = vst [vmem:[#allocation15_spill] sm:$0xff] %v2321_v11  ;;  %3953 = vst [vmem:[#allocation16_spill] sm:$0xff] %v2344_v21  ;;  %v387_v32 = vcombine.high %v23_v12, %v23_v12  ;;  %v2372_v33 = vrot.slane %v23_v12, %v2213_v28  ;;  %v404_v31 = vcombine.high %v24_v17, %v24_v17 }
  0x11   :  { %3954 = vst [vmem:[#allocation17_spill] sm:$0xff] %v2347_v22  ;;  %3955 = vst [vmem:[#allocation18_spill] sm:$0xff] %v2351_v23  ;;  %v2391_v20 = vrot.slane %v24_v17, %v2213_v28  ;;  %v421_v0 = vcombine.high %v25_v30, %v25_v30  ;;  %v2397_v61 = vrot.slane %v25_v30, %v2213_v28  ;;  %v44_v22 = vld [vmem:[%s3793_s0 + $0x116] sm:$0xff] }
  0x12   :  { %3956 = vst [vmem:[#allocation19_spill] sm:$0xff] %v2354_v24  ;;  %v2386_v12 = vrot.slane %v387_v32, %v2213_v28  ;;  %v2394_v34 = vrot.slane %v404_v31, %v2213_v28  ;;  %v438_v19 = vcombine.high %v26_v25, %v26_v25  ;;  %v29_v32 = vld [vmem:[%s3793_s0 + $0xa2] sm:$0xff]  ;;  %v2410_v18 = vrot.slane %v26_v25, %v2213_v28 }
  0x13   :  { %3958 = vst [vmem:[#allocation21_spill] sm:$0xff] %v2397_v61  ;;  %v455_v30 = vcombine.high %v27_v27, %v27_v27  ;;  %v2415_v16 = vrot.slane %v421_v0, %v2213_v28  ;;  %v2428_v31 = vrot.slane %v27_v27, %v2213_v28  ;;  %v472_v0 = vcombine.high %v28_v60, %v28_v60  ;;  %v33_v25 = vld [vmem:[%s3793_s0 + $0xc2] sm:$0xff] }
  0x14   :  { %3957 = vst [vmem:[#allocation20_spill] sm:$0xff] %v2394_v34  ;;  %3959 = vst [vmem:[#allocation22_spill] sm:$0xff] %v2410_v18  ;;  %v2420_v15 = vrot.slane %v438_v19, %v2213_v28  ;;  %v32_v19 = vld [vmem:[%s3793_s0 + $0xba] sm:$0xff]  ;;  %v2444_v27 = vrot.slane %v28_v60, %v2213_v28  ;;  %v2454_v47 = vrot.slane %v29_v32, %v2213_v28 }
  0x15   :  { %3960 = vst [vmem:[#allocation23_spill] sm:$0xff] %v2415_v16  ;;  %3962 = vst [vmem:[#allocation25_spill] sm:$0xff] %v2428_v31  ;;  %v2431_v51 = vrot.slane %v455_v30, %v2213_v28  ;;  %v488_v30 = vcombine.high %v29_v32, %v29_v32  ;;  %v2451_v13 = vrot.slane %v472_v0, %v2213_v28  ;;  %v34_v0 = vld [vmem:[%s3793_s0 + $0xca] sm:$0xff] }
  0x16   :  { %3961 = vst [vmem:[#allocation24_spill] sm:$0xff] %v2420_v15  ;;  %3964 = vst [vmem:[#allocation27_spill] sm:$0xff] %v2444_v27  ;;  %v505_v48 = vcombine.high %v30_v49, %v30_v49  ;;  %v2465_v62 = vrot.slane %v30_v49, %v2213_v28  ;;  %v522_v17 = vcombine.high %v31_v50, %v31_v50  ;;  %v36_v49 = vld [vmem:[%s3793_s0 + $0xd8] sm:$0xff] }
  0x17   :  { %3963 = vst [vmem:[#allocation26_spill] sm:$0xff] %v2431_v51  ;;  %3965 = vst [vmem:[#allocation28_spill] sm:$0xff] %v2451_v13  ;;  %v2462_v14 = vrot.slane %v488_v30, %v2213_v28  ;;  %v2473_v8 = vrot.slane %v31_v50, %v2213_v28  ;;  %v539_v46 = vcombine.high %v32_v19, %v32_v19  ;;  %v48_v15 = vld [vmem:[%s3793_s0 + $0x136] sm:$0xff] }
  0x18   :  { %v2478_v60 = vrot.slane %v505_v48, %v2213_v28  ;;  %v2483_v35 = vrot.slane %v32_v19, %v2213_v28  ;;  %v2489_v50 = vrot.slane %v522_v17, %v2213_v28  ;;  %v556_v48 = vcombine.high %v33_v25, %v33_v25 }
  0x19   :  { %v2494_v30 = vrot.slane %v539_v46, %v2213_v28  ;;  %v2504_v17 = vrot.slane %v33_v25, %v2213_v28  ;;  %v573_v63 = vcombine.high %v34_v0, %v34_v0  ;;  %v37_v46 = vld [vmem:[%s3793_s0 + $0xe0] sm:$0xff]  ;;  %v2517_v19 = vrot.slane %v34_v0, %v2213_v28  ;;  %v38_v25 = vld [vmem:[%s3793_s0 + $0xe8] sm:$0xff] }
  0x1a   :  { %3966 = vst [vmem:[#allocation29_spill] sm:$0xff] %v2483_v35  ;;  %3967 = vst [vmem:[#allocation30_spill] sm:$0xff] %v2489_v50  ;;  %v2514_v44 = vrot.slane %v556_v48, %v2213_v28  ;;  %v590_v45 = vcombine.high %v35_v2, %v35_v2  ;;  %v2528_v24 = vrot.slane %v35_v2, %v2213_v28  ;;  %v39_v48 = vld [vmem:[%s3793_s0 + $0xf0] sm:$0xff]  ;;  %v41_v2 = vld [vmem:[%s3793_s0 + $0x100] sm:$0xff]  ;;  %v1441_v50 = vsel %vm1439_vm0, %v2278_v58, 0.0 }
  0x1b   :  { %3968 = vst [vmem:[#allocation31_spill] sm:$0xff] %v2494_v30  ;;  %3969 = vst [vmem:[#allocation32_spill] sm:$0xff] %v2504_v17  ;;  %v2525_v13 = vrot.slane %v573_v63, %v2213_v28  ;;  %v606_v57 = vcombine.high %v36_v49, %v36_v49  ;;  %v2538_v32 = vrot.slane %v36_v49, %v2213_v28  ;;  %v40_v63 = vld [vmem:[%s3793_s0 + $0xf8] sm:$0xff]  ;;  %v58_v30 = vld [vmem:[%s3793_s0 + $0x182] sm:$0xff] }
  0x1c   :  { %3970 = vst [vmem:[#allocation33_spill] sm:$0xff] %v2514_v44  ;;  %3971 = vst [vmem:[#allocation34_spill] sm:$0xff] %v2517_v19  ;;  %v2546_v27 = vrot.slane %v590_v45, %v2213_v28  ;;  %v623_v23 = vcombine.high %v37_v46, %v37_v46  ;;  %v2556_v56 = vrot.slane %v37_v46, %v2213_v28  ;;  %v42_v46 = vld [vmem:[%s3793_s0 + $0x108] sm:$0x3f] }
  0x1d   :  { %3972 = vst [vmem:[#allocation35_spill] sm:$0xff] %v2525_v13  ;;  %3973 = vst [vmem:[#allocation36_spill] sm:$0xff] %v2528_v24  ;;  %v2551_v1 = vrot.slane %v606_v57, %v2213_v28  ;;  %v640_v51 = vcombine.high %v38_v25, %v38_v25  ;;  %v2565_v0 = vrot.slane %v38_v25, %v2213_v28  ;;  %v43_v25 = vld [vmem:[%s3793_s0 + $0x10e] sm:$0xff] }
  0x1e   :  { %3974 = vst [vmem:[#allocation37_spill] sm:$0xff] %v2546_v27  ;;  %v2562_v45 = vrot.slane %v623_v23, %v2213_v28  ;;  %v657_v27 = vcombine.high %v39_v48, %v39_v48  ;;  %v2568_v57 = vrot.slane %v39_v48, %v2213_v28  ;;  %v674_v13 = vcombine.high %v40_v63, %v40_v63 }
  0x1f   :  { %v2578_v23 = vrot.slane %v640_v51, %v2213_v28  ;;  %v2595_v49 = vrot.slane %v40_v63, %v2213_v28  ;;  %v691_v31 = vcombine.high %v41_v2, %v41_v2  ;;  %v2606_v48 = vrot.slane %v41_v2, %v2213_v28  ;;  %v46_v63 = vld [vmem:[%s3793_s0 + $0x126] sm:$0xff] }
  0x20   :  { %3975 = vst [vmem:[#allocation38_spill] sm:$0xff] %v2568_v57  ;;  %v2588_v55 = vrot.slane %v657_v27, %v2213_v28  ;;  %v2598_v19 = vrot.slane %v674_v13, %v2213_v28  ;;  %v708_v24 = vcombine.high %v42_v46, %v42_v46  ;;  %v2609_v51 = vrot.slane %v42_v46, %v2213_v28  ;;  %v45_v13 = vld [vmem:[%s3793_s0 + $0x11e] sm:$0xff]  ;;  %v47_v27 = vld [vmem:[%s3793_s0 + $0x12e] sm:$0xff] }
  0x21   :  { %3976 = vst [vmem:[#allocation39_spill] sm:$0xff] %v2578_v23  ;;  %3978 = vst [vmem:[#allocation41_spill] sm:$0xff] %v2595_v49  ;;  %v2622_v2 = vrot.slane %v691_v31, %v2213_v28  ;;  %v724_v54 = vcombine.high %v43_v25, %v43_v25  ;;  %v2632_v11 = vrot.slane %v43_v25, %v2213_v28  ;;  %v49_v25 = vld [vmem:[%s3793_s0 + $0x13e] sm:$0x3f] }
  0x22   :  { %3977 = vst [vmem:[#allocation40_spill] sm:$0xff] %v2588_v55  ;;  %3979 = vst [vmem:[#allocation42_spill] sm:$0xff] %v2598_v19  ;;  %v2627_v44 = vrot.slane %v708_v24, %v2213_v28  ;;  %v741_v46 = vcombine.high %v44_v22, %v44_v22  ;;  %v2643_v24 = vrot.slane %v44_v22, %v2213_v28  ;;  %v50_v22 = vld [vmem:[%s3793_s0 + $0x144] sm:$0xff] }
  0x23   :  { %3980 = vst [vmem:[#allocation43_spill] sm:$0xff] %v2606_v48  ;;  %3981 = vst [vmem:[#allocation44_spill] sm:$0xff] %v2609_v51  ;;  %v2640_v21 = vrot.slane %v724_v54, %v2213_v28  ;;  %v2651_v51 = vrot.slane %v45_v13, %v2213_v28  ;;  %v775_v48 = vcombine.high %v46_v63, %v46_v63  ;;  %v62_v57 = vld [vmem:[%s3793_s0 + $0x1a2] sm:$0xff] }
  0x24   :  { %3982 = vst [vmem:[#allocation45_spill] sm:$0xff] %v2622_v2  ;;  %3983 = vst [vmem:[#allocation46_spill] sm:$0xff] %v2627_v44  ;;  %v758_v44 = vcombine.high %v45_v13, %v45_v13  ;;  %v2656_v31 = vrot.slane %v741_v46, %v2213_v28  ;;  %v2661_v2 = vrot.slane %v46_v63, %v2213_v28 }
  0x25   :  { %v2672_v54 = vrot.slane %v775_v48, %v2213_v28  ;;  %v792_v46 = vcombine.high %v47_v27, %v47_v27  ;;  %v809_v49 = vcombine.high %v48_v15, %v48_v15  ;;  %v51_v48 = vld [vmem:[%s3793_s0 + $0x14c] sm:$0xff]  ;;  %v2695_v63 = vrot.slane %v48_v15, %v2213_v28 }
  0x26   :  { %3984 = vst [vmem:[#allocation47_spill] sm:$0xff] %v2661_v2  ;;  %v2667_v13 = vrot.slane %v758_v44, %v2213_v28  ;;  %v2682_v44 = vrot.slane %v47_v27, %v2213_v28  ;;  %v52_v27 = vld [vmem:[%s3793_s0 + $0x154] sm:$0xff]  ;;  %v826_v19 = vcombine.high %v49_v25, %v49_v25  ;;  %v2706_v52 = vrot.slane %v49_v25, %v2213_v28  ;;  %v55_v25 = vld [vmem:[%s3793_s0 + $0x16c] sm:$0xff] }
  0x27   :  { %3986 = vst [vmem:[#allocation49_spill] sm:$0xff] %v2672_v54  ;;  %v2692_v18 = vrot.slane %v792_v46, %v2213_v28  ;;  %3989 = vst [vmem:[#allocation52_spill] sm:$0xff] %v2695_v63  ;;  %v2703_v10 = vrot.slane %v809_v49, %v2213_v28  ;;  %v53_v46 = vld [vmem:[%s3793_s0 + $0x15c] sm:$0xff]  ;;  %v842_v54 = vcombine.high %v50_v22, %v50_v22  ;;  %v54_v49 = vld [vmem:[%s3793_s0 + $0x164] sm:$0xff] }
  0x28   :  { %3985 = vst [vmem:[#allocation48_spill] sm:$0xff] %v2667_v13  ;;  %3987 = vst [vmem:[#allocation50_spill] sm:$0xff] %v2682_v44  ;;  %v2716_v53 = vrot.slane %v50_v22, %v2213_v28  ;;  %v2724_v44 = vrot.slane %v826_v19, %v2213_v28  ;;  %v2734_v63 = vrot.slane %v51_v48, %v2213_v28  ;;  %v69_v13 = vld [vmem:[%s3793_s0 + $0x1d8] sm:$0xff] }
  0x29   :  { %3988 = vst [vmem:[#allocation51_spill] sm:$0xff] %v2692_v18  ;;  %3990 = vst [vmem:[#allocation53_spill] sm:$0xff] %v2703_v10  ;;  %v859_v18 = vcombine.high %v51_v48, %v51_v48  ;;  %v2729_v17 = vrot.slane %v842_v54, %v2213_v28  ;;  %v876_v55 = vcombine.high %v52_v27, %v52_v27  ;;  %v56_v48 = vld [vmem:[%s3793_s0 + $0x174] sm:$0x3f] }
  0x2a   :  { %3991 = vst [vmem:[#allocation54_spill] sm:$0xff] %v2706_v52  ;;  %3992 = vst [vmem:[#allocation55_spill] sm:$0xff] %v2724_v44  ;;  %v2743_v15 = vrot.slane %v52_v27, %v2213_v28  ;;  %v893_v44 = vcombine.high %v53_v46, %v53_v46  ;;  %v2746_v54 = vrot.slane %v53_v46, %v2213_v28  ;;  %v57_v27 = vld [vmem:[%s3793_s0 + $0x17a] sm:$0xff] }
  0x2b   :  { %v2740_v19 = vrot.slane %v859_v18, %v2213_v28  ;;  %v2756_v18 = vrot.slane %v876_v55, %v2213_v28  ;;  %v910_v10 = vcombine.high %v54_v49, %v54_v49  ;;  %v2773_v22 = vrot.slane %v54_v49, %v2213_v28  ;;  %v60_v49 = vld [vmem:[%s3793_s0 + $0x192] sm:$0xff] }
  0x2c   :  { %3993 = vst [vmem:[#allocation56_spill] sm:$0xff] %v2746_v54  ;;  %v2766_v16 = vrot.slane %v893_v44, %v2213_v28  ;;  %v927_v43 = vcombine.high %v55_v25, %v55_v25  ;;  %v2784_v46 = vrot.slane %v55_v25, %v2213_v28  ;;  %v944_v52 = vcombine.high %v56_v48, %v56_v48  ;;  %v61_v44 = vld [vmem:[%s3793_s0 + $0x19a] sm:$0xff] }
  0x2d   :  { %3994 = vst [vmem:[#allocation57_spill] sm:$0xff] %v2756_v18  ;;  %3996 = vst [vmem:[#allocation59_spill] sm:$0xff] %v2773_v22  ;;  %v2776_v9 = vrot.slane %v910_v10, %v2213_v28  ;;  %v2787_v55 = vrot.slane %v56_v48, %v2213_v28  ;;  %v59_v10 = vld [vmem:[%s3793_s0 + $0x18a] sm:$0xff]  ;;  %v2810_v35 = vrot.slane %v57_v27, %v2213_v28 }
  0x2e   :  { %3995 = vst [vmem:[#allocation58_spill] sm:$0xff] %v2766_v16  ;;  %3998 = vst [vmem:[#allocation61_spill] sm:$0xff] %v2784_v46  ;;  %v2800_v25 = vrot.slane %v927_v43, %v2213_v28  ;;  %v960_v16 = vcombine.high %v57_v27, %v57_v27  ;;  %v2805_v2 = vrot.slane %v944_v52, %v2213_v28  ;;  %v63_v27 = vld [vmem:[%s3793_s0 + $0x1aa] sm:$0x3f] }
  0x2f   :  { %3997 = vst [vmem:[#allocation60_spill] sm:$0xff] %v2776_v9  ;;  %3999 = vst [vmem:[#allocation62_spill] sm:$0xff] %v2787_v55  ;;  %v977_v48 = vcombine.high %v58_v30, %v58_v30  ;;  %v2821_v52 = vrot.slane %v58_v30, %v2213_v28  ;;  %v2829_v55 = vrot.slane %v59_v10, %v2213_v28  ;;  %v64_v30 = vld [vmem:[%s3793_s0 + $0x1b0] sm:$0xff] }
  0x30   :  { %4000 = vst [vmem:[#allocation63_spill] sm:$0xff] %v2800_v25  ;;  %4001 = vst [vmem:[#allocation64_spill] sm:$0xff] %v2805_v2  ;;  %v2818_v54 = vrot.slane %v960_v16, %v2213_v28  ;;  %v994_v2 = vcombine.high %v59_v10, %v59_v10  ;;  %v1011_v46 = vcombine.high %v60_v49, %v60_v49 }
  0x31   :  { %v2834_v43 = vrot.slane %v977_v48, %v2213_v28  ;;  %v2839_v25 = vrot.slane %v60_v49, %v2213_v28  ;;  %v1028_v48 = vcombine.high %v61_v44, %v61_v44  ;;  %v1045_v61 = vcombine.high %v62_v57, %v62_v57 }
  0x32   :  { %v2845_v10 = vrot.slane %v994_v2, %v2213_v28  ;;  %v2850_v16 = vrot.slane %v1011_v46, %v2213_v28  ;;  %v2860_v2 = vrot.slane %v61_v44, %v2213_v28  ;;  %v65_v46 = vld [vmem:[%s3793_s0 + $0x1b8] sm:$0xff]  ;;  %v2873_v22 = vrot.slane %v62_v57, %v2213_v28  ;;  %v66_v44 = vld [vmem:[%s3793_s0 + $0x1c0] sm:$0xff] }
  0x33   :  { %4002 = vst [vmem:[#allocation65_spill] sm:$0xff] %v2839_v25  ;;  %v2870_v49 = vrot.slane %v1028_v48, %v2213_v28  ;;  %v2881_v42 = vrot.slane %v1045_v61, %v2213_v28  ;;  %v1062_v9 = vcombine.high %v63_v27, %v63_v27  ;;  %v67_v48 = vld [vmem:[%s3793_s0 + $0x1c8] sm:$0xff]  ;;  %v1085_v25 = vrot.slane %v64_v30, %v2213_v28  ;;  %v68_v61 = vld [vmem:[%s3793_s0 + $0x1d0] sm:$0xff] }
  0x34   :  { %4003 = vst [vmem:[#allocation66_spill] sm:$0xff] %v2845_v10  ;;  %4004 = vst [vmem:[#allocation67_spill] sm:$0xff] %v2850_v16  ;;  %v2884_v10 = vrot.slane %v63_v27, %v2213_v28  ;;  %v1078_v16 = vcombine.high %v64_v30, %v64_v30  ;;  %v1095_v57 = vcombine.high %v65_v46, %v65_v46 }
  0x35   :  { %4005 = vst [vmem:[#allocation68_spill] sm:$0xff] %v2860_v2  ;;  %4006 = vst [vmem:[#allocation69_spill] sm:$0xff] %v2870_v49  ;;  %v2900_v2 = vrot.slane %v1062_v9, %v2213_v28  ;;  %v1093_v7 = vcombine.high %v1085_v25, %v1085_v25  ;;  %v2908_v30 = vrot.slane %v65_v46, %v2213_v28  ;;  %v1440_v46 = vsel %vm1439_vm0, %v2220_v36, 0.0 }
  0x36   :  { %4007 = vst [vmem:[#allocation70_spill] sm:$0xff] %v2873_v22  ;;  %4008 = vst [vmem:[#allocation71_spill] sm:$0xff] %v2881_v42  ;;  %v2905_v49 = vrot.slane %v1078_v16, %v2213_v28  ;;  %v1112_v22 = vcombine.high %v66_v44, %v66_v44  ;;  %v2914_v27 = vrot.slane %v1095_v57, %v2213_v28  ;;  %v70_v16 = vld [vmem:[%s3793_s0 + $0x1e0] sm:$0x3f] }
  0x37   :  { %4009 = vst [vmem:[#allocation72_spill] sm:$0xff] %v2884_v10  ;;  %4010 = vst [vmem:[#allocation73_spill] sm:$0xff] %v2900_v2  ;;  %v2917_v9 = vrot.slane %v66_v44, %v2213_v28  ;;  %v1129_v18 = vcombine.high %v67_v48, %v67_v48  ;;  %v2920_v2 = vrot.slane %v67_v48, %v2213_v28 }
  0x38   :  { %v2930_v57 = vrot.slane %v1112_v22, %v2213_v28  ;;  %v1146_v42 = vcombine.high %v68_v61, %v68_v61  ;;  %v2944_v10 = vrot.slane %v68_v61, %v2213_v28  ;;  %v1163_v34 = vcombine.high %v69_v13, %v69_v13 }
  0x39   :  { %4011 = vst [vmem:[#allocation74_spill] sm:$0xff] %v2920_v2  ;;  %v2937_v23 = vrot.slane %v1129_v18, %v2213_v28  ;;  %v2952_v48 = vrot.slane %v69_v13, %v2213_v28  ;;  %v1180_v18 = vcombine.high %v70_v16, %v70_v16  ;;  %v2955_v6 = vrot.slane %v70_v16, %v2213_v28 }
  0x3a   :  { %4012 = vst [vmem:[#allocation75_spill] sm:$0xff] %v2930_v57  ;;  %4014 = vst [vmem:[#allocation77_spill] sm:$0xff] %v2944_v10  ;;  %v2947_v22 = vrot.slane %v1146_v42, %v2213_v28  ;;  %v2962_v42 = vrot.slane %v1163_v34, %v2213_v28  ;;  %v1442_v34 = vadd.f32 %v1441_v50, %v1440_v46  ;;  %v1445_v10 = vsel %vm1439_vm0, %v2454_v47, 0.0 }
  0x3b   :  { %4013 = vst [vmem:[#allocation76_spill] sm:$0xff] %v2937_v23  ;;  %4016 = vst [vmem:[#allocation79_spill] sm:$0xff] %v2952_v48  ;;  %v2969_v44 = vrot.slane %v1180_v18, %v2213_v28  ;;  %v1447_v18 = vsel %vm1439_vm0, %v2538_v32, 0.0  ;;  %v1449_v13 = vsel %vm1439_vm0, %v2632_v11, 0.0  ;;  %v1451_v16 = vsel %vm1439_vm0, %v2716_v53, 0.0 }
  0x3c   :  { %4015 = vst [vmem:[#allocation78_spill] sm:$0xff] %v2947_v22  ;;  %4017 = vst [vmem:[#allocation80_spill] sm:$0xff] %v2955_v6  ;;  %v1443_v22 = vsel %vm1439_vm0, %v2358_v29, 0.0  ;;  %v1453_v28 = vsel %vm1439_vm0, %v2810_v35, 0.0  ;;  %v1455_v50 = vsel %vm1439_vm0, %v1085_v25, 0.0  ;;  %v4020_v46 = vcombine.high %v2220_v36, %v2220_v36 }
  0x3d   :  { %4018 = vst [vmem:[#allocation81_spill] sm:$0xff] %v2962_v42  ;;  %4019 = vst [vmem:[#allocation82_spill] sm:$0xff] %v2969_v44  ;;  %v1444_v61 = vadd.f32 %v1443_v22, %v1442_v34  ;;  %v4021_v6 = vcombine.high %v2278_v58, %v2278_v58  ;;  %v4022_v23 = vcombine.high %v2358_v29, %v2358_v29 }
  0x3e   :  { %v1457_v44 = vsel %vm1439_vm0, %v4020_v46, 0.0  ;;  %v4023_v22 = vcombine.high %v2454_v47, %v2454_v47  ;;  %v4024_v36 = vcombine.high %v2538_v32, %v2538_v32  ;;  %v4025_v58 = vcombine.high %v2632_v11, %v2632_v11 }
  0x3f   :  { %v1458_v42 = vsel %vm1439_vm0, %v4021_v6, 0.0  ;;  %v1460_v2 = vsel %vm1439_vm0, %v4022_v23, 0.0  ;;  %v1446_v46 = vadd.f32 %v1445_v10, %v1444_v61  ;;  %v4026_v29 = vcombine.high %v2716_v53, %v2716_v53 }
  0x40   :  { %v1459_v48 = vadd.f32 %v1458_v42, %v1457_v44  ;;  %v1462_v25 = vsel %vm1439_vm0, %v4023_v22, 0.0  ;;  %v1464_v34 = vsel %vm1439_vm0, %v4024_v36, 0.0  ;;  %v1466_v6 = vsel %vm1439_vm0, %v4025_v58, 0.0 }
  0x41   :  { %v1468_v23 = vsel %vm1439_vm0, %v4026_v29, 0.0  ;;  %v4027_v47 = vcombine.high %v2810_v35, %v2810_v35  ;;  %v1472_v32 = vsel %vm1439_vm0, %v1093_v7, 0.0  ;;  %v1474_v10 = vsel %vm1439_vm0, %v2223_v37, 0.0 }
  0x42   :  { %v1461_v42 = vadd.f32 %v1460_v2, %v1459_v48  ;;  %v1475_v11 = vsel %vm1439_vm0, %v2281_v59, 0.0  ;;  %v1448_v61 = vadd.f32 %v1447_v18, %v1446_v46  ;;  %v1477_v53 = vsel %vm1439_vm0, %v2369_v26, 0.0 }
  0x43   :  { %v1470_v44 = vsel %vm1439_vm0, %v4027_v47, 0.0  ;;  %v1476_v22 = vadd.f32 %v1475_v11, %v1474_v10  ;;  %v1479_v36 = vsel %vm1439_vm0, %v2462_v14, 0.0  ;;  %v1481_v2 = vsel %vm1439_vm0, %v2551_v1, 0.0 }
  0x44   :  { %v1463_v35 = vadd.f32 %v1462_v25, %v1461_v42  ;;  %v1483_v7 = vsel %vm1439_vm0, %v2640_v21, 0.0  ;;  %v1485_v48 = vsel %vm1439_vm0, %v2729_v17, 0.0  ;;  %v1450_v58 = vadd.f32 %v1449_v13, %v1448_v61 }
  0x45   :  { %v1478_v29 = vadd.f32 %v1477_v53, %v1476_v22  ;;  %v1487_v18 = vsel %vm1439_vm0, %v2818_v54, 0.0  ;;  %v1489_v46 = vsel %vm1439_vm0, %v2905_v49, 0.0  ;;  %v4028_v25 = vcombine.high %v2223_v37, %v2223_v37 }
  0x46   :  { %v1465_v47 = vadd.f32 %v1464_v34, %v1463_v35  ;;  %v4029_v10 = vcombine.high %v2281_v59, %v2281_v59  ;;  %v4030_v13 = vcombine.high %v2369_v26, %v2369_v26  ;;  %v1452_v22 = vadd.f32 %v1451_v16, %v1450_v58 }
  0x47   :  { %v1491_v42 = vsel %vm1439_vm0, %v4028_v25, 0.0  ;;  %v1480_v53 = vadd.f32 %v1479_v36, %v1478_v29  ;;  %v4031_v34 = vcombine.high %v2462_v14, %v2462_v14  ;;  %v4032_v25 = vcombine.high %v2551_v1, %v2551_v1 }
  0x48   :  { %v1492_v11 = vsel %vm1439_vm0, %v4029_v10, 0.0  ;;  %v1494_v61 = vsel %vm1439_vm0, %v4030_v13, 0.0  ;;  %v1467_v35 = vadd.f32 %v1466_v6, %v1465_v47  ;;  %v4033_v10 = vcombine.high %v2640_v21, %v2640_v21 }
  0x49   :  { %v1493_v57 = vadd.f32 %v1492_v11, %v1491_v42  ;;  %v1496_v37 = vsel %vm1439_vm0, %v4031_v34, 0.0  ;;  %v1498_v59 = vsel %vm1439_vm0, %v4032_v25, 0.0  ;;  %v4034_v16 = vcombine.high %v2729_v17, %v2729_v17 }
  0x4a   :  { %v1500_v26 = vsel %vm1439_vm0, %v4033_v10, 0.0  ;;  %v1454_v58 = vadd.f32 %v1453_v28, %v1452_v22  ;;  %v1482_v14 = vadd.f32 %v1481_v2, %v1480_v53  ;;  %v4035_v6 = vcombine.high %v2818_v54, %v2818_v54 }
  0x4b   :  { %v1502_v36 = vsel %vm1439_vm0, %v4034_v16, 0.0  ;;  %v1495_v29 = vadd.f32 %v1494_v61, %v1493_v57  ;;  %v1469_v47 = vadd.f32 %v1468_v23, %v1467_v35  ;;  %v4036_v42 = vcombine.high %v2905_v49, %v2905_v49 }
  0x4c   :  { %v1504_v1 = vsel %vm1439_vm0, %v4035_v6, 0.0  ;;  %v1508_v11 = vsel %vm1439_vm0, %v2226_v38, 0.0  ;;  %v1509_v17 = vsel %vm1439_vm0, %v2298_v3, 0.0  ;;  %v3081_v28 = vadd.f32 %v1455_v50, %v1454_v58 }
  0x4d   :  { %v1506_v21 = vsel %vm1439_vm0, %v4036_v42, 0.0  ;;  %v1484_v57 = vadd.f32 %v1483_v7, %v1482_v14  ;;  %v1497_v2 = vadd.f32 %v1496_v37, %v1495_v29  ;;  %v1510_v13 = vadd.f32 %v1509_v17, %v1508_v11 }
  0x4e   :  { %v1471_v54 = vadd.f32 %v1470_v44, %v1469_v47  ;;  %v1511_v23 = vsel %vm1439_vm0, %v2372_v33, 0.0  ;;  %v1513_v49 = vsel %vm1439_vm0, %v2465_v62, 0.0  ;;  %v1515_v61 = vsel %vm1439_vm0, %v2556_v56, 0.0 }
  0x4f   :  { %v1486_v22 = vadd.f32 %v1485_v48, %v1484_v57  ;;  %v1499_v53 = vadd.f32 %v1498_v59, %v1497_v2  ;;  %v1512_v34 = vadd.f32 %v1511_v23, %v1510_v13  ;;  %v1517_v50 = vsel %vm1439_vm0, %v2643_v24, 0.0 }
  0x50   :  { %v3091_v35 = vadd.f32 %v1472_v32, %v1471_v54  ;;  %v1519_v44 = vsel %vm1439_vm0, %v2734_v63, 0.0  ;;  %v1521_v7 = vsel %vm1439_vm0, %v2821_v52, 0.0  ;;  %v1523_v37 = vsel %vm1439_vm0, %v2908_v30, 0.0 }
  0x51   :  { %v1488_v25 = vadd.f32 %v1487_v18, %v1486_v22  ;;  %v1501_v10 = vadd.f32 %v1500_v26, %v1499_v53  ;;  %v1514_v16 = vadd.f32 %v1513_v49, %v1512_v34  ;;  %v4037_v48 = vcombine.high %v2226_v38, %v2226_v38 }
  0x52   :  { %v4038_v32 = vcombine.high %v2298_v3, %v2298_v3  ;;  %v4039_v14 = vcombine.high %v2372_v33, %v2372_v33  ;;  %v4040_v18 = vcombine.high %v2465_v62, %v2465_v62  ;;  %v4041_v38 = vcombine.high %v2556_v56, %v2556_v56 }
  0x53   :  { %v1525_v59 = vsel %vm1439_vm0, %v4037_v48, 0.0  ;;  %v3119_v47 = vadd.f32 %v1489_v46, %v1488_v25  ;;  %v1503_v3 = vadd.f32 %v1502_v36, %v1501_v10  ;;  %v1516_v42 = vadd.f32 %v1515_v61, %v1514_v16 }
  0x54   :  { %v1526_v58 = vsel %vm1439_vm0, %v4038_v32, 0.0  ;;  %v1528_v29 = vsel %vm1439_vm0, %v4039_v14, 0.0  ;;  %v1530_v26 = vsel %vm1439_vm0, %v4040_v18, 0.0  ;;  %v1532_v6 = vsel %vm1439_vm0, %v4041_v38, 0.0 }
  0x55   :  { %v1527_v11 = vadd.f32 %v1526_v58, %v1525_v59  ;;  %v4042_v33 = vcombine.high %v2643_v24, %v2643_v24  ;;  %v4043_v62 = vcombine.high %v2734_v63, %v2734_v63  ;;  %v4044_v56 = vcombine.high %v2821_v52, %v2821_v52 }
  0x56   :  { %v4045_v46 = vcombine.high %v2908_v30, %v2908_v30  ;;  %v1505_v13 = vadd.f32 %v1504_v1, %v1503_v3  ;;  %v1518_v54 = vadd.f32 %v1517_v50, %v1516_v42  ;;  %v1542_v23 = vsel %vm1439_vm0, %v2229_v39, 0.0 }
  0x57   :  { %v1534_v17 = vsel %vm1439_vm0, %v4042_v33, 0.0  ;;  %v1536_v57 = vsel %vm1439_vm0, %v4043_v62, 0.0  ;;  %v1538_v2 = vsel %vm1439_vm0, %v4044_v56, 0.0  ;;  %v1529_v24 = vadd.f32 %v1528_v29, %v1527_v11 }
  0x58   :  { %v1540_v36 = vsel %vm1439_vm0, %v4045_v46, 0.0  ;;  %v1543_v63 = vsel %vm1439_vm0, %v2301_v4, 0.0  ;;  %v1545_v49 = vsel %vm1439_vm0, %v2386_v12, 0.0  ;;  %v1547_v52 = vsel %vm1439_vm0, %v2478_v60, 0.0 }
  0x59   :  { %v1549_v30 = vsel %vm1439_vm0, %v2562_v45, 0.0  ;;  %v3147_v61 = vadd.f32 %v1506_v21, %v1505_v13  ;;  %v1520_v1 = vadd.f32 %v1519_v44, %v1518_v54  ;;  %v1531_v22 = vadd.f32 %v1530_v26, %v1529_v24 }
  0x5a   :  { %v1544_v53 = vadd.f32 %v1543_v63, %v1542_v23  ;;  %v1551_v34 = vsel %vm1439_vm0, %v2656_v31, 0.0  ;;  %v1553_v50 = vsel %vm1439_vm0, %v2740_v19, 0.0  ;;  %v1555_v25 = vsel %vm1439_vm0, %v2834_v43, 0.0 }
  0x5b   :  { %v1557_v10 = vsel %vm1439_vm0, %v2914_v27, 0.0  ;;  %v1522_v16 = vadd.f32 %v1521_v7, %v1520_v1  ;;  %v1533_v48 = vadd.f32 %v1532_v6, %v1531_v22  ;;  %v4046_v21 = vcombine.high %v2229_v39, %v2229_v39 }
  0x5c   :  { %v1546_v59 = vadd.f32 %v1545_v49, %v1544_v53  ;;  %v4047_v32 = vcombine.high %v2301_v4, %v2301_v4  ;;  %v4048_v14 = vcombine.high %v2386_v12, %v2386_v12  ;;  %v4049_v7 = vcombine.high %v2478_v60, %v2478_v60 }
  0x5d   :  { %v1559_v44 = vsel %vm1439_vm0, %v4046_v21, 0.0  ;;  %v4050_v39 = vcombine.high %v2562_v45, %v2562_v45  ;;  %v3177_v38 = vadd.f32 %v1523_v37, %v1522_v16  ;;  %v1535_v4 = vadd.f32 %v1534_v17, %v1533_v48 }
  0x5e   :  { %v1560_v58 = vsel %vm1439_vm0, %v4047_v32, 0.0  ;;  %v1562_v29 = vsel %vm1439_vm0, %v4048_v14, 0.0  ;;  %v1564_v18 = vsel %vm1439_vm0, %v4049_v7, 0.0  ;;  %v1548_v6 = vadd.f32 %v1547_v52, %v1546_v59 }
  0x5f   :  { %v1566_v26 = vsel %vm1439_vm0, %v4050_v39, 0.0  ;;  %v1561_v3 = vadd.f32 %v1560_v58, %v1559_v44  ;;  %v4051_v12 = vcombine.high %v2656_v31, %v2656_v31  ;;  %v4052_v60 = vcombine.high %v2740_v19, %v2740_v19 }
  0x60   :  { %v4053_v45 = vcombine.high %v2834_v43, %v2834_v43  ;;  %v4054_v37 = vcombine.high %v2914_v27, %v2914_v27  ;;  %v1537_v62 = vadd.f32 %v1536_v57, %v1535_v4  ;;  %v1550_v56 = vadd.f32 %v1549_v30, %v1548_v6 }
  0x61   :  { %v1568_v42 = vsel %vm1439_vm0, %v4051_v12, 0.0  ;;  %v1570_v11 = vsel %vm1439_vm0, %v4052_v60, 0.0  ;;  %v1563_v31 = vadd.f32 %v1562_v29, %v1561_v3  ;;  %v1576_v46 = vsel %vm1439_vm0, %v2232_v40, 0.0  ;;  %v4064_v12 = vld [vmem:[#allocation11_spill] sm:$0xff]  ;;  %v4065_v60 = vld [vmem:[#allocation20_spill] sm:$0xff] }
  0x62   :  { %v1572_v33 = vsel %vm1439_vm0, %v4053_v45, 0.0  ;;  %v1574_v17 = vsel %vm1439_vm0, %v4054_v37, 0.0  ;;  %v1577_v19 = vsel %vm1439_vm0, %v2304_v5, 0.0  ;;  %v1579_v13 = vsel %vm1439_vm0, %v2391_v20, 0.0 }
  0x63   :  { %v1581_v43 = vsel %vm1439_vm0, %v2473_v8, 0.0  ;;  %v1583_v27 = vsel %vm1439_vm0, %v2565_v0, 0.0  ;;  %v1539_v54 = vadd.f32 %v1538_v2, %v1537_v62  ;;  %v1552_v24 = vadd.f32 %v1551_v34, %v1550_v56  ;;  %v4066_v62 = vld [vmem:[#allocation30_spill] sm:$0xff] }
  0x64   :  { %v1565_v57 = vadd.f32 %v1564_v18, %v1563_v31  ;;  %v1578_v23 = vadd.f32 %v1577_v19, %v1576_v46  ;;  %v1585_v63 = vsel %vm1439_vm0, %v2651_v51, 0.0  ;;  %v1587_v49 = vsel %vm1439_vm0, %v2743_v15, 0.0  ;;  %v4067_v31 = vld [vmem:[#allocation39_spill] sm:$0xff]  ;;  %v4068_v46 = vld [vmem:[#allocation48_spill] sm:$0xff] }
  0x65   :  { %v1589_v52 = vsel %vm1439_vm0, %v2829_v55, 0.0  ;;  %v1591_v30 = vsel %vm1439_vm0, %v2917_v9, 0.0  ;;  %v3213_v1 = vadd.f32 %v1540_v36, %v1539_v54  ;;  %v1554_v22 = vadd.f32 %v1553_v50, %v1552_v24 }
  0x66   :  { %v1567_v53 = vadd.f32 %v1566_v26, %v1565_v57  ;;  %v1580_v2 = vadd.f32 %v1579_v13, %v1578_v23  ;;  %v4055_v34 = vcombine.high %v2232_v40, %v2232_v40  ;;  %v4056_v48 = vcombine.high %v2304_v5, %v2304_v5  ;;  %v4069_v13 = vld [vmem:[#allocation57_spill] sm:$0xff]  ;;  %v4070_v57 = vld [vmem:[#allocation66_spill] sm:$0xff] }
  0x67   :  { %v4057_v21 = vcombine.high %v2391_v20, %v2391_v20  ;;  %v4058_v36 = vcombine.high %v2473_v8, %v2473_v8  ;;  %v1556_v32 = vadd.f32 %v1555_v25, %v1554_v22  ;;  %v4059_v29 = vcombine.high %v2565_v0, %v2565_v0 }
  0x68   :  { %v1593_v16 = vsel %vm1439_vm0, %v4055_v34, 0.0  ;;  %v1594_v59 = vsel %vm1439_vm0, %v4056_v48, 0.0  ;;  %v1569_v58 = vadd.f32 %v1568_v42, %v1567_v53  ;;  %v1582_v40 = vadd.f32 %v1581_v43, %v1580_v2 }
  0x69   :  { %v1596_v44 = vsel %vm1439_vm0, %v4057_v21, 0.0  ;;  %v1598_v50 = vsel %vm1439_vm0, %v4058_v36, 0.0  ;;  %v1595_v14 = vadd.f32 %v1594_v59, %v1593_v16  ;;  %v1600_v5 = vsel %vm1439_vm0, %v4059_v29, 0.0 }
  0x6a   :  { %v4060_v7 = vcombine.high %v2651_v51, %v2651_v51  ;;  %v4061_v18 = vcombine.high %v2743_v15, %v2743_v15  ;;  %v4062_v25 = vcombine.high %v2829_v55, %v2829_v55  ;;  %v3247_v26 = vadd.f32 %v1557_v10, %v1556_v32 }
  0x6b   :  { %v1571_v0 = vadd.f32 %v1570_v11, %v1569_v58  ;;  %v1584_v4 = vadd.f32 %v1583_v27, %v1582_v40  ;;  %v1597_v6 = vadd.f32 %v1596_v44, %v1595_v14  ;;  %v4063_v51 = vcombine.high %v2917_v9, %v2917_v9 }
  0x6c   :  { %v1602_v20 = vsel %vm1439_vm0, %v4060_v7, 0.0  ;;  %v1604_v8 = vsel %vm1439_vm0, %v4061_v18, 0.0  ;;  %v1606_v39 = vsel %vm1439_vm0, %v4062_v25, 0.0  ;;  %v1610_v15 = vsel %vm1439_vm0, %v2235_v41, 0.0 }
  0x6d   :  { %v1608_v3 = vsel %vm1439_vm0, %v4063_v51, 0.0  ;;  %v1611_v42 = vsel %vm1439_vm0, %v4064_v12, 0.0  ;;  %v1613_v55 = vsel %vm1439_vm0, %v4065_v60, 0.0  ;;  %v1573_v45 = vadd.f32 %v1572_v33, %v1571_v0 }
  0x6e   :  { %v1586_v10 = vadd.f32 %v1585_v63, %v1584_v4  ;;  %v1599_v37 = vadd.f32 %v1598_v50, %v1597_v6  ;;  %v1612_v11 = vadd.f32 %v1611_v42, %v1610_v15  ;;  %v1615_v56 = vsel %vm1439_vm0, %v4066_v62, 0.0  ;;  %v4071_v63 = vld [vmem:[#allocation75_spill] sm:$0xff] }
  0x6f   :  { %v1617_v9 = vsel %vm1439_vm0, %v4067_v31, 0.0  ;;  %v1619_v19 = vsel %vm1439_vm0, %v4068_v46, 0.0  ;;  %v1621_v43 = vsel %vm1439_vm0, %v4069_v13, 0.0  ;;  %v3267_v27 = vadd.f32 %v1574_v17, %v1573_v45 }
  0x70   :  { %v1588_v54 = vadd.f32 %v1587_v49, %v1586_v10  ;;  %v1601_v24 = vadd.f32 %v1600_v5, %v1599_v37  ;;  %v1614_v33 = vadd.f32 %v1613_v55, %v1612_v11  ;;  %v1623_v23 = vsel %vm1439_vm0, %v4070_v57, 0.0  ;;  %v4083_v55 = vld [vmem:[#allocation21_spill] sm:$0xff]  ;;  %v4085_v11 = vld [vmem:[#allocation38_spill] sm:$0xff] }
  0x71   :  { %v1625_v22 = vsel %vm1439_vm0, %v4071_v63, 0.0  ;;  %v4072_v53 = vcombine.high %v2235_v41, %v2235_v41  ;;  %v4073_v34 = vcombine.high %v4064_v12, %v4064_v12  ;;  %v4074_v21 = vcombine.high %v4065_v60, %v4065_v60  ;;  %v4082_v12 = vld [vmem:[#allocation12_spill] sm:$0xff]  ;;  %v4084_v10 = vld [vmem:[#allocation29_spill] sm:$0xff] }
  0x72   :  { %v1590_v16 = vadd.f32 %v1589_v52, %v1588_v54  ;;  %v1603_v49 = vadd.f32 %v1602_v20, %v1601_v24  ;;  %v1616_v48 = vadd.f32 %v1615_v56, %v1614_v33  ;;  %v4075_v36 = vcombine.high %v4066_v62, %v4066_v62  ;;  %v4088_v24 = vld [vmem:[#allocation65_spill] sm:$0xff] }
  0x73   :  { %v1627_v2 = vsel %vm1439_vm0, %v4072_v53, 0.0  ;;  %v1628_v17 = vsel %vm1439_vm0, %v4073_v34, 0.0  ;;  %v1630_v44 = vsel %vm1439_vm0, %v4074_v21, 0.0  ;;  %v4076_v50 = vcombine.high %v4067_v31, %v4067_v31 }
  0x74   :  { %v1629_v59 = vadd.f32 %v1628_v17, %v1627_v2  ;;  %v1632_v41 = vsel %vm1439_vm0, %v4075_v36, 0.0  ;;  %v4077_v52 = vcombine.high %v4068_v46, %v4068_v46  ;;  %v3297_v40 = vadd.f32 %v1591_v30, %v1590_v16  ;;  %v4081_v30 = vld [vmem:[#allocation3_spill] sm:$0xff] }
  0x75   :  { %v1634_v32 = vsel %vm1439_vm0, %v4076_v50, 0.0  ;;  %v1605_v14 = vadd.f32 %v1604_v8, %v1603_v49  ;;  %v1618_v29 = vadd.f32 %v1617_v9, %v1616_v48  ;;  %v4078_v7 = vcombine.high %v4069_v13, %v4069_v13  ;;  %v4087_v13 = vld [vmem:[#allocation56_spill] sm:$0xff] }
  0x76   :  { %v1636_v58 = vsel %vm1439_vm0, %v4077_v52, 0.0  ;;  %v1631_v5 = vadd.f32 %v1630_v44, %v1629_v59  ;;  %v4079_v18 = vcombine.high %v4070_v57, %v4070_v57  ;;  %v4080_v0 = vcombine.high %v4071_v63, %v4071_v63  ;;  %v4089_v57 = vld [vmem:[#allocation74_spill] sm:$0xff] }
  0x77   :  { %v1638_v20 = vsel %vm1439_vm0, %v4078_v7, 0.0  ;;  %v1644_v8 = vsel %vm1439_vm0, %v4081_v30, 0.0  ;;  %v1607_v6 = vadd.f32 %v1606_v39, %v1605_v14  ;;  %v1620_v51 = vadd.f32 %v1619_v19, %v1618_v29  ;;  %v4086_v39 = vld [vmem:[#allocation47_spill] sm:$0xff] }
  0x78   :  { %v1640_v25 = vsel %vm1439_vm0, %v4079_v18, 0.0  ;;  %v1642_v4 = vsel %vm1439_vm0, %v4080_v0, 0.0  ;;  %v1633_v15 = vadd.f32 %v1632_v41, %v1631_v5  ;;  %v1645_v42 = vsel %vm1439_vm0, %v4082_v12, 0.0 }
  0x79   :  { %v1646_v60 = vadd.f32 %v1645_v42, %v1644_v8  ;;  %v1647_v45 = vsel %vm1439_vm0, %v4083_v55, 0.0  ;;  %v1649_v37 = vsel %vm1439_vm0, %v4084_v10, 0.0  ;;  %v1651_v62 = vsel %vm1439_vm0, %v4085_v11, 0.0 }
  0x7a   :  { %v3321_v56 = vadd.f32 %v1608_v3, %v1607_v6  ;;  %v1622_v31 = vadd.f32 %v1621_v43, %v1620_v51  ;;  %v1635_v9 = vadd.f32 %v1634_v32, %v1633_v15  ;;  %v1653_v46 = vsel %vm1439_vm0, %v4086_v39, 0.0  ;;  %v4100_v6 = vld [vmem:[#allocation13_spill] sm:$0xff] }
  0x7b   :  { %v1648_v19 = vadd.f32 %v1647_v45, %v1646_v60  ;;  %v1655_v54 = vsel %vm1439_vm0, %v4087_v13, 0.0  ;;  %v1657_v33 = vsel %vm1439_vm0, %v4088_v24, 0.0  ;;  %v1659_v63 = vsel %vm1439_vm0, %v4089_v57, 0.0  ;;  %v4101_v60 = vld [vmem:[#allocation23_spill] sm:$0xff] }
  0x7c   :  { %v1624_v53 = vadd.f32 %v1623_v23, %v1622_v31  ;;  %v1637_v2 = vadd.f32 %v1636_v58, %v1635_v9  ;;  %v4090_v3 = vcombine.high %v4081_v30, %v4081_v30  ;;  %v4091_v34 = vcombine.high %v4082_v12, %v4082_v12  ;;  %v4099_v30 = vld [vmem:[#allocation4_spill] sm:$0xff] }
  0x7d   :  { %v1650_v16 = vadd.f32 %v1649_v37, %v1648_v19  ;;  %v4092_v48 = vcombine.high %v4083_v55, %v4083_v55  ;;  %v4093_v23 = vcombine.high %v4084_v10, %v4084_v10  ;;  %v4094_v41 = vcombine.high %v4085_v11, %v4085_v11  ;;  %v4103_v37 = vld [vmem:[#allocation40_spill] sm:$0xff] }
  0x7e   :  { %v1661_v43 = vsel %vm1439_vm0, %v4090_v3, 0.0  ;;  %v1662_v17 = vsel %vm1439_vm0, %v4091_v34, 0.0  ;;  %v3347_v44 = vadd.f32 %v1625_v22, %v1624_v53  ;;  %v1639_v36 = vadd.f32 %v1638_v20, %v1637_v2 }
  0x7f   :  { %v1663_v49 = vadd.f32 %v1662_v17, %v1661_v43  ;;  %v1664_v59 = vsel %vm1439_vm0, %v4092_v48, 0.0  ;;  %v1666_v21 = vsel %vm1439_vm0, %v4093_v23, 0.0  ;;  %v1668_v50 = vsel %vm1439_vm0, %v4094_v41, 0.0 }
  0x80   :  { %v4095_v32 = vcombine.high %v4086_v39, %v4086_v39  ;;  %v1652_v58 = vadd.f32 %v1651_v62, %v1650_v16  ;;  %v4096_v29 = vcombine.high %v4087_v13, %v4087_v13  ;;  %v4097_v22 = vcombine.high %v4088_v24, %v4088_v24  ;;  %v4104_v62 = vld [vmem:[#allocation49_spill] sm:$0xff]  ;;  %v4106_v24 = vld [vmem:[#allocation67_spill] sm:$0xff] }
  0x81   :  { %v1665_v14 = vadd.f32 %v1664_v59, %v1663_v49  ;;  %v1641_v20 = vadd.f32 %v1640_v25, %v1639_v36  ;;  %v4098_v18 = vcombine.high %v4089_v57, %v4089_v57  ;;  %v1678_v8 = vsel %vm1439_vm0, %v4099_v30, 0.0  ;;  %v4102_v25 = vld [vmem:[#allocation31_spill] sm:$0xff] }
  0x82   :  { %v1670_v52 = vsel %vm1439_vm0, %v4095_v32, 0.0  ;;  %v1672_v5 = vsel %vm1439_vm0, %v4096_v29, 0.0  ;;  %v1674_v7 = vsel %vm1439_vm0, %v4097_v22, 0.0  ;;  %v1679_v51 = vsel %vm1439_vm0, %v4100_v6, 0.0 }
  0x83   :  { %v1676_v0 = vsel %vm1439_vm0, %v4098_v18, 0.0  ;;  %v1654_v15 = vadd.f32 %v1653_v46, %v1652_v58  ;;  %v1667_v12 = vadd.f32 %v1666_v21, %v1665_v14  ;;  %v1680_v42 = vadd.f32 %v1679_v51, %v1678_v8  ;;  %v4105_v46 = vld [vmem:[#allocation58_spill] sm:$0xff] }
  0x84   :  { %v1681_v55 = vsel %vm1439_vm0, %v4101_v60, 0.0  ;;  %v3375_v45 = vadd.f32 %v1642_v4, %v1641_v20  ;;  %v1683_v10 = vsel %vm1439_vm0, %v4102_v25, 0.0  ;;  %v1685_v11 = vsel %vm1439_vm0, %v4103_v37, 0.0  ;;  %v4107_v4 = vld [vmem:[#allocation76_spill] sm:$0xff] }
  0x85   :  { %v1687_v31 = vsel %vm1439_vm0, %v4104_v62, 0.0  ;;  %v1656_v9 = vadd.f32 %v1655_v54, %v1654_v15  ;;  %v1669_v39 = vadd.f32 %v1668_v50, %v1667_v12  ;;  %v1682_v19 = vadd.f32 %v1681_v55, %v1680_v42  ;;  %v4118_v12 = vld [vmem:[#allocation14_spill] sm:$0xff] }
  0x86   :  { %v1689_v13 = vsel %vm1439_vm0, %v4105_v46, 0.0  ;;  %v1691_v57 = vsel %vm1439_vm0, %v4106_v24, 0.0  ;;  %v1693_v53 = vsel %vm1439_vm0, %v4107_v4, 0.0  ;;  %v4108_v2 = vcombine.high %v4099_v30, %v4099_v30  ;;  %v4119_v55 = vld [vmem:[#allocation22_spill] sm:$0xff] }
  0x87   :  { %v4109_v43 = vcombine.high %v4100_v6, %v4100_v6  ;;  %v1658_v34 = vadd.f32 %v1657_v33, %v1656_v9  ;;  %v1671_v17 = vadd.f32 %v1670_v52, %v1669_v39  ;;  %v1684_v16 = vadd.f32 %v1683_v10, %v1682_v19  ;;  %v4120_v10 = vld [vmem:[#allocation32_spill] sm:$0xff] }
  0x88   :  { %v1695_v3 = vsel %vm1439_vm0, %v4108_v2, 0.0  ;;  %v4110_v48 = vcombine.high %v4101_v60, %v4101_v60  ;;  %v4111_v23 = vcombine.high %v4102_v25, %v4102_v25  ;;  %v4112_v36 = vcombine.high %v4103_v37, %v4103_v37  ;;  %v4124_v2 = vld [vmem:[#allocation68_spill] sm:$0xff] }
  0x89   :  { %v1696_v54 = vsel %vm1439_vm0, %v4109_v43, 0.0  ;;  %v4113_v33 = vcombine.high %v4104_v62, %v4104_v62  ;;  %v3413_v32 = vadd.f32 %v1659_v63, %v1658_v34  ;;  %v1673_v52 = vadd.f32 %v1672_v5, %v1671_v17  ;;  %v4117_v63 = vld [vmem:[#allocation5_spill] sm:$0xff] }
  0x8a   :  { %v1697_v49 = vadd.f32 %v1696_v54, %v1695_v3  ;;  %v1698_v59 = vsel %vm1439_vm0, %v4110_v48, 0.0  ;;  %v1700_v21 = vsel %vm1439_vm0, %v4111_v23, 0.0  ;;  %v1702_v41 = vsel %vm1439_vm0, %v4112_v36, 0.0  ;;  %v4125_v43 = vld [vmem:[#allocation77_spill] sm:$0xff] }
  0x8b   :  { %v1704_v50 = vsel %vm1439_vm0, %v4113_v33, 0.0  ;;  %v1686_v58 = vadd.f32 %v1685_v11, %v1684_v16  ;;  %v4114_v29 = vcombine.high %v4105_v46, %v4105_v46  ;;  %v4115_v20 = vcombine.high %v4106_v24, %v4106_v24  ;;  %v4121_v11 = vld [vmem:[#allocation41_spill] sm:$0xff]  ;;  %v4123_v24 = vld [vmem:[#allocation59_spill] sm:$0xff] }
  0x8c   :  { %v1699_v14 = vadd.f32 %v1698_v59, %v1697_v49  ;;  %v4116_v30 = vcombine.high %v4107_v4, %v4107_v4  ;;  %v1712_v5 = vsel %vm1439_vm0, %v4117_v63, 0.0  ;;  %v1675_v6 = vadd.f32 %v1674_v7, %v1673_v52  ;;  %v4122_v7 = vld [vmem:[#allocation50_spill] sm:$0xff] }
  0x8d   :  { %v1706_v22 = vsel %vm1439_vm0, %v4114_v29, 0.0  ;;  %v1708_v18 = vsel %vm1439_vm0, %v4115_v20, 0.0  ;;  %v1688_v51 = vadd.f32 %v1687_v31, %v1686_v58  ;;  %v1713_v42 = vsel %vm1439_vm0, %v4118_v12, 0.0 }
  0x8e   :  { %v1710_v8 = vsel %vm1439_vm0, %v4116_v30, 0.0  ;;  %v1701_v15 = vadd.f32 %v1700_v21, %v1699_v14  ;;  %v1714_v60 = vadd.f32 %v1713_v42, %v1712_v5  ;;  %v1715_v25 = vsel %vm1439_vm0, %v4119_v55, 0.0  ;;  %v4136_v42 = vld [vmem:[#allocation15_spill] sm:$0xff] }
  0x8f   :  { %v1717_v37 = vsel %vm1439_vm0, %v4120_v10, 0.0  ;;  %v1719_v62 = vsel %vm1439_vm0, %v4121_v11, 0.0  ;;  %v3437_v9 = vadd.f32 %v1676_v0, %v1675_v6  ;;  %v1690_v39 = vadd.f32 %v1689_v13, %v1688_v51 }
  0x90   :  { %v1703_v19 = vadd.f32 %v1702_v41, %v1701_v15  ;;  %v1721_v31 = vsel %vm1439_vm0, %v4122_v7, 0.0  ;;  %v1716_v46 = vadd.f32 %v1715_v25, %v1714_v60  ;;  %v1723_v4 = vsel %vm1439_vm0, %v4123_v24, 0.0  ;;  %v4135_v15 = vld [vmem:[#allocation6_spill] sm:$0xff] }
  0x91   :  { %v1725_v3 = vsel %vm1439_vm0, %v4124_v2, 0.0  ;;  %v1727_v54 = vsel %vm1439_vm0, %v4125_v43, 0.0  ;;  %v1692_v34 = vadd.f32 %v1691_v57, %v1690_v39  ;;  %v4126_v0 = vcombine.high %v4117_v63, %v4117_v63 }
  0x92   :  { %v1705_v17 = vadd.f32 %v1704_v50, %v1703_v19  ;;  %v4127_v16 = vcombine.high %v4118_v12, %v4118_v12  ;;  %v1718_v48 = vadd.f32 %v1717_v37, %v1716_v46  ;;  %v4128_v23 = vcombine.high %v4119_v55, %v4119_v55  ;;  %v4137_v37 = vld [vmem:[#allocation24_spill] sm:$0xff]  ;;  %v4139_v19 = vld [vmem:[#allocation42_spill] sm:$0xff]  ;;  %v4140_v46 = vld [vmem:[#allocation51_spill] sm:$0xff] }
  0x93   :  { %v1729_v13 = vsel %vm1439_vm0, %v4126_v0, 0.0  ;;  %v4129_v57 = vcombine.high %v4120_v10, %v4120_v10  ;;  %v3463_v41 = vadd.f32 %v1693_v53, %v1692_v34  ;;  %v4130_v50 = vcombine.high %v4121_v11, %v4121_v11  ;;  %v4142_v0 = vld [vmem:[#allocation69_spill] sm:$0xff] }
  0x94   :  { %v1730_v49 = vsel %vm1439_vm0, %v4127_v16, 0.0  ;;  %v1732_v21 = vsel %vm1439_vm0, %v4128_v23, 0.0  ;;  %v1707_v33 = vadd.f32 %v1706_v22, %v1705_v17  ;;  %v4131_v58 = vcombine.high %v4122_v7, %v4122_v7 }
  0x95   :  { %v1731_v59 = vadd.f32 %v1730_v49, %v1729_v13  ;;  %v1734_v36 = vsel %vm1439_vm0, %v4129_v57, 0.0  ;;  %v1736_v52 = vsel %vm1439_vm0, %v4130_v50, 0.0  ;;  %v1720_v29 = vadd.f32 %v1719_v62, %v1718_v48 }
  0x96   :  { %v1738_v14 = vsel %vm1439_vm0, %v4131_v58, 0.0  ;;  %v4132_v30 = vcombine.high %v4123_v24, %v4123_v24  ;;  %v4133_v53 = vcombine.high %v4124_v2, %v4124_v2  ;;  %v1709_v5 = vadd.f32 %v1708_v18, %v1707_v33  ;;  %v4138_v18 = vld [vmem:[#allocation33_spill] sm:$0xff] }
  0x97   :  { %v1733_v20 = vadd.f32 %v1732_v21, %v1731_v59  ;;  %v4134_v6 = vcombine.high %v4125_v43, %v4125_v43  ;;  %v1746_v12 = vsel %vm1439_vm0, %v4135_v15, 0.0  ;;  %v1747_v60 = vsel %vm1439_vm0, %v4136_v42, 0.0 }
  0x98   :  { %v1740_v63 = vsel %vm1439_vm0, %v4132_v30, 0.0  ;;  %v1742_v22 = vsel %vm1439_vm0, %v4133_v53, 0.0  ;;  %v1722_v55 = vadd.f32 %v1721_v31, %v1720_v29  ;;  %v1748_v10 = vadd.f32 %v1747_v60, %v1746_v12  ;;  %v4141_v31 = vld [vmem:[#allocation60_spill] sm:$0xff] }
  0x99   :  { %v1744_v51 = vsel %vm1439_vm0, %v4134_v6, 0.0  ;;  %v1735_v25 = vadd.f32 %v1734_v36, %v1733_v20  ;;  %v1749_v11 = vsel %vm1439_vm0, %v4137_v37, 0.0  ;;  %v3491_v62 = vadd.f32 %v1710_v8, %v1709_v5  ;;  %v4143_v8 = vld [vmem:[#allocation78_spill] sm:$0xff] }
  0x9a   :  { %v1751_v39 = vsel %vm1439_vm0, %v4138_v18, 0.0  ;;  %v1753_v7 = vsel %vm1439_vm0, %v4139_v19, 0.0  ;;  %v1755_v24 = vsel %vm1439_vm0, %v4140_v46, 0.0  ;;  %v1724_v2 = vadd.f32 %v1723_v4, %v1722_v55 }
  0x9b   :  { %v1737_v43 = vadd.f32 %v1736_v52, %v1735_v25  ;;  %v1750_v34 = vadd.f32 %v1749_v11, %v1748_v10  ;;  %v1757_v17 = vsel %vm1439_vm0, %v4141_v31, 0.0  ;;  %v1759_v13 = vsel %vm1439_vm0, %v4142_v0, 0.0 }
  0x9c   :  { %v1761_v16 = vsel %vm1439_vm0, %v4143_v8, 0.0  ;;  %v4144_v49 = vcombine.high %v4135_v15, %v4135_v15  ;;  %v4145_v59 = vcombine.high %v4136_v42, %v4136_v42  ;;  %v1726_v23 = vadd.f32 %v1725_v3, %v1724_v2  ;;  %v4156_v2 = vld [vmem:[#allocation34_spill] sm:$0xff] }
  0x9d   :  { %v1739_v21 = vadd.f32 %v1738_v14, %v1737_v43  ;;  %v1752_v57 = vadd.f32 %v1751_v39, %v1750_v34  ;;  %v4146_v33 = vcombine.high %v4137_v37, %v4137_v37  ;;  %v4147_v52 = vcombine.high %v4138_v18, %v4138_v18  ;;  %v4154_v18 = vld [vmem:[#allocation16_spill] sm:$0xff]  ;;  %v4157_v34 = vld [vmem:[#allocation43_spill] sm:$0xff] }
  0x9e   :  { %v1763_v48 = vsel %vm1439_vm0, %v4144_v49, 0.0  ;;  %v1764_v4 = vsel %vm1439_vm0, %v4145_v59, 0.0  ;;  %v4148_v29 = vcombine.high %v4139_v19, %v4139_v19  ;;  %v4149_v3 = vcombine.high %v4140_v46, %v4140_v46  ;;  %v4159_v59 = vld [vmem:[#allocation61_spill] sm:$0xff] }
  0x9f   :  { %v1765_v36 = vadd.f32 %v1764_v4, %v1763_v48  ;;  %v1766_v50 = vsel %vm1439_vm0, %v4146_v33, 0.0  ;;  %v1768_v58 = vsel %vm1439_vm0, %v4147_v52, 0.0  ;;  %v3529_v30 = vadd.f32 %v1727_v54, %v1726_v23  ;;  %v4153_v54 = vld [vmem:[#allocation7_spill] sm:$0xff]  ;;  %v4160_v23 = vld [vmem:[#allocation70_spill] sm:$0xff] }
  0xa0   :  { %v1770_v20 = vsel %vm1439_vm0, %v4148_v29, 0.0  ;;  %v1772_v14 = vsel %vm1439_vm0, %v4149_v3, 0.0  ;;  %v1741_v53 = vadd.f32 %v1740_v63, %v1739_v21  ;;  %v1754_v5 = vadd.f32 %v1753_v7, %v1752_v57  ;;  %v4155_v7 = vld [vmem:[#allocation25_spill] sm:$0xff]  ;;  %v4161_v57 = vld [vmem:[#allocation79_spill] sm:$0xff] }
  0xa1   :  { %v1767_v6 = vadd.f32 %v1766_v50, %v1765_v36  ;;  %v4150_v15 = vcombine.high %v4141_v31, %v4141_v31  ;;  %v4151_v42 = vcombine.high %v4142_v0, %v4142_v0  ;;  %v4152_v55 = vcombine.high %v4143_v8, %v4143_v8 }
  0xa2   :  { %v1780_v63 = vsel %vm1439_vm0, %v4153_v54, 0.0  ;;  %v1743_v10 = vadd.f32 %v1742_v22, %v1741_v53  ;;  %v1756_v37 = vadd.f32 %v1755_v24, %v1754_v5  ;;  %v1781_v39 = vsel %vm1439_vm0, %v4154_v18, 0.0  ;;  %v4158_v22 = vld [vmem:[#allocation52_spill] sm:$0xff] }
  0xa3   :  { %v1774_v12 = vsel %vm1439_vm0, %v4150_v15, 0.0  ;;  %v1776_v60 = vsel %vm1439_vm0, %v4151_v42, 0.0  ;;  %v1778_v25 = vsel %vm1439_vm0, %v4152_v55, 0.0  ;;  %v1769_v11 = vadd.f32 %v1768_v58, %v1767_v6 }
  0xa4   :  { %v1782_v19 = vadd.f32 %v1781_v39, %v1780_v63  ;;  %v1783_v46 = vsel %vm1439_vm0, %v4155_v7, 0.0  ;;  %v1785_v43 = vsel %vm1439_vm0, %v4156_v2, 0.0  ;;  %v1787_v31 = vsel %vm1439_vm0, %v4157_v34, 0.0 }
  0xa5   :  { %v3553_v0 = vadd.f32 %v1744_v51, %v1743_v10  ;;  %v1758_v8 = vadd.f32 %v1757_v17, %v1756_v37  ;;  %v1771_v49 = vadd.f32 %v1770_v20, %v1769_v11  ;;  %v1789_v24 = vsel %vm1439_vm0, %v4158_v22, 0.0 }
  0xa6   :  { %v1784_v48 = vadd.f32 %v1783_v46, %v1782_v19  ;;  %v1791_v4 = vsel %vm1439_vm0, %v4159_v59, 0.0  ;;  %v1793_v21 = vsel %vm1439_vm0, %v4160_v23, 0.0  ;;  %v1795_v36 = vsel %vm1439_vm0, %v4161_v57, 0.0 }
  0xa7   :  { %v1760_v33 = vadd.f32 %v1759_v13, %v1758_v8  ;;  %v1773_v50 = vadd.f32 %v1772_v14, %v1771_v49  ;;  %v4162_v51 = vcombine.high %v4153_v54, %v4153_v54  ;;  %v4163_v52 = vcombine.high %v4154_v18, %v4154_v18  ;;  %v4173_v49 = vld [vmem:[#allocation26_spill] sm:$0xff] }
  0xa8   :  { %v1786_v29 = vadd.f32 %v1785_v43, %v1784_v48  ;;  %v4164_v3 = vcombine.high %v4155_v7, %v4155_v7  ;;  %v4165_v13 = vcombine.high %v4156_v2, %v4156_v2  ;;  %v4166_v15 = vcombine.high %v4157_v34, %v4157_v34  ;;  %v4171_v7 = vld [vmem:[#allocation8_spill] sm:$0xff]  ;;  %v4172_v2 = vld [vmem:[#allocation17_spill] sm:$0xff] }
  0xa9   :  { %v1797_v17 = vsel %vm1439_vm0, %v4162_v51, 0.0  ;;  %v1798_v58 = vsel %vm1439_vm0, %v4163_v52, 0.0  ;;  %v3579_v5 = vadd.f32 %v1761_v16, %v1760_v33  ;;  %v1775_v6 = vadd.f32 %v1774_v12, %v1773_v50  ;;  %v4176_v33 = vld [vmem:[#allocation53_spill] sm:$0xff] }
  0xaa   :  { %v1799_v20 = vadd.f32 %v1798_v58, %v1797_v17  ;;  %v1800_v53 = vsel %vm1439_vm0, %v4164_v3, 0.0  ;;  %v1802_v14 = vsel %vm1439_vm0, %v4165_v13, 0.0  ;;  %v1804_v42 = vsel %vm1439_vm0, %v4166_v15, 0.0 }
  0xab   :  { %v4167_v55 = vcombine.high %v4158_v22, %v4158_v22  ;;  %v1788_v63 = vadd.f32 %v1787_v31, %v1786_v29  ;;  %v4168_v37 = vcombine.high %v4159_v59, %v4159_v59  ;;  %v4169_v16 = vcombine.high %v4160_v23, %v4160_v23  ;;  %v4175_v23 = vld [vmem:[#allocation45_spill] sm:$0xff]  ;;  %v4178_v29 = vld [vmem:[#allocation71_spill] sm:$0xff] }
  0xac   :  { %v1801_v10 = vadd.f32 %v1800_v53, %v1799_v20  ;;  %v1777_v18 = vadd.f32 %v1776_v60, %v1775_v6  ;;  %v4170_v39 = vcombine.high %v4161_v57, %v4161_v57  ;;  %v1814_v46 = vsel %vm1439_vm0, %v4171_v7, 0.0  ;;  %v4174_v60 = vld [vmem:[#allocation35_spill] sm:$0xff] }
  0xad   :  { %v1806_v54 = vsel %vm1439_vm0, %v4167_v55, 0.0  ;;  %v1808_v11 = vsel %vm1439_vm0, %v4168_v37, 0.0  ;;  %v1810_v12 = vsel %vm1439_vm0, %v4169_v16, 0.0  ;;  %v1815_v43 = vsel %vm1439_vm0, %v4172_v2, 0.0 }
  0xae   :  { %v1812_v19 = vsel %vm1439_vm0, %v4170_v39, 0.0  ;;  %v1790_v34 = vadd.f32 %v1789_v24, %v1788_v63  ;;  %v1803_v31 = vadd.f32 %v1802_v14, %v1801_v10  ;;  %v1816_v8 = vadd.f32 %v1815_v43, %v1814_v46  ;;  %v4177_v24 = vld [vmem:[#allocation63_spill] sm:$0xff] }
  0xaf   :  { %v1817_v22 = vsel %vm1439_vm0, %v4173_v49, 0.0  ;;  %v3607_v48 = vadd.f32 %v1778_v25, %v1777_v18  ;;  %v1819_v59 = vsel %vm1439_vm0, %v4174_v60, 0.0  ;;  %v1821_v57 = vsel %vm1439_vm0, %v4175_v23, 0.0  ;;  %v4179_v25 = vld [vmem:[#allocation81_spill] sm:$0xff] }
  0xb0   :  { %v1823_v50 = vsel %vm1439_vm0, %v4176_v33, 0.0  ;;  %v1792_v51 = vadd.f32 %v1791_v4, %v1790_v34  ;;  %v1805_v17 = vadd.f32 %v1804_v42, %v1803_v31  ;;  %v1818_v52 = vadd.f32 %v1817_v22, %v1816_v8 }
  0xb1   :  { %v1825_v58 = vsel %vm1439_vm0, %v4177_v24, 0.0  ;;  %v1827_v20 = vsel %vm1439_vm0, %v4178_v29, 0.0  ;;  %v1829_v3 = vsel %vm1439_vm0, %v4179_v25, 0.0  ;;  %v4180_v53 = vcombine.high %v4171_v7, %v4171_v7 }
  0xb2   :  { %v4181_v14 = vcombine.high %v4172_v2, %v4172_v2  ;;  %v1794_v6 = vadd.f32 %v1793_v21, %v1792_v51  ;;  %v1807_v15 = vadd.f32 %v1806_v54, %v1805_v17  ;;  %v1820_v42 = vadd.f32 %v1819_v59, %v1818_v52  ;;  %v4191_v52 = vld [vmem:[#allocation27_spill] sm:$0xff] }
  0xb3   :  { %v1831_v13 = vsel %vm1439_vm0, %v4180_v53, 0.0  ;;  %v4182_v63 = vcombine.high %v4173_v49, %v4173_v49  ;;  %v4183_v37 = vcombine.high %v4174_v60, %v4174_v60  ;;  %v4184_v18 = vcombine.high %v4175_v23, %v4175_v23 }
  0xb4   :  { %v1832_v4 = vsel %vm1439_vm0, %v4181_v14, 0.0  ;;  %v4185_v21 = vcombine.high %v4176_v33, %v4176_v33  ;;  %v3645_v7 = vadd.f32 %v1795_v36, %v1794_v6  ;;  %v1809_v46 = vadd.f32 %v1808_v11, %v1807_v15  ;;  %v4189_v36 = vld [vmem:[#allocation9_spill] sm:$0xff]  ;;  %v4190_v33 = vld [vmem:[#allocation18_spill] sm:$0xff] }
  0xb5   :  { %v1833_v55 = vadd.f32 %v1832_v4, %v1831_v13  ;;  %v1834_v10 = vsel %vm1439_vm0, %v4182_v63, 0.0  ;;  %v1836_v16 = vsel %vm1439_vm0, %v4183_v37, 0.0  ;;  %v1838_v39 = vsel %vm1439_vm0, %v4184_v18, 0.0  ;;  %v4193_v13 = vld [vmem:[#allocation44_spill] sm:$0xff] }
  0xb6   :  { %v1840_v54 = vsel %vm1439_vm0, %v4185_v21, 0.0  ;;  %v1822_v2 = vadd.f32 %v1821_v57, %v1820_v42  ;;  %v4186_v34 = vcombine.high %v4177_v24, %v4177_v24  ;;  %v4187_v8 = vcombine.high %v4178_v29, %v4178_v29  ;;  %v4192_v29 = vld [vmem:[#allocation36_spill] sm:$0xff]  ;;  %v4195_v42 = vld [vmem:[#allocation62_spill] sm:$0xff] }
  0xb7   :  { %v1835_v43 = vadd.f32 %v1834_v10, %v1833_v55  ;;  %v4188_v22 = vcombine.high %v4179_v25, %v4179_v25  ;;  %v1848_v11 = vsel %vm1439_vm0, %v4189_v36, 0.0  ;;  %v1811_v59 = vadd.f32 %v1810_v12, %v1809_v46  ;;  %v4194_v12 = vld [vmem:[#allocation54_spill] sm:$0xff]  ;;  %v4196_v63 = vld [vmem:[#allocation72_spill] sm:$0xff] }
  0xb8   :  { %v1842_v31 = vsel %vm1439_vm0, %v4186_v34, 0.0  ;;  %v1844_v49 = vsel %vm1439_vm0, %v4187_v8, 0.0  ;;  %v1824_v23 = vadd.f32 %v1823_v50, %v1822_v2  ;;  %v1849_v51 = vsel %vm1439_vm0, %v4190_v33, 0.0  ;;  %v4197_v37 = vld [vmem:[#allocation80_spill] sm:$0xff] }
  0xb9   :  { %v1846_v60 = vsel %vm1439_vm0, %v4188_v22, 0.0  ;;  %v1837_v57 = vadd.f32 %v1836_v16, %v1835_v43  ;;  %v1850_v17 = vadd.f32 %v1849_v51, %v1848_v11  ;;  %v1851_v24 = vsel %vm1439_vm0, %v4191_v52, 0.0 }
  0xba   :  { %v1853_v53 = vsel %vm1439_vm0, %v4192_v29, 0.0  ;;  %v1855_v25 = vsel %vm1439_vm0, %v4193_v13, 0.0  ;;  %v3669_v14 = vadd.f32 %v1812_v19, %v1811_v59  ;;  %v1826_v4 = vadd.f32 %v1825_v58, %v1824_v23 }
  0xbb   :  { %v1839_v6 = vadd.f32 %v1838_v39, %v1837_v57  ;;  %v1857_v50 = vsel %vm1439_vm0, %v4194_v12, 0.0  ;;  %v1852_v15 = vadd.f32 %v1851_v24, %v1850_v17  ;;  %v1859_v55 = vsel %vm1439_vm0, %v4195_v42, 0.0 }
  0xbc   :  { %v1861_v10 = vsel %vm1439_vm0, %v4196_v63, 0.0  ;;  %v1863_v16 = vsel %vm1439_vm0, %v4197_v37, 0.0  ;;  %v1828_v18 = vadd.f32 %v1827_v20, %v1826_v4  ;;  %v4198_v19 = vcombine.high %v4189_v36, %v4189_v36  ;;  %v4208_v4 = vld [vmem:[#allocation19_spill] sm:$0xff] }
  0xbd   :  { %v1841_v21 = vadd.f32 %v1840_v54, %v1839_v6  ;;  %v4199_v39 = vcombine.high %v4190_v33, %v4190_v33  ;;  %v1854_v2 = vadd.f32 %v1853_v53, %v1852_v15  ;;  %v4200_v34 = vcombine.high %v4191_v52, %v4191_v52 }
  0xbe   :  { %v1865_v58 = vsel %vm1439_vm0, %v4198_v19, 0.0  ;;  %v4201_v20 = vcombine.high %v4192_v29, %v4192_v29  ;;  %v3695_v22 = vadd.f32 %v1829_v3, %v1828_v18  ;;  %v4202_v11 = vcombine.high %v4193_v13, %v4193_v13  ;;  %v4207_v13 = vld [vmem:[#allocation10_spill] sm:$0xff]  ;;  %v4209_v18 = vld [vmem:[#allocation28_spill] sm:$0xff]  ;;  %v4210_v19 = vld [vmem:[#allocation37_spill] sm:$0xff] }
  0xbf   :  { %v1866_v46 = vsel %vm1439_vm0, %v4199_v39, 0.0  ;;  %v1868_v8 = vsel %vm1439_vm0, %v4200_v34, 0.0  ;;  %v1843_v36 = vadd.f32 %v1842_v31, %v1841_v21  ;;  %v4203_v23 = vcombine.high %v4194_v12, %v4194_v12  ;;  %v4212_v39 = vld [vmem:[#allocation55_spill] sm:$0xff] }
  0xc0   :  { %v1867_v43 = vadd.f32 %v1866_v46, %v1865_v58  ;;  %v1870_v54 = vsel %vm1439_vm0, %v4201_v20, 0.0  ;;  %v1872_v59 = vsel %vm1439_vm0, %v4202_v11, 0.0  ;;  %v1856_v33 = vadd.f32 %v1855_v25, %v1854_v2  ;;  %v4211_v58 = vld [vmem:[#allocation46_spill] sm:$0xff]  ;;  %v4214_v20 = vld [vmem:[#allocation73_spill] sm:$0xff] }
  0xc1   :  { %v1874_v57 = vsel %vm1439_vm0, %v4203_v23, 0.0  ;;  %v4204_v17 = vcombine.high %v4195_v42, %v4195_v42  ;;  %v4205_v3 = vcombine.high %v4196_v63, %v4196_v63  ;;  %v1845_v24 = vadd.f32 %v1844_v49, %v1843_v36  ;;  %v4215_v36 = vld [vmem:[#allocation82_spill] sm:$0xff] }
  0xc2   :  { %v1869_v51 = vadd.f32 %v1868_v8, %v1867_v43  ;;  %v4206_v29 = vcombine.high %v4197_v37, %v4197_v37  ;;  %v1882_v25 = vsel %vm1439_vm0, %v4207_v13, 0.0  ;;  %v1883_v6 = vsel %vm1439_vm0, %v4208_v4, 0.0  ;;  %v4213_v8 = vld [vmem:[#allocation64_spill] sm:$0xff] }
  0xc3   :  { %v1876_v52 = vsel %vm1439_vm0, %v4204_v17, 0.0  ;;  %v1878_v31 = vsel %vm1439_vm0, %v4205_v3, 0.0  ;;  %v1858_v12 = vadd.f32 %v1857_v50, %v1856_v33  ;;  %v1884_v42 = vadd.f32 %v1883_v6, %v1882_v25 }
  0xc4   :  { %v1880_v53 = vsel %vm1439_vm0, %v4206_v29, 0.0  ;;  %v1871_v15 = vadd.f32 %v1870_v54, %v1869_v51  ;;  %v1885_v63 = vsel %vm1439_vm0, %v4209_v18, 0.0  ;;  %v1847_v21 = vadd.f32 %v1846_v60, %v1845_v24 }
  0xc5   :  { %v1887_v49 = vsel %vm1439_vm0, %v4210_v19, 0.0  ;;  %v1889_v37 = vsel %vm1439_vm0, %v4211_v58, 0.0  ;;  %v1891_v46 = vsel %vm1439_vm0, %v4212_v39, 0.0  ;;  %v1860_v2 = vadd.f32 %v1859_v55, %v1858_v12 }
  0xc6   :  { %v1873_v43 = vadd.f32 %v1872_v59, %v1871_v15  ;;  %v1886_v34 = vadd.f32 %v1885_v63, %v1884_v42  ;;  %v1893_v50 = vsel %vm1439_vm0, %v4213_v8, 0.0  ;;  %v1895_v54 = vsel %vm1439_vm0, %v4214_v20, 0.0 }
  0xc7   :  { %v1897_v60 = vsel %vm1439_vm0, %v4215_v36, 0.0  ;;  %v1899_v11 = vmul.f32 0.11111111, %v3081_v28  ;;  %v1900_v23 = vmul.f32 0.11111111, %v3091_v35  ;;  %v1862_v33 = vadd.f32 %v1861_v10, %v1860_v2 }
  0xc8   :  { %v1875_v51 = vadd.f32 %v1874_v57, %v1873_v43  ;;  %v1888_v17 = vadd.f32 %v1887_v49, %v1886_v34  ;;  %v1901_v55 = vmul.f32 0.11111111, %v3119_v47  ;;  %v1902_v59 = vmul.f32 0.11111111, %v3147_v61 }
  0xc9   :  { %v1903_v3 = vmul.f32 0.11111111, %v3177_v38  ;;  %v1904_v24 = vmul.f32 0.11111111, %v3213_v1  ;;  %v1953_v29 = vcombine.low %v1899_v11, %v1900_v23  ;;  %v1864_v13 = vadd.f32 %v1863_v16, %v1862_v33 }
  0xca   :  { %v1877_v25 = vadd.f32 %v1876_v52, %v1875_v51  ;;  %v1890_v4 = vadd.f32 %v1889_v37, %v1888_v17  ;;  %v1905_v6 = vmul.f32 0.11111111, %v3247_v26  ;;  %v1906_v28 = vmul.f32 0.11111111, %v3267_v27  ;;  %v4216_v26 = vld [vmem:[#allocation2_spill] sm:$0xff] }
  0xcb   :  { %v1907_v35 = vmul.f32 0.11111111, %v3297_v40  ;;  %v1908_v10 = vmul.f32 0.11111111, %v3321_v56  ;;  %v1954_v57 = vcombine.low %v1901_v55, %v1902_v59  ;;  %v1909_v61 = vmul.f32 0.11111111, %v3347_v44 }
  0xcc   :  { %v1879_v47 = vadd.f32 %v1878_v31, %v1877_v25  ;;  %v1892_v12 = vadd.f32 %v1891_v46, %v1890_v4  ;;  %v1910_v38 = vmul.f32 0.11111111, %v3375_v45  ;;  %v1911_v1 = vmul.f32 0.11111111, %v3413_v32 }
  0xcd   :  { %v1912_v16 = vmul.f32 0.11111111, %v3437_v9  ;;  %v1913_v52 = vmul.f32 0.11111111, %v3463_v41  ;;  %v1961_v15 = vrot.slane %v1953_v29, %v4216_v26  ;;  %v1914_v40 = vmul.f32 0.11111111, %v3491_v62 }
  0xce   :  { %v1881_v27 = vadd.f32 %v1880_v53, %v1879_v47  ;;  %v1894_v42 = vadd.f32 %v1893_v50, %v1892_v12  ;;  %v1915_v56 = vmul.f32 0.11111111, %v3529_v30  ;;  %v1916_v31 = vmul.f32 0.11111111, %v3553_v0 }
  0xcf   :  { %v1917_v44 = vmul.f32 0.11111111, %v3579_v5  ;;  %v1918_v45 = vmul.f32 0.11111111, %v3607_v48  ;;  %v1968_v32 = vrot.slane %v1954_v57, %v4216_v26  ;;  %v1919_v9 = vmul.f32 0.11111111, %v3645_v7 }
  0xd0   :  { %v1896_v18 = vadd.f32 %v1895_v54, %v1894_v42  ;;  %v1920_v41 = vmul.f32 0.11111111, %v3669_v14  ;;  %v1921_v53 = vmul.f32 0.11111111, %v3695_v22  ;;  %v1922_v63 = vmul.f32 0.11111111, %v1847_v21 }
  0xd1   :  { %v1923_v19 = vmul.f32 0.11111111, %v1864_v13  ;;  %v1924_v62 = vmul.f32 0.11111111, %v1881_v27  ;;  %v1969_v49 = vcombine.low %v1961_v15, %v1968_v32  ;;  %v1970_v58 = vcombine.low %v1903_v3, %v1904_v24 }
  0xd2   :  { %v1898_v30 = vadd.f32 %v1897_v60, %v1896_v18  ;;  %v1971_v0 = vcombine.low %v1905_v6, %v1906_v28  ;;  %v1987_v37 = vcombine.low %v1907_v35, %v1908_v10  ;;  %v1988_v5 = vcombine.low %v1909_v61, %v1910_v38 }
  0xd3   :  { %v2004_v39 = vcombine.low %v1911_v1, %v1912_v16  ;;  %v2005_v48 = vcombine.low %v1913_v52, %v1914_v40  ;;  %v2021_v46 = vcombine.low %v1915_v56, %v1916_v31  ;;  %2078 = vst [vmem:[%s3794_s1] sm:$0xff] %v1969_v49  ;;  %v1978_v14 = vrot.slane %v1970_v58, %v4216_v26 }
  0xd4   :  { %v1925_v7 = vmul.f32 0.11111111, %v1898_v30  ;;  %v1985_v22 = vrot.slane %v1971_v0, %v4216_v26  ;;  %v1995_v21 = vrot.slane %v1987_v37, %v4216_v26  ;;  %v2002_v2 = vrot.slane %v1988_v5, %v4216_v26 }
  0xd5   :  { %v2012_v43 = vrot.slane %v2004_v39, %v4216_v26  ;;  %v2019_v34 = vrot.slane %v2005_v48, %v4216_v26  ;;  %v2022_v8 = vcombine.low %v1917_v44, %v1918_v45  ;;  %v2029_v20 = vrot.slane %v2021_v46, %v4216_v26 }
  0xd6   :  { %v1986_v50 = vcombine.low %v1978_v14, %v1985_v22  ;;  %v2038_v54 = vcombine.low %v1919_v9, %v1920_v41  ;;  %v2039_v36 = vcombine.low %v1921_v53, %v1922_v63  ;;  %v2003_v60 = vcombine.low %v1995_v21, %v2002_v2 }
  0xd7   :  { %v2020_v11 = vcombine.low %v2012_v43, %v2019_v34  ;;  %v2036_v23 = vrot.slane %v2022_v8, %v4216_v26  ;;  %v2055_v33 = vcombine.low %v1923_v19, %v1924_v62  ;;  %v2069_v55 = vrot.slane %v1925_v7, %v4216_v26 }
  0xd8   :  { %v2046_v51 = vrot.slane %v2038_v54, %v4216_v26  ;;  %v2053_v17 = vrot.slane %v2039_v36, %v4216_v26  ;;  %2079 = vst [vmem:[%s3794_s1 + $0x8] sm:$0xff] %v1986_v50  ;;  %2080 = vst [vmem:[%s3794_s1 + $0x10] sm:$0xff] %v2003_v60 }
  0xd9   :  { %v2037_v59 = vcombine.low %v2029_v20, %v2036_v23  ;;  %v2062_v3 = vrot.slane %v2055_v33, %v4216_v26  ;;  %2081 = vst [vmem:[%s3794_s1 + $0x18] sm:$0xff] %v2020_v11 }
  0xda   :  { %v2054_v24 = vcombine.low %v2046_v51, %v2053_v17 }
  0xdb   :  { %v2070_v29 = vcombine.low %v2062_v3, %v2069_v55  ;;  %2082 = vst [vmem:[%s3794_s1 + $0x20] sm:$0xff] %v2037_v59 }
  0xdc   :  { %2083 = vst [vmem:[%s3794_s1 + $0x28] sm:$0xff] %v2054_v24 }
  0xdd   :  { %2084 = vst [vmem:[%s3794_s1 + $0x30] sm:$0x3f] %v2070_v29 }

// kernel: net_forward.19
= control target key start
LH: loop header
LB: loop body
LE: loop exit
PB: predicated region body
PF: predicated region fallthrough
CT: control target
= control target key end

     0   :  { %s704_s12 = smov 0   ;;  %s845_s0 = inlined_call_operand.vmem [shape: bf16[288,144], index: 0, kind: input, shape index: {}]   ;;  %s846_s1 = inlined_call_operand.vmem [shape: bf16[144,24], index: 1, kind: input, shape index: {}]   ;;  %s847_s2 = inlined_call_operand.vmem [shape: f32[1,24], index: 2, kind: input, shape index: {}]   ;;  %s848_s3 = inlined_call_operand.vmem [shape: f32[288,24], index: 3, kind: output, shape index: {}]  }
   0x1 LB: > { %s564_s13 = sadd.s32 4294967295, %s681_s12   ;;  %p568_p0 = scmp.ge.s32.totalorder %s681_s12, 1  ;;  %s681_s12 = sphi %s704_s12, %s13_s12  }
   0x2   : > { %p139_p1 = scmp.lt.s32.totalorder %s681_s12, 3 }
   0x4   : > { %p140_p2 = pnand %p568_p0, %p139_p1 }
   0x5   : > { %v639_v0 = vld [vmem:[%s846_s1] sm:$0xff] (!%p140_p2)   ;;  %v683_v1 = vmov (!%p140_p2), 0   ;;  %s164_s16 = smul.u32 (!%p140_p2), 18, %s564_s13  ;;  %v640_v2 = vld [vmem:[%s846_s1 + $0x8] sm:$0xff] (!%p140_p2)   ;;  %v641_v3 = vld [vmem:[%s846_s1 + $0x10] sm:$0xff] (!%p140_p2)   ;;  %vm356_vm0 = vcmask (!%p140_p2), 130048  }
   0x6   : > { %143 = sbr.rel (%p140_p2) target bundleno = 291 (0x123), region = 32  ;;  %384 = vmatprep.subr.bf16.mxu0 (!%p140_p2), %v683_v1  ;;  %612 = vmatprep.subr.bf16.mxu1 (!%p140_p2), %v683_v1  ;;  %v642_v4 = vld [vmem:[%s846_s1 + $0x18] sm:$0xff] (!%p140_p2)   ;;  %v643_v7 = vld [vmem:[%s846_s1 + $0x20] sm:$0xff] (!%p140_p2)   ;;  %v644_v8 = vld [vmem:[%s846_s1 + $0x28] sm:$0xff] (!%p140_p2)   ;;  %vm489_vm1 = vcmask (!%p140_p2), 195584  }
   0x7   : > { %385 = vmatpush1.bf16.msra.mxu0 (!%p140_p2), %v639_v0  ;;  %621 = vmatpush1.bf16.msra.mxu1 (!%p140_p2), %v639_v0  ;;  %p165_p3 = scmp.lt.s32.totalorder (!%p140_p2), %s164_s16, 35  ;;  %v645_v9 = vld [vmem:[%s846_s1 + $0x30] sm:$0xff] (!%p140_p2)   ;;  %v646_v10 = vld [vmem:[%s846_s1 + $0x38] sm:$0xff] (!%p140_p2)   ;;  %v647_v11 = vld [vmem:[%s846_s1 + $0x40] sm:$0xff] (!%p140_p2)  }
   0x8   : > { %386 = vmatprep.subr.bf16.mxu0 (!%p140_p2), %v683_v1  ;;  %613 = vmatprep.subr.bf16.mxu1 (!%p140_p2), %v683_v1  ;;  %v779_v28 = vld [vmem:[%s847_s2] ss:$0 sm:$0xff] (!%p140_p2) }
   0xb   : > { %387 = vmatpush1.bf16.msra.mxu0 (!%p140_p2), %v640_v2  ;;  %622 = vmatpush1.bf16.msra.mxu1 (!%p140_p2), %v640_v2 }
   0xc   : > { %388 = vmatprep.subr.bf16.mxu0 (!%p140_p2), %v683_v1  ;;  %614 = vmatprep.subr.bf16.mxu1 (!%p140_p2), %v683_v1 }
   0xd   : > { %s850_s16 = smov (!%p165_p3, %s164_s16), 35 }
   0xe   : > { %s611_s21 = sshll.u32 %s850_s16, 3 }
   0xf   : > { %s729_s24 = scalar_lea.vmem %s845_s0, %s611_s21  ;;  %389 = vmatpush1.bf16.msra.mxu0 %v641_v3  ;;  %623 = vmatpush1.bf16.msra.mxu1 %v641_v3  ;;  %s786_s15 = scalar_lea.vmem %s848_s3, %s611_s21 }
  0x10   : > { %v650_v5 = vld [vmem:[%s729_s24 + $0x4] ss:$8 sps:$4 sm:$0xff]   ;;  %390 = vmatprep.subr.bf16.mxu0 %v683_v1  ;;  %615 = vmatprep.subr.bf16.mxu1 %v683_v1  ;;  %v653_v6 = vld [vmem:[%s729_s24 + $0x54] ss:$8 sps:$4 sm:$0xff]   ;;  %v648_v12 = vld [vmem:[%s729_s24] ss:$8 sps:$4 sm:$0xff]  }
  0x11   : > { %600 = vmatprep.mubr.msk.bf16.mxu0 %vm356_vm0, %v650_v5  ;;  %605 = vmatprep.mubr.msk.bf16.mxu1 %vm356_vm0, %v653_v6  ;;  %v651_v13 = vld [vmem:[%s729_s24 + $0x50] ss:$8 sps:$4 sm:$0xff]   ;;  %v654_v14 = vld [vmem:[%s729_s24 + $0x14] ss:$8 sps:$4 sm:$0xff]   ;;  %v657_v15 = vld [vmem:[%s729_s24 + $0x64] ss:$8 sps:$4 sm:$0xff]  }
  0x12   : > { %v656_v16 = vld [vmem:[%s729_s24 + $0x10] ss:$8 sps:$4 sm:$0xff]   ;;  %v659_v17 = vld [vmem:[%s729_s24 + $0x60] ss:$8 sps:$4 sm:$0xff]   ;;  %v660_v18 = vld [vmem:[%s729_s24 + $0x24] ss:$8 sps:$4 sm:$0xff]  }
  0x13   : > { %391 = vmatpush1.bf16.msra.mxu0 %v642_v4  ;;  %624 = vmatpush1.bf16.msra.mxu1 %v642_v4  ;;  %v663_v19 = vld [vmem:[%s729_s24 + $0x74] ss:$8 sps:$4 sm:$0xff]   ;;  %v662_v20 = vld [vmem:[%s729_s24 + $0x20] ss:$8 sps:$4 sm:$0xff]   ;;  %v665_v21 = vld [vmem:[%s729_s24 + $0x70] ss:$8 sps:$4 sm:$0xff]  }
  0x14   : > { %392 = vmatprep.subr.bf16.mxu0 %v683_v1  ;;  %616 = vmatprep.subr.bf16.mxu1 %v683_v1  ;;  %v666_v22 = vld [vmem:[%s729_s24 + $0x34] ss:$8 sps:$4 sm:$0xff]   ;;  %v669_v23 = vld [vmem:[%s729_s24 + $0x84] ss:$8 sps:$4 sm:$0xff]   ;;  %v668_v24 = vld [vmem:[%s729_s24 + $0x30] ss:$8 sps:$4 sm:$0xff]  }
  0x15   : > { %v671_v25 = vld [vmem:[%s729_s24 + $0x80] ss:$8 sps:$4 sm:$0xff]   ;;  %v672_v26 = vld [vmem:[%s729_s24 + $0x44] ss:$8 sps:$4 sm:$0xff]  }
  0x16   : > { %v674_v27 = vld [vmem:[%s729_s24 + $0x40] ss:$8 sps:$4 sm:$0xff]  }
  0x17   : > { %393 = vmatpush1.bf16.msra.mxu0 %v643_v7  ;;  %625 = vmatpush1.bf16.msra.mxu1 %v643_v7 }
  0x18   : > { %394 = vmatprep.subr.bf16.mxu0 %v683_v1  ;;  %617 = vmatprep.subr.bf16.mxu1 %v683_v1 }
  0x1b   : > { %395 = vmatpush1.bf16.msra.mxu0 %v644_v8  ;;  %626 = vmatpush1.bf16.msra.mxu1 %v644_v8 }
  0x1c   : > { %396 = vmatprep.subr.bf16.mxu0 %v683_v1  ;;  %618 = vmatprep.subr.bf16.mxu1 %v683_v1 }
  0x1f   : > { %397 = vmatpush1.bf16.msra.mxu0 %v645_v9  ;;  %627 = vmatpush1.bf16.msra.mxu1 %v645_v9 }
  0x20   : > { %398 = vmatprep.subr.bf16.mxu0 %v683_v1  ;;  %619 = vmatprep.subr.bf16.mxu1 %v683_v1 }
  0x23   : > { %399 = vmatpush1.bf16.msra.mxu0 %v646_v10  ;;  %628 = vmatpush1.bf16.msra.mxu1 %v646_v10 }
  0x24   : > { %400 = vmatprep.subr.bf16.mxu0 %v683_v1  ;;  %620 = vmatprep.subr.bf16.mxu1 %v683_v1 }
  0x27   : > { %401 = vmatpush1.bf16.msra.mxu0 %v647_v11  ;;  %629 = vmatpush1.bf16.msra.mxu1 %v647_v11 }
  0x2a   : > { %417 = vmatmul.mubr.bf16.vlgmr.msra.gmra.mrb[0].mxu0 %v648_v12  ;;  %457 = vmatmul.mubr.bf16.vlgmr.msra.gmra.mrb[0].mxu1 %v651_v13 }
  0x2b   : > { %601 = vmatprep.mubr.msk.bf16.mxu0 %vm356_vm0, %v654_v14  ;;  %606 = vmatprep.mubr.msk.bf16.mxu1 %vm356_vm0, %v657_v15 }
  0x32   : > { %425 = vmatmul.mubr.bf16.gmra.mrb[4].mxu0 %v656_v16  ;;  %465 = vmatmul.mubr.bf16.gmra.mrb[4].mxu1 %v659_v17 }
  0x33   : > { %602 = vmatprep.mubr.msk.bf16.mxu0 %vm356_vm0, %v660_v18  ;;  %607 = vmatprep.mubr.msk.bf16.mxu1 %vm356_vm0, %v663_v19 }
  0x3a   : > { %433 = vmatmul.mubr.bf16.gmra.mrb[8].mxu0 %v662_v20  ;;  %473 = vmatmul.mubr.bf16.gmra.mrb[8].mxu1 %v665_v21 }
  0x3b   : > { %603 = vmatprep.mubr.msk.bf16.mxu0 %vm356_vm0, %v666_v22  ;;  %608 = vmatprep.mubr.msk.bf16.mxu1 %vm356_vm0, %v669_v23 }
  0x42   : > { %441 = vmatmul.mubr.bf16.gmra.mrb[12].mxu0 %v668_v24  ;;  %481 = vmatmul.mubr.bf16.gmra.mrb[12].mxu1 %v671_v25 }
  0x43   : > { %604 = vmatprep.mubr.msk.bf16.mxu0 %vm356_vm0, %v672_v26 }
  0x4a   : > { %449 = vmatmul.mubr.bf16.gmra.mrb[16].mxu0 %v674_v27 }
  0xfd   : > { %v418_v29 = vpop.f32.mrb[0].mxu0  ;;  %v458_v30 = vpop.f32.mrb[0].mxu1 }
  0xfe   : > { %v419_v31 = vadd.f32 %v779_v28, %v418_v29  ;;  %v420_v32 = vpop.f32.mrb[1].mxu0  ;;  %v459_v33 = vadd.f32 %v779_v28, %v458_v30  ;;  %v460_v34 = vpop.f32.mrb[1].mxu1 }
  0xff   : > { %v421_v35 = vpop.f32.mrb[2].mxu0  ;;  %v461_v36 = vpop.f32.mrb[2].mxu1 }
 0x100   : > { %490 = vst.msk [vmem:[%s786_s15] sm:$0xff] %vm489_vm1, %v419_v31  ;;  %v422_v37 = vadd.f32 %v779_v28, %v421_v35  ;;  %v423_v38 = vpop.f32.mrb[3].mxu0  ;;  %500 = vst.msk [vmem:[%s786_s15 + $0x50] sm:$0xff] %vm489_vm1, %v459_v33  ;;  %v462_v39 = vadd.f32 %v779_v28, %v461_v36  ;;  %v463_v40 = vpop.f32.mrb[3].mxu1 }
 0x102   : > { %491 = vst.msk [vmem:[%s786_s15 + $0x8] sm:$0xff] %vm489_vm1, %v422_v37  ;;  %501 = vst.msk [vmem:[%s786_s15 + $0x58] sm:$0xff] %vm489_vm1, %v462_v39 }
 0x105   : > { %v426_v41 = vpop.f32.mrb[4].mxu0  ;;  %v466_v42 = vpop.f32.mrb[4].mxu1 }
 0x106   : > { %v427_v43 = vadd.f32 %v779_v28, %v426_v41  ;;  %v428_v44 = vpop.f32.mrb[5].mxu0  ;;  %v467_v45 = vadd.f32 %v779_v28, %v466_v42  ;;  %v468_v46 = vpop.f32.mrb[5].mxu1 }
 0x107   : > { %v429_v47 = vpop.f32.mrb[6].mxu0  ;;  %v469_v48 = vpop.f32.mrb[6].mxu1 }
 0x108   : > { %492 = vst.msk [vmem:[%s786_s15 + $0x10] sm:$0xff] %vm489_vm1, %v427_v43  ;;  %v430_v49 = vadd.f32 %v779_v28, %v429_v47  ;;  %v431_v50 = vpop.f32.mrb[7].mxu0  ;;  %502 = vst.msk [vmem:[%s786_s15 + $0x60] sm:$0xff] %vm489_vm1, %v467_v45  ;;  %v470_v51 = vadd.f32 %v779_v28, %v469_v48  ;;  %v471_v52 = vpop.f32.mrb[7].mxu1 }
 0x10a   : > { %493 = vst.msk [vmem:[%s786_s15 + $0x18] sm:$0xff] %vm489_vm1, %v430_v49  ;;  %503 = vst.msk [vmem:[%s786_s15 + $0x68] sm:$0xff] %vm489_vm1, %v470_v51 }
 0x10d   : > { %v434_v53 = vpop.f32.mrb[8].mxu0  ;;  %v474_v54 = vpop.f32.mrb[8].mxu1 }
 0x10e   : > { %v435_v55 = vadd.f32 %v779_v28, %v434_v53  ;;  %v436_v56 = vpop.f32.mrb[9].mxu0  ;;  %v475_v57 = vadd.f32 %v779_v28, %v474_v54  ;;  %v476_v58 = vpop.f32.mrb[9].mxu1 }
 0x10f   : > { %v437_v59 = vpop.f32.mrb[10].mxu0  ;;  %v477_v60 = vpop.f32.mrb[10].mxu1 }
 0x110   : > { %494 = vst.msk [vmem:[%s786_s15 + $0x20] sm:$0xff] %vm489_vm1, %v435_v55  ;;  %v438_v61 = vadd.f32 %v779_v28, %v437_v59  ;;  %v439_v62 = vpop.f32.mrb[11].mxu0  ;;  %504 = vst.msk [vmem:[%s786_s15 + $0x70] sm:$0xff] %vm489_vm1, %v475_v57  ;;  %v478_v63 = vadd.f32 %v779_v28, %v477_v60  ;;  %v479_v0 = vpop.f32.mrb[11].mxu1 }
 0x112   : > { %495 = vst.msk [vmem:[%s786_s15 + $0x28] sm:$0xff] %vm489_vm1, %v438_v61  ;;  %505 = vst.msk [vmem:[%s786_s15 + $0x78] sm:$0xff] %vm489_vm1, %v478_v63 }
 0x115   : > { %v442_v1 = vpop.f32.mrb[12].mxu0  ;;  %v482_v2 = vpop.f32.mrb[12].mxu1 }
 0x116   : > { %v443_v3 = vadd.f32 %v779_v28, %v442_v1  ;;  %v444_v4 = vpop.f32.mrb[13].mxu0  ;;  %v483_v5 = vadd.f32 %v779_v28, %v482_v2  ;;  %v484_v6 = vpop.f32.mrb[13].mxu1 }
 0x117   : > { %v445_v7 = vpop.f32.mrb[14].mxu0  ;;  %v485_v8 = vpop.f32.mrb[14].mxu1 }
 0x118   : > { %496 = vst.msk [vmem:[%s786_s15 + $0x30] sm:$0xff] %vm489_vm1, %v443_v3  ;;  %v446_v9 = vadd.f32 %v779_v28, %v445_v7  ;;  %v447_v10 = vpop.f32.mrb[15].mxu0  ;;  %506 = vst.msk [vmem:[%s786_s15 + $0x80] sm:$0xff] %vm489_vm1, %v483_v5  ;;  %v486_v11 = vadd.f32 %v779_v28, %v485_v8  ;;  %v487_v12 = vpop.f32.mrb[15].mxu1 }
 0x11a   : > { %497 = vst.msk [vmem:[%s786_s15 + $0x38] sm:$0xff] %vm489_vm1, %v446_v9  ;;  %507 = vst.msk [vmem:[%s786_s15 + $0x88] sm:$0xff] %vm489_vm1, %v486_v11 }
 0x11d   : > { %v450_v13 = vpop.f32.mrb[16].mxu0 }
 0x11e   : > { %v451_v14 = vadd.f32 %v779_v28, %v450_v13  ;;  %v452_v15 = vpop.f32.mrb[17].mxu0 }
 0x11f   : > { %v453_v16 = vpop.f32.mrb[18].mxu0 }
 0x120   : > { %498 = vst.msk [vmem:[%s786_s15 + $0x40] sm:$0xff] %vm489_vm1, %v451_v14  ;;  %v454_v17 = vadd.f32 %v779_v28, %v453_v16  ;;  %v455_v18 = vpop.f32.mrb[19].mxu0 }
 0x122   : > { %499 = vst.msk [vmem:[%s786_s15 + $0x48] sm:$0xff] %vm489_vm1, %v454_v17 }
 0x123 PF: > { %s13_s12 = sadd.s32 1, %s681_s12  }
 0x124   : > { %p10_p4 = scmp.ge.s32.totalorder %s13_s12, 4  }
 0x126   :  { %12 = sbr.rel (!%p10_p4) target bundleno = 1 (0x1), region = 62 }

// kernel: net_forward.20
= control target key start
LH: loop header
LB: loop body
LE: loop exit
PB: predicated region body
PF: predicated region fallthrough
CT: control target
= control target key end

     0   :  { %s764_s12 = smov 0   ;;  %s948_s0 = inlined_call_operand.vmem [shape: bf16[288,216], index: 0, kind: input, shape index: {}]   ;;  %s949_s1 = inlined_call_operand.vmem [shape: bf16[216,24], index: 1, kind: input, shape index: {}]   ;;  %s950_s2 = inlined_call_operand.vmem [shape: f32[1,24], index: 2, kind: input, shape index: {}]   ;;  %s951_s3 = inlined_call_operand.vmem [shape: f32[288,24], index: 3, kind: output, shape index: {}]  }
   0x1 LB: > { %s604_s13 = sadd.s32 4294967295, %s741_s12   ;;  %p608_p0 = scmp.ge.s32.totalorder %s741_s12, 1  ;;  %s741_s12 = sphi %s764_s12, %s13_s12  }
   0x2   : > { %p139_p1 = scmp.lt.s32.totalorder %s741_s12, 3 }
   0x4   : > { %p140_p2 = pnand %p608_p0, %p139_p1 }
   0x5   : > { %v694_v0 = vld [vmem:[%s949_s1] sm:$0xff] (!%p140_p2)   ;;  %v743_v1 = vmov (!%p140_p2), 0   ;;  %v695_v2 = vld [vmem:[%s949_s1 + $0x8] sm:$0xff] (!%p140_p2)   ;;  %s164_s18 = smul.u32 (!%p140_p2), 18, %s604_s13  ;;  %v696_v3 = vld [vmem:[%s949_s1 + $0x10] sm:$0xff] (!%p140_p2)   ;;  %vm392_vm0 = vcmask (!%p140_p2), 719872  }
   0x6   : > { %143 = sbr.rel (%p140_p2) target bundleno = 311 (0x137), region = 32  ;;  %424 = vmatprep.subr.bf16.mxu0 (!%p140_p2), %v743_v1  ;;  %657 = vmatprep.subr.bf16.mxu1 (!%p140_p2), %v743_v1  ;;  %v697_v4 = vld [vmem:[%s949_s1 + $0x18] sm:$0xff] (!%p140_p2)   ;;  %v698_v5 = vld [vmem:[%s949_s1 + $0x20] sm:$0xff] (!%p140_p2)   ;;  %v699_v8 = vld [vmem:[%s949_s1 + $0x28] sm:$0xff] (!%p140_p2)   ;;  %vm420_vm1 = vcmask (!%p140_p2), 1043456   ;;  %vm529_vm2 = vcmask (!%p140_p2), 195584  }
   0x7   : > { %425 = vmatpush1.bf16.msra.mxu0 (!%p140_p2), %v694_v0  ;;  %671 = vmatpush1.bf16.msra.mxu1 (!%p140_p2), %v694_v0  ;;  %p165_p3 = scmp.lt.s32.totalorder (!%p140_p2), %s164_s18, 35  ;;  %v700_v9 = vld [vmem:[%s949_s1 + $0x30] sm:$0xff] (!%p140_p2)   ;;  %v701_v10 = vld [vmem:[%s949_s1 + $0x38] sm:$0xff] (!%p140_p2)   ;;  %v702_v11 = vld [vmem:[%s949_s1 + $0x40] sm:$0xff] (!%p140_p2)  }
   0x8   : > { %426 = vmatprep.subr.bf16.mxu0 (!%p140_p2), %v743_v1  ;;  %658 = vmatprep.subr.bf16.mxu1 (!%p140_p2), %v743_v1  ;;  %v703_v12 = vld [vmem:[%s949_s1 + $0x48] sm:$0xff] (!%p140_p2)   ;;  %v704_v13 = vld [vmem:[%s949_s1 + $0x50] sm:$0xff] (!%p140_p2)   ;;  %v705_v14 = vld [vmem:[%s949_s1 + $0x58] sm:$0xff] (!%p140_p2)  }
   0x9   : > { %v706_v15 = vld [vmem:[%s949_s1 + $0x60] sm:$0xff] (!%p140_p2)   ;;  %v707_v16 = vld [vmem:[%s949_s1 + $0x68] ss:$0 sps:$4 sm:$0xff] (!%p140_p2)  }
   0xa   : > { %v422_v17 = vsel (!%p140_p2), %vm420_vm1, %v707_v16, 0  ;;  %v882_v34 = vld [vmem:[%s950_s2] ss:$0 sm:$0xff] (!%p140_p2) }
   0xb   : > { %427 = vmatpush1.bf16.msra.mxu0 (!%p140_p2), %v695_v2  ;;  %672 = vmatpush1.bf16.msra.mxu1 (!%p140_p2), %v695_v2 }
   0xc   : > { %428 = vmatprep.subr.bf16.mxu0 (!%p140_p2), %v743_v1  ;;  %659 = vmatprep.subr.bf16.mxu1 (!%p140_p2), %v743_v1 }
   0xd   : > { %s953_s18 = smov (!%p165_p3, %s164_s18), 35 }
   0xe   : > { %s656_s21 = sshll.u32 %s953_s18, 3 }
   0xf   : > { %429 = vmatpush1.bf16.msra.mxu0 %v696_v3  ;;  %673 = vmatpush1.bf16.msra.mxu1 %v696_v3  ;;  %s800_s26 = scalar_lea.vmem %s948_s0, %s656_s21  ;;  %s889_s28 = scalar_lea.vmem %s951_s3, %s656_s21 }
  0x10   : > { %430 = vmatprep.subr.bf16.mxu0 %v743_v1  ;;  %660 = vmatprep.subr.bf16.mxu1 %v743_v1  ;;  %v710_v6 = vld [vmem:[%s800_s26 + $0x4] ss:$8 sps:$4 sm:$0xff]   ;;  %v713_v7 = vld [vmem:[%s800_s26 + $0x54] ss:$8 sps:$4 sm:$0xff]   ;;  %v708_v18 = vld [vmem:[%s800_s26] ss:$8 sps:$4 sm:$0xff]  }
  0x11   : > { %645 = vmatprep.mubr.msk.bf16.mxu0 %vm392_vm0, %v710_v6  ;;  %650 = vmatprep.mubr.msk.bf16.mxu1 %vm392_vm0, %v713_v7  ;;  %v711_v19 = vld [vmem:[%s800_s26 + $0x50] ss:$8 sps:$4 sm:$0xff]   ;;  %v714_v20 = vld [vmem:[%s800_s26 + $0x14] ss:$8 sps:$4 sm:$0xff]   ;;  %v717_v21 = vld [vmem:[%s800_s26 + $0x64] ss:$8 sps:$4 sm:$0xff]  }
  0x12   : > { %v716_v22 = vld [vmem:[%s800_s26 + $0x10] ss:$8 sps:$4 sm:$0xff]   ;;  %v719_v23 = vld [vmem:[%s800_s26 + $0x60] ss:$8 sps:$4 sm:$0xff]   ;;  %v720_v24 = vld [vmem:[%s800_s26 + $0x24] ss:$8 sps:$4 sm:$0xff]  }
  0x13   : > { %431 = vmatpush1.bf16.msra.mxu0 %v697_v4  ;;  %674 = vmatpush1.bf16.msra.mxu1 %v697_v4  ;;  %v723_v25 = vld [vmem:[%s800_s26 + $0x74] ss:$8 sps:$4 sm:$0xff]   ;;  %v722_v26 = vld [vmem:[%s800_s26 + $0x20] ss:$8 sps:$4 sm:$0xff]   ;;  %v725_v27 = vld [vmem:[%s800_s26 + $0x70] ss:$8 sps:$4 sm:$0xff]  }
  0x14   : > { %432 = vmatprep.subr.bf16.mxu0 %v743_v1  ;;  %661 = vmatprep.subr.bf16.mxu1 %v743_v1  ;;  %v726_v28 = vld [vmem:[%s800_s26 + $0x34] ss:$8 sps:$4 sm:$0xff]   ;;  %v729_v29 = vld [vmem:[%s800_s26 + $0x84] ss:$8 sps:$4 sm:$0xff]   ;;  %v728_v30 = vld [vmem:[%s800_s26 + $0x30] ss:$8 sps:$4 sm:$0xff]  }
  0x15   : > { %v731_v31 = vld [vmem:[%s800_s26 + $0x80] ss:$8 sps:$4 sm:$0xff]   ;;  %v732_v32 = vld [vmem:[%s800_s26 + $0x44] ss:$8 sps:$4 sm:$0xff]  }
  0x16   : > { %v734_v33 = vld [vmem:[%s800_s26 + $0x40] ss:$8 sps:$4 sm:$0xff]  }
  0x17   : > { %433 = vmatpush1.bf16.msra.mxu0 %v698_v5  ;;  %675 = vmatpush1.bf16.msra.mxu1 %v698_v5 }
  0x18   : > { %434 = vmatprep.subr.bf16.mxu0 %v743_v1  ;;  %662 = vmatprep.subr.bf16.mxu1 %v743_v1 }
  0x1b   : > { %435 = vmatpush1.bf16.msra.mxu0 %v699_v8  ;;  %676 = vmatpush1.bf16.msra.mxu1 %v699_v8 }
  0x1c   : > { %436 = vmatprep.subr.bf16.mxu0 %v743_v1  ;;  %663 = vmatprep.subr.bf16.mxu1 %v743_v1 }
  0x1f   : > { %437 = vmatpush1.bf16.msra.mxu0 %v700_v9  ;;  %677 = vmatpush1.bf16.msra.mxu1 %v700_v9 }
  0x20   : > { %438 = vmatprep.subr.bf16.mxu0 %v743_v1  ;;  %664 = vmatprep.subr.bf16.mxu1 %v743_v1 }
  0x23   : > { %439 = vmatpush1.bf16.msra.mxu0 %v701_v10  ;;  %678 = vmatpush1.bf16.msra.mxu1 %v701_v10 }
  0x24   : > { %440 = vmatprep.subr.bf16.mxu0 %v743_v1  ;;  %665 = vmatprep.subr.bf16.mxu1 %v743_v1 }
  0x27   : > { %441 = vmatpush1.bf16.msra.mxu0 %v702_v11  ;;  %679 = vmatpush1.bf16.msra.mxu1 %v702_v11 }
  0x28   : > { %442 = vmatprep.subr.bf16.mxu0 %v743_v1  ;;  %666 = vmatprep.subr.bf16.mxu1 %v743_v1 }
  0x2b   : > { %443 = vmatpush1.bf16.msra.mxu0 %v703_v12  ;;  %680 = vmatpush1.bf16.msra.mxu1 %v703_v12 }
  0x2c   : > { %444 = vmatprep.subr.bf16.mxu0 %v743_v1  ;;  %667 = vmatprep.subr.bf16.mxu1 %v743_v1 }
  0x2f   : > { %445 = vmatpush1.bf16.msra.mxu0 %v704_v13  ;;  %681 = vmatpush1.bf16.msra.mxu1 %v704_v13 }
  0x30   : > { %446 = vmatprep.subr.bf16.mxu0 %v743_v1  ;;  %668 = vmatprep.subr.bf16.mxu1 %v743_v1 }
  0x33   : > { %447 = vmatpush1.bf16.msra.mxu0 %v705_v14  ;;  %682 = vmatpush1.bf16.msra.mxu1 %v705_v14 }
  0x34   : > { %448 = vmatprep.subr.bf16.mxu0 %v743_v1  ;;  %669 = vmatprep.subr.bf16.mxu1 %v743_v1 }
  0x37   : > { %449 = vmatpush1.bf16.msra.mxu0 %v706_v15  ;;  %683 = vmatpush1.bf16.msra.mxu1 %v706_v15 }
  0x38   : > { %450 = vmatprep.subr.bf16.mxu0 %v743_v1  ;;  %670 = vmatprep.subr.bf16.mxu1 %v743_v1 }
  0x3b   : > { %451 = vmatpush1.bf16.msra.mxu0 %v422_v17  ;;  %684 = vmatpush1.bf16.msra.mxu1 %v422_v17 }
  0x3e   : > { %457 = vmatmul.mubr.bf16.vlgmr.msra.gmra.mrb[0].mxu0 %v708_v18  ;;  %497 = vmatmul.mubr.bf16.vlgmr.msra.gmra.mrb[0].mxu1 %v711_v19 }
  0x3f   : > { %646 = vmatprep.mubr.msk.bf16.mxu0 %vm392_vm0, %v714_v20  ;;  %651 = vmatprep.mubr.msk.bf16.mxu1 %vm392_vm0, %v717_v21 }
  0x46   : > { %465 = vmatmul.mubr.bf16.gmra.mrb[4].mxu0 %v716_v22  ;;  %505 = vmatmul.mubr.bf16.gmra.mrb[4].mxu1 %v719_v23 }
  0x47   : > { %647 = vmatprep.mubr.msk.bf16.mxu0 %vm392_vm0, %v720_v24  ;;  %652 = vmatprep.mubr.msk.bf16.mxu1 %vm392_vm0, %v723_v25 }
  0x4e   : > { %473 = vmatmul.mubr.bf16.gmra.mrb[8].mxu0 %v722_v26  ;;  %513 = vmatmul.mubr.bf16.gmra.mrb[8].mxu1 %v725_v27 }
  0x4f   : > { %648 = vmatprep.mubr.msk.bf16.mxu0 %vm392_vm0, %v726_v28  ;;  %653 = vmatprep.mubr.msk.bf16.mxu1 %vm392_vm0, %v729_v29 }
  0x56   : > { %481 = vmatmul.mubr.bf16.gmra.mrb[12].mxu0 %v728_v30  ;;  %521 = vmatmul.mubr.bf16.gmra.mrb[12].mxu1 %v731_v31 }
  0x57   : > { %649 = vmatprep.mubr.msk.bf16.mxu0 %vm392_vm0, %v732_v32 }
  0x5e   : > { %489 = vmatmul.mubr.bf16.gmra.mrb[16].mxu0 %v734_v33 }
 0x111   : > { %v458_v35 = vpop.f32.mrb[0].mxu0  ;;  %v498_v36 = vpop.f32.mrb[0].mxu1 }
 0x112   : > { %v459_v37 = vadd.f32 %v882_v34, %v458_v35  ;;  %v460_v38 = vpop.f32.mrb[1].mxu0  ;;  %v499_v39 = vadd.f32 %v882_v34, %v498_v36  ;;  %v500_v40 = vpop.f32.mrb[1].mxu1 }
 0x113   : > { %v461_v41 = vpop.f32.mrb[2].mxu0  ;;  %v501_v42 = vpop.f32.mrb[2].mxu1 }
 0x114   : > { %530 = vst.msk [vmem:[%s889_s28] sm:$0xff] %vm529_vm2, %v459_v37  ;;  %v462_v43 = vadd.f32 %v882_v34, %v461_v41  ;;  %v463_v44 = vpop.f32.mrb[3].mxu0  ;;  %540 = vst.msk [vmem:[%s889_s28 + $0x50] sm:$0xff] %vm529_vm2, %v499_v39  ;;  %v502_v45 = vadd.f32 %v882_v34, %v501_v42  ;;  %v503_v46 = vpop.f32.mrb[3].mxu1 }
 0x116   : > { %531 = vst.msk [vmem:[%s889_s28 + $0x8] sm:$0xff] %vm529_vm2, %v462_v43  ;;  %541 = vst.msk [vmem:[%s889_s28 + $0x58] sm:$0xff] %vm529_vm2, %v502_v45 }
 0x119   : > { %v466_v47 = vpop.f32.mrb[4].mxu0  ;;  %v506_v48 = vpop.f32.mrb[4].mxu1 }
 0x11a   : > { %v467_v49 = vadd.f32 %v882_v34, %v466_v47  ;;  %v468_v50 = vpop.f32.mrb[5].mxu0  ;;  %v507_v51 = vadd.f32 %v882_v34, %v506_v48  ;;  %v508_v52 = vpop.f32.mrb[5].mxu1 }
 0x11b   : > { %v469_v53 = vpop.f32.mrb[6].mxu0  ;;  %v509_v54 = vpop.f32.mrb[6].mxu1 }
 0x11c   : > { %532 = vst.msk [vmem:[%s889_s28 + $0x10] sm:$0xff] %vm529_vm2, %v467_v49  ;;  %v470_v55 = vadd.f32 %v882_v34, %v469_v53  ;;  %v471_v56 = vpop.f32.mrb[7].mxu0  ;;  %542 = vst.msk [vmem:[%s889_s28 + $0x60] sm:$0xff] %vm529_vm2, %v507_v51  ;;  %v510_v57 = vadd.f32 %v882_v34, %v509_v54  ;;  %v511_v58 = vpop.f32.mrb[7].mxu1 }
 0x11e   : > { %533 = vst.msk [vmem:[%s889_s28 + $0x18] sm:$0xff] %vm529_vm2, %v470_v55  ;;  %543 = vst.msk [vmem:[%s889_s28 + $0x68] sm:$0xff] %vm529_vm2, %v510_v57 }
 0x121   : > { %v474_v59 = vpop.f32.mrb[8].mxu0  ;;  %v514_v60 = vpop.f32.mrb[8].mxu1 }
 0x122   : > { %v475_v61 = vadd.f32 %v882_v34, %v474_v59  ;;  %v476_v62 = vpop.f32.mrb[9].mxu0  ;;  %v515_v63 = vadd.f32 %v882_v34, %v514_v60  ;;  %v516_v0 = vpop.f32.mrb[9].mxu1 }
 0x123   : > { %v477_v1 = vpop.f32.mrb[10].mxu0  ;;  %v517_v2 = vpop.f32.mrb[10].mxu1 }
 0x124   : > { %534 = vst.msk [vmem:[%s889_s28 + $0x20] sm:$0xff] %vm529_vm2, %v475_v61  ;;  %v478_v3 = vadd.f32 %v882_v34, %v477_v1  ;;  %v479_v4 = vpop.f32.mrb[11].mxu0  ;;  %544 = vst.msk [vmem:[%s889_s28 + $0x70] sm:$0xff] %vm529_vm2, %v515_v63  ;;  %v518_v5 = vadd.f32 %v882_v34, %v517_v2  ;;  %v519_v6 = vpop.f32.mrb[11].mxu1 }
 0x126   : > { %535 = vst.msk [vmem:[%s889_s28 + $0x28] sm:$0xff] %vm529_vm2, %v478_v3  ;;  %545 = vst.msk [vmem:[%s889_s28 + $0x78] sm:$0xff] %vm529_vm2, %v518_v5 }
 0x129   : > { %v482_v7 = vpop.f32.mrb[12].mxu0  ;;  %v522_v8 = vpop.f32.mrb[12].mxu1 }
 0x12a   : > { %v483_v9 = vadd.f32 %v882_v34, %v482_v7  ;;  %v484_v10 = vpop.f32.mrb[13].mxu0  ;;  %v523_v11 = vadd.f32 %v882_v34, %v522_v8  ;;  %v524_v12 = vpop.f32.mrb[13].mxu1 }
 0x12b   : > { %v485_v13 = vpop.f32.mrb[14].mxu0  ;;  %v525_v14 = vpop.f32.mrb[14].mxu1 }
 0x12c   : > { %536 = vst.msk [vmem:[%s889_s28 + $0x30] sm:$0xff] %vm529_vm2, %v483_v9  ;;  %v486_v15 = vadd.f32 %v882_v34, %v485_v13  ;;  %v487_v16 = vpop.f32.mrb[15].mxu0  ;;  %546 = vst.msk [vmem:[%s889_s28 + $0x80] sm:$0xff] %vm529_vm2, %v523_v11  ;;  %v526_v17 = vadd.f32 %v882_v34, %v525_v14  ;;  %v527_v18 = vpop.f32.mrb[15].mxu1 }
 0x12e   : > { %537 = vst.msk [vmem:[%s889_s28 + $0x38] sm:$0xff] %vm529_vm2, %v486_v15  ;;  %547 = vst.msk [vmem:[%s889_s28 + $0x88] sm:$0xff] %vm529_vm2, %v526_v17 }
 0x131   : > { %v490_v19 = vpop.f32.mrb[16].mxu0 }
 0x132   : > { %v491_v20 = vadd.f32 %v882_v34, %v490_v19  ;;  %v492_v21 = vpop.f32.mrb[17].mxu0 }
 0x133   : > { %v493_v22 = vpop.f32.mrb[18].mxu0 }
 0x134   : > { %538 = vst.msk [vmem:[%s889_s28 + $0x40] sm:$0xff] %vm529_vm2, %v491_v20  ;;  %v494_v23 = vadd.f32 %v882_v34, %v493_v22  ;;  %v495_v24 = vpop.f32.mrb[19].mxu0 }
 0x136   : > { %539 = vst.msk [vmem:[%s889_s28 + $0x48] sm:$0xff] %vm529_vm2, %v494_v23 }
 0x137 PF: > { %s13_s12 = sadd.s32 1, %s741_s12  }
 0x138   : > { %p10_p4 = scmp.ge.s32.totalorder %s13_s12, 4  }
 0x13a   :  { %12 = sbr.rel (!%p10_p4) target bundleno = 1 (0x1), region = 62 }

// kernel: net_forward.18
= control target key start
LH: loop header
LB: loop body
LE: loop exit
PB: predicated region body
PF: predicated region fallthrough
CT: control target
= control target key end

     0   :  { %s1174_s12 = smov 0   ;;  %s1387_s0 = inlined_call_operand.vmem [shape: bf16[288,400], index: 0, kind: input, shape index: {}]   ;;  %s1388_s1 = inlined_call_operand.vmem [shape: bf16[400,24], index: 1, kind: input, shape index: {}]   ;;  %s1389_s2 = inlined_call_operand.vmem [shape: f32[1,24], index: 2, kind: input, shape index: {}]   ;;  %s1390_s3 = inlined_call_operand.vmem [shape: f32[288,24], index: 3, kind: output, shape index: {}]  }
   0x1 LB: > { %s905_s13 = sadd.s32 4294967295, %s1151_s12   ;;  %p909_p0 = scmp.ge.s32.totalorder %s1151_s12, 1  ;;  %s1151_s12 = sphi %s1174_s12, %s13_s12  }
   0x2   : > { %p139_p1 = scmp.lt.s32.totalorder %s1151_s12, 3 }
   0x4   : > { %p140_p2 = pnand %p909_p0, %p139_p1 }
   0x5   : > { %v1066_v0 = vld [vmem:[%s1388_s1 + $0x40] sm:$0xff] (!%p140_p2)   ;;  %v1153_v1 = vmov (!%p140_p2), 0   ;;  %v1069_v4 = vld [vmem:[%s1388_s1 + $0x48] sm:$0xff] (!%p140_p2)   ;;  %v1072_v7 = vld [vmem:[%s1388_s1 + $0x50] sm:$0xff] (!%p140_p2)   ;;  %s164_s30 = smul.u32 (!%p140_p2), 18, %s905_s13  ;;  %vm592_vm0 = vcmask (!%p140_p2), 130048  }
   0x6   : > { %143 = sbr.rel (%p140_p2) target bundleno = 325 (0x145), region = 32  ;;  %725 = vmatprep.subr.bf16.mxu1 (!%p140_p2), %v1153_v1  ;;  %v1067_v2 = vld [vmem:[%s1388_s1 + $0x80] sm:$0xff] (!%p140_p2)   ;;  %987 = vmatprep.subr.bf16.mxu0 (!%p140_p2), %v1066_v0  ;;  %v1070_v5 = vld [vmem:[%s1388_s1 + $0x88] sm:$0xff] (!%p140_p2)   ;;  %v1073_v8 = vld [vmem:[%s1388_s1 + $0x90] sm:$0xff] (!%p140_p2)   ;;  %vm830_vm1 = vcmask (!%p140_p2), 195584  }
   0x7   : > { %v1068_v3 = vld [vmem:[%s1388_s1] sm:$0xff] (!%p140_p2)   ;;  %726 = vmatpush1.bf16.msra.mxu1 (!%p140_p2), %v1067_v2  ;;  %v1071_v6 = vld [vmem:[%s1388_s1 + $0x8] sm:$0xff] (!%p140_p2)   ;;  %v1074_v9 = vld [vmem:[%s1388_s1 + $0x10] sm:$0xff] (!%p140_p2)   ;;  %p165_p3 = scmp.lt.s32.totalorder (!%p140_p2), %s164_s30, 35 }
   0x8   : > { %988 = vmatpush3.bf16.msra.mxu0 (!%p140_p2), %v1068_v3  ;;  %727 = vmatprep.subr.bf16.mxu1 (!%p140_p2), %v1153_v1  ;;  %v1075_v10 = vld [vmem:[%s1388_s1 + $0x58] sm:$0xff] (!%p140_p2)   ;;  %v1078_v13 = vld [vmem:[%s1388_s1 + $0x60] sm:$0xff] (!%p140_p2)   ;;  %v1081_v16 = vld [vmem:[%s1388_s1 + $0x68] sm:$0xff] (!%p140_p2)  }
   0x9   : > { %989 = vmatprep.subr.bf16.mxu0 (!%p140_p2), %v1069_v4  ;;  %v1076_v11 = vld [vmem:[%s1388_s1 + $0x98] sm:$0xff] (!%p140_p2)   ;;  %v1079_v14 = vld [vmem:[%s1388_s1 + $0xa0] sm:$0xff] (!%p140_p2)   ;;  %v1082_v17 = vld [vmem:[%s1388_s1 + $0xa8] sm:$0xff] (!%p140_p2)  }
   0xa   : > { %v1077_v12 = vld [vmem:[%s1388_s1 + $0x18] sm:$0xff] (!%p140_p2)   ;;  %v1080_v15 = vld [vmem:[%s1388_s1 + $0x20] sm:$0xff] (!%p140_p2)   ;;  %v1083_v18 = vld [vmem:[%s1388_s1 + $0x28] sm:$0xff] (!%p140_p2)  }
   0xb   : > { %728 = vmatpush1.bf16.msra.mxu1 (!%p140_p2), %v1070_v5  ;;  %v1084_v19 = vld [vmem:[%s1388_s1 + $0x70] sm:$0xff] (!%p140_p2)   ;;  %v1087_v22 = vld [vmem:[%s1388_s1 + $0x78] sm:$0xff] (!%p140_p2)   ;;  %v1093_v28 = vld [vmem:[%s1388_s1 + $0xc0] sm:$0xff] (!%p140_p2)  }
   0xc   : > { %990 = vmatpush3.bf16.msra.mxu0 (!%p140_p2), %v1071_v6  ;;  %729 = vmatprep.subr.bf16.mxu1 (!%p140_p2), %v1153_v1  ;;  %v1085_v20 = vld [vmem:[%s1388_s1 + $0xb0] sm:$0xff] (!%p140_p2)   ;;  %v1088_v24 = vld [vmem:[%s1388_s1 + $0xb8] sm:$0xff] (!%p140_p2)   ;;  %v1322_v0 = vld [vmem:[%s1389_s2] ss:$0 sm:$0xff] (!%p140_p2) }
   0xd   : > { %991 = vmatprep.subr.bf16.mxu0 %v1072_v7  ;;  %s1392_s30 = smov (!%p165_p3, %s164_s30), 35  ;;  %v1086_v21 = vld [vmem:[%s1388_s1 + $0x30] sm:$0xff]   ;;  %v1089_v26 = vld [vmem:[%s1388_s1 + $0x38] sm:$0xff]  }
   0xe   : > { %s986_s23 = sshll.u32 %s1392_s30, 4  ;;  %s912_s20 = sshll.u32 %s1392_s30, 3 }
   0xf   : > { %730 = vmatpush1.bf16.msra.mxu1 %v1073_v8  ;;  %s1254_s6 = scalar_lea.vmem %s1387_s0, %s986_s23  ;;  %s1329_s23 = scalar_lea.vmem %s1390_s3, %s912_s20 }
  0x10   : > { %992 = vmatpush3.bf16.msra.mxu0 %v1074_v9  ;;  %731 = vmatprep.subr.bf16.mxu1 %v1153_v1  ;;  %v1092_v23 = vld [vmem:[%s1254_s6 + $0x4] ss:$16 sps:$4 sm:$0xff]   ;;  %v1096_v25 = vld [vmem:[%s1254_s6 + $0xc] ss:$16 sps:$4 sm:$0xff]   ;;  %v1090_v27 = vld [vmem:[%s1254_s6] ss:$16 sps:$4 sm:$0xff]  }
  0x11   : > { %993 = vmatprep.subr.bf16.mxu0 %v1075_v10  ;;  %652 = vmatprep.mubr.bf16.mxu0 %v1092_v23  ;;  %v1097_v29 = vld [vmem:[%s1254_s6 + $0x24] ss:$16 sps:$4 sm:$0xff]   ;;  %v1094_v30 = vld [vmem:[%s1254_s6 + $0x8] ss:$16 sps:$4 sm:$0xff]   ;;  %v1100_v31 = vld [vmem:[%s1254_s6 + $0x2c] ss:$16 sps:$4 sm:$0xff]  }
  0x12   : > { %975 = vmatprep.mubr.msk.bf16.mxu1 %vm592_vm0, %v1096_v25  ;;  %v1099_v32 = vld [vmem:[%s1254_s6 + $0x20] ss:$16 sps:$4 sm:$0xff]   ;;  %v1103_v33 = vld [vmem:[%s1254_s6 + $0x44] ss:$16 sps:$4 sm:$0xff]   ;;  %v1102_v34 = vld [vmem:[%s1254_s6 + $0x28] ss:$16 sps:$4 sm:$0xff]  }
  0x13   : > { %732 = vmatpush1.bf16.msra.mxu1 %v1076_v11  ;;  %v1106_v35 = vld [vmem:[%s1254_s6 + $0x4c] ss:$16 sps:$4 sm:$0xff]   ;;  %v1105_v36 = vld [vmem:[%s1254_s6 + $0x40] ss:$16 sps:$4 sm:$0xff]   ;;  %v1109_v37 = vld [vmem:[%s1254_s6 + $0x64] ss:$16 sps:$4 sm:$0xff]  }
  0x14   : > { %994 = vmatpush3.bf16.msra.mxu0 %v1077_v12  ;;  %733 = vmatprep.subr.bf16.mxu1 %v1153_v1  ;;  %v1108_v38 = vld [vmem:[%s1254_s6 + $0x48] ss:$16 sps:$4 sm:$0xff]   ;;  %v1112_v39 = vld [vmem:[%s1254_s6 + $0x6c] ss:$16 sps:$4 sm:$0xff]   ;;  %v1111_v40 = vld [vmem:[%s1254_s6 + $0x60] ss:$16 sps:$4 sm:$0xff]  }
  0x15   : > { %995 = vmatprep.subr.bf16.mxu0 %v1078_v13  ;;  %v1115_v41 = vld [vmem:[%s1254_s6 + $0x84] ss:$16 sps:$4 sm:$0xff]   ;;  %v1114_v42 = vld [vmem:[%s1254_s6 + $0x68] ss:$16 sps:$4 sm:$0xff]   ;;  %v1118_v43 = vld [vmem:[%s1254_s6 + $0x8c] ss:$16 sps:$4 sm:$0xff]  }
  0x16   : > { %v1117_v44 = vld [vmem:[%s1254_s6 + $0x80] ss:$16 sps:$4 sm:$0xff]   ;;  %v1121_v45 = vld [vmem:[%s1254_s6 + $0xa4] ss:$16 sps:$4 sm:$0xff]   ;;  %v1120_v46 = vld [vmem:[%s1254_s6 + $0x88] ss:$16 sps:$4 sm:$0xff]  }
  0x17   : > { %734 = vmatpush1.bf16.msra.mxu1 %v1079_v14  ;;  %v1124_v47 = vld [vmem:[%s1254_s6 + $0xac] ss:$16 sps:$4 sm:$0xff]   ;;  %v1123_v48 = vld [vmem:[%s1254_s6 + $0xa0] ss:$16 sps:$4 sm:$0xff]   ;;  %v1127_v49 = vld [vmem:[%s1254_s6 + $0xc4] ss:$16 sps:$4 sm:$0xff]  }
  0x18   : > { %996 = vmatpush3.bf16.msra.mxu0 %v1080_v15  ;;  %735 = vmatprep.subr.bf16.mxu1 %v1153_v1  ;;  %v1126_v50 = vld [vmem:[%s1254_s6 + $0xa8] ss:$16 sps:$4 sm:$0xff]   ;;  %v1130_v51 = vld [vmem:[%s1254_s6 + $0xcc] ss:$16 sps:$4 sm:$0xff]   ;;  %v1129_v52 = vld [vmem:[%s1254_s6 + $0xc0] ss:$16 sps:$4 sm:$0xff]  }
  0x19   : > { %997 = vmatprep.subr.bf16.mxu0 %v1081_v16  ;;  %v1133_v53 = vld [vmem:[%s1254_s6 + $0xe4] ss:$16 sps:$4 sm:$0xff]   ;;  %v1132_v54 = vld [vmem:[%s1254_s6 + $0xc8] ss:$16 sps:$4 sm:$0xff]   ;;  %v1136_v55 = vld [vmem:[%s1254_s6 + $0xec] ss:$16 sps:$4 sm:$0xff]  }
  0x1a   : > { %v1135_v56 = vld [vmem:[%s1254_s6 + $0xe0] ss:$16 sps:$4 sm:$0xff]   ;;  %v1139_v57 = vld [vmem:[%s1254_s6 + $0x104] ss:$16 sps:$4 sm:$0xff]   ;;  %v1138_v58 = vld [vmem:[%s1254_s6 + $0xe8] ss:$16 sps:$4 sm:$0xff]  }
  0x1b   : > { %736 = vmatpush1.bf16.msra.mxu1 %v1082_v17  ;;  %v1142_v59 = vld [vmem:[%s1254_s6 + $0x10c] ss:$16 sps:$4 sm:$0xff]   ;;  %v1141_v60 = vld [vmem:[%s1254_s6 + $0x100] ss:$16 sps:$4 sm:$0xff]   ;;  %v1144_v61 = vld [vmem:[%s1254_s6 + $0x108] ss:$16 sps:$4 sm:$0xff]  }
  0x1c   : > { %998 = vmatpush3.bf16.msra.mxu0 %v1083_v18  ;;  %737 = vmatprep.subr.bf16.mxu1 %v1153_v1 }
  0x1d   : > { %999 = vmatprep.subr.bf16.mxu0 %v1084_v19 }
  0x1f   : > { %738 = vmatpush1.bf16.msra.mxu1 %v1085_v20 }
  0x20   : > { %1000 = vmatpush3.bf16.msra.mxu0 %v1086_v21  ;;  %739 = vmatprep.subr.bf16.mxu1 %v1153_v1 }
  0x21   : > { %1001 = vmatprep.subr.bf16.mxu0 %v1087_v22 }
  0x23   : > { %740 = vmatpush1.bf16.msra.mxu1 %v1088_v24 }
  0x24   : > { %1002 = vmatpush3.bf16.msra.mxu0 %v1089_v26  ;;  %741 = vmatprep.subr.bf16.mxu1 %v1153_v1 }
  0x27   : > { %653 = vmatmul.mubr.bf16.vlgmr.msra.gmra.mrb[0].mxu0 %v1090_v27  ;;  %742 = vmatpush1.bf16.msra.mxu1 %v1093_v28 }
  0x28   : > { %660 = vmatprep.mubr.bf16.mxu0 %v1097_v29 }
  0x2a   : > { %758 = vmatmul.mubr.bf16.vlgmr.msra.gmra.mrb[0].mxu1 %v1094_v30 }
  0x2b   : > { %976 = vmatprep.mubr.msk.bf16.mxu1 %vm592_vm0, %v1100_v31 }
  0x2f   : > { %661 = vmatmul.mubr.bf16.gmra.mrb[4].mxu0 %v1099_v32 }
  0x30   : > { %668 = vmatprep.mubr.bf16.mxu0 %v1103_v33 }
  0x32   : > { %766 = vmatmul.mubr.bf16.gmra.mrb[4].mxu1 %v1102_v34 }
  0x33   : > { %977 = vmatprep.mubr.msk.bf16.mxu1 %vm592_vm0, %v1106_v35 }
  0x37   : > { %669 = vmatmul.mubr.bf16.gmra.mrb[8].mxu0 %v1105_v36 }
  0x38   : > { %676 = vmatprep.mubr.bf16.mxu0 %v1109_v37 }
  0x3a   : > { %774 = vmatmul.mubr.bf16.gmra.mrb[8].mxu1 %v1108_v38 }
  0x3b   : > { %978 = vmatprep.mubr.msk.bf16.mxu1 %vm592_vm0, %v1112_v39 }
  0x3f   : > { %677 = vmatmul.mubr.bf16.gmra.mrb[12].mxu0 %v1111_v40 }
  0x40   : > { %684 = vmatprep.mubr.bf16.mxu0 %v1115_v41 }
  0x42   : > { %782 = vmatmul.mubr.bf16.gmra.mrb[12].mxu1 %v1114_v42 }
  0x43   : > { %979 = vmatprep.mubr.msk.bf16.mxu1 %vm592_vm0, %v1118_v43 }
  0x47   : > { %685 = vmatmul.mubr.bf16.gmra.mrb[16].mxu0 %v1117_v44 }
  0x48   : > { %692 = vmatprep.mubr.bf16.mxu0 %v1121_v45 }
  0x4a   : > { %790 = vmatmul.mubr.bf16.gmra.mrb[16].mxu1 %v1120_v46 }
  0x4b   : > { %980 = vmatprep.mubr.msk.bf16.mxu1 %vm592_vm0, %v1124_v47 }
  0x4f   : > { %693 = vmatmul.mubr.bf16.gmra.mrb[20].mxu0 %v1123_v48 }
  0x50   : > { %700 = vmatprep.mubr.bf16.mxu0 %v1127_v49 }
  0x52   : > { %798 = vmatmul.mubr.bf16.gmra.mrb[20].mxu1 %v1126_v50 }
  0x53   : > { %981 = vmatprep.mubr.msk.bf16.mxu1 %vm592_vm0, %v1130_v51 }
  0x57   : > { %701 = vmatmul.mubr.bf16.gmra.mrb[24].mxu0 %v1129_v52 }
  0x58   : > { %708 = vmatprep.mubr.bf16.mxu0 %v1133_v53 }
  0x5a   : > { %806 = vmatmul.mubr.bf16.gmra.mrb[24].mxu1 %v1132_v54 }
  0x5b   : > { %982 = vmatprep.mubr.msk.bf16.mxu1 %vm592_vm0, %v1136_v55 }
  0x5f   : > { %709 = vmatmul.mubr.bf16.gmra.mrb[28].mxu0 %v1135_v56 }
  0x60   : > { %716 = vmatprep.mubr.bf16.mxu0 %v1139_v57 }
  0x62   : > { %814 = vmatmul.mubr.bf16.gmra.mrb[28].mxu1 %v1138_v58 }
  0x63   : > { %983 = vmatprep.mubr.msk.bf16.mxu1 %vm592_vm0, %v1142_v59 }
  0x67   : > { %717 = vmatmul.mubr.bf16.gmra.mrb[32].mxu0 %v1141_v60 }
  0x6a   : > { %822 = vmatmul.mubr.bf16.gmra.mrb[32].mxu1 %v1144_v61 }
  0xfa   : > { %v1003_v62 = vpop.f32.mrb[0].mxu0 }
  0xfb   : > { %v1004_v63 = vpop.f32.mrb[1].mxu0 }
  0xfc   : > { %v1005_v1 = vadd.f32 %v1004_v63, %v1003_v62  ;;  %v1006_v2 = vpop.f32.mrb[2].mxu0 }
  0xfd   : > { %v1007_v3 = vpop.f32.mrb[3].mxu0  ;;  %v759_v4 = vpop.f32.mrb[0].mxu1 }
  0xfe   : > { %v1008_v5 = vadd.f32 %v1007_v3, %v1006_v2  ;;  %v655_v6 = vadd.f32 %v1005_v1, %v1322_v0  ;;  %v761_v7 = vpop.f32.mrb[1].mxu1 }
  0xff   : > { %v762_v8 = vpop.f32.mrb[2].mxu1 }
 0x100   : > { %v760_v9 = vadd.f32 %v759_v4, %v655_v6  ;;  %v658_v10 = vadd.f32 %v1008_v5, %v1322_v0  ;;  %v764_v11 = vpop.f32.mrb[3].mxu1 }
 0x102   : > { %831 = vst.msk [vmem:[%s1329_s23] sm:$0xff] %vm830_vm1, %v760_v9  ;;  %v763_v12 = vadd.f32 %v762_v8, %v658_v10  ;;  %v1009_v13 = vpop.f32.mrb[4].mxu0 }
 0x103   : > { %v1010_v14 = vpop.f32.mrb[5].mxu0 }
 0x104   : > { %832 = vst.msk [vmem:[%s1329_s23 + $0x8] sm:$0xff] %vm830_vm1, %v763_v12  ;;  %v1011_v15 = vadd.f32 %v1010_v14, %v1009_v13  ;;  %v1012_v16 = vpop.f32.mrb[6].mxu0 }
 0x105   : > { %v1013_v17 = vpop.f32.mrb[7].mxu0  ;;  %v767_v18 = vpop.f32.mrb[4].mxu1 }
 0x106   : > { %v1014_v19 = vadd.f32 %v1013_v17, %v1012_v16  ;;  %v663_v20 = vadd.f32 %v1011_v15, %v1322_v0  ;;  %v769_v21 = vpop.f32.mrb[5].mxu1 }
 0x107   : > { %v770_v22 = vpop.f32.mrb[6].mxu1 }
 0x108   : > { %v768_v23 = vadd.f32 %v767_v18, %v663_v20  ;;  %v666_v24 = vadd.f32 %v1014_v19, %v1322_v0  ;;  %v772_v25 = vpop.f32.mrb[7].mxu1 }
 0x10a   : > { %833 = vst.msk [vmem:[%s1329_s23 + $0x10] sm:$0xff] %vm830_vm1, %v768_v23  ;;  %v771_v26 = vadd.f32 %v770_v22, %v666_v24  ;;  %v1015_v27 = vpop.f32.mrb[8].mxu0 }
 0x10b   : > { %v1016_v28 = vpop.f32.mrb[9].mxu0 }
 0x10c   : > { %834 = vst.msk [vmem:[%s1329_s23 + $0x18] sm:$0xff] %vm830_vm1, %v771_v26  ;;  %v1017_v29 = vadd.f32 %v1016_v28, %v1015_v27  ;;  %v1018_v30 = vpop.f32.mrb[10].mxu0 }
 0x10d   : > { %v1019_v31 = vpop.f32.mrb[11].mxu0  ;;  %v775_v32 = vpop.f32.mrb[8].mxu1 }
 0x10e   : > { %v1020_v33 = vadd.f32 %v1019_v31, %v1018_v30  ;;  %v671_v34 = vadd.f32 %v1017_v29, %v1322_v0  ;;  %v777_v35 = vpop.f32.mrb[9].mxu1 }
 0x10f   : > { %v778_v36 = vpop.f32.mrb[10].mxu1 }
 0x110   : > { %v776_v37 = vadd.f32 %v775_v32, %v671_v34  ;;  %v674_v38 = vadd.f32 %v1020_v33, %v1322_v0  ;;  %v780_v39 = vpop.f32.mrb[11].mxu1 }
 0x112   : > { %835 = vst.msk [vmem:[%s1329_s23 + $0x20] sm:$0xff] %vm830_vm1, %v776_v37  ;;  %v779_v40 = vadd.f32 %v778_v36, %v674_v38  ;;  %v1021_v41 = vpop.f32.mrb[12].mxu0 }
 0x113   : > { %v1022_v42 = vpop.f32.mrb[13].mxu0 }
 0x114   : > { %836 = vst.msk [vmem:[%s1329_s23 + $0x28] sm:$0xff] %vm830_vm1, %v779_v40  ;;  %v1023_v43 = vadd.f32 %v1022_v42, %v1021_v41  ;;  %v1024_v44 = vpop.f32.mrb[14].mxu0 }
 0x115   : > { %v1025_v45 = vpop.f32.mrb[15].mxu0  ;;  %v783_v46 = vpop.f32.mrb[12].mxu1 }
 0x116   : > { %v1026_v47 = vadd.f32 %v1025_v45, %v1024_v44  ;;  %v679_v48 = vadd.f32 %v1023_v43, %v1322_v0  ;;  %v785_v49 = vpop.f32.mrb[13].mxu1 }
 0x117   : > { %v786_v50 = vpop.f32.mrb[14].mxu1 }
 0x118   : > { %v784_v51 = vadd.f32 %v783_v46, %v679_v48  ;;  %v682_v52 = vadd.f32 %v1026_v47, %v1322_v0  ;;  %v788_v53 = vpop.f32.mrb[15].mxu1 }
 0x11a   : > { %837 = vst.msk [vmem:[%s1329_s23 + $0x30] sm:$0xff] %vm830_vm1, %v784_v51  ;;  %v787_v54 = vadd.f32 %v786_v50, %v682_v52  ;;  %v1027_v55 = vpop.f32.mrb[16].mxu0 }
 0x11b   : > { %v1028_v56 = vpop.f32.mrb[17].mxu0 }
 0x11c   : > { %838 = vst.msk [vmem:[%s1329_s23 + $0x38] sm:$0xff] %vm830_vm1, %v787_v54  ;;  %v1029_v57 = vadd.f32 %v1028_v56, %v1027_v55  ;;  %v1030_v58 = vpop.f32.mrb[18].mxu0 }
 0x11d   : > { %v1031_v59 = vpop.f32.mrb[19].mxu0  ;;  %v791_v60 = vpop.f32.mrb[16].mxu1 }
 0x11e   : > { %v1032_v61 = vadd.f32 %v1031_v59, %v1030_v58  ;;  %v687_v62 = vadd.f32 %v1029_v57, %v1322_v0  ;;  %v793_v63 = vpop.f32.mrb[17].mxu1 }
 0x11f   : > { %v794_v1 = vpop.f32.mrb[18].mxu1 }
 0x120   : > { %v792_v2 = vadd.f32 %v791_v60, %v687_v62  ;;  %v690_v3 = vadd.f32 %v1032_v61, %v1322_v0  ;;  %v796_v4 = vpop.f32.mrb[19].mxu1 }
 0x122   : > { %839 = vst.msk [vmem:[%s1329_s23 + $0x40] sm:$0xff] %vm830_vm1, %v792_v2  ;;  %v795_v5 = vadd.f32 %v794_v1, %v690_v3  ;;  %v1033_v6 = vpop.f32.mrb[20].mxu0 }
 0x123   : > { %v1034_v7 = vpop.f32.mrb[21].mxu0 }
 0x124   : > { %840 = vst.msk [vmem:[%s1329_s23 + $0x48] sm:$0xff] %vm830_vm1, %v795_v5  ;;  %v1035_v8 = vadd.f32 %v1034_v7, %v1033_v6  ;;  %v1036_v9 = vpop.f32.mrb[22].mxu0 }
 0x125   : > { %v1037_v10 = vpop.f32.mrb[23].mxu0  ;;  %v799_v11 = vpop.f32.mrb[20].mxu1 }
 0x126   : > { %v1038_v12 = vadd.f32 %v1037_v10, %v1036_v9  ;;  %v695_v13 = vadd.f32 %v1035_v8, %v1322_v0  ;;  %v801_v14 = vpop.f32.mrb[21].mxu1 }
 0x127   : > { %v802_v15 = vpop.f32.mrb[22].mxu1 }
 0x128   : > { %v800_v16 = vadd.f32 %v799_v11, %v695_v13  ;;  %v698_v17 = vadd.f32 %v1038_v12, %v1322_v0  ;;  %v804_v18 = vpop.f32.mrb[23].mxu1 }
 0x12a   : > { %841 = vst.msk [vmem:[%s1329_s23 + $0x50] sm:$0xff] %vm830_vm1, %v800_v16  ;;  %v803_v19 = vadd.f32 %v802_v15, %v698_v17  ;;  %v1039_v20 = vpop.f32.mrb[24].mxu0 }
 0x12b   : > { %v1040_v21 = vpop.f32.mrb[25].mxu0 }
 0x12c   : > { %842 = vst.msk [vmem:[%s1329_s23 + $0x58] sm:$0xff] %vm830_vm1, %v803_v19  ;;  %v1041_v22 = vadd.f32 %v1040_v21, %v1039_v20  ;;  %v1042_v23 = vpop.f32.mrb[26].mxu0 }
 0x12d   : > { %v1043_v24 = vpop.f32.mrb[27].mxu0  ;;  %v807_v25 = vpop.f32.mrb[24].mxu1 }
 0x12e   : > { %v1044_v26 = vadd.f32 %v1043_v24, %v1042_v23  ;;  %v703_v27 = vadd.f32 %v1041_v22, %v1322_v0  ;;  %v809_v28 = vpop.f32.mrb[25].mxu1 }
 0x12f   : > { %v810_v29 = vpop.f32.mrb[26].mxu1 }
 0x130   : > { %v808_v30 = vadd.f32 %v807_v25, %v703_v27  ;;  %v706_v31 = vadd.f32 %v1044_v26, %v1322_v0  ;;  %v812_v32 = vpop.f32.mrb[27].mxu1 }
 0x132   : > { %843 = vst.msk [vmem:[%s1329_s23 + $0x60] sm:$0xff] %vm830_vm1, %v808_v30  ;;  %v811_v33 = vadd.f32 %v810_v29, %v706_v31  ;;  %v1045_v34 = vpop.f32.mrb[28].mxu0 }
 0x133   : > { %v1046_v35 = vpop.f32.mrb[29].mxu0 }
 0x134   : > { %844 = vst.msk [vmem:[%s1329_s23 + $0x68] sm:$0xff] %vm830_vm1, %v811_v33  ;;  %v1047_v36 = vadd.f32 %v1046_v35, %v1045_v34  ;;  %v1048_v37 = vpop.f32.mrb[30].mxu0 }
 0x135   : > { %v1049_v38 = vpop.f32.mrb[31].mxu0  ;;  %v815_v39 = vpop.f32.mrb[28].mxu1 }
 0x136   : > { %v1050_v40 = vadd.f32 %v1049_v38, %v1048_v37  ;;  %v711_v41 = vadd.f32 %v1047_v36, %v1322_v0  ;;  %v817_v42 = vpop.f32.mrb[29].mxu1 }
 0x137   : > { %v818_v43 = vpop.f32.mrb[30].mxu1 }
 0x138   : > { %v816_v44 = vadd.f32 %v815_v39, %v711_v41  ;;  %v714_v45 = vadd.f32 %v1050_v40, %v1322_v0  ;;  %v820_v46 = vpop.f32.mrb[31].mxu1 }
 0x13a   : > { %845 = vst.msk [vmem:[%s1329_s23 + $0x70] sm:$0xff] %vm830_vm1, %v816_v44  ;;  %v819_v47 = vadd.f32 %v818_v43, %v714_v45  ;;  %v1051_v48 = vpop.f32.mrb[32].mxu0 }
 0x13b   : > { %v1052_v49 = vpop.f32.mrb[33].mxu0 }
 0x13c   : > { %846 = vst.msk [vmem:[%s1329_s23 + $0x78] sm:$0xff] %vm830_vm1, %v819_v47  ;;  %v1053_v50 = vadd.f32 %v1052_v49, %v1051_v48  ;;  %v1054_v51 = vpop.f32.mrb[34].mxu0 }
 0x13d   : > { %v1055_v52 = vpop.f32.mrb[35].mxu0  ;;  %v823_v53 = vpop.f32.mrb[32].mxu1 }
 0x13e   : > { %v1056_v54 = vadd.f32 %v1055_v52, %v1054_v51  ;;  %v719_v55 = vadd.f32 %v1053_v50, %v1322_v0  ;;  %v825_v56 = vpop.f32.mrb[33].mxu1 }
 0x13f   : > { %v826_v57 = vpop.f32.mrb[34].mxu1 }
 0x140   : > { %v824_v58 = vadd.f32 %v823_v53, %v719_v55  ;;  %v722_v59 = vadd.f32 %v1056_v54, %v1322_v0  ;;  %v828_v60 = vpop.f32.mrb[35].mxu1 }
 0x142   : > { %847 = vst.msk [vmem:[%s1329_s23 + $0x80] sm:$0xff] %vm830_vm1, %v824_v58  ;;  %v827_v61 = vadd.f32 %v826_v57, %v722_v59 }
 0x144   : > { %848 = vst.msk [vmem:[%s1329_s23 + $0x88] sm:$0xff] %vm830_vm1, %v827_v61 }
 0x145 PF: > { %s13_s12 = sadd.s32 1, %s1151_s12  }
 0x146   : > { %p10_p4 = scmp.ge.s32.totalorder %s13_s12, 4  }
 0x148   :  { %12 = sbr.rel (!%p10_p4) target bundleno = 1 (0x1), region = 62 }

// kernel: net_forward.23
= control target key start
LH: loop header
LB: loop body
LE: loop exit
PB: predicated region body
PF: predicated region fallthrough
CT: control target
= control target key end

     0   :  { %vm12_vm0 = vcmask 1041408   ;;  %vm13_vm1 = vcmask 1043458   ;;  %vm15_vm2 = vcmask 521220   ;;  %s55_s0 = inlined_call_operand.vmem [shape: f32[4,2,320], index: 0, kind: input, shape index: {}]   ;;  %s56_s1 = inlined_call_operand.vmem [shape: f32[2,320], index: 1, kind: output, shape index: {}]  }
   0x1   :  { %v8_v0 = vld [vmem:[%s55_s0] sm:$0x3f]  ;;  %v9_v1 = vld [vmem:[%s55_s0 + $0x6] sm:$0x3f]  ;;  %v10_v2 = vld [vmem:[%s55_s0 + $0xc] sm:$0x3f] }
   0x2   :  { %v11_v3 = vld [vmem:[%s55_s0 + $0x12] sm:$0x3f]  ;;  %vm14_vm3 = vmor %vm13_vm1, %vm12_vm0 }
   0x3   :  { %vm16_vm4 = vmor %vm15_vm2, %vm14_vm3 }
   0x4   :  { %v17_v4 = vsel %vm16_vm4, %v8_v0, -inf  ;;  %v18_v5 = vsel %vm16_vm4, %v9_v1, -inf  ;;  %v19_v6 = vsel %vm16_vm4, %v10_v2, -inf  ;;  %v20_v7 = vsel %vm16_vm4, %v11_v3, -inf }
   0x5   :  { %v21_v8 = vmax.f32 %v17_v4, %v18_v5  ;;  %v22_v9 = vmax.f32 %v19_v6, %v20_v7 }
   0x7   :  { %v23_v10 = vmax.f32 %v21_v8, %v22_v9 }
   0x9   :  { %v24_v11 = vmax.f32 %v23_v10, 0.0 }
   0xb   :  { %25 = vst.msk [vmem:[%s56_s1] sm:$0x3f] %vm16_vm4, %v24_v11 }

// kernel: net_forward.24
= control target key start
LH: loop header
LB: loop body
LE: loop exit
PB: predicated region body
PF: predicated region fallthrough
CT: control target
= control target key end

     0   :  { %vm48_vm0 = vcmask 162816   ;;  %vm55_vm1 = vcmask 1041408   ;;  %vm108_vm2 = vcmask 588800   ;;  %s188_s1 = inlined_call_operand.vmem [shape: bf16[20,72], index: 1, kind: input, shape index: {}]   ;;  %s189_s0 = inlined_call_operand.vmem [shape: bf16[32,20], index: 0, kind: input, shape index: {}]   ;;  %s190_s2 = inlined_call_operand.vmem [shape: f32[1,72], index: 2, kind: input, shape index: {}]   ;;  %s191_s3 = inlined_call_operand.vmem [shape: f32[32,72], index: 3, kind: output, shape index: {}]  }
   0x1   :  { %v137_v0 = vld [vmem:[%s188_s1] sm:$0xff]   ;;  %v138_v1 = vld [vmem:[%s188_s1 + $0x8] ss:$0 sps:$4 sm:$0x33]  }
   0x2   :  { %v139_v2 = vld [vmem:[%s189_s0] sm:$0xff]   ;;  %128 = vmatprep.subr.bf16.mxu0 %v137_v0  ;;  %v57_v3 = vsel %vm55_vm1, %v138_v1, 0  ;;  %v140_v4 = vld [vmem:[%s189_s0 + $0x8] sm:$0xff]  }
   0x3   :  { %129 = vmatpush3.bf16.msra.mxu0 %v137_v0  ;;  %132 = vmatprep.mubr.msk.bf16.mxu0 %vm48_vm0, %v139_v2  ;;  %v117_v5 = vld [vmem:[%s190_s2] ss:$0 sm:$0xff] }
   0x4   :  { %136 = vmatprep.subr.msk.bf16.mxu0 %vm55_vm1, %v138_v1 }
   0x7   :  { %131 = vmatpush3.bf16.msra.mxu0 %v57_v3 }
   0xa   :  { %133 = vmatmul.mubr.msk.bf16.vlgmr.msra.gmra.mrb[0].mxu0 %vm48_vm0, %v140_v4 }
  0xdd   :  { %v134_v6 = vpop.f32.mrb[0].mxu0 }
  0xde   :  { %v102_v7 = vadd.f32 %v134_v6, %v117_v5  ;;  %v93_v8 = vpop.f32.mrb[1].mxu0 }
  0xdf   :  { %v94_v9 = vadd.f32 %v117_v5, %v93_v8  ;;  %v135_v10 = vpop.f32.mrb[2].mxu0 }
  0xe0   :  { %111 = vst.msk [vmem:[%s191_s3 + $0x10] sm:$0xff] %vm108_vm2, %v102_v7  ;;  %v105_v11 = vadd.f32 %v135_v10, %v117_v5  ;;  %v96_v12 = vpop.f32.mrb[3].mxu0 }
  0xe1   :  { %109 = vst.msk [vmem:[%s191_s3] sm:$0xff] %vm108_vm2, %v94_v9  ;;  %v97_v13 = vadd.f32 %v117_v5, %v96_v12 }
  0xe2   :  { %112 = vst.msk [vmem:[%s191_s3 + $0x18] sm:$0xff] %vm108_vm2, %v105_v11 }
  0xe3   :  { %110 = vst.msk [vmem:[%s191_s3 + $0x8] sm:$0xff] %vm108_vm2, %v97_v13 }

// kernel: net_forward.22
= control target key start
LH: loop header
LB: loop body
LE: loop exit
PB: predicated region body
PF: predicated region fallthrough
CT: control target
= control target key end

     0   :  { %s3231_s12 = smov 0   ;;  %s3808_s0 = inlined_call_operand.vmem [shape: bf16[128,2200], index: 0, kind: input, shape index: {}]   ;;  %s3809_s1 = inlined_call_operand.vmem [shape: bf16[2200,20], index: 1, kind: input, shape index: {}]   ;;  %s3810_s2 = inlined_call_operand.vmem [shape: f32[1,20], index: 2, kind: input, shape index: {}]   ;;  %s3811_s3 = inlined_call_operand.vmem [shape: f32[128,20], index: 3, kind: output, shape index: {}]  }
   0x1 LB: > { %s2380_s13 = sadd.s32 4294967295, %s3208_s12   ;;  %p2384_p0 = scmp.ge.s32.totalorder %s3208_s12, 1  ;;  %s3208_s12 = sphi %s3231_s12, %s13_s12  }
   0x2   : > { %p139_p1 = scmp.lt.s32.totalorder %s3208_s12, 3 }
   0x4   : > { %p140_p2 = pnand %p2384_p0, %p139_p1 }
   0x5   : > { %v2956_v0 = vld [vmem:[%s3809_s1 + $0x40] sm:$0xff] (!%p140_p2)   ;;  %v2960_v4 = vld [vmem:[%s3809_s1 + $0x48] sm:$0xff] (!%p140_p2)   ;;  %v2964_v8 = vld [vmem:[%s3809_s1 + $0x50] sm:$0xff] (!%p140_p2)   ;;  %s2385_s19 = sshll.u32 (!%p140_p2), %s2380_s13, 3  ;;  %vm1713_vm0 = vcmask (!%p140_p2), 195584   ;;  %vm1726_vm1 = vcmask (!%p140_p2), 1043456  }
   0x6   : > { %143 = sbr.rel (%p140_p2) target bundleno = 401 (0x191), region = 32  ;;  %v2957_v1 = vld [vmem:[%s3809_s1 + $0xc0] sm:$0xff] (!%p140_p2)   ;;  %2606 = vmatprep.subr.bf16.mxu0 (!%p140_p2), %v2956_v0  ;;  %v2961_v5 = vld [vmem:[%s3809_s1 + $0xc8] sm:$0xff] (!%p140_p2)   ;;  %v2965_v9 = vld [vmem:[%s3809_s1 + $0xd0] sm:$0xff] (!%p140_p2)   ;;  %p165_p3 = scmp.lt.s32.totalorder (!%p140_p2), %s2385_s19, 15  ;;  %vm2315_vm2 = vcmask (!%p140_p2), 162816  }
   0x7   : > { %v2958_v2 = vld [vmem:[%s3809_s1] sm:$0xff] (!%p140_p2)   ;;  %2646 = vmatprep.subr.bf16.mxu1 (!%p140_p2), %v2957_v1  ;;  %v2962_v6 = vld [vmem:[%s3809_s1 + $0x8] sm:$0xff] (!%p140_p2)   ;;  %v2966_v10 = vld [vmem:[%s3809_s1 + $0x10] sm:$0xff] (!%p140_p2)  }
   0x8   : > { %v2959_v3 = vld [vmem:[%s3809_s1 + $0x80] sm:$0xff] (!%p140_p2)   ;;  %2607 = vmatpush3.bf16.msra.mxu0 (!%p140_p2), %v2958_v2  ;;  %v2963_v7 = vld [vmem:[%s3809_s1 + $0x88] sm:$0xff] (!%p140_p2)   ;;  %v2967_v11 = vld [vmem:[%s3809_s1 + $0x90] sm:$0xff] (!%p140_p2)  }
   0x9   : > { %2647 = vmatpush3.bf16.msra.mxu1 (!%p140_p2), %v2959_v3  ;;  %2608 = vmatprep.subr.bf16.mxu0 (!%p140_p2), %v2960_v4  ;;  %v2968_v12 = vld [vmem:[%s3809_s1 + $0x58] sm:$0xff] (!%p140_p2)   ;;  %v2972_v16 = vld [vmem:[%s3809_s1 + $0x60] sm:$0xff] (!%p140_p2)   ;;  %v2976_v20 = vld [vmem:[%s3809_s1 + $0x68] sm:$0xff] (!%p140_p2)  }
   0xa   : > { %2648 = vmatprep.subr.bf16.mxu1 (!%p140_p2), %v2961_v5  ;;  %v2969_v13 = vld [vmem:[%s3809_s1 + $0xd8] sm:$0xff] (!%p140_p2)   ;;  %v2973_v17 = vld [vmem:[%s3809_s1 + $0xe0] sm:$0xff] (!%p140_p2)   ;;  %v2977_v21 = vld [vmem:[%s3809_s1 + $0xe8] sm:$0xff] (!%p140_p2)  }
   0xb   : > { %v2970_v14 = vld [vmem:[%s3809_s1 + $0x18] sm:$0xff] (!%p140_p2)   ;;  %v2974_v18 = vld [vmem:[%s3809_s1 + $0x20] sm:$0xff] (!%p140_p2)   ;;  %v2978_v22 = vld [vmem:[%s3809_s1 + $0x28] sm:$0xff] (!%p140_p2)  }
   0xc   : > { %2609 = vmatpush3.bf16.msra.mxu0 (!%p140_p2), %v2962_v6  ;;  %v2971_v15 = vld [vmem:[%s3809_s1 + $0x98] sm:$0xff] (!%p140_p2)   ;;  %v2975_v19 = vld [vmem:[%s3809_s1 + $0xa0] sm:$0xff] (!%p140_p2)   ;;  %v2979_v23 = vld [vmem:[%s3809_s1 + $0xa8] sm:$0xff] (!%p140_p2)  }
   0xd   : > { %2649 = vmatpush3.bf16.msra.mxu1 %v2963_v7  ;;  %2610 = vmatprep.subr.bf16.mxu0 %v2964_v8  ;;  %s3813_s19 = smov (!%p165_p3, %s2385_s19), 15  ;;  %v2980_v24 = vld [vmem:[%s3809_s1 + $0x70] sm:$0xff]   ;;  %v2984_v28 = vld [vmem:[%s3809_s1 + $0x78] sm:$0xff]   ;;  %v2994_v36 = vld [vmem:[%s3809_s1 + $0x140] sm:$0xff]  }
   0xe   : > { %2650 = vmatprep.subr.bf16.mxu1 %v2965_v9  ;;  %v2981_v25 = vld [vmem:[%s3809_s1 + $0xf0] sm:$0xff]   ;;  %s2946_s16 = smul.u32 72, %s3813_s19  ;;  %v2985_v29 = vld [vmem:[%s3809_s1 + $0xf8] sm:$0xff]   ;;  %v2995_v37 = vld [vmem:[%s3809_s1 + $0x1c0] sm:$0xff]  }
   0xf   : > { %v2982_v26 = vld [vmem:[%s3809_s1 + $0x30] sm:$0xff]   ;;  %v2986_v30 = vld [vmem:[%s3809_s1 + $0x38] sm:$0xff]   ;;  %v2996_v38 = vld [vmem:[%s3809_s1 + $0x100] sm:$0xff]  }
  0x10   : > { %2611 = vmatpush3.bf16.msra.mxu0 %v2966_v10  ;;  %v2983_v27 = vld [vmem:[%s3809_s1 + $0xb0] sm:$0xff]   ;;  %s3337_s13 = scalar_lea.vmem %s3808_s0, %s2946_s16  ;;  %v2987_v31 = vld [vmem:[%s3809_s1 + $0xb8] sm:$0xff]   ;;  %v2997_v39 = vld [vmem:[%s3809_s1 + $0x180] sm:$0xff]  }
  0x11   : > { %2651 = vmatpush3.bf16.msra.mxu1 %v2967_v11  ;;  %2612 = vmatprep.subr.bf16.mxu0 %v2968_v12  ;;  %v2988_v32 = vld [vmem:[%s3337_s13] ss:$72 sps:$4 sm:$0xff]   ;;  %v2990_v33 = vld [vmem:[%s3337_s13 + $0x4] ss:$72 sps:$4 sm:$0xff]   ;;  %v3002_v44 = vld [vmem:[%s3337_s13 + $0x94] ss:$72 sps:$4 sm:$0xff]  }
  0x12   : > { %2652 = vmatprep.subr.bf16.mxu1 %v2969_v13  ;;  %v2991_v34 = vld [vmem:[%s3337_s13 + $0x8] ss:$72 sps:$4 sm:$0xff]   ;;  %v2993_v35 = vld [vmem:[%s3337_s13 + $0xc] ss:$72 sps:$4 sm:$0xff]   ;;  %1762 = vmatprep.mubr.bf16.mxu0 %v2990_v33  ;;  %v3004_v45 = vld [vmem:[%s3337_s13 + $0x9c] ss:$72 sps:$4 sm:$0xff]  }
  0x13   : > { %1827 = vmatprep.mubr.bf16.mxu1 %v2993_v35  ;;  %v2998_v40 = vld [vmem:[%s3809_s1 + $0x148] sm:$0xff]   ;;  %v3006_v46 = vld [vmem:[%s3337_s13 + $0x90] ss:$72 sps:$4 sm:$0xff]   ;;  %v3022_v60 = vld [vmem:[%s3809_s1 + $0x160] sm:$0xff]  }
  0x14   : > { %2613 = vmatpush3.bf16.msra.mxu0 %v2970_v14  ;;  %v2999_v41 = vld [vmem:[%s3809_s1 + $0x1c8] sm:$0xff]   ;;  %v3007_v47 = vld [vmem:[%s3337_s13 + $0x98] ss:$72 sps:$4 sm:$0xff]   ;;  %v3008_v48 = vld [vmem:[%s3809_s1 + $0x150] sm:$0xff]  }
  0x15   : > { %2653 = vmatpush3.bf16.msra.mxu1 %v2971_v15  ;;  %2614 = vmatprep.subr.bf16.mxu0 %v2972_v16  ;;  %v3000_v42 = vld [vmem:[%s3809_s1 + $0x108] sm:$0xff]   ;;  %v3009_v49 = vld [vmem:[%s3809_s1 + $0x1d0] sm:$0xff]   ;;  %v3012_v52 = vld [vmem:[%s3809_s1 + $0x158] sm:$0xff]  }
  0x16   : > { %2654 = vmatprep.subr.bf16.mxu1 %v2973_v17  ;;  %v3001_v43 = vld [vmem:[%s3809_s1 + $0x188] sm:$0xff]   ;;  %v3010_v50 = vld [vmem:[%s3809_s1 + $0x110] sm:$0xff]   ;;  %v3013_v53 = vld [vmem:[%s3809_s1 + $0x1d8] sm:$0xff]  }
  0x17   : > { %v3011_v51 = vld [vmem:[%s3809_s1 + $0x190] sm:$0xff]   ;;  %v3014_v54 = vld [vmem:[%s3809_s1 + $0x118] sm:$0xff]   ;;  %v3016_v56 = vld [vmem:[%s3337_s13 + $0x124] ss:$72 sps:$4 sm:$0xff]  }
  0x18   : > { %2615 = vmatpush3.bf16.msra.mxu0 %v2974_v18  ;;  %v3015_v55 = vld [vmem:[%s3809_s1 + $0x198] sm:$0xff]   ;;  %v3018_v57 = vld [vmem:[%s3337_s13 + $0x12c] ss:$72 sps:$4 sm:$0xff]   ;;  %v3020_v58 = vld [vmem:[%s3337_s13 + $0x120] ss:$72 sps:$4 sm:$0xff]  }
  0x19   : > { %2655 = vmatpush3.bf16.msra.mxu1 %v2975_v19  ;;  %2616 = vmatprep.subr.bf16.mxu0 %v2976_v20  ;;  %v3021_v59 = vld [vmem:[%s3337_s13 + $0x128] ss:$72 sps:$4 sm:$0xff]   ;;  %v3023_v61 = vld [vmem:[%s3809_s1 + $0x1e0] sm:$0xff]   ;;  %v3030_v4 = vld [vmem:[%s3337_s13 + $0x1b4] ss:$72 sps:$4 sm:$0xff]  }
  0x1a   : > { %2656 = vmatprep.subr.bf16.mxu1 %v2977_v21  ;;  %v3024_v62 = vld [vmem:[%s3809_s1 + $0x120] sm:$0xff]   ;;  %v3026_v0 = vld [vmem:[%s3809_s1 + $0x168] sm:$0xff]   ;;  %v3034_v6 = vld [vmem:[%s3337_s13 + $0x1b0] ss:$72 sps:$4 sm:$0xff]  }
  0x1b   : > { %v3025_v63 = vld [vmem:[%s3809_s1 + $0x1a0] sm:$0xff]   ;;  %v3027_v1 = vld [vmem:[%s3809_s1 + $0x1e8] sm:$0xff]   ;;  %v3036_v8 = vld [vmem:[%s3809_s1 + $0x170] sm:$0xff]  }
  0x1c   : > { %2617 = vmatpush3.bf16.msra.mxu0 %v2978_v22  ;;  %v3028_v2 = vld [vmem:[%s3809_s1 + $0x128] sm:$0xff]   ;;  %v3032_v5 = vld [vmem:[%s3337_s13 + $0x1bc] ss:$72 sps:$4 sm:$0xff]   ;;  %v3035_v7 = vld [vmem:[%s3337_s13 + $0x1b8] ss:$72 sps:$4 sm:$0xff]  }
  0x1d   : > { %2657 = vmatpush3.bf16.msra.mxu1 %v2979_v23  ;;  %2618 = vmatprep.subr.bf16.mxu0 %v2980_v24  ;;  %v3029_v3 = vld [vmem:[%s3809_s1 + $0x1a8] sm:$0xff]   ;;  %v3037_v9 = vld [vmem:[%s3809_s1 + $0x1f0] sm:$0xff]   ;;  %v3040_v12 = vld [vmem:[%s3809_s1 + $0x178] sm:$0xff]  }
  0x1e   : > { %2658 = vmatprep.subr.bf16.mxu1 %v2981_v25  ;;  %v3038_v10 = vld [vmem:[%s3809_s1 + $0x130] sm:$0xff]   ;;  %v3041_v13 = vld [vmem:[%s3809_s1 + $0x1f8] sm:$0xff]   ;;  %v3050_v20 = vld [vmem:[%s3809_s1 + $0x240] sm:$0xff]  }
  0x1f   : > { %v3039_v11 = vld [vmem:[%s3809_s1 + $0x1b0] sm:$0xff]   ;;  %v3042_v14 = vld [vmem:[%s3809_s1 + $0x138] sm:$0xff]   ;;  %v3051_v21 = vld [vmem:[%s3809_s1 + $0x2c0] sm:$0xff]  }
  0x20   : > { %2619 = vmatpush3.bf16.msra.mxu0 %v2982_v26  ;;  %v3043_v15 = vld [vmem:[%s3809_s1 + $0x1b8] sm:$0xff]   ;;  %v3052_v22 = vld [vmem:[%s3809_s1 + $0x200] sm:$0xff]   ;;  %v3054_v24 = vld [vmem:[%s3809_s1 + $0x248] sm:$0xff]  }
  0x21   : > { %2659 = vmatpush3.bf16.msra.mxu1 %v2983_v27  ;;  %2620 = vmatprep.subr.bf16.mxu0 %v2984_v28  ;;  %v3044_v16 = vld [vmem:[%s3337_s13 + $0x10] ss:$72 sps:$4 sm:$0xff]   ;;  %v3046_v17 = vld [vmem:[%s3337_s13 + $0x14] ss:$72 sps:$4 sm:$0xff]   ;;  %v3053_v23 = vld [vmem:[%s3809_s1 + $0x280] sm:$0xff]  }
  0x22   : > { %2660 = vmatprep.subr.bf16.mxu1 %v2985_v29  ;;  %v3047_v18 = vld [vmem:[%s3337_s13 + $0x18] ss:$72 sps:$4 sm:$0xff]   ;;  %v3049_v19 = vld [vmem:[%s3337_s13 + $0x1c] ss:$72 sps:$4 sm:$0xff]   ;;  %v3055_v25 = vld [vmem:[%s3809_s1 + $0x2c8] sm:$0xff]  }
  0x23   : > { %v3056_v26 = vld [vmem:[%s3809_s1 + $0x208] sm:$0xff]   ;;  %v3065_v33 = vld [vmem:[%s3809_s1 + $0x2d0] sm:$0xff]  }
  0x24   : > { %2621 = vmatpush3.bf16.msra.mxu0 %v2986_v30  ;;  %v3057_v27 = vld [vmem:[%s3809_s1 + $0x288] sm:$0xff]   ;;  %v3067_v35 = vld [vmem:[%s3809_s1 + $0x290] sm:$0xff]  }
  0x25   : > { %2661 = vmatpush3.bf16.msra.mxu1 %v2987_v31  ;;  %2686 = vmatprep.subr.bf16.mxu0 %v2994_v36  ;;  %v3058_v28 = vld [vmem:[%s3337_s13 + $0xa4] ss:$72 sps:$4 sm:$0xff]   ;;  %v3062_v30 = vld [vmem:[%s3337_s13 + $0xa0] ss:$72 sps:$4 sm:$0xff]   ;;  %v3068_v36 = vld [vmem:[%s3809_s1 + $0x258] sm:$0xff]  }
  0x26   : > { %2726 = vmatprep.subr.bf16.mxu1 %v2995_v37  ;;  %v3060_v29 = vld [vmem:[%s3337_s13 + $0xac] ss:$72 sps:$4 sm:$0xff]   ;;  %v3063_v31 = vld [vmem:[%s3337_s13 + $0xa8] ss:$72 sps:$4 sm:$0xff]   ;;  %v3069_v37 = vld [vmem:[%s3809_s1 + $0x2d8] sm:$0xff]  }
  0x27   : > { %1763 = vmatmul.mubr.bf16.vlgmr.msra.gmra.mrb[0].mxu0 %v2988_v32  ;;  %v3064_v32 = vld [vmem:[%s3809_s1 + $0x250] sm:$0xff]  }
  0x28   : > { %1828 = vmatmul.mubr.bf16.vlgmr.msra.gmra.mrb[0].mxu1 %v2991_v34  ;;  %2687 = vmatpush3.bf16.msra.mxu0 %v2996_v38  ;;  %v3066_v34 = vld [vmem:[%s3809_s1 + $0x210] sm:$0xff]   ;;  %v3070_v38 = vld [vmem:[%s3809_s1 + $0x218] sm:$0xff]  }
  0x29   : > { %2727 = vmatpush3.bf16.msra.mxu1 %v2997_v39  ;;  %2688 = vmatprep.subr.bf16.mxu0 %v2998_v40  ;;  %v3071_v39 = vld [vmem:[%s3809_s1 + $0x298] sm:$0xff]  }
  0x2a   : > { %2728 = vmatprep.subr.bf16.mxu1 %v2999_v41  ;;  %1770 = vmatprep.mubr.bf16.mxu0 %v3002_v44  ;;  %v3072_v40 = vld [vmem:[%s3337_s13 + $0x134] ss:$72 sps:$4 sm:$0xff]   ;;  %v3078_v44 = vld [vmem:[%s3809_s1 + $0x260] sm:$0xff]  }
  0x2b   : > { %1835 = vmatprep.mubr.bf16.mxu1 %v3004_v45  ;;  %v3074_v41 = vld [vmem:[%s3337_s13 + $0x13c] ss:$72 sps:$4 sm:$0xff]  }
  0x2c   : > { %2689 = vmatpush3.bf16.msra.mxu0 %v3000_v42  ;;  %v3076_v42 = vld [vmem:[%s3337_s13 + $0x130] ss:$72 sps:$4 sm:$0xff]   ;;  %v3079_v45 = vld [vmem:[%s3809_s1 + $0x2e0] sm:$0xff]  }
  0x2d   : > { %2729 = vmatpush3.bf16.msra.mxu1 %v3001_v43  ;;  %2690 = vmatprep.subr.bf16.mxu0 %v3008_v48  ;;  %v3077_v43 = vld [vmem:[%s3337_s13 + $0x138] ss:$72 sps:$4 sm:$0xff]   ;;  %v3082_v48 = vld [vmem:[%s3809_s1 + $0x268] sm:$0xff]  }
  0x2e   : > { %2730 = vmatprep.subr.bf16.mxu1 %v3009_v49  ;;  %v3083_v49 = vld [vmem:[%s3809_s1 + $0x2e8] sm:$0xff]  }
  0x2f   : > { %1771 = vmatmul.mubr.bf16.gmra.mrb[4].mxu0 %v3006_v46  ;;  %v3080_v46 = vld [vmem:[%s3809_s1 + $0x220] sm:$0xff]  }
  0x30   : > { %1836 = vmatmul.mubr.bf16.gmra.mrb[4].mxu1 %v3007_v47  ;;  %2691 = vmatpush3.bf16.msra.mxu0 %v3010_v50  ;;  %v3081_v47 = vld [vmem:[%s3809_s1 + $0x2a0] sm:$0xff]   ;;  %v3084_v50 = vld [vmem:[%s3809_s1 + $0x228] sm:$0xff]  }
  0x31   : > { %2731 = vmatpush3.bf16.msra.mxu1 %v3011_v51  ;;  %2692 = vmatprep.subr.bf16.mxu0 %v3012_v52  ;;  %v3085_v51 = vld [vmem:[%s3809_s1 + $0x2a8] sm:$0xff]  }
  0x32   : > { %2732 = vmatprep.subr.bf16.mxu1 %v3013_v53  ;;  %1778 = vmatprep.mubr.bf16.mxu0 %v3016_v56  ;;  %v3086_v52 = vld [vmem:[%s3337_s13 + $0x1c4] ss:$72 sps:$4 sm:$0xff]   ;;  %v3092_v56 = vld [vmem:[%s3809_s1 + $0x270] sm:$0xff]  }
  0x33   : > { %1843 = vmatprep.mubr.bf16.mxu1 %v3018_v57  ;;  %v3088_v53 = vld [vmem:[%s3337_s13 + $0x1cc] ss:$72 sps:$4 sm:$0xff]  }
  0x34   : > { %2693 = vmatpush3.bf16.msra.mxu0 %v3014_v54  ;;  %v3090_v54 = vld [vmem:[%s3337_s13 + $0x1c0] ss:$72 sps:$4 sm:$0xff]   ;;  %v3093_v57 = vld [vmem:[%s3809_s1 + $0x2f0] sm:$0xff]  }
  0x35   : > { %2733 = vmatpush3.bf16.msra.mxu1 %v3015_v55  ;;  %2694 = vmatprep.subr.bf16.mxu0 %v3022_v60  ;;  %v3091_v55 = vld [vmem:[%s3337_s13 + $0x1c8] ss:$72 sps:$4 sm:$0xff]   ;;  %v3096_v60 = vld [vmem:[%s3809_s1 + $0x278] sm:$0xff]  }
  0x36   : > { %2734 = vmatprep.subr.bf16.mxu1 %v3023_v61  ;;  %v3097_v61 = vld [vmem:[%s3809_s1 + $0x2f8] sm:$0xff]  }
  0x37   : > { %1779 = vmatmul.mubr.bf16.gmra.mrb[8].mxu0 %v3020_v58  ;;  %v3094_v58 = vld [vmem:[%s3809_s1 + $0x230] sm:$0xff]  }
  0x38   : > { %1844 = vmatmul.mubr.bf16.gmra.mrb[8].mxu1 %v3021_v59  ;;  %2695 = vmatpush3.bf16.msra.mxu0 %v3024_v62  ;;  %v3095_v59 = vld [vmem:[%s3809_s1 + $0x2b0] sm:$0xff]   ;;  %v3098_v62 = vld [vmem:[%s3809_s1 + $0x238] sm:$0xff]  }
  0x39   : > { %2735 = vmatpush3.bf16.msra.mxu1 %v3025_v63  ;;  %2696 = vmatprep.subr.bf16.mxu0 %v3026_v0  ;;  %v3099_v63 = vld [vmem:[%s3809_s1 + $0x2b8] sm:$0xff]   ;;  %v3100_v0 = vld [vmem:[%s3337_s13 + $0x20] ss:$72 sps:$4 sm:$0xff]  }
  0x3a   : > { %2736 = vmatprep.subr.bf16.mxu1 %v3027_v1  ;;  %1786 = vmatprep.mubr.bf16.mxu0 %v3030_v4  ;;  %v3102_v1 = vld [vmem:[%s3337_s13 + $0x24] ss:$72 sps:$4 sm:$0xff]  }
  0x3b   : > { %1851 = vmatprep.mubr.bf16.mxu1 %v3032_v5  ;;  %v3106_v4 = vld [vmem:[%s3809_s1 + $0x340] sm:$0xff]  }
  0x3c   : > { %2697 = vmatpush3.bf16.msra.mxu0 %v3028_v2  ;;  %v3103_v2 = vld [vmem:[%s3337_s13 + $0x28] ss:$72 sps:$4 sm:$0xff]   ;;  %v3107_v5 = vld [vmem:[%s3809_s1 + $0x3c0] sm:$0xff]  }
  0x3d   : > { %2737 = vmatpush3.bf16.msra.mxu1 %v3029_v3  ;;  %2698 = vmatprep.subr.bf16.mxu0 %v3036_v8  ;;  %v3105_v3 = vld [vmem:[%s3337_s13 + $0x2c] ss:$72 sps:$4 sm:$0xff]  }
  0x3e   : > { %2738 = vmatprep.subr.bf16.mxu1 %v3037_v9  ;;  %v3110_v8 = vld [vmem:[%s3809_s1 + $0x348] sm:$0xff]  }
  0x3f   : > { %1787 = vmatmul.mubr.bf16.gmra.mrb[12].mxu0 %v3034_v6  ;;  %v3108_v6 = vld [vmem:[%s3809_s1 + $0x300] sm:$0xff]   ;;  %v3111_v9 = vld [vmem:[%s3809_s1 + $0x3c8] sm:$0xff]  }
  0x40   : > { %1852 = vmatmul.mubr.bf16.gmra.mrb[12].mxu1 %v3035_v7  ;;  %2699 = vmatpush3.bf16.msra.mxu0 %v3038_v10  ;;  %v3109_v7 = vld [vmem:[%s3809_s1 + $0x380] sm:$0xff]   ;;  %v3112_v10 = vld [vmem:[%s3809_s1 + $0x308] sm:$0xff]  }
  0x41   : > { %2739 = vmatpush3.bf16.msra.mxu1 %v3039_v11  ;;  %2700 = vmatprep.subr.bf16.mxu0 %v3040_v12  ;;  %v3113_v11 = vld [vmem:[%s3809_s1 + $0x388] sm:$0xff]   ;;  %v3114_v12 = vld [vmem:[%s3337_s13 + $0xb4] ss:$72 sps:$4 sm:$0xff]  }
  0x42   : > { %2740 = vmatprep.subr.bf16.mxu1 %v3041_v13  ;;  %1892 = vmatprep.mubr.bf16.mxu0 %v3046_v17  ;;  %v3116_v13 = vld [vmem:[%s3337_s13 + $0xbc] ss:$72 sps:$4 sm:$0xff]   ;;  %v3121_v17 = vld [vmem:[%s3809_s1 + $0x3d0] sm:$0xff]  }
  0x43   : > { %1957 = vmatprep.mubr.bf16.mxu1 %v3049_v19  ;;  %v3123_v19 = vld [vmem:[%s3809_s1 + $0x390] sm:$0xff]  }
  0x44   : > { %2701 = vmatpush3.bf16.msra.mxu0 %v3042_v14  ;;  %v3118_v14 = vld [vmem:[%s3337_s13 + $0xb0] ss:$72 sps:$4 sm:$0xff]  }
  0x45   : > { %2741 = vmatpush3.bf16.msra.mxu1 %v3043_v15  ;;  %2766 = vmatprep.subr.bf16.mxu0 %v3050_v20  ;;  %v3119_v15 = vld [vmem:[%s3337_s13 + $0xb8] ss:$72 sps:$4 sm:$0xff]  }
  0x46   : > { %2806 = vmatprep.subr.bf16.mxu1 %v3051_v21  ;;  %v3124_v20 = vld [vmem:[%s3809_s1 + $0x358] sm:$0xff]  }
  0x47   : > { %1893 = vmatmul.mubr.bf16.vlgmr.msra.gmra.mrb[16].mxu0 %v3044_v16  ;;  %v3120_v16 = vld [vmem:[%s3809_s1 + $0x350] sm:$0xff]   ;;  %v3125_v21 = vld [vmem:[%s3809_s1 + $0x3d8] sm:$0xff]  }
  0x48   : > { %1958 = vmatmul.mubr.bf16.vlgmr.msra.gmra.mrb[16].mxu1 %v3047_v18  ;;  %2767 = vmatpush3.bf16.msra.mxu0 %v3052_v22  ;;  %v3122_v18 = vld [vmem:[%s3809_s1 + $0x310] sm:$0xff]   ;;  %v3126_v22 = vld [vmem:[%s3809_s1 + $0x318] sm:$0xff]  }
  0x49   : > { %2807 = vmatpush3.bf16.msra.mxu1 %v3053_v23  ;;  %2768 = vmatprep.subr.bf16.mxu0 %v3054_v24  ;;  %v3127_v23 = vld [vmem:[%s3809_s1 + $0x398] sm:$0xff]   ;;  %v3128_v24 = vld [vmem:[%s3337_s13 + $0x144] ss:$72 sps:$4 sm:$0xff]  }
  0x4a   : > { %2808 = vmatprep.subr.bf16.mxu1 %v3055_v25  ;;  %1900 = vmatprep.mubr.bf16.mxu0 %v3058_v28  ;;  %v3130_v25 = vld [vmem:[%s3337_s13 + $0x14c] ss:$72 sps:$4 sm:$0xff]   ;;  %v3134_v28 = vld [vmem:[%s3809_s1 + $0x360] sm:$0xff]  }
  0x4b   : > { %1965 = vmatprep.mubr.bf16.mxu1 %v3060_v29  ;;  %v3135_v29 = vld [vmem:[%s3809_s1 + $0x3e0] sm:$0xff]  }
  0x4c   : > { %2769 = vmatpush3.bf16.msra.mxu0 %v3056_v26  ;;  %v3132_v26 = vld [vmem:[%s3337_s13 + $0x140] ss:$72 sps:$4 sm:$0xff]  }
  0x4d   : > { %2809 = vmatpush3.bf16.msra.mxu1 %v3057_v27  ;;  %2770 = vmatprep.subr.bf16.mxu0 %v3064_v32  ;;  %v3133_v27 = vld [vmem:[%s3337_s13 + $0x148] ss:$72 sps:$4 sm:$0xff]  }
  0x4e   : > { %2810 = vmatprep.subr.bf16.mxu1 %v3065_v33  ;;  %v3138_v32 = vld [vmem:[%s3809_s1 + $0x368] sm:$0xff]  }
  0x4f   : > { %1901 = vmatmul.mubr.bf16.gmra.mrb[20].mxu0 %v3062_v30  ;;  %v3136_v30 = vld [vmem:[%s3809_s1 + $0x320] sm:$0xff]   ;;  %v3139_v33 = vld [vmem:[%s3809_s1 + $0x3e8] sm:$0xff]  }
  0x50   : > { %1966 = vmatmul.mubr.bf16.gmra.mrb[20].mxu1 %v3063_v31  ;;  %2771 = vmatpush3.bf16.msra.mxu0 %v3066_v34  ;;  %v3137_v31 = vld [vmem:[%s3809_s1 + $0x3a0] sm:$0xff]   ;;  %v3140_v34 = vld [vmem:[%s3809_s1 + $0x328] sm:$0xff]  }
  0x51   : > { %2811 = vmatpush3.bf16.msra.mxu1 %v3067_v35  ;;  %2772 = vmatprep.subr.bf16.mxu0 %v3068_v36  ;;  %v3141_v35 = vld [vmem:[%s3809_s1 + $0x3a8] sm:$0xff]   ;;  %v3142_v36 = vld [vmem:[%s3337_s13 + $0x1d4] ss:$72 sps:$4 sm:$0xff]  }
  0x52   : > { %2812 = vmatprep.subr.bf16.mxu1 %v3069_v37  ;;  %1908 = vmatprep.mubr.bf16.mxu0 %v3072_v40  ;;  %v3144_v37 = vld [vmem:[%s3337_s13 + $0x1dc] ss:$72 sps:$4 sm:$0xff]   ;;  %v3148_v40 = vld [vmem:[%s3809_s1 + $0x370] sm:$0xff]  }
  0x53   : > { %1973 = vmatprep.mubr.bf16.mxu1 %v3074_v41  ;;  %v3149_v41 = vld [vmem:[%s3809_s1 + $0x3f0] sm:$0xff]  }
  0x54   : > { %2773 = vmatpush3.bf16.msra.mxu0 %v3070_v38  ;;  %v3146_v38 = vld [vmem:[%s3337_s13 + $0x1d0] ss:$72 sps:$4 sm:$0xff]  }
  0x55   : > { %2813 = vmatpush3.bf16.msra.mxu1 %v3071_v39  ;;  %2774 = vmatprep.subr.bf16.mxu0 %v3078_v44  ;;  %v3147_v39 = vld [vmem:[%s3337_s13 + $0x1d8] ss:$72 sps:$4 sm:$0xff]  }
  0x56   : > { %2814 = vmatprep.subr.bf16.mxu1 %v3079_v45  ;;  %v3152_v44 = vld [vmem:[%s3809_s1 + $0x378] sm:$0xff]  }
  0x57   : > { %1909 = vmatmul.mubr.bf16.gmra.mrb[24].mxu0 %v3076_v42  ;;  %v3150_v42 = vld [vmem:[%s3809_s1 + $0x330] sm:$0xff]   ;;  %v3153_v45 = vld [vmem:[%s3809_s1 + $0x3f8] sm:$0xff]  }
  0x58   : > { %1974 = vmatmul.mubr.bf16.gmra.mrb[24].mxu1 %v3077_v43  ;;  %2775 = vmatpush3.bf16.msra.mxu0 %v3080_v46  ;;  %v3151_v43 = vld [vmem:[%s3809_s1 + $0x3b0] sm:$0xff]   ;;  %v3154_v46 = vld [vmem:[%s3809_s1 + $0x338] sm:$0xff]  }
  0x59   : > { %2815 = vmatpush3.bf16.msra.mxu1 %v3081_v47  ;;  %2776 = vmatprep.subr.bf16.mxu0 %v3082_v48  ;;  %v3155_v47 = vld [vmem:[%s3809_s1 + $0x3b8] sm:$0xff]  }
  0x5a   : > { %2816 = vmatprep.subr.bf16.mxu1 %v3083_v49  ;;  %1916 = vmatprep.mubr.bf16.mxu0 %v3086_v52  ;;  %v3156_v48 = vld [vmem:[%s3337_s13 + $0x30] ss:$72 sps:$4 sm:$0xff]   ;;  %v3158_v49 = vld [vmem:[%s3337_s13 + $0x34] ss:$72 sps:$4 sm:$0xff]  }
  0x5b   : > { %1981 = vmatprep.mubr.bf16.mxu1 %v3088_v53  ;;  %v3161_v52 = vld [vmem:[%s3337_s13 + $0x3c] ss:$72 sps:$4 sm:$0xff]  }
  0x5c   : > { %2777 = vmatpush3.bf16.msra.mxu0 %v3084_v50  ;;  %v3210_v50 = vmov 0   ;;  %v3162_v53 = vld [vmem:[%s3809_s1 + $0x400] sm:$0xff]  }
  0x5d   : > { %2817 = vmatpush3.bf16.msra.mxu1 %v3085_v51  ;;  %2778 = vmatprep.subr.bf16.mxu0 %v3092_v56  ;;  %v3159_v51 = vld [vmem:[%s3337_s13 + $0x38] ss:$72 sps:$4 sm:$0xff]   ;;  %v3167_v56 = vld [vmem:[%s3337_s13 + $0xcc] ss:$72 sps:$4 sm:$0xff]  }
  0x5e   : > { %2818 = vmatprep.subr.bf16.mxu1 %v3093_v57  ;;  %v3166_v57 = vld [vmem:[%s3337_s13 + $0xc0] ss:$72 sps:$4 sm:$0xff]  }
  0x5f   : > { %1917 = vmatmul.mubr.bf16.gmra.mrb[28].mxu0 %v3090_v54  ;;  %v3163_v54 = vld [vmem:[%s3809_s1 + $0x408] sm:$0xff]  }
  0x60   : > { %1982 = vmatmul.mubr.bf16.gmra.mrb[28].mxu1 %v3091_v55  ;;  %2779 = vmatpush3.bf16.msra.mxu0 %v3094_v58  ;;  %v3164_v55 = vld [vmem:[%s3337_s13 + $0xc4] ss:$72 sps:$4 sm:$0xff]   ;;  %v3169_v58 = vld [vmem:[%s3809_s1 + $0x410] sm:$0xff]  }
  0x61   : > { %2819 = vmatpush3.bf16.msra.mxu1 %v3095_v59  ;;  %2780 = vmatprep.subr.bf16.mxu0 %v3096_v60  ;;  %v3170_v59 = vld [vmem:[%s3337_s13 + $0xc8] ss:$72 sps:$4 sm:$0xff]   ;;  %v3172_v60 = vld [vmem:[%s3337_s13 + $0x154] ss:$72 sps:$4 sm:$0xff]  }
  0x62   : > { %2820 = vmatprep.subr.bf16.mxu1 %v3097_v61  ;;  %2022 = vmatprep.mubr.bf16.mxu0 %v3102_v1  ;;  %v3175_v61 = vld [vmem:[%s3337_s13 + $0x15c] ss:$72 sps:$4 sm:$0xff]   ;;  %v3178_v1 = vld [vmem:[%s3337_s13 + $0x158] ss:$72 sps:$4 sm:$0xff]  }
  0x63   : > { %2087 = vmatprep.mubr.bf16.mxu1 %v3105_v3  ;;  %v3183_v3 = vld [vmem:[%s3337_s13 + $0x1ec] ss:$72 sps:$4 sm:$0xff]  }
  0x64   : > { %2781 = vmatpush3.bf16.msra.mxu0 %v3098_v62  ;;  %v3171_v62 = vld [vmem:[%s3809_s1 + $0x418] sm:$0xff]  }
  0x65   : > { %2821 = vmatpush3.bf16.msra.mxu1 %v3099_v63  ;;  %2846 = vmatprep.subr.bf16.mxu0 %v3106_v4  ;;  %v3174_v63 = vld [vmem:[%s3337_s13 + $0x150] ss:$72 sps:$4 sm:$0xff]   ;;  %v3179_v4 = vld [vmem:[%s3809_s1 + $0x428] sm:$0xff]  }
  0x66   : > { %2886 = vmatprep.subr.bf16.mxu1 %v3107_v5  ;;  %v3182_v5 = vld [vmem:[%s3337_s13 + $0x1e0] ss:$72 sps:$4 sm:$0xff]  }
  0x67   : > { %2023 = vmatmul.mubr.bf16.vlgmr.msra.gmra.mrb[32].mxu0 %v3100_v0  ;;  %v3177_v0 = vld [vmem:[%s3809_s1 + $0x420] sm:$0xff]  }
  0x68   : > { %2088 = vmatmul.mubr.bf16.vlgmr.msra.gmra.mrb[32].mxu1 %v3103_v2  ;;  %2847 = vmatpush3.bf16.msra.mxu0 %v3108_v6  ;;  %v3180_v2 = vld [vmem:[%s3337_s13 + $0x1e4] ss:$72 sps:$4 sm:$0xff]   ;;  %v3185_v6 = vld [vmem:[%s3809_s1 + $0x430] sm:$0xff]  }
  0x69   : > { %2887 = vmatpush3.bf16.msra.mxu1 %v3109_v7  ;;  %2848 = vmatprep.subr.bf16.mxu0 %v3110_v8  ;;  %v3186_v7 = vld [vmem:[%s3337_s13 + $0x1e8] ss:$72 sps:$4 sm:$0xff]   ;;  %v3192_v8 = vld [vmem:[%s3337_s13 + $0x44] ss:$72 sps:$4 sm:$0xff]  }
  0x6a   : > { %2888 = vmatprep.subr.bf16.mxu1 %v3111_v9  ;;  %2030 = vmatprep.mubr.bf16.mxu0 %v3114_v12  ;;  %v3195_v9 = vld [vmem:[%s3337_s13 + $0x164] ss:$72 sps:$4 sm:$0xff]   ;;  %v3189_v12 = vld [vmem:[%s3809_s1 + $0x448] ss:$0 sps:$4 sm:$0xff]  }
  0x6b   : > { %2095 = vmatprep.mubr.bf16.mxu1 %v3116_v13  ;;  %v1728_v13 = vsel %vm1726_vm1, %v3189_v12, 0 }
  0x6c   : > { %2849 = vmatpush3.bf16.msra.mxu0 %v3112_v10  ;;  %v3187_v10 = vld [vmem:[%s3809_s1 + $0x438] sm:$0xff]  }
  0x6d   : > { %2889 = vmatpush3.bf16.msra.mxu1 %v3113_v11  ;;  %2850 = vmatprep.subr.bf16.mxu0 %v3120_v16  ;;  %v3188_v11 = vld [vmem:[%s3809_s1 + $0x440] sm:$0xff]   ;;  %v3196_v16 = vld [vmem:[%s3337_s13 + $0xd4] ss:$72 sps:$4 sm:$0xff]  }
  0x6e   : > { %2890 = vmatprep.subr.bf16.mxu1 %v3121_v17  ;;  %v3198_v17 = vld [vmem:[%s3337_s13 + $0x1f4] ss:$72 sps:$4 sm:$0xff]  }
  0x6f   : > { %2031 = vmatmul.mubr.bf16.gmra.mrb[36].mxu0 %v3118_v14  ;;  %v3190_v14 = vld [vmem:[%s3337_s13 + $0x40] ss:$72 sps:$4 sm:$0xff]  }
  0x70   : > { %2096 = vmatmul.mubr.bf16.gmra.mrb[36].mxu1 %v3119_v15  ;;  %2851 = vmatpush3.bf16.msra.mxu0 %v3122_v18  ;;  %v3193_v15 = vld [vmem:[%s3337_s13 + $0x160] ss:$72 sps:$4 sm:$0xff]   ;;  %v3200_v18 = vld [vmem:[%s3337_s13 + $0xd0] ss:$72 sps:$4 sm:$0xff]  }
  0x71   : > { %2891 = vmatpush3.bf16.msra.mxu1 %v3123_v19  ;;  %2852 = vmatprep.subr.bf16.mxu0 %v3124_v20  ;;  %v3201_v19 = vld [vmem:[%s3337_s13 + $0x1f0] ss:$72 sps:$4 sm:$0xff]   ;;  %s2388_s13 = sshll.u32 %s3813_s19, 3 }
  0x72   : > { %2892 = vmatprep.subr.bf16.mxu1 %v3125_v21  ;;  %2038 = vmatprep.mubr.bf16.mxu0 %v3128_v24  ;;  %s3787_s5 = scalar_lea.vmem %s3811_s3, %s2388_s13 }
  0x73   : > { %2103 = vmatprep.mubr.bf16.mxu1 %v3130_v25 }
  0x74   : > { %2853 = vmatpush3.bf16.msra.mxu0 %v3126_v22  ;;  %v2389_v22 = vld [vmem:[%s3810_s2] ss:$0 sm:$0xff] }
  0x75   : > { %2893 = vmatpush3.bf16.msra.mxu1 %v3127_v23  ;;  %2854 = vmatprep.subr.bf16.mxu0 %v3134_v28 }
  0x76   : > { %2894 = vmatprep.subr.bf16.mxu1 %v3135_v29 }
  0x77   : > { %2039 = vmatmul.mubr.bf16.gmra.mrb[40].mxu0 %v3132_v26 }
  0x78   : > { %2104 = vmatmul.mubr.bf16.gmra.mrb[40].mxu1 %v3133_v27  ;;  %2855 = vmatpush3.bf16.msra.mxu0 %v3136_v30 }
  0x79   : > { %2895 = vmatpush3.bf16.msra.mxu1 %v3137_v31  ;;  %2856 = vmatprep.subr.bf16.mxu0 %v3138_v32 }
  0x7a   : > { %2896 = vmatprep.subr.bf16.mxu1 %v3139_v33  ;;  %2046 = vmatprep.mubr.bf16.mxu0 %v3142_v36 }
  0x7b   : > { %2111 = vmatprep.mubr.bf16.mxu1 %v3144_v37 }
  0x7c   : > { %2857 = vmatpush3.bf16.msra.mxu0 %v3140_v34 }
  0x7d   : > { %2897 = vmatpush3.bf16.msra.mxu1 %v3141_v35  ;;  %2858 = vmatprep.subr.bf16.mxu0 %v3148_v40 }
  0x7e   : > { %2898 = vmatprep.subr.bf16.mxu1 %v3149_v41 }
  0x7f   : > { %2047 = vmatmul.mubr.bf16.gmra.mrb[44].mxu0 %v3146_v38 }
  0x80   : > { %2112 = vmatmul.mubr.bf16.gmra.mrb[44].mxu1 %v3147_v39  ;;  %2859 = vmatpush3.bf16.msra.mxu0 %v3150_v42 }
  0x81   : > { %2899 = vmatpush3.bf16.msra.mxu1 %v3151_v43  ;;  %2860 = vmatprep.subr.bf16.mxu0 %v3152_v44 }
  0x82   : > { %2900 = vmatprep.subr.bf16.mxu1 %v3153_v45  ;;  %2152 = vmatprep.mubr.bf16.mxu0 %v3158_v49 }
  0x83   : > { %2217 = vmatprep.mubr.bf16.mxu1 %v3161_v52 }
  0x84   : > { %2861 = vmatpush3.bf16.msra.mxu0 %v3154_v46 }
  0x85   : > { %2901 = vmatpush3.bf16.msra.mxu1 %v3155_v47  ;;  %2250 = vmatprep.subr.bf16.mxu0 %v3210_v50 }
  0x86   : > { %2926 = vmatprep.subr.bf16.mxu1 %v3210_v50 }
  0x87   : > { %2153 = vmatmul.mubr.bf16.vlgmr.msra.gmra.mrb[48].mxu0 %v3156_v48 }
  0x88   : > { %2218 = vmatmul.mubr.bf16.vlgmr.msra.gmra.mrb[48].mxu1 %v3159_v51  ;;  %2251 = vmatpush1.bf16.msra.mxu0 %v3162_v53 }
  0x89   : > { %2936 = vmatpush1.bf16.msra.mxu1 %v3162_v53  ;;  %2252 = vmatprep.subr.bf16.mxu0 %v3210_v50 }
  0x8a   : > { %2927 = vmatprep.subr.bf16.mxu1 %v3210_v50  ;;  %2160 = vmatprep.mubr.bf16.mxu0 %v3164_v55 }
  0x8b   : > { %2225 = vmatprep.mubr.bf16.mxu1 %v3167_v56 }
  0x8c   : > { %2253 = vmatpush1.bf16.msra.mxu0 %v3163_v54 }
  0x8d   : > { %2937 = vmatpush1.bf16.msra.mxu1 %v3163_v54  ;;  %2254 = vmatprep.subr.bf16.mxu0 %v3210_v50 }
  0x8e   : > { %2928 = vmatprep.subr.bf16.mxu1 %v3210_v50 }
  0x8f   : > { %2161 = vmatmul.mubr.bf16.gmra.mrb[52].mxu0 %v3166_v57 }
  0x90   : > { %2255 = vmatpush1.bf16.msra.mxu0 %v3169_v58  ;;  %2226 = vmatmul.mubr.bf16.gmra.mrb[52].mxu1 %v3170_v59 }
  0x91   : > { %2938 = vmatpush1.bf16.msra.mxu1 %v3169_v58  ;;  %2256 = vmatprep.subr.bf16.mxu0 %v3210_v50 }
  0x92   : > { %2929 = vmatprep.subr.bf16.mxu1 %v3210_v50  ;;  %2168 = vmatprep.mubr.bf16.mxu0 %v3172_v60 }
  0x93   : > { %2233 = vmatprep.mubr.bf16.mxu1 %v3175_v61 }
  0x94   : > { %2257 = vmatpush1.bf16.msra.mxu0 %v3171_v62 }
  0x95   : > { %2939 = vmatpush1.bf16.msra.mxu1 %v3171_v62  ;;  %2258 = vmatprep.subr.bf16.mxu0 %v3210_v50 }
  0x96   : > { %2930 = vmatprep.subr.bf16.mxu1 %v3210_v50 }
  0x97   : > { %2169 = vmatmul.mubr.bf16.gmra.mrb[56].mxu0 %v3174_v63 }
  0x98   : > { %2259 = vmatpush1.bf16.msra.mxu0 %v3177_v0  ;;  %2234 = vmatmul.mubr.bf16.gmra.mrb[56].mxu1 %v3178_v1 }
  0x99   : > { %2940 = vmatpush1.bf16.msra.mxu1 %v3177_v0  ;;  %2260 = vmatprep.subr.bf16.mxu0 %v3210_v50 }
  0x9a   : > { %2931 = vmatprep.subr.bf16.mxu1 %v3210_v50  ;;  %2176 = vmatprep.mubr.bf16.mxu0 %v3180_v2 }
  0x9b   : > { %2241 = vmatprep.mubr.bf16.mxu1 %v3183_v3 }
  0x9c   : > { %2261 = vmatpush1.bf16.msra.mxu0 %v3179_v4 }
  0x9d   : > { %2941 = vmatpush1.bf16.msra.mxu1 %v3179_v4  ;;  %2262 = vmatprep.subr.bf16.mxu0 %v3210_v50 }
  0x9e   : > { %2932 = vmatprep.subr.bf16.mxu1 %v3210_v50 }
  0x9f   : > { %2177 = vmatmul.mubr.bf16.gmra.mrb[60].mxu0 %v3182_v5 }
  0xa0   : > { %2263 = vmatpush1.bf16.msra.mxu0 %v3185_v6  ;;  %2242 = vmatmul.mubr.bf16.gmra.mrb[60].mxu1 %v3186_v7 }
  0xa1   : > { %2942 = vmatpush1.bf16.msra.mxu1 %v3185_v6  ;;  %2264 = vmatprep.subr.bf16.mxu0 %v3210_v50 }
  0xa2   : > { %2933 = vmatprep.subr.bf16.mxu1 %v3210_v50  ;;  %2600 = vmatprep.mubr.msk.bf16.mxu0 %vm1713_vm0, %v3192_v8 }
  0xa3   : > { %2602 = vmatprep.mubr.msk.bf16.mxu1 %vm1713_vm0, %v3195_v9 }
  0xa4   : > { %2265 = vmatpush1.bf16.msra.mxu0 %v3187_v10 }
  0xa5   : > { %2943 = vmatpush1.bf16.msra.mxu1 %v3187_v10  ;;  %2266 = vmatprep.subr.bf16.mxu0 %v3210_v50 }
  0xa6   : > { %2934 = vmatprep.subr.bf16.mxu1 %v3210_v50 }
  0xa8   : > { %2267 = vmatpush1.bf16.msra.mxu0 %v3188_v11 }
  0xa9   : > { %2944 = vmatpush1.bf16.msra.mxu1 %v3188_v11  ;;  %2268 = vmatprep.subr.bf16.mxu0 %v3210_v50 }
  0xaa   : > { %2935 = vmatprep.subr.bf16.mxu1 %v3210_v50 }
  0xac   : > { %2269 = vmatpush1.bf16.msra.mxu0 %v1728_v13 }
  0xad   : > { %2945 = vmatpush1.bf16.msra.mxu1 %v1728_v13 }
  0xaf   : > { %2283 = vmatmul.mubr.bf16.vlgmr.msra.gmra.mrb[64].mxu0 %v3190_v14 }
  0xb0   : > { %2299 = vmatmul.mubr.bf16.vlgmr.msra.gmra.mrb[64].mxu1 %v3193_v15  ;;  %2601 = vmatprep.mubr.msk.bf16.mxu0 %vm1713_vm0, %v3196_v16 }
  0xb1   : > { %2603 = vmatprep.mubr.msk.bf16.mxu1 %vm1713_vm0, %v3198_v17 }
  0xb7   : > { %2291 = vmatmul.mubr.bf16.gmra.mrb[68].mxu0 %v3200_v18 }
  0xb8   : > { %2307 = vmatmul.mubr.bf16.gmra.mrb[68].mxu1 %v3201_v19 }
  0xfa   : > { %v2622_v20 = vpop.f32.mrb[0].mxu0 }
  0xfb   : > { %v2662_v21 = vpop.f32.mrb[0].mxu1  ;;  %v2623_v23 = vpop.f32.mrb[1].mxu0 }
  0xfc   : > { %v2624_v24 = vadd.f32 %v2623_v23, %v2622_v20  ;;  %v2663_v25 = vpop.f32.mrb[1].mxu1  ;;  %v2625_v26 = vpop.f32.mrb[2].mxu0 }
  0xfd   : > { %v2664_v27 = vadd.f32 %v2663_v25, %v2662_v21  ;;  %v2665_v28 = vpop.f32.mrb[2].mxu1  ;;  %v2626_v29 = vpop.f32.mrb[3].mxu0 }
  0xfe   : > { %v1765_v30 = vadd.f32 %v2624_v24, %v2389_v22  ;;  %v2627_v31 = vadd.f32 %v2626_v29, %v2625_v26  ;;  %v2666_v32 = vpop.f32.mrb[3].mxu1 }
  0xff   : > { %v2667_v33 = vadd.f32 %v2666_v32, %v2665_v28 }
 0x100   : > { %v1830_v34 = vadd.f32 %v2664_v27, %v1765_v30  ;;  %v1768_v35 = vadd.f32 %v2627_v31, %v2389_v22 }
 0x102   : > { %v1833_v36 = vadd.f32 %v2667_v33, %v1768_v35  ;;  %v2628_v37 = vpop.f32.mrb[4].mxu0 }
 0x103   : > { %v2668_v38 = vpop.f32.mrb[4].mxu1  ;;  %v2629_v39 = vpop.f32.mrb[5].mxu0 }
 0x104   : > { %v2630_v40 = vadd.f32 %v2629_v39, %v2628_v37  ;;  %v2669_v41 = vpop.f32.mrb[5].mxu1  ;;  %v2631_v42 = vpop.f32.mrb[6].mxu0 }
 0x105   : > { %v2670_v43 = vadd.f32 %v2669_v41, %v2668_v38  ;;  %v2671_v44 = vpop.f32.mrb[6].mxu1  ;;  %v2632_v45 = vpop.f32.mrb[7].mxu0 }
 0x106   : > { %v1773_v46 = vadd.f32 %v2630_v40, %v2389_v22  ;;  %v2633_v47 = vadd.f32 %v2632_v45, %v2631_v42  ;;  %v2672_v48 = vpop.f32.mrb[7].mxu1 }
 0x107   : > { %v2673_v49 = vadd.f32 %v2672_v48, %v2671_v44 }
 0x108   : > { %v1838_v50 = vadd.f32 %v2670_v43, %v1773_v46  ;;  %v1776_v51 = vadd.f32 %v2633_v47, %v2389_v22 }
 0x10a   : > { %v3762_v52 = vadd.f32 %v2673_v49, %v1776_v51  ;;  %v2634_v53 = vpop.f32.mrb[8].mxu0 }
 0x10b   : > { %v2674_v54 = vpop.f32.mrb[8].mxu1  ;;  %v2635_v55 = vpop.f32.mrb[9].mxu0 }
 0x10c   : > { %v2636_v56 = vadd.f32 %v2635_v55, %v2634_v53  ;;  %v2675_v57 = vpop.f32.mrb[9].mxu1  ;;  %v2637_v58 = vpop.f32.mrb[10].mxu0 }
 0x10d   : > { %v2676_v59 = vadd.f32 %v2675_v57, %v2674_v54  ;;  %v2677_v60 = vpop.f32.mrb[10].mxu1  ;;  %v2638_v61 = vpop.f32.mrb[11].mxu0 }
 0x10e   : > { %v1781_v62 = vadd.f32 %v2636_v56, %v2389_v22  ;;  %v2639_v63 = vadd.f32 %v2638_v61, %v2637_v58  ;;  %v2678_v0 = vpop.f32.mrb[11].mxu1 }
 0x10f   : > { %v2679_v1 = vadd.f32 %v2678_v0, %v2677_v60 }
 0x110   : > { %v1846_v2 = vadd.f32 %v2676_v59, %v1781_v62  ;;  %v1784_v3 = vadd.f32 %v2639_v63, %v2389_v22 }
 0x112   : > { %v3764_v4 = vadd.f32 %v2679_v1, %v1784_v3  ;;  %v2640_v5 = vpop.f32.mrb[12].mxu0 }
 0x113   : > { %v2680_v6 = vpop.f32.mrb[12].mxu1  ;;  %v2641_v7 = vpop.f32.mrb[13].mxu0 }
 0x114   : > { %v2681_v8 = vpop.f32.mrb[13].mxu1  ;;  %v2642_v9 = vadd.f32 %v2641_v7, %v2640_v5  ;;  %v2643_v11 = vpop.f32.mrb[14].mxu0 }
 0x115   : > { %v2682_v10 = vadd.f32 %v2681_v8, %v2680_v6  ;;  %v2683_v12 = vpop.f32.mrb[14].mxu1  ;;  %v2644_v13 = vpop.f32.mrb[15].mxu0 }
 0x116   : > { %v2684_v14 = vpop.f32.mrb[15].mxu1  ;;  %v1789_v15 = vadd.f32 %v2642_v9, %v2389_v22  ;;  %v2645_v16 = vadd.f32 %v2644_v13, %v2643_v11 }
 0x117   : > { %v2685_v17 = vadd.f32 %v2684_v14, %v2683_v12 }
 0x118   : > { %v1854_v18 = vadd.f32 %v2682_v10, %v1789_v15  ;;  %v1792_v19 = vadd.f32 %v2645_v16, %v2389_v22 }
 0x11a   : > { %v3766_v20 = vadd.f32 %v2685_v17, %v1792_v19  ;;  %v2702_v21 = vpop.f32.mrb[16].mxu0 }
 0x11b   : > { %v2703_v23 = vpop.f32.mrb[17].mxu0  ;;  %v2742_v24 = vpop.f32.mrb[16].mxu1 }
 0x11c   : > { %v2704_v25 = vadd.f32 %v2703_v23, %v2702_v21  ;;  %v2705_v26 = vpop.f32.mrb[18].mxu0  ;;  %v2743_v27 = vpop.f32.mrb[17].mxu1 }
 0x11d   : > { %v2706_v28 = vpop.f32.mrb[19].mxu0  ;;  %v2744_v30 = vadd.f32 %v2743_v27, %v2742_v24  ;;  %v2745_v31 = vpop.f32.mrb[18].mxu1 }
 0x11e   : > { %v1895_v29 = vadd.f32 %v2704_v25, %v1830_v34  ;;  %v2707_v32 = vadd.f32 %v2706_v28, %v2705_v26  ;;  %v2746_v33 = vpop.f32.mrb[19].mxu1 }
 0x11f   : > { %v2747_v38 = vadd.f32 %v2746_v33, %v2745_v31 }
 0x120   : > { %v1960_v35 = vadd.f32 %v2744_v30, %v1895_v29  ;;  %v1898_v37 = vadd.f32 %v2707_v32, %v1833_v36 }
 0x122   : > { %v3768_v39 = vadd.f32 %v2747_v38, %v1898_v37  ;;  %v2708_v22 = vpop.f32.mrb[20].mxu0 }
 0x123   : > { %v2748_v40 = vpop.f32.mrb[20].mxu1  ;;  %v2709_v41 = vpop.f32.mrb[21].mxu0 }
 0x124   : > { %v2710_v42 = vadd.f32 %v2709_v41, %v2708_v22  ;;  %v2749_v43 = vpop.f32.mrb[21].mxu1  ;;  %v2711_v44 = vpop.f32.mrb[22].mxu0 }
 0x125   : > { %v2750_v45 = vadd.f32 %v2749_v43, %v2748_v40  ;;  %v2751_v46 = vpop.f32.mrb[22].mxu1  ;;  %v2712_v47 = vpop.f32.mrb[23].mxu0 }
 0x126   : > { %v1903_v48 = vadd.f32 %v2710_v42, %v1838_v50  ;;  %v2713_v34 = vadd.f32 %v2712_v47, %v2711_v44  ;;  %v2752_v49 = vpop.f32.mrb[23].mxu1 }
 0x127   : > { %v2753_v51 = vadd.f32 %v2752_v49, %v2751_v46 }
 0x128   : > { %v1968_v53 = vadd.f32 %v2750_v45, %v1903_v48  ;;  %v1906_v54 = vadd.f32 %v2713_v34, %v3762_v52 }
 0x12a   : > { %v3771_v36 = vadd.f32 %v2753_v51, %v1906_v54  ;;  %v2714_v55 = vpop.f32.mrb[24].mxu0 }
 0x12b   : > { %v2754_v56 = vpop.f32.mrb[24].mxu1  ;;  %v2715_v57 = vpop.f32.mrb[25].mxu0 }
 0x12c   : > { %v2755_v58 = vpop.f32.mrb[25].mxu1  ;;  %v2716_v59 = vadd.f32 %v2715_v57, %v2714_v55  ;;  %v2717_v61 = vpop.f32.mrb[26].mxu0 }
 0x12d   : > { %v2756_v60 = vadd.f32 %v2755_v58, %v2754_v56  ;;  %v2757_v62 = vpop.f32.mrb[26].mxu1  ;;  %v2718_v63 = vpop.f32.mrb[27].mxu0 }
 0x12e   : > { %v2758_v0 = vpop.f32.mrb[27].mxu1  ;;  %v1911_v1 = vadd.f32 %v2716_v59, %v1846_v2  ;;  %v2719_v50 = vadd.f32 %v2718_v63, %v2717_v61 }
 0x12f   : > { %v2759_v3 = vadd.f32 %v2758_v0, %v2757_v62 }
 0x130   : > { %v1976_v5 = vadd.f32 %v2756_v60, %v1911_v1  ;;  %v1914_v6 = vadd.f32 %v2719_v50, %v3764_v4 }
 0x132   : > { %v3774_v7 = vadd.f32 %v2759_v3, %v1914_v6  ;;  %v2720_v52 = vpop.f32.mrb[28].mxu0 }
 0x133   : > { %v2760_v8 = vpop.f32.mrb[28].mxu1  ;;  %v2721_v9 = vpop.f32.mrb[29].mxu0 }
 0x134   : > { %v2722_v10 = vadd.f32 %v2721_v9, %v2720_v52  ;;  %v2761_v11 = vpop.f32.mrb[29].mxu1  ;;  %v2723_v12 = vpop.f32.mrb[30].mxu0 }
 0x135   : > { %v2762_v13 = vadd.f32 %v2761_v11, %v2760_v8  ;;  %v2763_v14 = vpop.f32.mrb[30].mxu1  ;;  %v2724_v15 = vpop.f32.mrb[31].mxu0 }
 0x136   : > { %v1919_v16 = vadd.f32 %v2722_v10, %v1854_v18  ;;  %v2725_v17 = vadd.f32 %v2724_v15, %v2723_v12  ;;  %v2764_v19 = vpop.f32.mrb[31].mxu1 }
 0x137   : > { %v2765_v2 = vadd.f32 %v2764_v19, %v2763_v14 }
 0x138   : > { %v1984_v21 = vadd.f32 %v2762_v13, %v1919_v16  ;;  %v1922_v23 = vadd.f32 %v2725_v17, %v3766_v20 }
 0x13a   : > { %v3777_v24 = vadd.f32 %v2765_v2, %v1922_v23  ;;  %v2782_v4 = vpop.f32.mrb[32].mxu0 }
 0x13b   : > { %v2822_v25 = vpop.f32.mrb[32].mxu1  ;;  %v2783_v26 = vpop.f32.mrb[33].mxu0 }
 0x13c   : > { %v2784_v27 = vadd.f32 %v2783_v26, %v2782_v4  ;;  %v2823_v28 = vpop.f32.mrb[33].mxu1  ;;  %v2785_v29 = vpop.f32.mrb[34].mxu0 }
 0x13d   : > { %v2824_v30 = vadd.f32 %v2823_v28, %v2822_v25  ;;  %v2825_v31 = vpop.f32.mrb[34].mxu1  ;;  %v2786_v32 = vpop.f32.mrb[35].mxu0 }
 0x13e   : > { %v2025_v33 = vadd.f32 %v2784_v27, %v1960_v35  ;;  %v2787_v37 = vadd.f32 %v2786_v32, %v2785_v29  ;;  %v2826_v18 = vpop.f32.mrb[35].mxu1 }
 0x13f   : > { %v2827_v38 = vadd.f32 %v2826_v18, %v2825_v31 }
 0x140   : > { %v2090_v22 = vadd.f32 %v2824_v30, %v2025_v33  ;;  %v2028_v40 = vadd.f32 %v2787_v37, %v3768_v39 }
 0x142   : > { %v2093_v41 = vadd.f32 %v2827_v38, %v2028_v40  ;;  %v2788_v20 = vpop.f32.mrb[36].mxu0 }
 0x143   : > { %v2828_v42 = vpop.f32.mrb[36].mxu1  ;;  %v2789_v43 = vpop.f32.mrb[37].mxu0 }
 0x144   : > { %v2829_v44 = vpop.f32.mrb[37].mxu1  ;;  %v2790_v45 = vadd.f32 %v2789_v43, %v2788_v20  ;;  %v2791_v47 = vpop.f32.mrb[38].mxu0 }
 0x145   : > { %v2830_v46 = vadd.f32 %v2829_v44, %v2828_v42  ;;  %v2831_v48 = vpop.f32.mrb[38].mxu1  ;;  %v2792_v34 = vpop.f32.mrb[39].mxu0 }
 0x146   : > { %v2832_v49 = vpop.f32.mrb[39].mxu1  ;;  %v2033_v51 = vadd.f32 %v2790_v45, %v1968_v53  ;;  %v2793_v54 = vadd.f32 %v2792_v34, %v2791_v47 }
 0x147   : > { %v2833_v35 = vadd.f32 %v2832_v49, %v2831_v48 }
 0x148   : > { %v2098_v55 = vadd.f32 %v2830_v46, %v2033_v51  ;;  %v2036_v56 = vadd.f32 %v2793_v54, %v3771_v36 }
 0x14a   : > { %v2101_v57 = vadd.f32 %v2833_v35, %v2036_v56  ;;  %v2794_v58 = vpop.f32.mrb[40].mxu0 }
 0x14b   : > { %v2834_v39 = vpop.f32.mrb[40].mxu1  ;;  %v2795_v59 = vpop.f32.mrb[41].mxu0 }
 0x14c   : > { %v2796_v60 = vadd.f32 %v2795_v59, %v2794_v58  ;;  %v2835_v61 = vpop.f32.mrb[41].mxu1  ;;  %v2797_v62 = vpop.f32.mrb[42].mxu0 }
 0x14d   : > { %v2836_v63 = vadd.f32 %v2835_v61, %v2834_v39  ;;  %v2837_v0 = vpop.f32.mrb[42].mxu1  ;;  %v2798_v1 = vpop.f32.mrb[43].mxu0 }
 0x14e   : > { %v2041_v50 = vadd.f32 %v2796_v60, %v1976_v5  ;;  %v2799_v3 = vadd.f32 %v2798_v1, %v2797_v62  ;;  %v2838_v6 = vpop.f32.mrb[43].mxu1 }
 0x14f   : > { %v2839_v52 = vadd.f32 %v2838_v6, %v2837_v0 }
 0x150   : > { %v2106_v53 = vadd.f32 %v2836_v63, %v2041_v50  ;;  %v2044_v8 = vadd.f32 %v2799_v3, %v3774_v7 }
 0x152   : > { %v2109_v9 = vadd.f32 %v2839_v52, %v2044_v8  ;;  %v2800_v10 = vpop.f32.mrb[44].mxu0 }
 0x153   : > { %v2840_v36 = vpop.f32.mrb[44].mxu1  ;;  %v2801_v11 = vpop.f32.mrb[45].mxu0 }
 0x154   : > { %v2802_v12 = vadd.f32 %v2801_v11, %v2800_v10  ;;  %v2841_v13 = vpop.f32.mrb[45].mxu1  ;;  %v2803_v14 = vpop.f32.mrb[46].mxu0 }
 0x155   : > { %v2842_v15 = vadd.f32 %v2841_v13, %v2840_v36  ;;  %v2843_v16 = vpop.f32.mrb[46].mxu1  ;;  %v2804_v17 = vpop.f32.mrb[47].mxu0 }
 0x156   : > { %v2049_v19 = vadd.f32 %v2802_v12, %v1984_v21  ;;  %v2805_v2 = vadd.f32 %v2804_v17, %v2803_v14  ;;  %v2844_v23 = vpop.f32.mrb[47].mxu1 }
 0x157   : > { %v2845_v5 = vadd.f32 %v2844_v23, %v2843_v16 }
 0x158   : > { %v2114_v4 = vadd.f32 %v2842_v15, %v2049_v19  ;;  %v2052_v25 = vadd.f32 %v2805_v2, %v3777_v24 }
 0x15a   : > { %v2117_v26 = vadd.f32 %v2845_v5, %v2052_v25  ;;  %v2862_v27 = vpop.f32.mrb[48].mxu0 }
 0x15b   : > { %v2902_v7 = vpop.f32.mrb[48].mxu1  ;;  %v2863_v28 = vpop.f32.mrb[49].mxu0 }
 0x15c   : > { %v2864_v29 = vadd.f32 %v2863_v28, %v2862_v27  ;;  %v2903_v30 = vpop.f32.mrb[49].mxu1  ;;  %v2865_v31 = vpop.f32.mrb[50].mxu0 }
 0x15d   : > { %v2904_v32 = vadd.f32 %v2903_v30, %v2902_v7  ;;  %v2905_v33 = vpop.f32.mrb[50].mxu1  ;;  %v2866_v37 = vpop.f32.mrb[51].mxu0 }
 0x15e   : > { %v2155_v18 = vadd.f32 %v2864_v29, %v2090_v22  ;;  %v2867_v38 = vadd.f32 %v2866_v37, %v2865_v31  ;;  %v2906_v40 = vpop.f32.mrb[51].mxu1 }
 0x15f   : > { %v2907_v21 = vadd.f32 %v2906_v40, %v2905_v33 }
 0x160   : > { %v2158_v20 = vadd.f32 %v2867_v38, %v2093_v41  ;;  %v2220_v42 = vadd.f32 %v2904_v32, %v2155_v18 }
 0x162   : > { %v2868_v43 = vpop.f32.mrb[52].mxu0  ;;  %v2223_v44 = vadd.f32 %v2907_v21, %v2158_v20 }
 0x163   : > { %v2869_v45 = vpop.f32.mrb[53].mxu0  ;;  %v2908_v24 = vpop.f32.mrb[52].mxu1 }
 0x164   : > { %v2870_v46 = vadd.f32 %v2869_v45, %v2868_v43  ;;  %v2871_v47 = vpop.f32.mrb[54].mxu0  ;;  %v2909_v48 = vpop.f32.mrb[53].mxu1 }
 0x165   : > { %v2872_v34 = vpop.f32.mrb[55].mxu0  ;;  %v2910_v49 = vadd.f32 %v2909_v48, %v2908_v24  ;;  %v2911_v51 = vpop.f32.mrb[54].mxu1 }
 0x166   : > { %v2163_v54 = vadd.f32 %v2870_v46, %v2098_v55  ;;  %v2873_v35 = vadd.f32 %v2872_v34, %v2871_v47  ;;  %v2912_v56 = vpop.f32.mrb[55].mxu1 }
 0x167   : > { %v2913_v58 = vadd.f32 %v2912_v56, %v2911_v51 }
 0x168   : > { %v2166_v22 = vadd.f32 %v2873_v35, %v2101_v57  ;;  %v2228_v39 = vadd.f32 %v2910_v49, %v2163_v54 }
 0x16a   : > { %v2874_v59 = vpop.f32.mrb[56].mxu0  ;;  %v2231_v60 = vadd.f32 %v2913_v58, %v2166_v22 }
 0x16b   : > { %v2875_v41 = vpop.f32.mrb[57].mxu0  ;;  %v2914_v61 = vpop.f32.mrb[56].mxu1 }
 0x16c   : > { %v2876_v62 = vadd.f32 %v2875_v41, %v2874_v59  ;;  %v2877_v63 = vpop.f32.mrb[58].mxu0  ;;  %v2915_v0 = vpop.f32.mrb[57].mxu1 }
 0x16d   : > { %v2878_v1 = vpop.f32.mrb[59].mxu0  ;;  %v2916_v50 = vadd.f32 %v2915_v0, %v2914_v61  ;;  %v2917_v3 = vpop.f32.mrb[58].mxu1 }
 0x16e   : > { %v2171_v6 = vadd.f32 %v2876_v62, %v2106_v53  ;;  %v2879_v52 = vadd.f32 %v2878_v1, %v2877_v63  ;;  %v2918_v8 = vpop.f32.mrb[59].mxu1 }
 0x16f   : > { %v2919_v10 = vadd.f32 %v2918_v8, %v2917_v3 }
 0x170   : > { %v2174_v55 = vadd.f32 %v2879_v52, %v2109_v9  ;;  %v2236_v36 = vadd.f32 %v2916_v50, %v2171_v6 }
 0x172   : > { %v2880_v11 = vpop.f32.mrb[60].mxu0  ;;  %v2239_v12 = vadd.f32 %v2919_v10, %v2174_v55 }
 0x173   : > { %v2881_v57 = vpop.f32.mrb[61].mxu0  ;;  %v2920_v13 = vpop.f32.mrb[60].mxu1 }
 0x174   : > { %v2882_v14 = vadd.f32 %v2881_v57, %v2880_v11  ;;  %v2883_v15 = vpop.f32.mrb[62].mxu0  ;;  %v2921_v16 = vpop.f32.mrb[61].mxu1 }
 0x175   : > { %v2884_v17 = vpop.f32.mrb[63].mxu0  ;;  %v2922_v19 = vadd.f32 %v2921_v16, %v2920_v13  ;;  %v2923_v2 = vpop.f32.mrb[62].mxu1 }
 0x176   : > { %v2179_v23 = vadd.f32 %v2882_v14, %v2114_v4  ;;  %v2885_v5 = vadd.f32 %v2884_v17, %v2883_v15  ;;  %v2924_v25 = vpop.f32.mrb[63].mxu1 }
 0x177   : > { %v2925_v53 = vadd.f32 %v2924_v25, %v2923_v2 }
 0x178   : > { %v2182_v27 = vadd.f32 %v2885_v5, %v2117_v26  ;;  %v2244_v7 = vadd.f32 %v2922_v19, %v2179_v23 }
 0x17a   : > { %v2247_v28 = vadd.f32 %v2925_v53, %v2182_v27 }
 0x182   : > { %v2284_v9 = vpop.f32.mrb[64].mxu0 }
 0x183   : > { %v2285_v29 = vadd.f32 %v2284_v9, %v2220_v42  ;;  %v2300_v4 = vpop.f32.mrb[64].mxu1  ;;  %v2286_v30 = vpop.f32.mrb[65].mxu0 }
 0x184   : > { %v2301_v31 = vadd.f32 %v2300_v4, %v2236_v36  ;;  %v2302_v32 = vpop.f32.mrb[65].mxu1  ;;  %v2287_v26 = vpop.f32.mrb[66].mxu0 }
 0x185   : > { %2316 = vst.msk [vmem:[%s3787_s5] sm:$0xff] %vm2315_vm2, %v2285_v29  ;;  %v2288_v33 = vadd.f32 %v2287_v26, %v2223_v44  ;;  %v2303_v37 = vpop.f32.mrb[66].mxu1  ;;  %v2289_v18 = vpop.f32.mrb[67].mxu0 }
 0x186   : > { %2320 = vst.msk [vmem:[%s3787_s5 + $0x20] sm:$0xff] %vm2315_vm2, %v2301_v31  ;;  %v2304_v38 = vadd.f32 %v2303_v37, %v2239_v12  ;;  %v2305_v40 = vpop.f32.mrb[67].mxu1 }
 0x187   : > { %2317 = vst.msk [vmem:[%s3787_s5 + $0x8] sm:$0xff] %vm2315_vm2, %v2288_v33 }
 0x188   : > { %2321 = vst.msk [vmem:[%s3787_s5 + $0x28] sm:$0xff] %vm2315_vm2, %v2304_v38 }
 0x18a   : > { %v2292_v21 = vpop.f32.mrb[68].mxu0 }
 0x18b   : > { %v2293_v20 = vadd.f32 %v2292_v21, %v2228_v39  ;;  %v2308_v42 = vpop.f32.mrb[68].mxu1  ;;  %v2294_v43 = vpop.f32.mrb[69].mxu0 }
 0x18c   : > { %v2309_v45 = vadd.f32 %v2308_v42, %v2244_v7  ;;  %v2310_v24 = vpop.f32.mrb[69].mxu1  ;;  %v2295_v44 = vpop.f32.mrb[70].mxu0 }
 0x18d   : > { %2318 = vst.msk [vmem:[%s3787_s5 + $0x10] sm:$0xff] %vm2315_vm2, %v2293_v20  ;;  %v2296_v46 = vadd.f32 %v2295_v44, %v2231_v60  ;;  %v2311_v47 = vpop.f32.mrb[70].mxu1  ;;  %v2297_v48 = vpop.f32.mrb[71].mxu0 }
 0x18e   : > { %2322 = vst.msk [vmem:[%s3787_s5 + $0x30] sm:$0xff] %vm2315_vm2, %v2309_v45  ;;  %v2312_v34 = vadd.f32 %v2311_v47, %v2247_v28  ;;  %v2313_v49 = vpop.f32.mrb[71].mxu1 }
 0x18f   : > { %2319 = vst.msk [vmem:[%s3787_s5 + $0x18] sm:$0xff] %vm2315_vm2, %v2296_v46 }
 0x190   : > { %2323 = vst.msk [vmem:[%s3787_s5 + $0x38] sm:$0xff] %vm2315_vm2, %v2312_v34 }
 0x191 PF: > { %s13_s12 = sadd.s32 1, %s3208_s12  }
 0x192   : > { %p10_p4 = scmp.ge.s32.totalorder %s13_s12, 4  }
 0x194   :  { %12 = sbr.rel (!%p10_p4) target bundleno = 1 (0x1), region = 62 }

// kernel: net_forward.28
= control target key start
LH: loop header
LB: loop body
LE: loop exit
PB: predicated region body
PF: predicated region fallthrough
CT: control target
= control target key end

     0   :  { %v30_v0 = vlaneseq  ;;  %v287_v1 = vmov 1983009808   ;;  %vm197_vm0 = vcmask 1041408   ;;  %s387_s0 = inlined_call_operand.vmem [shape: f32[9,2,384], index: 0, kind: input, shape index: {}]   ;;  %s388_s1 = inlined_call_operand.vmem [shape: f32[2,384], index: 1, kind: output, shape index: {}]  }
   0x1   :  { %v28_v2 = vunpack.c.l.s4 %v287_v1  ;;  %v8_v5 = vld [vmem:[%s387_s0] sm:$0x3f]  ;;  %v9_v6 = vld [vmem:[%s387_s0 + $0x6] sm:$0x3f]  ;;  %v10_v8 = vld [vmem:[%s387_s0 + $0xc] sm:$0x3f] }
   0x2   :  { %v31_v4 = vshrl.u32 %v30_v0, 7  ;;  %v11_v9 = vld [vmem:[%s387_s0 + $0x12] sm:$0x3f]  ;;  %v26_v10 = vcombine.high %v8_v5, %v8_v5  ;;  %v12_v11 = vld [vmem:[%s387_s0 + $0x18] sm:$0x3f]  ;;  %v42_v13 = vcombine.high %v9_v6, %v9_v6  ;;  %v58_v15 = vcombine.high %v10_v8, %v10_v8 }
   0x3   :  { %v29_v3 = vunpack.c.0.s8 %v28_v2  ;;  %v13_v16 = vld [vmem:[%s387_s0 + $0x1e] sm:$0x3f]  ;;  %v14_v17 = vld [vmem:[%s387_s0 + $0x24] sm:$0x3f]  ;;  %v74_v19 = vcombine.high %v11_v9, %v11_v9  ;;  %v327_v20 = vld [vmem:[%s387_s0 + $0x2a] sm:$0x3f]  ;;  %v90_v23 = vcombine.high %v12_v11, %v12_v11 }
   0x4   :  { %v332_v21 = vld [vmem:[%s387_s0 + $0x30] sm:$0x3f]  ;;  %v106_v24 = vcombine.high %v13_v16, %v13_v16  ;;  %v122_v25 = vcombine.high %v14_v17, %v14_v17  ;;  %v138_v28 = vcombine.high %v327_v20, %v327_v20 }
   0x5   :  { %v304_v7 = vsub.s32 %v29_v3, %v31_v4  ;;  %v154_v29 = vcombine.high %v332_v21, %v332_v21 }
   0x7   :  { %v33_v12 = vrot.slane %v8_v5, %v304_v7  ;;  %v49_v14 = vrot.slane %v9_v6, %v304_v7  ;;  %v65_v18 = vrot.slane %v10_v8, %v304_v7  ;;  %v81_v22 = vrot.slane %v11_v9, %v304_v7 }
   0x8   :  { %v40_v26 = vrot.slane %v26_v10, %v304_v7  ;;  %v97_v27 = vrot.slane %v12_v11, %v304_v7  ;;  %v56_v31 = vrot.slane %v42_v13, %v304_v7  ;;  %v72_v33 = vrot.slane %v58_v15, %v304_v7 }
   0x9   :  { %v41_v30 = vcombine.high %v33_v12, %v33_v12  ;;  %v57_v32 = vcombine.high %v49_v14, %v49_v14  ;;  %v73_v34 = vcombine.high %v65_v18, %v65_v18  ;;  %v113_v35 = vrot.slane %v13_v16, %v304_v7 }
   0xa   :  { %v198_v36 = vsel %vm197_vm0, %v33_v12, 0.0  ;;  %v199_v37 = vsel %vm197_vm0, %v49_v14, 0.0  ;;  %v89_v38 = vcombine.high %v81_v22, %v81_v22  ;;  %v129_v39 = vrot.slane %v14_v17, %v304_v7 }
   0xb   :  { %v200_v40 = vadd.f32 %v199_v37, %v198_v36  ;;  %v201_v41 = vsel %vm197_vm0, %v65_v18, 0.0  ;;  %v88_v42 = vrot.slane %v74_v19, %v304_v7  ;;  %v104_v43 = vrot.slane %v90_v23, %v304_v7 }
   0xc   :  { %v105_v44 = vcombine.high %v97_v27, %v97_v27  ;;  %v203_v45 = vsel %vm197_vm0, %v81_v22, 0.0  ;;  %v145_v46 = vrot.slane %v327_v20, %v304_v7  ;;  %v215_v48 = vsel %vm197_vm0, %v41_v30, 0.0 }
   0xd   :  { %v202_v47 = vadd.f32 %v201_v41, %v200_v40  ;;  %v216_v49 = vsel %vm197_vm0, %v57_v32, 0.0  ;;  %v121_v50 = vcombine.high %v113_v35, %v113_v35  ;;  %v205_v51 = vsel %vm197_vm0, %v97_v27, 0.0 }
   0xe   :  { %v217_v52 = vadd.f32 %v216_v49, %v215_v48  ;;  %v218_v53 = vsel %vm197_vm0, %v73_v34, 0.0  ;;  %v137_v54 = vcombine.high %v129_v39, %v129_v39  ;;  %v161_v55 = vrot.slane %v332_v21, %v304_v7 }
   0xf   :  { %v204_v56 = vadd.f32 %v203_v45, %v202_v47  ;;  %v220_v57 = vsel %vm197_vm0, %v89_v38, 0.0  ;;  %v207_v58 = vsel %vm197_vm0, %v113_v35, 0.0  ;;  %v232_v60 = vsel %vm197_vm0, %v40_v26, 0.0 }
  0x10   :  { %v219_v59 = vadd.f32 %v218_v53, %v217_v52  ;;  %v233_v61 = vsel %vm197_vm0, %v56_v31, 0.0  ;;  %v222_v63 = vsel %vm197_vm0, %v105_v44, 0.0  ;;  %v235_v1 = vsel %vm197_vm0, %v72_v33, 0.0 }
  0x11   :  { %v206_v62 = vadd.f32 %v205_v51, %v204_v56  ;;  %v234_v0 = vadd.f32 %v233_v61, %v232_v60  ;;  %v120_v2 = vrot.slane %v106_v24, %v304_v7  ;;  %v209_v3 = vsel %vm197_vm0, %v129_v39, 0.0 }
  0x12   :  { %v221_v4 = vadd.f32 %v220_v57, %v219_v59  ;;  %v237_v5 = vsel %vm197_vm0, %v88_v42, 0.0  ;;  %v153_v6 = vcombine.high %v145_v46, %v145_v46  ;;  %v224_v9 = vsel %vm197_vm0, %v121_v50, 0.0 }
  0x13   :  { %v208_v8 = vadd.f32 %v207_v58, %v206_v62  ;;  %v236_v10 = vadd.f32 %v235_v1, %v234_v0  ;;  %v136_v11 = vrot.slane %v122_v25, %v304_v7  ;;  %v211_v12 = vsel %vm197_vm0, %v145_v46, 0.0 }
  0x14   :  { %v223_v13 = vadd.f32 %v222_v63, %v221_v4  ;;  %v239_v14 = vsel %vm197_vm0, %v104_v43, 0.0  ;;  %v169_v15 = vcombine.high %v161_v55, %v161_v55  ;;  %v226_v17 = vsel %vm197_vm0, %v137_v54, 0.0 }
  0x15   :  { %v210_v16 = vadd.f32 %v209_v3, %v208_v8  ;;  %v238_v18 = vadd.f32 %v237_v5, %v236_v10  ;;  %v152_v19 = vrot.slane %v138_v28, %v304_v7  ;;  %v213_v20 = vsel %vm197_vm0, %v161_v55, 0.0 }
  0x16   :  { %v225_v21 = vadd.f32 %v224_v9, %v223_v13  ;;  %v241_v22 = vsel %vm197_vm0, %v120_v2, 0.0  ;;  %v228_v24 = vsel %vm197_vm0, %v153_v6, 0.0  ;;  %v168_v26 = vrot.slane %v154_v29, %v304_v7 }
  0x17   :  { %v212_v23 = vadd.f32 %v211_v12, %v210_v16  ;;  %v240_v25 = vadd.f32 %v239_v14, %v238_v18  ;;  %v243_v30 = vsel %vm197_vm0, %v136_v11, 0.0  ;;  %v230_v32 = vsel %vm197_vm0, %v169_v15, 0.0 }
  0x18   :  { %v227_v27 = vadd.f32 %v226_v17, %v225_v21  ;;  %v245_v28 = vsel %vm197_vm0, %v152_v19, 0.0  ;;  %v247_v37 = vsel %vm197_vm0, %v168_v26, 0.0 }
  0x19   :  { %v214_v31 = vadd.f32 %v213_v20, %v212_v23  ;;  %v242_v33 = vadd.f32 %v241_v22, %v240_v25 }
  0x1a   :  { %v229_v34 = vadd.f32 %v228_v24, %v227_v27 }
  0x1b   :  { %v244_v35 = vadd.f32 %v243_v30, %v242_v33  ;;  %v249_v38 = vmul.f32 0.11111111, %v214_v31 }
  0x1c   :  { %v231_v36 = vadd.f32 %v230_v32, %v229_v34 }
  0x1d   :  { %v246_v39 = vadd.f32 %v245_v28, %v244_v35 }
  0x1e   :  { %v250_v40 = vmul.f32 0.11111111, %v231_v36 }
  0x1f   :  { %v248_v41 = vadd.f32 %v247_v37, %v246_v39 }
  0x20   :  { %v255_v42 = vcombine.low %v249_v38, %v250_v40 }
  0x21   :  { %v251_v29 = vmul.f32 0.11111111, %v248_v41 }
  0x22   :  { %v262_v43 = vrot.slane %v255_v42, %v304_v7 }
  0x23   :  { %v269_v44 = vrot.slane %v251_v29, %v304_v7 }
  0x25   :  { %v270_v45 = vcombine.low %v262_v43, %v269_v44 }
  0x27   :  { %272 = vst [vmem:[%s388_s1] sm:$0x3f] %v270_v45 }

// kernel: net_forward.26
= control target key start
LH: loop header
LB: loop body
LE: loop exit
PB: predicated region body
PF: predicated region fallthrough
CT: control target
= control target key end

     0   :  { %v231_v0 = vmov 0   ;;  %vm116_vm0 = vcmask 130048   ;;  %vm172_vm1 = vcmask 195584   ;;  %s306_s1 = inlined_call_operand.vmem [shape: bf16[144,24], index: 1, kind: input, shape index: {}]   ;;  %s307_s0 = inlined_call_operand.vmem [shape: bf16[32,144], index: 0, kind: input, shape index: {}]   ;;  %s308_s2 = inlined_call_operand.vmem [shape: f32[1,24], index: 2, kind: input, shape index: {}]   ;;  %s309_s3 = inlined_call_operand.vmem [shape: f32[32,24], index: 3, kind: output, shape index: {}]  }
   0x1   :  { %123 = vmatprep.subr.bf16.mxu0 %v231_v0  ;;  %197 = vmatprep.subr.bf16.mxu1 %v231_v0  ;;  %v216_v1 = vld [vmem:[%s306_s1] sm:$0xff]   ;;  %v217_v2 = vld [vmem:[%s306_s1 + $0x8] sm:$0xff]   ;;  %v218_v3 = vld [vmem:[%s306_s1 + $0x10] sm:$0xff]  }
   0x2   :  { %124 = vmatpush1.bf16.msra.mxu0 %v216_v1  ;;  %206 = vmatpush1.bf16.msra.mxu1 %v216_v1  ;;  %v219_v4 = vld [vmem:[%s306_s1 + $0x18] sm:$0xff]   ;;  %v227_v5 = vld [vmem:[%s307_s0 + $0x4] ss:$8 sps:$4 sm:$0xff]   ;;  %v222_v9 = vld [vmem:[%s306_s1 + $0x30] sm:$0xff]  }
   0x3   :  { %125 = vmatprep.subr.bf16.mxu0 %v231_v0  ;;  %198 = vmatprep.subr.bf16.mxu1 %v231_v0  ;;  %v230_v6 = vld [vmem:[%s307_s0 + $0x14] ss:$8 sps:$4 sm:$0xff]   ;;  %v220_v7 = vld [vmem:[%s306_s1 + $0x20] sm:$0xff]   ;;  %v221_v8 = vld [vmem:[%s306_s1 + $0x28] sm:$0xff]  }
   0x4   :  { %195 = vmatprep.mubr.msk.bf16.mxu0 %vm116_vm0, %v227_v5  ;;  %196 = vmatprep.mubr.msk.bf16.mxu1 %vm116_vm0, %v230_v6  ;;  %v223_v10 = vld [vmem:[%s306_s1 + $0x38] sm:$0xff]   ;;  %v224_v11 = vld [vmem:[%s306_s1 + $0x40] sm:$0xff]  }
   0x5   :  { %v225_v12 = vld [vmem:[%s307_s0] ss:$8 sps:$4 sm:$0xff]   ;;  %v228_v13 = vld [vmem:[%s307_s0 + $0x10] ss:$8 sps:$4 sm:$0xff]  }
   0x6   :  { %126 = vmatpush1.bf16.msra.mxu0 %v217_v2  ;;  %207 = vmatpush1.bf16.msra.mxu1 %v217_v2  ;;  %v181_v14 = vld [vmem:[%s308_s2] ss:$0 sm:$0xff] }
   0x7   :  { %127 = vmatprep.subr.bf16.mxu0 %v231_v0  ;;  %199 = vmatprep.subr.bf16.mxu1 %v231_v0 }
   0xa   :  { %128 = vmatpush1.bf16.msra.mxu0 %v218_v3  ;;  %208 = vmatpush1.bf16.msra.mxu1 %v218_v3 }
   0xb   :  { %129 = vmatprep.subr.bf16.mxu0 %v231_v0  ;;  %200 = vmatprep.subr.bf16.mxu1 %v231_v0 }
   0xe   :  { %130 = vmatpush1.bf16.msra.mxu0 %v219_v4  ;;  %209 = vmatpush1.bf16.msra.mxu1 %v219_v4 }
   0xf   :  { %131 = vmatprep.subr.bf16.mxu0 %v231_v0  ;;  %201 = vmatprep.subr.bf16.mxu1 %v231_v0 }
  0x12   :  { %132 = vmatpush1.bf16.msra.mxu0 %v220_v7  ;;  %210 = vmatpush1.bf16.msra.mxu1 %v220_v7 }
  0x13   :  { %133 = vmatprep.subr.bf16.mxu0 %v231_v0  ;;  %202 = vmatprep.subr.bf16.mxu1 %v231_v0 }
  0x16   :  { %134 = vmatpush1.bf16.msra.mxu0 %v221_v8  ;;  %211 = vmatpush1.bf16.msra.mxu1 %v221_v8 }
  0x17   :  { %135 = vmatprep.subr.bf16.mxu0 %v231_v0  ;;  %203 = vmatprep.subr.bf16.mxu1 %v231_v0 }
  0x1a   :  { %136 = vmatpush1.bf16.msra.mxu0 %v222_v9  ;;  %212 = vmatpush1.bf16.msra.mxu1 %v222_v9 }
  0x1b   :  { %137 = vmatprep.subr.bf16.mxu0 %v231_v0  ;;  %204 = vmatprep.subr.bf16.mxu1 %v231_v0 }
  0x1e   :  { %138 = vmatpush1.bf16.msra.mxu0 %v223_v10  ;;  %213 = vmatpush1.bf16.msra.mxu1 %v223_v10 }
  0x1f   :  { %139 = vmatprep.subr.bf16.mxu0 %v231_v0  ;;  %205 = vmatprep.subr.bf16.mxu1 %v231_v0 }
  0x22   :  { %140 = vmatpush1.bf16.msra.mxu0 %v224_v11  ;;  %214 = vmatpush1.bf16.msra.mxu1 %v224_v11 }
  0x25   :  { %156 = vmatmul.mubr.bf16.vlgmr.msra.gmra.mrb[0].mxu0 %v225_v12  ;;  %164 = vmatmul.mubr.bf16.vlgmr.msra.gmra.mrb[0].mxu1 %v228_v13 }
  0xf8   :  { %v157_v15 = vpop.f32.mrb[0].mxu0  ;;  %v165_v16 = vpop.f32.mrb[0].mxu1 }
  0xf9   :  { %v158_v17 = vadd.f32 %v181_v14, %v157_v15  ;;  %v166_v18 = vadd.f32 %v181_v14, %v165_v16  ;;  %v159_v19 = vpop.f32.mrb[1].mxu0  ;;  %v167_v20 = vpop.f32.mrb[1].mxu1 }
  0xfa   :  { %v160_v21 = vpop.f32.mrb[2].mxu0  ;;  %v168_v22 = vpop.f32.mrb[2].mxu1 }
  0xfb   :  { %173 = vst.msk [vmem:[%s309_s3] sm:$0xff] %vm172_vm1, %v158_v17  ;;  %175 = vst.msk [vmem:[%s309_s3 + $0x10] sm:$0xff] %vm172_vm1, %v166_v18  ;;  %v161_v23 = vadd.f32 %v181_v14, %v160_v21  ;;  %v169_v24 = vadd.f32 %v181_v14, %v168_v22  ;;  %v162_v25 = vpop.f32.mrb[3].mxu0  ;;  %v170_v26 = vpop.f32.mrb[3].mxu1 }
  0xfd   :  { %174 = vst.msk [vmem:[%s309_s3 + $0x8] sm:$0xff] %vm172_vm1, %v161_v23  ;;  %176 = vst.msk [vmem:[%s309_s3 + $0x18] sm:$0xff] %vm172_vm1, %v169_v24 }

// kernel: net_forward.27
= control target key start
LH: loop header
LB: loop body
LE: loop exit
PB: predicated region body
PF: predicated region fallthrough
CT: control target
= control target key end

     0   :  { %v291_v0 = vmov 0   ;;  %vm152_vm0 = vcmask 719872   ;;  %vm159_vm1 = vcmask 1043456   ;;  %vm212_vm2 = vcmask 195584   ;;  %s409_s1 = inlined_call_operand.vmem [shape: bf16[216,24], index: 1, kind: input, shape index: {}]   ;;  %s410_s0 = inlined_call_operand.vmem [shape: bf16[32,216], index: 0, kind: input, shape index: {}]   ;;  %s411_s2 = inlined_call_operand.vmem [shape: f32[1,24], index: 2, kind: input, shape index: {}]   ;;  %s412_s3 = inlined_call_operand.vmem [shape: f32[32,24], index: 3, kind: output, shape index: {}]  }
   0x1   :  { %163 = vmatprep.subr.bf16.mxu0 %v291_v0  ;;  %242 = vmatprep.subr.bf16.mxu1 %v291_v0  ;;  %v271_v1 = vld [vmem:[%s409_s1] sm:$0xff]   ;;  %v272_v2 = vld [vmem:[%s409_s1 + $0x8] sm:$0xff]   ;;  %v273_v3 = vld [vmem:[%s409_s1 + $0x10] sm:$0xff]  }
   0x2   :  { %164 = vmatpush1.bf16.msra.mxu0 %v271_v1  ;;  %256 = vmatpush1.bf16.msra.mxu1 %v271_v1  ;;  %v274_v4 = vld [vmem:[%s409_s1 + $0x18] sm:$0xff]   ;;  %v275_v5 = vld [vmem:[%s409_s1 + $0x20] sm:$0xff]   ;;  %v276_v8 = vld [vmem:[%s409_s1 + $0x28] sm:$0xff]  }
   0x3   :  { %165 = vmatprep.subr.bf16.mxu0 %v291_v0  ;;  %243 = vmatprep.subr.bf16.mxu1 %v291_v0  ;;  %v287_v6 = vld [vmem:[%s410_s0 + $0x4] ss:$8 sps:$4 sm:$0xff]   ;;  %v290_v7 = vld [vmem:[%s410_s0 + $0x14] ss:$8 sps:$4 sm:$0xff]   ;;  %v284_v16 = vld [vmem:[%s409_s1 + $0x68] ss:$0 sps:$4 sm:$0xff]  }
   0x4   :  { %240 = vmatprep.mubr.msk.bf16.mxu0 %vm152_vm0, %v287_v6  ;;  %241 = vmatprep.mubr.msk.bf16.mxu1 %vm152_vm0, %v290_v7  ;;  %v277_v9 = vld [vmem:[%s409_s1 + $0x30] sm:$0xff]   ;;  %v278_v10 = vld [vmem:[%s409_s1 + $0x38] sm:$0xff]   ;;  %v279_v11 = vld [vmem:[%s409_s1 + $0x40] sm:$0xff]   ;;  %v161_v17 = vsel %vm159_vm1, %v284_v16, 0 }
   0x5   :  { %v280_v12 = vld [vmem:[%s409_s1 + $0x48] sm:$0xff]   ;;  %v281_v13 = vld [vmem:[%s409_s1 + $0x50] sm:$0xff]   ;;  %v282_v14 = vld [vmem:[%s409_s1 + $0x58] sm:$0xff]  }
   0x6   :  { %166 = vmatpush1.bf16.msra.mxu0 %v272_v2  ;;  %257 = vmatpush1.bf16.msra.mxu1 %v272_v2  ;;  %v283_v15 = vld [vmem:[%s409_s1 + $0x60] sm:$0xff]   ;;  %v288_v19 = vld [vmem:[%s410_s0 + $0x10] ss:$8 sps:$4 sm:$0xff]  }
   0x7   :  { %167 = vmatprep.subr.bf16.mxu0 %v291_v0  ;;  %244 = vmatprep.subr.bf16.mxu1 %v291_v0  ;;  %v285_v18 = vld [vmem:[%s410_s0] ss:$8 sps:$4 sm:$0xff]  }
   0x8   :  { %v221_v20 = vld [vmem:[%s411_s2] ss:$0 sm:$0xff] }
   0xa   :  { %168 = vmatpush1.bf16.msra.mxu0 %v273_v3  ;;  %258 = vmatpush1.bf16.msra.mxu1 %v273_v3 }
   0xb   :  { %169 = vmatprep.subr.bf16.mxu0 %v291_v0  ;;  %245 = vmatprep.subr.bf16.mxu1 %v291_v0 }
   0xe   :  { %170 = vmatpush1.bf16.msra.mxu0 %v274_v4  ;;  %259 = vmatpush1.bf16.msra.mxu1 %v274_v4 }
   0xf   :  { %171 = vmatprep.subr.bf16.mxu0 %v291_v0  ;;  %246 = vmatprep.subr.bf16.mxu1 %v291_v0 }
  0x12   :  { %172 = vmatpush1.bf16.msra.mxu0 %v275_v5  ;;  %260 = vmatpush1.bf16.msra.mxu1 %v275_v5 }
  0x13   :  { %173 = vmatprep.subr.bf16.mxu0 %v291_v0  ;;  %247 = vmatprep.subr.bf16.mxu1 %v291_v0 }
  0x16   :  { %174 = vmatpush1.bf16.msra.mxu0 %v276_v8  ;;  %261 = vmatpush1.bf16.msra.mxu1 %v276_v8 }
  0x17   :  { %175 = vmatprep.subr.bf16.mxu0 %v291_v0  ;;  %248 = vmatprep.subr.bf16.mxu1 %v291_v0 }
  0x1a   :  { %176 = vmatpush1.bf16.msra.mxu0 %v277_v9  ;;  %262 = vmatpush1.bf16.msra.mxu1 %v277_v9 }
  0x1b   :  { %177 = vmatprep.subr.bf16.mxu0 %v291_v0  ;;  %249 = vmatprep.subr.bf16.mxu1 %v291_v0 }
  0x1e   :  { %178 = vmatpush1.bf16.msra.mxu0 %v278_v10  ;;  %263 = vmatpush1.bf16.msra.mxu1 %v278_v10 }
  0x1f   :  { %179 = vmatprep.subr.bf16.mxu0 %v291_v0  ;;  %250 = vmatprep.subr.bf16.mxu1 %v291_v0 }
  0x22   :  { %180 = vmatpush1.bf16.msra.mxu0 %v279_v11  ;;  %264 = vmatpush1.bf16.msra.mxu1 %v279_v11 }
  0x23   :  { %181 = vmatprep.subr.bf16.mxu0 %v291_v0  ;;  %251 = vmatprep.subr.bf16.mxu1 %v291_v0 }
  0x26   :  { %182 = vmatpush1.bf16.msra.mxu0 %v280_v12  ;;  %265 = vmatpush1.bf16.msra.mxu1 %v280_v12 }
  0x27   :  { %183 = vmatprep.subr.bf16.mxu0 %v291_v0  ;;  %252 = vmatprep.subr.bf16.mxu1 %v291_v0 }
  0x2a   :  { %184 = vmatpush1.bf16.msra.mxu0 %v281_v13  ;;  %266 = vmatpush1.bf16.msra.mxu1 %v281_v13 }
  0x2b   :  { %185 = vmatprep.subr.bf16.mxu0 %v291_v0  ;;  %253 = vmatprep.subr.bf16.mxu1 %v291_v0 }
  0x2e   :  { %186 = vmatpush1.bf16.msra.mxu0 %v282_v14  ;;  %267 = vmatpush1.bf16.msra.mxu1 %v282_v14 }
  0x2f   :  { %187 = vmatprep.subr.bf16.mxu0 %v291_v0  ;;  %254 = vmatprep.subr.bf16.mxu1 %v291_v0 }
  0x32   :  { %188 = vmatpush1.bf16.msra.mxu0 %v283_v15  ;;  %268 = vmatpush1.bf16.msra.mxu1 %v283_v15 }
  0x33   :  { %189 = vmatprep.subr.bf16.mxu0 %v291_v0  ;;  %255 = vmatprep.subr.bf16.mxu1 %v291_v0 }
  0x36   :  { %190 = vmatpush1.bf16.msra.mxu0 %v161_v17  ;;  %269 = vmatpush1.bf16.msra.mxu1 %v161_v17 }
  0x39   :  { %196 = vmatmul.mubr.bf16.vlgmr.msra.gmra.mrb[0].mxu0 %v285_v18  ;;  %204 = vmatmul.mubr.bf16.vlgmr.msra.gmra.mrb[0].mxu1 %v288_v19 }
 0x10c   :  { %v197_v21 = vpop.f32.mrb[0].mxu0  ;;  %v205_v22 = vpop.f32.mrb[0].mxu1 }
 0x10d   :  { %v198_v23 = vadd.f32 %v221_v20, %v197_v21  ;;  %v206_v24 = vadd.f32 %v221_v20, %v205_v22  ;;  %v199_v25 = vpop.f32.mrb[1].mxu0  ;;  %v207_v26 = vpop.f32.mrb[1].mxu1 }
 0x10e   :  { %v200_v27 = vpop.f32.mrb[2].mxu0  ;;  %v208_v28 = vpop.f32.mrb[2].mxu1 }
 0x10f   :  { %213 = vst.msk [vmem:[%s412_s3] sm:$0xff] %vm212_vm2, %v198_v23  ;;  %215 = vst.msk [vmem:[%s412_s3 + $0x10] sm:$0xff] %vm212_vm2, %v206_v24  ;;  %v201_v29 = vadd.f32 %v221_v20, %v200_v27  ;;  %v209_v30 = vadd.f32 %v221_v20, %v208_v28  ;;  %v202_v31 = vpop.f32.mrb[3].mxu0  ;;  %v210_v32 = vpop.f32.mrb[3].mxu1 }
 0x111   :  { %214 = vst.msk [vmem:[%s412_s3 + $0x8] sm:$0xff] %vm212_vm2, %v201_v29  ;;  %216 = vst.msk [vmem:[%s412_s3 + $0x18] sm:$0xff] %vm212_vm2, %v209_v30 }

// kernel: net_forward.25
= control target key start
LH: loop header
LB: loop body
LE: loop exit
PB: predicated region body
PF: predicated region fallthrough
CT: control target
= control target key end

     0   :  { %v484_v0 = vmov 0   ;;  %vm268_vm0 = vcmask 130048   ;;  %vm373_vm1 = vcmask 195584   ;;  %s634_s1 = inlined_call_operand.vmem [shape: bf16[400,24], index: 1, kind: input, shape index: {}]   ;;  %s635_s0 = inlined_call_operand.vmem [shape: bf16[32,400], index: 0, kind: input, shape index: {}]   ;;  %s636_s2 = inlined_call_operand.vmem [shape: f32[1,24], index: 2, kind: input, shape index: {}]   ;;  %s637_s3 = inlined_call_operand.vmem [shape: f32[32,24], index: 3, kind: output, shape index: {}]  }
   0x1   :  { %324 = vmatprep.subr.bf16.mxu1 %v484_v0  ;;  %v447_v1 = vld [vmem:[%s634_s1 + $0x40] sm:$0xff]   ;;  %v450_v4 = vld [vmem:[%s634_s1 + $0x48] sm:$0xff]   ;;  %v453_v7 = vld [vmem:[%s634_s1 + $0x50] sm:$0xff]  }
   0x2   :  { %v448_v2 = vld [vmem:[%s634_s1 + $0x80] sm:$0xff]   ;;  %418 = vmatprep.subr.bf16.mxu0 %v447_v1  ;;  %v451_v5 = vld [vmem:[%s634_s1 + $0x88] sm:$0xff]   ;;  %v454_v8 = vld [vmem:[%s634_s1 + $0x90] sm:$0xff]  }
   0x3   :  { %v449_v3 = vld [vmem:[%s634_s1] sm:$0xff]   ;;  %325 = vmatpush1.bf16.msra.mxu1 %v448_v2  ;;  %v452_v6 = vld [vmem:[%s634_s1 + $0x8] sm:$0xff]   ;;  %v455_v9 = vld [vmem:[%s634_s1 + $0x10] sm:$0xff]  }
   0x4   :  { %419 = vmatpush3.bf16.msra.mxu0 %v449_v3  ;;  %326 = vmatprep.subr.bf16.mxu1 %v484_v0  ;;  %v456_v10 = vld [vmem:[%s634_s1 + $0x58] sm:$0xff]   ;;  %v459_v13 = vld [vmem:[%s634_s1 + $0x60] sm:$0xff]   ;;  %v462_v16 = vld [vmem:[%s634_s1 + $0x68] sm:$0xff]  }
   0x5   :  { %420 = vmatprep.subr.bf16.mxu0 %v450_v4  ;;  %v457_v11 = vld [vmem:[%s634_s1 + $0x98] sm:$0xff]   ;;  %v460_v14 = vld [vmem:[%s634_s1 + $0xa0] sm:$0xff]   ;;  %v463_v17 = vld [vmem:[%s634_s1 + $0xa8] sm:$0xff]  }
   0x6   :  { %v458_v12 = vld [vmem:[%s634_s1 + $0x18] sm:$0xff]   ;;  %v461_v15 = vld [vmem:[%s634_s1 + $0x20] sm:$0xff]   ;;  %v464_v18 = vld [vmem:[%s634_s1 + $0x28] sm:$0xff]  }
   0x7   :  { %327 = vmatpush1.bf16.msra.mxu1 %v451_v5  ;;  %v465_v19 = vld [vmem:[%s634_s1 + $0x70] sm:$0xff]   ;;  %v468_v22 = vld [vmem:[%s634_s1 + $0x78] sm:$0xff]   ;;  %v474_v28 = vld [vmem:[%s634_s1 + $0xc0] sm:$0xff]  }
   0x8   :  { %421 = vmatpush3.bf16.msra.mxu0 %v452_v6  ;;  %328 = vmatprep.subr.bf16.mxu1 %v484_v0  ;;  %v466_v20 = vld [vmem:[%s634_s1 + $0xb0] sm:$0xff]   ;;  %v469_v24 = vld [vmem:[%s634_s1 + $0xb8] sm:$0xff]   ;;  %v382_v36 = vld [vmem:[%s636_s2] ss:$0 sm:$0xff] }
   0x9   :  { %422 = vmatprep.subr.bf16.mxu0 %v453_v7  ;;  %v467_v21 = vld [vmem:[%s634_s1 + $0x30] sm:$0xff]   ;;  %v477_v25 = vld [vmem:[%s635_s0 + $0xc] ss:$16 sps:$4 sm:$0xff]   ;;  %v475_v30 = vld [vmem:[%s635_s0 + $0x8] ss:$16 sps:$4 sm:$0xff]  }
   0xa   :  { %v473_v23 = vld [vmem:[%s635_s0 + $0x4] ss:$16 sps:$4 sm:$0xff]   ;;  %v470_v26 = vld [vmem:[%s634_s1 + $0x38] sm:$0xff]   ;;  %416 = vmatprep.mubr.msk.bf16.mxu1 %vm268_vm0, %v477_v25  ;;  %v471_v27 = vld [vmem:[%s635_s0] ss:$16 sps:$4 sm:$0xff]  }
   0xb   :  { %329 = vmatpush1.bf16.msra.mxu1 %v454_v8  ;;  %307 = vmatprep.mubr.bf16.mxu0 %v473_v23  ;;  %v478_v29 = vld [vmem:[%s635_s0 + $0x24] ss:$16 sps:$4 sm:$0xff]   ;;  %v481_v31 = vld [vmem:[%s635_s0 + $0x2c] ss:$16 sps:$4 sm:$0xff]   ;;  %v480_v32 = vld [vmem:[%s635_s0 + $0x20] ss:$16 sps:$4 sm:$0xff]  }
   0xc   :  { %423 = vmatpush3.bf16.msra.mxu0 %v455_v9  ;;  %330 = vmatprep.subr.bf16.mxu1 %v484_v0  ;;  %v483_v33 = vld [vmem:[%s635_s0 + $0x28] ss:$16 sps:$4 sm:$0xff]  }
   0xd   :  { %424 = vmatprep.subr.bf16.mxu0 %v456_v10 }
   0xf   :  { %331 = vmatpush1.bf16.msra.mxu1 %v457_v11 }
  0x10   :  { %425 = vmatpush3.bf16.msra.mxu0 %v458_v12  ;;  %332 = vmatprep.subr.bf16.mxu1 %v484_v0 }
  0x11   :  { %426 = vmatprep.subr.bf16.mxu0 %v459_v13 }
  0x13   :  { %333 = vmatpush1.bf16.msra.mxu1 %v460_v14 }
  0x14   :  { %427 = vmatpush3.bf16.msra.mxu0 %v461_v15  ;;  %334 = vmatprep.subr.bf16.mxu1 %v484_v0 }
  0x15   :  { %428 = vmatprep.subr.bf16.mxu0 %v462_v16 }
  0x17   :  { %335 = vmatpush1.bf16.msra.mxu1 %v463_v17 }
  0x18   :  { %429 = vmatpush3.bf16.msra.mxu0 %v464_v18  ;;  %336 = vmatprep.subr.bf16.mxu1 %v484_v0 }
  0x19   :  { %430 = vmatprep.subr.bf16.mxu0 %v465_v19 }
  0x1b   :  { %337 = vmatpush1.bf16.msra.mxu1 %v466_v20 }
  0x1c   :  { %431 = vmatpush3.bf16.msra.mxu0 %v467_v21  ;;  %338 = vmatprep.subr.bf16.mxu1 %v484_v0 }
  0x1d   :  { %432 = vmatprep.subr.bf16.mxu0 %v468_v22 }
  0x1f   :  { %339 = vmatpush1.bf16.msra.mxu1 %v469_v24 }
  0x20   :  { %433 = vmatpush3.bf16.msra.mxu0 %v470_v26  ;;  %340 = vmatprep.subr.bf16.mxu1 %v484_v0 }
  0x23   :  { %308 = vmatmul.mubr.bf16.vlgmr.msra.gmra.mrb[0].mxu0 %v471_v27  ;;  %341 = vmatpush1.bf16.msra.mxu1 %v474_v28 }
  0x24   :  { %315 = vmatprep.mubr.bf16.mxu0 %v478_v29 }
  0x26   :  { %357 = vmatmul.mubr.bf16.vlgmr.msra.gmra.mrb[0].mxu1 %v475_v30 }
  0x27   :  { %417 = vmatprep.mubr.msk.bf16.mxu1 %vm268_vm0, %v481_v31 }
  0x2b   :  { %316 = vmatmul.mubr.bf16.gmra.mrb[4].mxu0 %v480_v32 }
  0x2e   :  { %365 = vmatmul.mubr.bf16.gmra.mrb[4].mxu1 %v483_v33 }
  0xf6   :  { %v434_v34 = vpop.f32.mrb[0].mxu0 }
  0xf7   :  { %v435_v35 = vpop.f32.mrb[1].mxu0 }
  0xf8   :  { %v436_v37 = vadd.f32 %v435_v35, %v434_v34  ;;  %v437_v38 = vpop.f32.mrb[2].mxu0 }
  0xf9   :  { %v438_v39 = vpop.f32.mrb[3].mxu0  ;;  %v358_v40 = vpop.f32.mrb[0].mxu1 }
  0xfa   :  { %v439_v41 = vadd.f32 %v438_v39, %v437_v38  ;;  %v310_v42 = vadd.f32 %v436_v37, %v382_v36  ;;  %v360_v43 = vpop.f32.mrb[1].mxu1 }
  0xfb   :  { %v361_v44 = vpop.f32.mrb[2].mxu1 }
  0xfc   :  { %v359_v45 = vadd.f32 %v358_v40, %v310_v42  ;;  %v313_v46 = vadd.f32 %v439_v41, %v382_v36  ;;  %v363_v47 = vpop.f32.mrb[3].mxu1 }
  0xfe   :  { %374 = vst.msk [vmem:[%s637_s3] sm:$0xff] %vm373_vm1, %v359_v45  ;;  %v362_v48 = vadd.f32 %v361_v44, %v313_v46  ;;  %v440_v49 = vpop.f32.mrb[4].mxu0 }
  0xff   :  { %v441_v50 = vpop.f32.mrb[5].mxu0 }
 0x100   :  { %375 = vst.msk [vmem:[%s637_s3 + $0x8] sm:$0xff] %vm373_vm1, %v362_v48  ;;  %v442_v51 = vadd.f32 %v441_v50, %v440_v49  ;;  %v443_v52 = vpop.f32.mrb[6].mxu0 }
 0x101   :  { %v444_v53 = vpop.f32.mrb[7].mxu0  ;;  %v366_v54 = vpop.f32.mrb[4].mxu1 }
 0x102   :  { %v445_v55 = vadd.f32 %v444_v53, %v443_v52  ;;  %v318_v56 = vadd.f32 %v442_v51, %v382_v36  ;;  %v368_v57 = vpop.f32.mrb[5].mxu1 }
 0x103   :  { %v369_v58 = vpop.f32.mrb[6].mxu1 }
 0x104   :  { %v367_v59 = vadd.f32 %v366_v54, %v318_v56  ;;  %v321_v60 = vadd.f32 %v445_v55, %v382_v36  ;;  %v371_v61 = vpop.f32.mrb[7].mxu1 }
 0x106   :  { %376 = vst.msk [vmem:[%s637_s3 + $0x10] sm:$0xff] %vm373_vm1, %v367_v59  ;;  %v370_v62 = vadd.f32 %v369_v58, %v321_v60 }
 0x108   :  { %377 = vst.msk [vmem:[%s637_s3 + $0x18] sm:$0xff] %vm373_vm1, %v370_v62 }

// kernel: net_forward.29
= control target key start
LH: loop header
LB: loop body
LE: loop exit
PB: predicated region body
PF: predicated region fallthrough
CT: control target
= control target key end

     0   :  { %v207_v27 = vlaneseq  ;;  %v1432_v35 = vmov 1966171168   ;;  %vm1434_vm0 = vmmov 0   ;;  %s1759_s0 = inlined_call_operand.vmem [shape: bf16[2,1408], index: 0, kind: input, shape index: {}]   ;;  %s1760_s1 = inlined_call_operand.vmem [shape: bf16[1408,10], index: 1, kind: input, shape index: {}]   ;;  %s1761_s2 = inlined_call_operand.vmem [shape: f32[1,10], index: 2, kind: input, shape index: {}]   ;;  %s1762_s3 = inlined_call_operand.hbm [shape: f32[2,10], index: 3, kind: output, shape index: {}]  }
   0x1   :  { %v1315_v0 = vld [vmem:[%s1760_s1 + $0x40] sm:$0xff]   ;;  %v1319_v4 = vld [vmem:[%s1760_s1 + $0x48] sm:$0xff]   ;;  %v1323_v8 = vld [vmem:[%s1760_s1 + $0x50] sm:$0xff]   ;;  %v205_v36 = vunpack.c.l.s4 %v1432_v35 }
   0x2   :  { %v1316_v1 = vld [vmem:[%s1760_s1] sm:$0xff]   ;;  %1172 = vmatprep.subr.bf16.mxu0 %v1315_v0  ;;  %v1320_v5 = vld [vmem:[%s1760_s1 + $0x8] sm:$0xff]   ;;  %v1324_v9 = vld [vmem:[%s1760_s1 + $0x10] sm:$0xff]   ;;  %v208_v32 = vshrl.u32 %v207_v27, 7 }
   0x3   :  { %v1317_v2 = vld [vmem:[%s1760_s1 + $0xc0] sm:$0xff]   ;;  %1173 = vmatpush3.bf16.msra.mxu0 %v1316_v1  ;;  %v1321_v6 = vld [vmem:[%s1760_s1 + $0xc8] sm:$0xff]   ;;  %v1325_v10 = vld [vmem:[%s1760_s1 + $0xd0] sm:$0xff]   ;;  %v206_v39 = vunpack.c.0.s8 %v205_v36 }
   0x4   :  { %v1318_v3 = vld [vmem:[%s1760_s1 + $0x80] sm:$0xff]   ;;  %1194 = vmatprep.subr.bf16.mxu1 %v1317_v2  ;;  %1174 = vmatprep.subr.bf16.mxu0 %v1319_v4  ;;  %v1322_v7 = vld [vmem:[%s1760_s1 + $0x88] sm:$0xff]   ;;  %v1326_v11 = vld [vmem:[%s1760_s1 + $0x90] sm:$0xff]  }
   0x5   :  { %1195 = vmatpush3.bf16.msra.mxu1 %v1318_v3  ;;  %v1327_v12 = vld [vmem:[%s1760_s1 + $0x58] sm:$0xff]   ;;  %v1331_v16 = vld [vmem:[%s1760_s1 + $0x60] sm:$0xff]   ;;  %v1335_v20 = vld [vmem:[%s1760_s1 + $0x68] sm:$0xff]   ;;  %v1561_v41 = vsub.s32 %v206_v39, %v208_v32 }
   0x6   :  { %1196 = vmatprep.subr.bf16.mxu1 %v1321_v6  ;;  %v1328_v13 = vld [vmem:[%s1760_s1 + $0x18] sm:$0xff]   ;;  %v1332_v17 = vld [vmem:[%s1760_s1 + $0x20] sm:$0xff]   ;;  %v1336_v21 = vld [vmem:[%s1760_s1 + $0x28] sm:$0xff]  }
   0x7   :  { %1175 = vmatpush3.bf16.msra.mxu0 %v1320_v5  ;;  %v1329_v14 = vld [vmem:[%s1760_s1 + $0xd8] sm:$0xff]   ;;  %v1333_v18 = vld [vmem:[%s1760_s1 + $0xe0] sm:$0xff]   ;;  %v1337_v22 = vld [vmem:[%s1760_s1 + $0xe8] sm:$0xff]  }
   0x8   :  { %1176 = vmatprep.subr.bf16.mxu0 %v1323_v8  ;;  %v1330_v15 = vld [vmem:[%s1760_s1 + $0x98] sm:$0xff]   ;;  %v1334_v19 = vld [vmem:[%s1760_s1 + $0xa0] sm:$0xff]   ;;  %v1338_v23 = vld [vmem:[%s1760_s1 + $0xa8] sm:$0xff]  }
   0x9   :  { %1197 = vmatpush3.bf16.msra.mxu1 %v1322_v7  ;;  %v1339_v24 = vld [vmem:[%s1760_s1 + $0x70] sm:$0xff]   ;;  %v1343_v29 = vld [vmem:[%s1760_s1 + $0x78] sm:$0xff]   ;;  %v16_v33 = vld [vmem:[%s1759_s0] sm:$0xff] }
   0xa   :  { %1198 = vmatprep.subr.bf16.mxu1 %v1325_v10  ;;  %v1340_v25 = vld [vmem:[%s1760_s1 + $0x30] sm:$0xff]   ;;  %v1344_v30 = vld [vmem:[%s1760_s1 + $0x38] sm:$0xff]   ;;  %v1348_v37 = vld [vmem:[%s1760_s1 + $0x140] sm:$0xff]   ;;  %v203_v38 = vcombine.high %v16_v33, %v16_v33  ;;  %v210_v42 = vrot.slane %v16_v33, %v1561_v41 }
   0xb   :  { %1177 = vmatpush3.bf16.msra.mxu0 %v1324_v9  ;;  %v1341_v26 = vld [vmem:[%s1760_s1 + $0xf0] sm:$0xff]   ;;  %v1345_v31 = vld [vmem:[%s1760_s1 + $0xf8] sm:$0xff]   ;;  %v1350_v40 = vld [vmem:[%s1760_s1 + $0x1c0] sm:$0xff]  }
   0xc   :  { %1178 = vmatprep.subr.bf16.mxu0 %v1327_v12  ;;  %v1342_v28 = vld [vmem:[%s1760_s1 + $0xb0] sm:$0xff]   ;;  %v1347_v34 = vld [vmem:[%s1760_s1 + $0xb8] sm:$0xff]   ;;  %v1565_v43 = vrot.slane %v203_v38, %v1561_v41  ;;  %v218_v44 = vcombine.high %v210_v42, %v210_v42  ;;  %v226_v45 = vrot.slane %v210_v42, %v1561_v41  ;;  %v1349_v48 = vld [vmem:[%s1760_s1 + $0x100] sm:$0xff]  }
   0xd   :  { %1199 = vmatpush3.bf16.msra.mxu1 %v1326_v11  ;;  %v1352_v51 = vld [vmem:[%s1760_s1 + $0x148] sm:$0xff]   ;;  %v1351_v53 = vld [vmem:[%s1760_s1 + $0x180] sm:$0xff]   ;;  %v1356_v57 = vld [vmem:[%s1760_s1 + $0x150] sm:$0xff]  }
   0xe   :  { %1200 = vmatprep.subr.bf16.mxu1 %v1329_v14  ;;  %v219_v46 = vcombine.high %v1565_v43, %v1565_v43  ;;  %v240_v47 = vrot.slane %v218_v44, %v1561_v41  ;;  %v248_v50 = vcombine.high %v226_v45, %v226_v45  ;;  %v1354_v54 = vld [vmem:[%s1760_s1 + $0x1c8] sm:$0xff]   ;;  %v1358_v59 = vld [vmem:[%s1760_s1 + $0x1d0] sm:$0xff]   ;;  %v1360_v61 = vld [vmem:[%s1760_s1 + $0x158] sm:$0xff]  }
   0xf   :  { %1179 = vmatpush3.bf16.msra.mxu0 %v1328_v13  ;;  %v1353_v56 = vld [vmem:[%s1760_s1 + $0x108] sm:$0xff]   ;;  %v1357_v60 = vld [vmem:[%s1760_s1 + $0x110] sm:$0xff]   ;;  %v1362_v63 = vld [vmem:[%s1760_s1 + $0x1d8] sm:$0xff]  }
  0x10   :  { %1180 = vmatprep.subr.bf16.mxu0 %v1331_v16  ;;  %v247_v49 = vrot.slane %v219_v46, %v1561_v41  ;;  %846 = vmatprep.mubr.bf16.mxu0 %v240_v47  ;;  %v250_v52 = vcombine.high %v240_v47, %v240_v47  ;;  %v1355_v58 = vld [vmem:[%s1760_s1 + $0x188] sm:$0xff]   ;;  %v1359_v62 = vld [vmem:[%s1760_s1 + $0x190] sm:$0xff]   ;;  %v1361_v0 = vld [vmem:[%s1760_s1 + $0x118] sm:$0xff]  }
  0x11   :  { %1201 = vmatpush3.bf16.msra.mxu1 %v1330_v15  ;;  %v1364_v1 = vld [vmem:[%s1760_s1 + $0x160] sm:$0xff]   ;;  %v1363_v2 = vld [vmem:[%s1760_s1 + $0x198] sm:$0xff]   ;;  %v1368_v5 = vld [vmem:[%s1760_s1 + $0x168] sm:$0xff]  }
  0x12   :  { %1202 = vmatprep.subr.bf16.mxu1 %v1333_v18  ;;  %v251_v55 = vcombine.high %v247_v49, %v247_v49  ;;  %886 = vmatprep.mubr.bf16.mxu1 %v250_v52  ;;  %v1366_v3 = vld [vmem:[%s1760_s1 + $0x1e0] sm:$0xff]   ;;  %v1370_v7 = vld [vmem:[%s1760_s1 + $0x1e8] sm:$0xff]   ;;  %v1372_v9 = vld [vmem:[%s1760_s1 + $0x170] sm:$0xff]  }
  0x13   :  { %1181 = vmatpush3.bf16.msra.mxu0 %v1332_v17  ;;  %v1365_v4 = vld [vmem:[%s1760_s1 + $0x120] sm:$0xff]   ;;  %v1369_v8 = vld [vmem:[%s1760_s1 + $0x128] sm:$0xff]   ;;  %v1374_v11 = vld [vmem:[%s1760_s1 + $0x1f0] sm:$0xff]   ;;  %v233_v17 = vrot.slane %v1565_v43, %v1561_v41 }
  0x14   :  { %1182 = vmatprep.subr.bf16.mxu0 %v1335_v20  ;;  %v1367_v6 = vld [vmem:[%s1760_s1 + $0x1a0] sm:$0xff]   ;;  %v1371_v10 = vld [vmem:[%s1760_s1 + $0x1a8] sm:$0xff]   ;;  %v1373_v12 = vld [vmem:[%s1760_s1 + $0x130] sm:$0xff]  }
  0x15   :  { %1203 = vmatpush3.bf16.msra.mxu1 %v1334_v19  ;;  %v1376_v13 = vld [vmem:[%s1760_s1 + $0x178] sm:$0xff]   ;;  %v1375_v14 = vld [vmem:[%s1760_s1 + $0x1b0] sm:$0xff]   ;;  %v1380_v18 = vld [vmem:[%s1760_s1 + $0x240] sm:$0xff]  }
  0x16   :  { %1204 = vmatprep.subr.bf16.mxu1 %v1337_v22  ;;  %v1378_v15 = vld [vmem:[%s1760_s1 + $0x1f8] sm:$0xff]   ;;  %v1381_v20 = vld [vmem:[%s1760_s1 + $0x200] sm:$0xff]   ;;  %v1383_v22 = vld [vmem:[%s1760_s1 + $0x248] sm:$0xff]  }
  0x17   :  { %1183 = vmatpush3.bf16.msra.mxu0 %v1336_v21  ;;  %v1377_v16 = vld [vmem:[%s1760_s1 + $0x138] sm:$0xff]   ;;  %v249_v21 = vcombine.high %v233_v17, %v233_v17  ;;  %v1385_v27 = vld [vmem:[%s1760_s1 + $0x288] sm:$0xff]   ;;  %v1392_v33 = vld [vmem:[%s1760_s1 + $0x260] sm:$0xff]  }
  0x18   :  { %1184 = vmatprep.subr.bf16.mxu0 %v1339_v24  ;;  %v1379_v19 = vld [vmem:[%s1760_s1 + $0x1b8] sm:$0xff]   ;;  %v1433_v24 = vmov 0.0  }
  0x19   :  { %1205 = vmatpush3.bf16.msra.mxu1 %v1338_v23  ;;  %v1382_v23 = vld [vmem:[%s1760_s1 + $0x280] sm:$0xff]   ;;  %v1391_v32 = vld [vmem:[%s1760_s1 + $0x298] sm:$0xff]  }
  0x1a   :  { %1206 = vmatprep.subr.bf16.mxu1 %v1341_v26  ;;  %v1386_v26 = vld [vmem:[%s1760_s1 + $0x250] sm:$0xff]  }
  0x1b   :  { %1185 = vmatpush3.bf16.msra.mxu0 %v1340_v25  ;;  %v1384_v25 = vld [vmem:[%s1760_s1 + $0x208] sm:$0xff]  }
  0x1c   :  { %1186 = vmatprep.subr.bf16.mxu0 %v1343_v29  ;;  %v1389_v29 = vld [vmem:[%s1760_s1 + $0x258] sm:$0xff]  }
  0x1d   :  { %1207 = vmatpush3.bf16.msra.mxu1 %v1342_v28  ;;  %v1387_v28 = vld [vmem:[%s1760_s1 + $0x210] sm:$0xff]  }
  0x1e   :  { %1208 = vmatprep.subr.bf16.mxu1 %v1345_v31  ;;  %v1390_v31 = vld [vmem:[%s1760_s1 + $0x218] sm:$0xff]  }
  0x1f   :  { %1187 = vmatpush3.bf16.msra.mxu0 %v1344_v30  ;;  %v1388_v30 = vld [vmem:[%s1760_s1 + $0x290] sm:$0xff]  }
  0x20   :  { %1216 = vmatprep.subr.bf16.mxu0 %v1348_v37 }
  0x21   :  { %1209 = vmatpush3.bf16.msra.mxu1 %v1347_v34  ;;  %v1083_v34 = vld.sshfl [vmem:[%s1759_s0 + $0x8] sm:$0x13 pattern:$0x75316420] }
  0x22   :  { %1238 = vmatprep.subr.bf16.mxu1 %v1350_v40  ;;  %847 = vmatmul.mubr.bf16.vlgmr.msra.gmra.mrb[0].mxu0 %v226_v45  ;;  %v259_v35 = vcombine.high %v1083_v34, %v1083_v34 }
  0x23   :  { %1217 = vmatpush3.bf16.msra.mxu0 %v1349_v48  ;;  %926 = vmatprep.mubr.bf16.mxu0 %v247_v49 }
  0x24   :  { %887 = vmatmul.mubr.bf16.vlgmr.msra.gmra.mrb[0].mxu1 %v248_v50  ;;  %1218 = vmatprep.subr.bf16.mxu0 %v1352_v51 }
  0x25   :  { %1239 = vmatpush3.bf16.msra.mxu1 %v1351_v53  ;;  %966 = vmatprep.mubr.bf16.mxu1 %v251_v55 }
  0x26   :  { %1240 = vmatprep.subr.bf16.mxu1 %v1354_v54 }
  0x27   :  { %1219 = vmatpush3.bf16.msra.mxu0 %v1353_v56 }
  0x28   :  { %1220 = vmatprep.subr.bf16.mxu0 %v1356_v57 }
  0x29   :  { %1241 = vmatpush3.bf16.msra.mxu1 %v1355_v58 }
  0x2a   :  { %1242 = vmatprep.subr.bf16.mxu1 %v1358_v59 }
  0x2b   :  { %1221 = vmatpush3.bf16.msra.mxu0 %v1357_v60 }
  0x2c   :  { %1222 = vmatprep.subr.bf16.mxu0 %v1360_v61 }
  0x2d   :  { %1243 = vmatpush3.bf16.msra.mxu1 %v1359_v62 }
  0x2e   :  { %1244 = vmatprep.subr.bf16.mxu1 %v1362_v63 }
  0x2f   :  { %1223 = vmatpush3.bf16.msra.mxu0 %v1361_v0 }
  0x30   :  { %1224 = vmatprep.subr.bf16.mxu0 %v1364_v1 }
  0x31   :  { %1245 = vmatpush3.bf16.msra.mxu1 %v1363_v2 }
  0x32   :  { %1246 = vmatprep.subr.bf16.mxu1 %v1366_v3 }
  0x33   :  { %1225 = vmatpush3.bf16.msra.mxu0 %v1365_v4 }
  0x34   :  { %1226 = vmatprep.subr.bf16.mxu0 %v1368_v5 }
  0x35   :  { %1247 = vmatpush3.bf16.msra.mxu1 %v1367_v6 }
  0x36   :  { %1248 = vmatprep.subr.bf16.mxu1 %v1370_v7 }
  0x37   :  { %1227 = vmatpush3.bf16.msra.mxu0 %v1369_v8 }
  0x38   :  { %1228 = vmatprep.subr.bf16.mxu0 %v1372_v9 }
  0x39   :  { %1249 = vmatpush3.bf16.msra.mxu1 %v1371_v10 }
  0x3a   :  { %1250 = vmatprep.subr.bf16.mxu1 %v1374_v11 }
  0x3b   :  { %1229 = vmatpush3.bf16.msra.mxu0 %v1373_v12 }
  0x3c   :  { %1230 = vmatprep.subr.bf16.mxu0 %v1376_v13 }
  0x3d   :  { %1251 = vmatpush3.bf16.msra.mxu1 %v1375_v14 }
  0x3e   :  { %1252 = vmatprep.subr.bf16.mxu1 %v1378_v15 }
  0x3f   :  { %1231 = vmatpush3.bf16.msra.mxu0 %v1377_v16 }
  0x40   :  { %1260 = vmatprep.subr.bf16.mxu0 %v1380_v18 }
  0x41   :  { %1253 = vmatpush3.bf16.msra.mxu1 %v1379_v19 }
  0x42   :  { %927 = vmatmul.mubr.bf16.vlgmr.msra.gmra.mrb[4].mxu0 %v233_v17  ;;  %1291 = vmatprep.subr.bf16.mxu1 %v1433_v24 }
  0x43   :  { %1261 = vmatpush3.bf16.msra.mxu0 %v1381_v20 }
  0x44   :  { %967 = vmatmul.mubr.bf16.vlgmr.msra.gmra.mrb[4].mxu1 %v249_v21  ;;  %1262 = vmatprep.subr.bf16.mxu0 %v1383_v22 }
  0x45   :  { %1292 = vmatpush3.bf16.msra.mxu1 %v1382_v23  ;;  %1307 = vmatprep.mubr.msk.bf16.mxu1 %vm1434_vm0, %v1433_v24 }
  0x46   :  { %1293 = vmatprep.subr.bf16.mxu1 %v1433_v24 }
  0x47   :  { %1263 = vmatpush3.bf16.msra.mxu0 %v1384_v25 }
  0x48   :  { %1264 = vmatprep.subr.bf16.mxu0 %v1386_v26 }
  0x49   :  { %1294 = vmatpush3.bf16.msra.mxu1 %v1385_v27 }
  0x4a   :  { %1295 = vmatprep.subr.bf16.mxu1 %v1433_v24 }
  0x4b   :  { %1265 = vmatpush3.bf16.msra.mxu0 %v1387_v28 }
  0x4c   :  { %1266 = vmatprep.subr.bf16.mxu0 %v1389_v29 }
  0x4d   :  { %1296 = vmatpush3.bf16.msra.mxu1 %v1388_v30 }
  0x4e   :  { %8 = vsyncpa [#allocation3], 0  ;;  %1297 = vmatprep.subr.bf16.mxu1 %v1433_v24  ;;  %v1393_v36 = vld [vmem:[%s1760_s1 + $0x220] sm:$0xff]   ;;  %v273_v37 = vrot.slane %v259_v35, %v1561_v41  ;;  %v1395_v38 = vld [vmem:[%s1760_s1 + $0x268] sm:$0xff]   ;;  %v266_v48 = vrot.slane %v1083_v34, %v1561_v41  ;;  %vm1054_vm1 = vcmask 74752  }
  0x4f   :  { %1267 = vmatpush3.bf16.msra.mxu0 %v1390_v31  ;;  %v1394_v39 = vld [vmem:[%s1760_s1 + $0x2a0] sm:$0xff]   ;;  %v1396_v40 = vld [vmem:[%s1760_s1 + $0x228] sm:$0xff]   ;;  %v1398_v42 = vld [vmem:[%s1760_s1 + $0x270] sm:$0xff]  }
  0x50   :  { %1268 = vmatprep.subr.bf16.mxu0 %v1392_v33  ;;  %1006 = vmatprep.mubr.bf16.mxu0 %v273_v37  ;;  %v1397_v43 = vld [vmem:[%s1760_s1 + $0x2a8] sm:$0xff]   ;;  %v1399_v44 = vld [vmem:[%s1760_s1 + $0x230] sm:$0xff]   ;;  %v1401_v45 = vld [vmem:[%s1760_s1 + $0x278] sm:$0xff]   ;;  %v274_v50 = vcombine.high %v266_v48, %v266_v48 }
  0x51   :  { %1298 = vmatpush3.bf16.msra.mxu1 %v1391_v32  ;;  %v1400_v46 = vld [vmem:[%s1760_s1 + $0x2b0] sm:$0xff]   ;;  %v1402_v47 = vld [vmem:[%s1760_s1 + $0x238] sm:$0xff]   ;;  %v1082_v52 = vld [vmem:[%s1761_s2] ss:$0 sm:$0xff] }
  0x52   :  { %1299 = vmatprep.subr.bf16.mxu1 %v1433_v24  ;;  %v1403_v49 = vld [vmem:[%s1760_s1 + $0x2b8] sm:$0xff]   ;;  %s1435_s1 = smov [#allocation2]  }
  0x53   :  { %1269 = vmatpush3.bf16.msra.mxu0 %v1393_v36  ;;  %s1074_s2 = sshll.u32 %s1435_s1, 4  ;;  %s1075_s2 = int_to_ptr.vmem [resolvable:$true] %s1074_s2 }
  0x54   :  { %1270 = vmatprep.subr.bf16.mxu0 %v1395_v38  ;;  %s1408_s4 = scalar_lea.vmem %s1075_s2, 32  ;;  %p1413_p1 = scmp.lt.s32.totalorder %s1075_s2, %s1075_s2 }
  0x55   :  { %1300 = vmatpush3.bf16.msra.mxu1 %v1394_v39  ;;  %p1409_p0 = scmp.ne.s32.totalorder %s1075_s2, %s1408_s4  ;;  %p1414_p2 = scmp.lt.s32.totalorder %s1408_s4, %s1408_s4 }
  0x56   :  { %1301 = vmatprep.subr.bf16.mxu1 %v1433_v24 }
  0x57   :  { %1271 = vmatpush3.bf16.msra.mxu0 %v1396_v40  ;;  %p1415_p3 = por %p1414_p2, %p1413_p1 }
  0x58   :  { %1272 = vmatprep.subr.bf16.mxu0 %v1398_v42 }
  0x59   :  { %1302 = vmatpush3.bf16.msra.mxu1 %v1397_v43  ;;  %p1416_p4 = pnand %p1415_p3, %p1409_p0 }
  0x5a   :  { %1303 = vmatprep.subr.bf16.mxu1 %v1433_v24 }
  0x5b   :  { %1273 = vmatpush3.bf16.msra.mxu0 %v1399_v44 }
  0x5c   :  { %1274 = vmatprep.subr.bf16.mxu0 %v1401_v45 }
  0x5d   :  { %1304 = vmatpush3.bf16.msra.mxu1 %v1400_v46 }
  0x5e   :  { %1305 = vmatprep.subr.bf16.mxu1 %v1433_v24 }
  0x5f   :  { %1275 = vmatpush3.bf16.msra.mxu0 %v1402_v47 }
  0x61   :  { %1306 = vmatpush3.bf16.msra.mxu1 %v1403_v49 }
  0x62   :  { %1007 = vmatmul.mubr.bf16.vlgmr.msra.gmra.mrb[8].mxu0 %v266_v48 }
  0x64   :  { %1308 = vmatmul.mubr.bf16.vlgmr.msra.gmra.mrb[8].mxu1 %v274_v50 }
  0xf5   :  { %v1188_v51 = vpop.f32.mrb[0].mxu0 }
  0xf6   :  { %v1189_v53 = vpop.f32.mrb[1].mxu0 }
  0xf7   :  { %v1190_v54 = vadd.f32 %v1189_v53, %v1188_v51  ;;  %v1191_v55 = vpop.f32.mrb[2].mxu0  ;;  %v1210_v41 = vpop.f32.mrb[0].mxu1 }
  0xf8   :  { %v1192_v56 = vpop.f32.mrb[3].mxu0  ;;  %v1211_v57 = vpop.f32.mrb[1].mxu1 }
  0xf9   :  { %v849_v58 = vadd.f32 %v1190_v54, %v1082_v52  ;;  %v1212_v59 = vadd.f32 %v1211_v57, %v1210_v41  ;;  %v1213_v60 = vpop.f32.mrb[2].mxu1 }
  0xfa   :  { %v1214_v61 = vpop.f32.mrb[3].mxu1 }
  0xfb   :  { %v889_v62 = vadd.f32 %v1212_v59, %v849_v58 }
 0x115   :  { %v1232_v63 = vpop.f32.mrb[4].mxu0 }
 0x116   :  { %v1233_v0 = vpop.f32.mrb[5].mxu0 }
 0x117   :  { %v1234_v1 = vadd.f32 %v1233_v0, %v1232_v63  ;;  %v1235_v2 = vpop.f32.mrb[6].mxu0  ;;  %v1254_v3 = vpop.f32.mrb[4].mxu1 }
 0x118   :  { %v1236_v4 = vpop.f32.mrb[7].mxu0  ;;  %v1255_v5 = vpop.f32.mrb[5].mxu1 }
 0x119   :  { %v929_v6 = vadd.f32 %v1234_v1, %v889_v62  ;;  %v1256_v7 = vadd.f32 %v1255_v5, %v1254_v3  ;;  %v1257_v8 = vpop.f32.mrb[6].mxu1 }
 0x11a   :  { %v1258_v9 = vpop.f32.mrb[7].mxu1 }
 0x11b   :  { %v969_v10 = vadd.f32 %v1256_v7, %v929_v6 }
 0x135   :  { %v1276_v11 = vpop.f32.mrb[8].mxu0 }
 0x136   :  { %v1277_v12 = vpop.f32.mrb[9].mxu0 }
 0x137   :  { %v1278_v13 = vadd.f32 %v1277_v12, %v1276_v11  ;;  %v1279_v14 = vpop.f32.mrb[10].mxu0  ;;  %v1048_v15 = vpop.f32.mrb[8].mxu1 }
 0x138   :  { %v1280_v16 = vpop.f32.mrb[11].mxu0  ;;  %v1309_v17 = vpop.f32.mrb[9].mxu1 }
 0x139   :  { %v1009_v18 = vadd.f32 %v1278_v13, %v969_v10  ;;  %v1051_v19 = vpop.f32.mrb[10].mxu1 }
 0x13a   :  { %v1310_v20 = vpop.f32.mrb[11].mxu1 }
 0x13b   :  { %v1049_v21 = vadd.f32 %v1048_v15, %v1009_v18 }
 0x13d   :  { %v1055_v22 = vsel %vm1054_vm1, %v1049_v21, -inf }
 0x13e   :  { %1056 = vmax.xlane.f32.xlu0 %v1055_v22 }
 0x1cb   :  { %v1057_v23 = vpop.xlane.xlu0 %1056 }
 0x1cc   :  { %v1058_v24 = vsub.f32 %v1049_v21, %v1057_v23 }
 0x1ce   :  { %v1059_v25 = vmul.f32 1.442695, %v1058_v24 }
 0x1d0   :  { %1404 = vpow2.f32 %v1059_v25 }
 0x1da   :  { %v1405_v26 = vpop.eup %1404 }
 0x1db   :  { %v1061_v27 = vsel %vm1054_vm1, %v1405_v26, 0.0 }
 0x1dc   :  { %1062 = vadd.xlane.f32.xlu0 %v1061_v27 }
 0x269   :  { %v1063_v28 = vpop.xlane.xlu0 %1062 }
 0x26a   :  { %1406 = vlog2.f32 %v1063_v28 }
 0x274   :  { %v1407_v29 = vpop.eup %1406 }
 0x275   :  { %v1065_v30 = vmul.f32 0.6931472, %v1407_v29 }
 0x277   :  { %v1066_v31 = vsub.f32 %v1058_v24, %v1065_v30 }
 0x279   :  { %1067 = vst.msk [vmem:[#allocation2] sm:$0x3] %vm1054_vm1, %v1066_v31 }
 0x27a   :  { %1419 = shalt.err (!%p1416_p4)
}
 0x27b   :  { %s1420_s7 = scalar_lea.hbm %s1762_s3, 32 }
 0x27c   :  { %p1421_p5 = scmp.ne.s32.totalorder %s1762_s3, %s1420_s7  ;;  %p1424_p6 = scmp.lt.u32.totalorder %s1420_s7, %s1762_s3 }
 0x27e   :  { %p1426_p7 = pnand %p1424_p6, %p1421_p5 }
 0x280   :  { %1429 = shalt.err (!%p1426_p7)
}
 0x281   :  { %1077 = dma.vmem_to_hbm [thread:$0]  %s1075_s2, 32, %s1762_s3, [#allocation3]  }
 0x282   :  { %1430 = dma.done.wait [#allocation3], 32  }
 0x283   :  { %1431 = vsyncadd [#allocation3], 4294967264 }
 0x284   :  { %1081 = vsyncpa [#allocation3], 1 }

</bundles_post_ra>
